<compile_context>
chip_gen: v7x
topology: tpu7x:2x2x1
jax: 0.10.0
libtpu: 0.0.40
codegen_flags: <defaults>
</compile_context>

<pallas_src>
import functools

import jax
import jax.numpy as jnp
import numpy as np
from jax.experimental import pallas as pl
from jax.experimental.pallas import tpu as pltpu


def _round_up(x, m):
    return (x + m - 1) // m * m


# Model geometry fixed by the PyTorch module: 13 planes on an 8x8 board.
H = W = 8
C_IN = 13
C_IN_PAD = 16            # pad conv1 input channels so the lane dim is W*16 = 128
C1 = 64
C2 = 64
C3 = 128
FC1_OUT = 512
VMEM_LIMIT = 32 * 1024 * 1024   # explicit budget; fits v5e/v6e (128 MiB) and v7x (64 MiB)


# ---------------------------------------------------------------------------
# Kernel A: fused conv1/conv2/conv3 (3x3, stride 1, pad 1) + ReLU, all on the MXU
# ---------------------------------------------------------------------------
def _conv_stack_kernel(s_ref, x_ref, g1_ref, b1_ref, g2_ref, b2_ref, g3_ref, b3_ref,
                       out_ref):
    # s_ref[0] @ A picks activation row y-1 (exact zeros at y==0, block-diag per image);
    # s_ref[1] @ A picks activation row y+1 (exact zeros at y==H-1).
    s_m = s_ref[0]
    s_p = s_ref[1]

    def conv3x3_relu(a, g_ref, b_ref):
        # a: (R, W*Cin) bf16.  Lifted conv:  out = sum_ky (shift_{ky-1} @ a) @ G[ky]
        # where G[ky] is banded over x and dense over channels (built on the host).
        a_m = jnp.dot(s_m, a, preferred_element_type=jnp.float32).astype(jnp.bfloat16)
        a_p = jnp.dot(s_p, a, preferred_element_type=jnp.float32).astype(jnp.bfloat16)
        acc = jnp.dot(a_m, g_ref[0], preferred_element_type=jnp.float32)
        acc = acc + jnp.dot(a, g_ref[1], preferred_element_type=jnp.float32)
        acc = acc + jnp.dot(a_p, g_ref[2], preferred_element_type=jnp.float32)
        return jnp.maximum(acc + b_ref[...], 0.0).astype(jnp.bfloat16)

    a1 = conv3x3_relu(x_ref[...], g1_ref, b1_ref)    # (R, W*C1)
    a2 = conv3x3_relu(a1, g2_ref, b2_ref)            # (R, W*C2)
    a3 = conv3x3_relu(a2, g3_ref, b3_ref)            # (R, W*C3)
    out_ref[...] = a3                                # bf16, row = b*H + y, col = x*C3 + c


def conv_stack(a0, shifts, p, *, bt):
    rows = a0.shape[0]                               # B_pad * H
    r = bt * H
    nb = rows // r
    return pl.pallas_call(
        _conv_stack_kernel,
        out_shape=jax.ShapeDtypeStruct((rows, W * C3), jnp.bfloat16),
        grid_spec=pltpu.PrefetchScalarGridSpec(
            num_scalar_prefetch=0,
            grid=(nb,),
            in_specs=[
                pl.BlockSpec((2, r, r), lambda i: (0, 0, 0)),
                pl.BlockSpec((r, W * C_IN_PAD), lambda i: (i, 0)),
                pl.BlockSpec((3, W * C_IN_PAD, W * C1), lambda i: (0, 0, 0)),
                pl.BlockSpec((1, W * C1), lambda i: (0, 0)),
                pl.BlockSpec((3, W * C1, W * C2), lambda i: (0, 0, 0)),
                pl.BlockSpec((1, W * C2), lambda i: (0, 0)),
                pl.BlockSpec((3, W * C2, W * C3), lambda i: (0, 0, 0)),
                pl.BlockSpec((1, W * C3), lambda i: (0, 0)),
            ],
            out_specs=pl.BlockSpec((r, W * C3), lambda i: (i, 0)),
        ),
        compiler_params=pltpu.CompilerParams(
            dimension_semantics=("parallel",),
            vmem_limit_bytes=VMEM_LIMIT,
        ),
    )(shifts, a0, p["g1"], p["b1"], p["g2"], p["b2"], p["g3"], p["b3"])


# ---------------------------------------------------------------------------
# Kernel B: fc1(+bias+ReLU) streamed over K in bf16, fc2(+bias) fused in epilogue,
#           fc1's N split in two halves on a leading "parallel" axis (v7x megacore)
# ---------------------------------------------------------------------------
def _fc_stack_kernel(act_ref, w1_ref, b1_ref, w2_ref, b2_ref, out_ref, acc_ref, *, nk):
    j = pl.program_id(0)          # fc1 output-column half (parallel axis)
    k = pl.program_id(1)          # fc1 K block (reduction axis)

    @pl.when(k == 0)
    def _():
        acc_ref[...] = jnp.zeros_like(acc_ref)

    # bf16 MXU inputs (activation already bf16 from Kernel A), f32 accumulation.
    acc_ref[...] += jnp.dot(act_ref[...], w1_ref[...],
                            preferred_element_type=jnp.float32)

    @pl.when(k == nk - 1)
    def _():
        h1 = jnp.maximum(acc_ref[...] + b1_ref[...], 0.0)          # fc1 epilogue (f32)
        part = jnp.dot(h1, w2_ref[...], preferred_element_type=jnp.float32)
        part = part + b2_ref[...] * (j == 0).astype(jnp.float32)   # add fc2 bias once
        out_ref[...] = part.astype(out_ref.dtype)                  # partial fc2 output


def fc_stack(act, p, *, tk=4096, n_split=2):
    b, k_total = act.shape
    n1 = p["fc1_w"].shape[1]
    n2 = p["fc2_w"].shape[1]
    assert k_total % tk == 0 and n1 % n_split == 0
    nk = k_total // tk
    nh = n1 // n_split
    return pl.pallas_call(
        functools.partial(_fc_stack_kernel, nk=nk),
        out_shape=jax.ShapeDtypeStruct((n_split, b, n2), jnp.float32),
        grid_spec=pltpu.PrefetchScalarGridSpec(
            num_scalar_prefetch=0,
            grid=(n_split, nk),
            in_specs=[
                pl.BlockSpec((b, tk), lambda j, k: (0, k)),
                pl.BlockSpec((tk, nh), lambda j, k: (k, j)),
                pl.BlockSpec((1, nh), lambda j, k: (0, j)),
                pl.BlockSpec((nh, n2), lambda j, k: (j, 0)),
                pl.BlockSpec((1, n2), lambda j, k: (0, 0)),
            ],
            out_specs=pl.BlockSpec((None, b, n2), lambda j, k: (j, 0, 0)),
            scratch_shapes=[pltpu.VMEM((b, nh), jnp.float32)],
        ),
        compiler_params=pltpu.CompilerParams(
            dimension_semantics=("parallel", "arbitrary"),
            vmem_limit_bytes=VMEM_LIMIT,
        ),
    )(act, p["fc1_w"], p["fc1_b"], p["fc2_w"], p["fc2_b"])


# ---------------------------------------------------------------------------
# Parameters (PyTorch layout) and one-time kernel-friendly conversion
# ---------------------------------------------------------------------------
def init_params(key, num_classes):
    ks = jax.random.split(key, 10)

    def init(k, shape, fan_in):
        return (jax.random.normal(k, shape, jnp.float32) /
                jnp.sqrt(fan_in)).astype(jnp.float32)

    return {
        "conv1_w": init(ks[0], (C1, C_IN, 3, 3), C_IN * 9),
        "conv1_b": init(ks[1], (C1,), C_IN * 9),
        "conv2_w": init(ks[2], (C2, C1, 3, 3), C1 * 9),
        "conv2_b": init(ks[3], (C2,), C1 * 9),
        "conv3_w": init(ks[4], (C3, C2, 3, 3), C2 * 9),
        "conv3_b": init(ks[5], (C3,), C2 * 9),
        "fc1_w": init(ks[6], (FC1_OUT, H * W * C3), H * W * C3),
        "fc1_b": init(ks[7], (FC1_OUT,), H * W * C3),
        "fc2_w": init(ks[8], (num_classes, FC1_OUT), FC1_OUT),
        "fc2_b": init(ks[9], (num_classes,), FC1_OUT),
    }


def prepare_params(params):
    """One-time conversion outside the forward path: lift conv weights into banded
    (W*Cin, W*Cout) matrices, tile biases, reorder fc1's K, bf16-cast, pad fc2."""

    def lift_conv(w, cin_pad):
        # w: (Cout, Cin, 3, 3) torch OIHW ->
        # G: (3, W*cin_pad, W*Cout) bf16 with
        #    G[ky, x'*cin_pad + ci, x*Cout + co] = w[co, ci, ky, (x'-x)+1] for |x'-x|<=1.
        w = np.asarray(w, np.float32)
        cout, cin = w.shape[0], w.shape[1]
        g = np.zeros((3, W * cin_pad, W * cout), np.float32)
        for ky in range(3):
            for kx in range(3):
                blk = w[:, :, ky, kx].T                       # (Cin, Cout)
                dx = kx - 1
                for x in range(W):
                    xs = x + dx                               # source column x' = x + dx
                    if 0 <= xs < W:
                        g[ky, xs * cin_pad:xs * cin_pad + cin,
                          x * cout:(x + 1) * cout] = blk
        return jnp.asarray(g, jnp.bfloat16)

    def bias_row(b):
        # column index in the lifted layout is x*Cout + co -> tile bias W times
        return jnp.tile(b, W).reshape(1, -1).astype(jnp.float32)

    fc1_w = params["fc1_w"]                       # (512, C3*H*W), torch NCHW-flatten order
    n1 = fc1_w.shape[0]
    # reorder K from (c, y, x) to (y, x, c) so Kernel A's flatten matches exactly
    fc1_wp = (fc1_w.reshape(n1, C3, H, W)
              .transpose(2, 3, 1, 0)
              .reshape(H * W * C3, n1)
              .astype(jnp.bfloat16))              # bf16 halves the dominant HBM read

    fc2_w = params["fc2_w"]                       # (num_classes, 512)
    nc = fc2_w.shape[0]
    n2 = _round_up(nc, 128)                       # lane-dense output
    fc2_wp = jnp.pad(fc2_w.T, ((0, 0), (0, n2 - nc)))
    fc2_bp = jnp.pad(params["fc2_b"], (0, n2 - nc)).reshape(1, n2)

    return {
        "g1": lift_conv(params["conv1_w"], C_IN_PAD),
        "b1": bias_row(params["conv1_b"]),
        "g2": lift_conv(params["conv2_w"], C1),
        "b2": bias_row(params["conv2_b"]),
        "g3": lift_conv(params["conv3_w"], C2),
        "b3": bias_row(params["conv3_b"]),
        "fc1_w": fc1_wp,
        "fc1_b": params["fc1_b"].reshape(1, -1),
        "fc2_w": fc2_wp,
        "fc2_b": fc2_bp,
    }


def _shift_matrices(bt):
    """(2, bt*H, bt*H) bf16 block-diagonal y-shift matrices: [0] picks row y-1, [1] y+1.
    Boundary rows (and cross-image rows) are exactly zero, giving exact conv padding."""
    r = jnp.arange(bt * H)
    row = r[:, None]
    col = r[None, :]
    same_image = (row // H) == (col // H)
    s_minus = (col == row - 1) & same_image
    s_plus = (col == row + 1) & same_image
    return jnp.stack([s_minus, s_plus]).astype(jnp.bfloat16)


@functools.partial(jax.jit, static_argnames=("num_classes",))
def chess_cnn_forward(x_nchw, prep, num_classes):
    B, C, hh, ww = x_nchw.shape
    assert (C, hh, ww) == (C_IN, H, W)
    bt = 16 if B % 16 == 0 else 8                 # images folded into the matmul M dim
    b_pad = _round_up(B, bt)

    x = jnp.transpose(x_nchw, (0, 2, 3, 1))                                   # NHWC (tiny)
    x = jnp.pad(x, ((0, b_pad - B), (0, 0), (0, 0), (0, C_IN_PAD - C)))       # batch + lane pad
    a0 = x.reshape(b_pad * H, W * C_IN_PAD).astype(jnp.bfloat16)              # (b_pad*8, 128)

    shifts = _shift_matrices(bt)
    conv_out = conv_stack(a0, shifts, prep, bt=bt)                            # (b_pad*8, 1024) bf16
    act = conv_out.reshape(b_pad, H * W * C3)                                 # free bitcast, (y,x,c)

    parts = fc_stack(act, prep)                                               # (2, b_pad, n2_pad)
    logits = parts[0] + parts[1]                                              # combine fc1-N halves
    return logits[:B, :num_classes]


# ---------------------------------------------------------------------------
# Pure-JAX reference (f32, HIGHEST precision) for a loose correctness check
# ---------------------------------------------------------------------------
def reference_forward(x, params):
    hp = jax.lax.Precision.HIGHEST

    def conv(h, w, b):
        y = jax.lax.conv_general_dilated(
            h, w, window_strides=(1, 1), padding=((1, 1), (1, 1)),
            dimension_numbers=("NCHW", "OIHW", "NCHW"), precision=hp)
        return jax.nn.relu(y + b[None, :, None, None])

    h = conv(x, params["conv1_w"], params["conv1_b"])
    h = conv(h, params["conv2_w"], params["conv2_b"])
    h = conv(h, params["conv3_w"], params["conv3_b"])
    h = h.reshape(h.shape[0], -1)
    h = jax.nn.relu(jnp.dot(h, params["fc1_w"].T, precision=hp) + params["fc1_b"])
    return jnp.dot(h, params["fc2_w"].T, precision=hp) + params["fc2_b"]


if __name__ == "__main__":
    num_classes = 10
    key = jax.random.PRNGKey(0)
    k_x, k_p = jax.random.split(key)

    # Input matches the module: batch=2, 13 planes on an 8x8 board (NCHW).
    x = jax.random.normal(k_x, (2, C_IN, H, W), jnp.float32)
    params = init_params(k_p, num_classes)
    prep = prepare_params(params)            # one-time layout conversion (not per forward)

    out = chess_cnn_forward(x, prep, num_classes=num_classes)
    out = jax.block_until_ready(out)
    assert out.shape == (2, num_classes), out.shape

    # Loose tolerance: convs and fc1 run with bf16 MXU inputs / f32 accumulation.
    ref = reference_forward(x, params)
    err = float(jnp.max(jnp.abs(out - ref)))
    scale = float(jnp.max(jnp.abs(ref))) + 1.0
    assert err <= 5e-2 * scale, f"max abs err {err} vs scale {scale}"

    print("KERNEL_OK")
</pallas_src>

<mosaic_0001>
module attributes {stable_mosaic.version = 11 : i64} {
  func.func @_conv_stack_kernel(%arg0: i32, %arg1: memref<2x64x64xbf16, #tpu.memory_space<vmem>>, %arg2: memref<64x128xbf16, #tpu.memory_space<vmem>>, %arg3: memref<3x128x512xbf16, #tpu.memory_space<vmem>>, %arg4: memref<1x512xf32, #tpu.memory_space<vmem>>, %arg5: memref<3x512x512xbf16, #tpu.memory_space<vmem>>, %arg6: memref<1x512xf32, #tpu.memory_space<vmem>>, %arg7: memref<3x512x1024xbf16, #tpu.memory_space<vmem>>, %arg8: memref<1x1024xf32, #tpu.memory_space<vmem>>, %arg9: memref<64x1024xbf16, #tpu.memory_space<vmem>>) attributes {dimension_semantics = [#tpu.dimension_semantics<parallel>], iteration_bounds = array<i64: 1>, scalar_prefetch = 0 : i64, scratch_operands = 0 : i64, tpu.core_type = #tpu.core_type<tc>, window_params = [{pipeline_mode = #tpu.pipeline_mode<synchronous>, transform_indices = @transform_0, window_bounds = array<i64: 2, 64, 64>}, {transform_indices = @transform_1, window_bounds = array<i64: 64, 128>}, {pipeline_mode = #tpu.pipeline_mode<synchronous>, transform_indices = @transform_2, window_bounds = array<i64: 3, 128, 512>}, {pipeline_mode = #tpu.pipeline_mode<synchronous>, transform_indices = @transform_3, window_bounds = array<i64: 1, 512>}, {pipeline_mode = #tpu.pipeline_mode<synchronous>, transform_indices = @transform_4, window_bounds = array<i64: 3, 512, 512>}, {pipeline_mode = #tpu.pipeline_mode<synchronous>, transform_indices = @transform_5, window_bounds = array<i64: 1, 512>}, {pipeline_mode = #tpu.pipeline_mode<synchronous>, transform_indices = @transform_6, window_bounds = array<i64: 3, 512, 1024>}, {pipeline_mode = #tpu.pipeline_mode<synchronous>, transform_indices = @transform_7, window_bounds = array<i64: 1, 1024>}, {transform_indices = @transform_8, window_bounds = array<i64: 64, 1024>}]} {
    %c0 = arith.constant 0 : index
    %c0_0 = arith.constant 0 : index
    %c0_1 = arith.constant 0 : index
    %0 = vector.load %arg1[%c0, %c0_0, %c0_1] : memref<2x64x64xbf16, #tpu.memory_space<vmem>>, vector<1x64x64xbf16>
    %1 = vector.shape_cast %0 : vector<1x64x64xbf16> to vector<64x64xbf16>
    %c1 = arith.constant 1 : index
    %c0_2 = arith.constant 0 : index
    %c0_3 = arith.constant 0 : index
    %2 = vector.load %arg1[%c1, %c0_2, %c0_3] : memref<2x64x64xbf16, #tpu.memory_space<vmem>>, vector<1x64x64xbf16>
    %3 = vector.shape_cast %2 : vector<1x64x64xbf16> to vector<64x64xbf16>
    %c0_4 = arith.constant 0 : index
    %c0_5 = arith.constant 0 : index
    %4 = vector.load %arg2[%c0_4, %c0_5] : memref<64x128xbf16, #tpu.memory_space<vmem>>, vector<64x128xbf16>
    %cst = arith.constant dense<0.000000e+00> : vector<64x128xf32>
    %5 = tpu.matmul %1, %4, %cst {dimension_numbers = #tpu.dot_dimension_numbers<[1], [0], [0], [1], [0, 0, 1, 1], [], []>} : vector<64x64xbf16>, vector<64x128xbf16>, vector<64x128xf32> -> vector<64x128xf32>
    %6 = arith.truncf %5 : vector<64x128xf32> to vector<64x128xbf16>
    %cst_6 = arith.constant dense<0.000000e+00> : vector<64x128xf32>
    %7 = tpu.matmul %3, %4, %cst_6 {dimension_numbers = #tpu.dot_dimension_numbers<[1], [0], [0], [1], [0, 0, 1, 1], [], []>} : vector<64x64xbf16>, vector<64x128xbf16>, vector<64x128xf32> -> vector<64x128xf32>
    %8 = arith.truncf %7 : vector<64x128xf32> to vector<64x128xbf16>
    %c0_7 = arith.constant 0 : index
    %c0_8 = arith.constant 0 : index
    %c0_9 = arith.constant 0 : index
    %9 = vector.load %arg3[%c0_7, %c0_8, %c0_9] : memref<3x128x512xbf16, #tpu.memory_space<vmem>>, vector<1x128x512xbf16>
    %10 = vector.shape_cast %9 : vector<1x128x512xbf16> to vector<128x512xbf16>
    %cst_10 = arith.constant dense<0.000000e+00> : vector<64x512xf32>
    %11 = tpu.matmul %6, %10, %cst_10 {dimension_numbers = #tpu.dot_dimension_numbers<[1], [0], [0], [1], [0, 0, 1, 1], [], []>} : vector<64x128xbf16>, vector<128x512xbf16>, vector<64x512xf32> -> vector<64x512xf32>
    %c1_11 = arith.constant 1 : index
    %c0_12 = arith.constant 0 : index
    %c0_13 = arith.constant 0 : index
    %12 = vector.load %arg3[%c1_11, %c0_12, %c0_13] : memref<3x128x512xbf16, #tpu.memory_space<vmem>>, vector<1x128x512xbf16>
    %13 = vector.shape_cast %12 : vector<1x128x512xbf16> to vector<128x512xbf16>
    %cst_14 = arith.constant dense<0.000000e+00> : vector<64x512xf32>
    %14 = tpu.matmul %4, %13, %cst_14 {dimension_numbers = #tpu.dot_dimension_numbers<[1], [0], [0], [1], [0, 0, 1, 1], [], []>} : vector<64x128xbf16>, vector<128x512xbf16>, vector<64x512xf32> -> vector<64x512xf32>
    %15 = arith.addf %11, %14 : vector<64x512xf32>
    %c2 = arith.constant 2 : index
    %c0_15 = arith.constant 0 : index
    %c0_16 = arith.constant 0 : index
    %16 = vector.load %arg3[%c2, %c0_15, %c0_16] : memref<3x128x512xbf16, #tpu.memory_space<vmem>>, vector<1x128x512xbf16>
    %17 = vector.shape_cast %16 : vector<1x128x512xbf16> to vector<128x512xbf16>
    %cst_17 = arith.constant dense<0.000000e+00> : vector<64x512xf32>
    %18 = tpu.matmul %8, %17, %cst_17 {dimension_numbers = #tpu.dot_dimension_numbers<[1], [0], [0], [1], [0, 0, 1, 1], [], []>} : vector<64x128xbf16>, vector<128x512xbf16>, vector<64x512xf32> -> vector<64x512xf32>
    %19 = arith.addf %15, %18 : vector<64x512xf32>
    %c0_18 = arith.constant 0 : index
    %c0_19 = arith.constant 0 : index
    %20 = vector.load %arg4[%c0_18, %c0_19] : memref<1x512xf32, #tpu.memory_space<vmem>>, vector<1x512xf32>
    %21 = vector.broadcast %20 : vector<1x512xf32> to vector<64x512xf32>
    %22 = arith.addf %19, %21 : vector<64x512xf32>
    %cst_20 = arith.constant 0.000000e+00 : f32
    %23 = vector.broadcast %cst_20 : f32 to vector<64x512xf32>
    %24 = arith.maximumf %22, %23 : vector<64x512xf32>
    %25 = arith.truncf %24 : vector<64x512xf32> to vector<64x512xbf16>
    %cst_21 = arith.constant dense<0.000000e+00> : vector<64x512xf32>
    %26 = tpu.matmul %1, %25, %cst_21 {dimension_numbers = #tpu.dot_dimension_numbers<[1], [0], [0], [1], [0, 0, 1, 1], [], []>} : vector<64x64xbf16>, vector<64x512xbf16>, vector<64x512xf32> -> vector<64x512xf32>
    %27 = arith.truncf %26 : vector<64x512xf32> to vector<64x512xbf16>
    %cst_22 = arith.constant dense<0.000000e+00> : vector<64x512xf32>
    %28 = tpu.matmul %3, %25, %cst_22 {dimension_numbers = #tpu.dot_dimension_numbers<[1], [0], [0], [1], [0, 0, 1, 1], [], []>} : vector<64x64xbf16>, vector<64x512xbf16>, vector<64x512xf32> -> vector<64x512xf32>
    %29 = arith.truncf %28 : vector<64x512xf32> to vector<64x512xbf16>
    %c0_23 = arith.constant 0 : index
    %c0_24 = arith.constant 0 : index
    %c0_25 = arith.constant 0 : index
    %30 = vector.load %arg5[%c0_23, %c0_24, %c0_25] : memref<3x512x512xbf16, #tpu.memory_space<vmem>>, vector<1x512x512xbf16>
    %31 = vector.shape_cast %30 : vector<1x512x512xbf16> to vector<512x512xbf16>
    %cst_26 = arith.constant dense<0.000000e+00> : vector<64x512xf32>
    %32 = tpu.matmul %27, %31, %cst_26 {dimension_numbers = #tpu.dot_dimension_numbers<[1], [0], [0], [1], [0, 0, 1, 1], [], []>} : vector<64x512xbf16>, vector<512x512xbf16>, vector<64x512xf32> -> vector<64x512xf32>
    %c1_27 = arith.constant 1 : index
    %c0_28 = arith.constant 0 : index
    %c0_29 = arith.constant 0 : index
    %33 = vector.load %arg5[%c1_27, %c0_28, %c0_29] : memref<3x512x512xbf16, #tpu.memory_space<vmem>>, vector<1x512x512xbf16>
    %34 = vector.shape_cast %33 : vector<1x512x512xbf16> to vector<512x512xbf16>
    %cst_30 = arith.constant dense<0.000000e+00> : vector<64x512xf32>
    %35 = tpu.matmul %25, %34, %cst_30 {dimension_numbers = #tpu.dot_dimension_numbers<[1], [0], [0], [1], [0, 0, 1, 1], [], []>} : vector<64x512xbf16>, vector<512x512xbf16>, vector<64x512xf32> -> vector<64x512xf32>
    %36 = arith.addf %32, %35 : vector<64x512xf32>
    %c2_31 = arith.constant 2 : index
    %c0_32 = arith.constant 0 : index
    %c0_33 = arith.constant 0 : index
    %37 = vector.load %arg5[%c2_31, %c0_32, %c0_33] : memref<3x512x512xbf16, #tpu.memory_space<vmem>>, vector<1x512x512xbf16>
    %38 = vector.shape_cast %37 : vector<1x512x512xbf16> to vector<512x512xbf16>
    %cst_34 = arith.constant dense<0.000000e+00> : vector<64x512xf32>
    %39 = tpu.matmul %29, %38, %cst_34 {dimension_numbers = #tpu.dot_dimension_numbers<[1], [0], [0], [1], [0, 0, 1, 1], [], []>} : vector<64x512xbf16>, vector<512x512xbf16>, vector<64x512xf32> -> vector<64x512xf32>
    %40 = arith.addf %36, %39 : vector<64x512xf32>
    %c0_35 = arith.constant 0 : index
    %c0_36 = arith.constant 0 : index
    %41 = vector.load %arg6[%c0_35, %c0_36] : memref<1x512xf32, #tpu.memory_space<vmem>>, vector<1x512xf32>
    %42 = vector.broadcast %41 : vector<1x512xf32> to vector<64x512xf32>
    %43 = arith.addf %40, %42 : vector<64x512xf32>
    %cst_37 = arith.constant 0.000000e+00 : f32
    %44 = vector.broadcast %cst_37 : f32 to vector<64x512xf32>
    %45 = arith.maximumf %43, %44 : vector<64x512xf32>
    %46 = arith.truncf %45 : vector<64x512xf32> to vector<64x512xbf16>
    %cst_38 = arith.constant dense<0.000000e+00> : vector<64x512xf32>
    %47 = tpu.matmul %1, %46, %cst_38 {dimension_numbers = #tpu.dot_dimension_numbers<[1], [0], [0], [1], [0, 0, 1, 1], [], []>} : vector<64x64xbf16>, vector<64x512xbf16>, vector<64x512xf32> -> vector<64x512xf32>
    %48 = arith.truncf %47 : vector<64x512xf32> to vector<64x512xbf16>
    %cst_39 = arith.constant dense<0.000000e+00> : vector<64x512xf32>
    %49 = tpu.matmul %3, %46, %cst_39 {dimension_numbers = #tpu.dot_dimension_numbers<[1], [0], [0], [1], [0, 0, 1, 1], [], []>} : vector<64x64xbf16>, vector<64x512xbf16>, vector<64x512xf32> -> vector<64x512xf32>
    %50 = arith.truncf %49 : vector<64x512xf32> to vector<64x512xbf16>
    %c0_40 = arith.constant 0 : index
    %c0_41 = arith.constant 0 : index
    %c0_42 = arith.constant 0 : index
    %51 = vector.load %arg7[%c0_40, %c0_41, %c0_42] : memref<3x512x1024xbf16, #tpu.memory_space<vmem>>, vector<1x512x1024xbf16>
    %52 = vector.shape_cast %51 : vector<1x512x1024xbf16> to vector<512x1024xbf16>
    %cst_43 = arith.constant dense<0.000000e+00> : vector<64x1024xf32>
    %53 = tpu.matmul %48, %52, %cst_43 {dimension_numbers = #tpu.dot_dimension_numbers<[1], [0], [0], [1], [0, 0, 1, 1], [], []>} : vector<64x512xbf16>, vector<512x1024xbf16>, vector<64x1024xf32> -> vector<64x1024xf32>
    %c1_44 = arith.constant 1 : index
    %c0_45 = arith.constant 0 : index
    %c0_46 = arith.constant 0 : index
    %54 = vector.load %arg7[%c1_44, %c0_45, %c0_46] : memref<3x512x1024xbf16, #tpu.memory_space<vmem>>, vector<1x512x1024xbf16>
    %55 = vector.shape_cast %54 : vector<1x512x1024xbf16> to vector<512x1024xbf16>
    %cst_47 = arith.constant dense<0.000000e+00> : vector<64x1024xf32>
    %56 = tpu.matmul %46, %55, %cst_47 {dimension_numbers = #tpu.dot_dimension_numbers<[1], [0], [0], [1], [0, 0, 1, 1], [], []>} : vector<64x512xbf16>, vector<512x1024xbf16>, vector<64x1024xf32> -> vector<64x1024xf32>
    %57 = arith.addf %53, %56 : vector<64x1024xf32>
    %c2_48 = arith.constant 2 : index
    %c0_49 = arith.constant 0 : index
    %c0_50 = arith.constant 0 : index
    %58 = vector.load %arg7[%c2_48, %c0_49, %c0_50] : memref<3x512x1024xbf16, #tpu.memory_space<vmem>>, vector<1x512x1024xbf16>
    %59 = vector.shape_cast %58 : vector<1x512x1024xbf16> to vector<512x1024xbf16>
    %cst_51 = arith.constant dense<0.000000e+00> : vector<64x1024xf32>
    %60 = tpu.matmul %50, %59, %cst_51 {dimension_numbers = #tpu.dot_dimension_numbers<[1], [0], [0], [1], [0, 0, 1, 1], [], []>} : vector<64x512xbf16>, vector<512x1024xbf16>, vector<64x1024xf32> -> vector<64x1024xf32>
    %61 = arith.addf %57, %60 : vector<64x1024xf32>
    %c0_52 = arith.constant 0 : index
    %c0_53 = arith.constant 0 : index
    %62 = vector.load %arg8[%c0_52, %c0_53] : memref<1x1024xf32, #tpu.memory_space<vmem>>, vector<1x1024xf32>
    %63 = vector.broadcast %62 : vector<1x1024xf32> to vector<64x1024xf32>
    %64 = arith.addf %61, %63 : vector<64x1024xf32>
    %cst_54 = arith.constant 0.000000e+00 : f32
    %65 = vector.broadcast %cst_54 : f32 to vector<64x1024xf32>
    %66 = arith.maximumf %64, %65 : vector<64x1024xf32>
    %67 = arith.truncf %66 : vector<64x1024xf32> to vector<64x1024xbf16>
    %c0_55 = arith.constant 0 : index
    %c0_56 = arith.constant 0 : index
    %68 = vector.load %arg9[%c0_55, %c0_56] : memref<64x1024xbf16, #tpu.memory_space<vmem>>, vector<64x1024xbf16>
    tpu.vector_store %arg9[%c0_55, %c0_56], %67 {strides = array<i32>} : memref<64x1024xbf16, #tpu.memory_space<vmem>>, vector<64x1024xbf16>,
    return
  }
  func.func @transform_0(%arg0: i32) -> (i32, i32, i32) {
    %c0_i32 = arith.constant 0 : i32
    %c0_i32_0 = arith.constant 0 : i32
    %c0_i32_1 = arith.constant 0 : i32
    %c0_i32_2 = arith.constant 0 : i32
    return %c0_i32, %c0_i32_0, %c0_i32_1 : i32, i32, i32
  }
  func.func @transform_1(%arg0: i32) -> (i32, i32) {
    %c0_i32 = arith.constant 0 : i32
    %c0_i32_0 = arith.constant 0 : i32
    return %arg0, %c0_i32 : i32, i32
  }
  func.func @transform_2(%arg0: i32) -> (i32, i32, i32) {
    %c0_i32 = arith.constant 0 : i32
    %c0_i32_0 = arith.constant 0 : i32
    %c0_i32_1 = arith.constant 0 : i32
    %c0_i32_2 = arith.constant 0 : i32
    return %c0_i32, %c0_i32_0, %c0_i32_1 : i32, i32, i32
  }
  func.func @transform_3(%arg0: i32) -> (i32, i32) {
    %c0_i32 = arith.constant 0 : i32
    %c0_i32_0 = arith.constant 0 : i32
    %c0_i32_1 = arith.constant 0 : i32
    return %c0_i32, %c0_i32_0 : i32, i32
  }
  func.func @transform_4(%arg0: i32) -> (i32, i32, i32) {
    %c0_i32 = arith.constant 0 : i32
    %c0_i32_0 = arith.constant 0 : i32
    %c0_i32_1 = arith.constant 0 : i32
    %c0_i32_2 = arith.constant 0 : i32
    return %c0_i32, %c0_i32_0, %c0_i32_1 : i32, i32, i32
  }
  func.func @transform_5(%arg0: i32) -> (i32, i32) {
    %c0_i32 = arith.constant 0 : i32
    %c0_i32_0 = arith.constant 0 : i32
    %c0_i32_1 = arith.constant 0 : i32
    return %c0_i32, %c0_i32_0 : i32, i32
  }
  func.func @transform_6(%arg0: i32) -> (i32, i32, i32) {
    %c0_i32 = arith.constant 0 : i32
    %c0_i32_0 = arith.constant 0 : i32
    %c0_i32_1 = arith.constant 0 : i32
    %c0_i32_2 = arith.constant 0 : i32
    return %c0_i32, %c0_i32_0, %c0_i32_1 : i32, i32, i32
  }
  func.func @transform_7(%arg0: i32) -> (i32, i32) {
    %c0_i32 = arith.constant 0 : i32
    %c0_i32_0 = arith.constant 0 : i32
    %c0_i32_1 = arith.constant 0 : i32
    return %c0_i32, %c0_i32_0 : i32, i32
  }
  func.func @transform_8(%arg0: i32) -> (i32, i32) {
    %c0_i32 = arith.constant 0 : i32
    %c0_i32_0 = arith.constant 0 : i32
    return %arg0, %c0_i32 : i32, i32
  }
}

module attributes {stable_mosaic.version = 11 : i64} {
  func.func @_fc_stack_kernel(%arg0: i32, %arg1: i32, %arg2: memref<8x4096xbf16, #tpu.memory_space<vmem>>, %arg3: memref<4096x256xbf16, #tpu.memory_space<vmem>>, %arg4: memref<1x256xf32, #tpu.memory_space<vmem>>, %arg5: memref<256x128xf32, #tpu.memory_space<vmem>>, %arg6: memref<1x128xf32, #tpu.memory_space<vmem>>, %arg7: memref<1x8x128xf32, #tpu.memory_space<vmem>>, %arg8: memref<8x256xf32, #tpu.memory_space<vmem>>) attributes {dimension_semantics = [#tpu.dimension_semantics<parallel>, #tpu.dimension_semantics<arbitrary>], iteration_bounds = array<i64: 2, 2>, scalar_prefetch = 0 : i64, scratch_operands = 1 : i64, tpu.core_type = #tpu.core_type<tc>, window_params = [{transform_indices = @transform_0, window_bounds = array<i64: 8, 4096>}, {transform_indices = @transform_1, window_bounds = array<i64: 4096, 256>}, {transform_indices = @transform_2, window_bounds = array<i64: 1, 256>}, {transform_indices = @transform_3, window_bounds = array<i64: 256, 128>}, {pipeline_mode = #tpu.pipeline_mode<synchronous>, transform_indices = @transform_4, window_bounds = array<i64: 1, 128>}, {transform_indices = @transform_5, window_bounds = array<i64: 1, 8, 128>}]} {
    %c0_i32 = arith.constant 0 : i32
    %0 = arith.cmpi eq, %arg1, %c0_i32 : i32
    %1 = arith.extui %0 : i1 to i32
    %c0_i32_0 = arith.constant 0 : i32
    %2 = arith.cmpi ne, %1, %c0_i32_0 : i32
    scf.if %2 {
      %cst_9 = arith.constant 0.000000e+00 : f32
      %12 = vector.broadcast %cst_9 : f32 to vector<8x256xf32>
      %c0_10 = arith.constant 0 : index
      %c0_11 = arith.constant 0 : index
      %13 = vector.load %arg8[%c0_10, %c0_11] : memref<8x256xf32, #tpu.memory_space<vmem>>, vector<8x256xf32>
      tpu.vector_store %arg8[%c0_10, %c0_11], %12 {strides = array<i32>} : memref<8x256xf32, #tpu.memory_space<vmem>>, vector<8x256xf32>,
    } else {
    }
    %c0 = arith.constant 0 : index
    %c0_1 = arith.constant 0 : index
    %3 = vector.load %arg8[%c0, %c0_1] : memref<8x256xf32, #tpu.memory_space<vmem>>, vector<8x256xf32>
    %c0_2 = arith.constant 0 : index
    %c0_3 = arith.constant 0 : index
    %4 = vector.load %arg2[%c0_2, %c0_3] : memref<8x4096xbf16, #tpu.memory_space<vmem>>, vector<8x4096xbf16>
    %c0_4 = arith.constant 0 : index
    %c0_5 = arith.constant 0 : index
    %5 = vector.load %arg3[%c0_4, %c0_5] : memref<4096x256xbf16, #tpu.memory_space<vmem>>, vector<4096x256xbf16>
    %cst = arith.constant dense<0.000000e+00> : vector<8x256xf32>
    %6 = tpu.matmul %4, %5, %cst {dimension_numbers = #tpu.dot_dimension_numbers<[1], [0], [0], [1], [0, 0, 1, 1], [], []>} : vector<8x4096xbf16>, vector<4096x256xbf16>, vector<8x256xf32> -> vector<8x256xf32>
    %7 = arith.addf %3, %6 : vector<8x256xf32>
    %c0_6 = arith.constant 0 : index
    %c0_7 = arith.constant 0 : index
    %8 = vector.load %arg8[%c0_6, %c0_7] : memref<8x256xf32, #tpu.memory_space<vmem>>, vector<8x256xf32>
    tpu.vector_store %arg8[%c0_6, %c0_7], %7 {strides = array<i32>} : memref<8x256xf32, #tpu.memory_space<vmem>>, vector<8x256xf32>,
    %c1_i32 = arith.constant 1 : i32
    %9 = arith.cmpi eq, %arg1, %c1_i32 : i32
    %10 = arith.extui %9 : i1 to i32
    %c0_i32_8 = arith.constant 0 : i32
    %11 = arith.cmpi ne, %10, %c0_i32_8 : i32
    scf.if %11 {
      %c0_9 = arith.constant 0 : index
      %c0_10 = arith.constant 0 : index
      %12 = vector.load %arg8[%c0_9, %c0_10] : memref<8x256xf32, #tpu.memory_space<vmem>>, vector<8x256xf32>
      %c0_11 = arith.constant 0 : index
      %c0_12 = arith.constant 0 : index
      %13 = vector.load %arg4[%c0_11, %c0_12] : memref<1x256xf32, #tpu.memory_space<vmem>>, vector<1x256xf32>
      %14 = vector.broadcast %13 : vector<1x256xf32> to vector<8x256xf32>
      %15 = arith.addf %12, %14 : vector<8x256xf32>
      %cst_13 = arith.constant 0.000000e+00 : f32
      %16 = vector.broadcast %cst_13 : f32 to vector<8x256xf32>
      %17 = arith.maximumf %15, %16 : vector<8x256xf32>
      %c0_14 = arith.constant 0 : index
      %c0_15 = arith.constant 0 : index
      %18 = vector.load %arg5[%c0_14, %c0_15] : memref<256x128xf32, #tpu.memory_space<vmem>>, vector<256x128xf32>
      %cst_16 = arith.constant dense<0.000000e+00> : vector<8x128xf32>
      %19 = tpu.matmul %17, %18, %cst_16 {dimension_numbers = #tpu.dot_dimension_numbers<[1], [0], [0], [1], [0, 0, 1, 1], [], []>} : vector<8x256xf32>, vector<256x128xf32>, vector<8x128xf32> -> vector<8x128xf32>
      %c0_17 = arith.constant 0 : index
      %c0_18 = arith.constant 0 : index
      %20 = vector.load %arg6[%c0_17, %c0_18] : memref<1x128xf32, #tpu.memory_space<vmem>>, vector<1x128xf32>
      %c0_i32_19 = arith.constant 0 : i32
      %21 = arith.cmpi eq, %arg0, %c0_i32_19 : i32
      %22 = arith.extui %21 : i1 to i32
      %23 = arith.sitofp %22 : i32 to f32
      %24 = vector.broadcast %23 : f32 to vector<1x128xf32>
      %25 = arith.mulf %20, %24 : vector<1x128xf32>
      %26 = vector.broadcast %25 : vector<1x128xf32> to vector<8x128xf32>
      %27 = arith.addf %19, %26 : vector<8x128xf32>
      %c0_20 = arith.constant 0 : index
      %c0_21 = arith.constant 0 : index
      %c0_22 = arith.constant 0 : index
      %28 = vector.load %arg7[%c0_20, %c0_21, %c0_22] : memref<1x8x128xf32, #tpu.memory_space<vmem>>, vector<1x8x128xf32>
      %29 = vector.shape_cast %28 : vector<1x8x128xf32> to vector<8x128xf32>
      %30 = vector.shape_cast %27 : vector<8x128xf32> to vector<1x8x128xf32>
      tpu.vector_store %arg7[%c0_20, %c0_21, %c0_22], %30 {strides = array<i32>} : memref<1x8x128xf32, #tpu.memory_space<vmem>>, vector<1x8x128xf32>,
    } else {
    }
    return
  }
  func.func @transform_0(%arg0: i32, %arg1: i32) -> (i32, i32) {
    %c0_i32 = arith.constant 0 : i32
    %c0_i32_0 = arith.constant 0 : i32
    return %c0_i32, %arg1 : i32, i32
  }
  func.func @transform_1(%arg0: i32, %arg1: i32) -> (i32, i32) {
    %c0_i32 = arith.constant 0 : i32
    return %arg1, %arg0 : i32, i32
  }
  func.func @transform_2(%arg0: i32, %arg1: i32) -> (i32, i32) {
    %c0_i32 = arith.constant 0 : i32
    %c0_i32_0 = arith.constant 0 : i32
    return %c0_i32, %arg0 : i32, i32
  }
  func.func @transform_3(%arg0: i32, %arg1: i32) -> (i32, i32) {
    %c0_i32 = arith.constant 0 : i32
    %c0_i32_0 = arith.constant 0 : i32
    return %arg0, %c0_i32 : i32, i32
  }
  func.func @transform_4(%arg0: i32, %arg1: i32) -> (i32, i32) {
    %c0_i32 = arith.constant 0 : i32
    %c0_i32_0 = arith.constant 0 : i32
    %c0_i32_1 = arith.constant 0 : i32
    return %c0_i32, %c0_i32_0 : i32, i32
  }
  func.func @transform_5(%arg0: i32, %arg1: i32) -> (i32, i32, i32) {
    %c0_i32 = arith.constant 0 : i32
    %c0_i32_0 = arith.constant 0 : i32
    %c0_i32_1 = arith.constant 0 : i32
    return %arg0, %c0_i32, %c0_i32_0 : i32, i32, i32
  }
}

</mosaic_0001>

<bundles_post_ra>
// kernel: chess_cnn_forward.3
= control target key start
LH: loop header
LB: loop body
LE: loop exit
PB: predicated region body
PF: predicated region fallthrough
CT: control target
= control target key end

     0   :  { %s6939_s0 = inlined_call_operand.vmem [shape: bf16[8,8192], index: 0, kind: input, shape index: {}]   ;;  %s6940_s1 = inlined_call_operand.hbm [shape: bf16[8192,512], index: 1, kind: input, shape index: {}]   ;;  %s6941_s2 = inlined_call_operand.vmem [shape: f32[1,512], index: 2, kind: input, shape index: {}]   ;;  %s6942_s3 = inlined_call_operand.vmem [shape: f32[512,128], index: 3, kind: input, shape index: {}]   ;;  %s6943_s4 = inlined_call_operand.vmem [shape: f32[1,128], index: 4, kind: input, shape index: {}]   ;;  %s6944_s5 = inlined_call_operand.vmem [shape: f32[2,8,128], index: 5, kind: output, shape index: {}]  }
   0x1   :  { %6947 = sst [smem:[#allocation8_spill]] %s6940_s1 }
   0x2   :  { %6948 = sst [smem:[#allocation9_spill]] %s6943_s4 }
   0x3   :  { %10 = vsyncpa [#allocation4], 0 }
   0x4   :  { %12 = vsyncpa [#allocation4 + $0x1], 0  ;;  %s6083_s18 = smov 0   ;;  %s6085_s19 = smov 0  }
   0x5   :  { %s6087_s20 = smov 0   ;;  %s6089_s21 = smov 0  }
   0x6   :  { %s6091_s22 = smov 0   ;;  %s6093_s23 = smov 0  }
   0x7   :  { %s6095_s24 = smov 0   ;;  %s6097_s25 = smov 0  }
   0x8 LB: > { %s4442_s26 = sadd.s32 4294967295, %s6046_s25   ;;  %s27_s27 = sadd.s32 1, %s6038_s23  ;;  %s6046_s25 = sphi %s6097_s25, %s18_s25   ;;  %s6042_s24 = sphi %s6095_s24, %s6964_s24   ;;  %s6038_s23 = sphi %s6093_s23, %s6963_s23   ;;  %s6034_s22 = sphi %s6091_s22, %s6962_s22   ;;  %s6030_s21 = sphi %s6089_s21, %s6961_s21   ;;  %s6026_s20 = sphi %s6087_s20, %s6960_s20   ;;  %s6022_s19 = sphi %s6085_s19, %s6959_s19   ;;  %s6018_s18 = sphi %s6083_s18, %s6958_s18  }
   0x9   : > { %p28_p0 = scmp.ge.s32.totalorder %s27_s27, 2  ;;  %s30_s28 = sadd.s32 1, %s6042_s24 }
   0xa   : > { %s65_s29 = sadd.s32 1, %s6026_s20  ;;  %p72_p1 = scmp.ne.s32.totalorder %s6026_s20, %s6022_s19 }
   0xb   : > { %s6966_s27 = smov (%p28_p0, %s27_s27), 0  ;;  %s6968_s28 = smov (!%p28_p0, %s30_s28), %s6042_s24 }
   0xc   : > { %6949 = sst [smem:[#allocation6_spill]] %s6966_s27  ;;  %s60_s30 = ssub.s32 %s6038_s23, %s6966_s27 }
   0xd   : > { %p73_p2 = scmp.eq.s32.totalorder %s6046_s25, 0  ;;  %p32_p3 = scmp.ge.s32.totalorder %s6968_s28, 2 }
   0xe   : > { %p78_p4 = scmp.ne.s32.totalorder %s6022_s19, %s6018_s18  ;;  %p79_p6 = scmp.eq.s32.totalorder %s4442_s26, 0 }
   0xf   : > { %p6134_p5 = por %p73_p2, %p72_p1  ;;  %s6970_s28 = smov (%p32_p3, %s6968_s28), 0 }
  0x10   : > { %6951 = sst [smem:[#allocation7_spill]] %s6970_s28  ;;  %p6140_p7 = por %p79_p6, %p78_p4 }
  0x11   : > { %s61_s8 = ssub.s32 %s6042_s24, %s6970_s28  ;;  %p5081_p8 = scmp.lt.s32.totalorder %s6046_s25, 4 }
  0x12   : > { %s62_s9 = sor.u32 %s61_s8, %s60_s30  ;;  %s213_s10 = sand.u32 1, %s6026_s20  }
  0x13   : > { %p63_p9 = scmp.eq.s32.totalorder %s62_s9, 0  ;;  %s4446_s11 = sshll.u32 %s213_s10, 12 }
  0x14   : > { %s4448_s12 = sshll.u32 %s6042_s24, 1  ;;  %s5007_s14 = sshll.u32 %s6038_s23, 11 }
  0x15   : > { %s6150_s13 = scalar_select %p63_p9, %s6026_s20, %s65_s29  }
  0x16   : > { %s224_s15 = sadd.s32 %s5007_s14, %s4448_s12  ;;  %s217_s16 = scalar_lea.vmem [#allocation3], %s4446_s11 }
  0x17   : > { %s227_s17 = sshll.u32 %s217_s16, 4  ;;  %s4450_s18 = sshll.u32 %s224_s15, 6  ;;  %s6153_s17 = int_to_ptr.vmem [resolvable:$true] %s227_s17 }
  0x18   : > { %s6953_s1 = sld [smem:[#allocation8_spill]]  ;;  %p6164_p10 = pnand %p5081_p8, %p6134_p5 }
  0x19   : > { %s6168_s30 = scalar_lea.sflag [#allocation4], %s213_s10 }
  0x1a   : > { %p5952_p12 = pneg %p6164_p10 }
  0x1e   : > { %s6158_s4 = scalar_lea.hbm %s6953_s1, %s4450_s18  ;;  %s5955_s9 = scalar_lea.hbm %s6953_s1, 262144 }
  0x1f   : > { %s5950_s8 = scalar_lea.hbm %s6158_s4, 65536  ;;  %p5956_p1 = scmp.lt.u32.totalorder %s6158_s4, %s6953_s1 }
  0x20   : > { %p5951_p11 = scmp.ne.s32.totalorder %s6158_s4, %s5950_s8  ;;  %p5957_p2 = scmp.lt.u32.totalorder %s5955_s9, %s5950_s8 }
  0x21   : > { %p5959_p4 = scmp.lt.u32.totalorder %s5950_s8, %s6158_s4 }
  0x22   : > { %p5953_p13 = pnand %p5952_p12, %p5951_p11  ;;  %p5958_p3 = por %p5957_p2, %p5956_p1 }
  0x24   : > { %p5954_p0 = pneg %p5953_p13  ;;  %p5960_p5 = por %p5959_p4, %p5958_p3 }
  0x26   : > { %p5961_p6 = pnand %p5960_p5, %p5954_p0 }
  0x28   : > { %5964 = shalt.err (!%p5961_p6)
}
  0x29   : > { %s5965_s10 = scalar_lea.vmem %s6153_s17, 65536  ;;  %s6048_s14 = smov [#allocation3]  }
  0x2a   : > { %p5966_p8 = scmp.ne.s32.totalorder %s6153_s17, %s5965_s10  ;;  %s5970_s15 = sshll.u32 %s6048_s14, 4  ;;  %s5971_s15 = int_to_ptr.vmem [resolvable:$false] %s5970_s15 }
  0x2b   : > { %s5972_s16 = scalar_lea.vmem %s5971_s15, 131072  ;;  %p5973_p13 = scmp.lt.s32.totalorder %s6153_s17, %s5971_s15 }
  0x2c   : > { %p5968_p9 = pnand %p5966_p8, %p5952_p12  ;;  %p5974_p1 = scmp.lt.s32.totalorder %s5972_s16, %s5965_s10 }
  0x2e   : > { %p5969_p11 = pneg %p5968_p9  ;;  %p5975_p2 = por %p5974_p1, %p5973_p13 }
  0x30   : > { %p5976_p3 = pnand %p5975_p2, %p5969_p11 }
  0x32   : > { %5979 = shalt.err (!%p5976_p3)
}
  0x33   : > { %s6049_s18 = smov 256   ;;  %s6050_s26 = smov 128  }
  0x34   : > { %s6051_s8 = smov 8   ;;  %p4451_p12 = scmp.ge.s32.totalorder %s6046_s25, 1 }
  0x35   : > { %5080 = dma.hbm_to_vmem [thread:$0]  (!%p6164_p10), %s6158_s4, 65536, %s6153_s17, %s6168_s30, %s6049_s18, %s6050_s26, %s6051_s8  }
  0x36   : > { %p252_p0 = scmp.lt.s32.totalorder %s6046_s25, 5 }
  0x38   : > { %p253_p4 = pnand %p4451_p12, %p252_p0 }
  0x39   : > { %s258_s27 = sand.u32 (!%p253_p4), 1, %s6022_s19  }
  0x3a   : > { %256 = sbr.rel (%p253_p4) target bundleno = 1044 (0x414), region = 40  ;;  %s4452_s6 = sshll.u32 (!%p253_p4), %s258_s27, 12 }
  0x3b   : > { %s259_s9 = scalar_lea.sflag (!%p253_p4), [#allocation4], %s258_s27  ;;  %s6199_s11 = scalar_lea.vmem (!%p253_p4), [#allocation3], %s4452_s6 }
  0x41   : > { %6013 = dma.done.wait (%p6140_p7), %s259_s9, 65536  }
  0x42   : > { %6015 = vsyncadd (%p6140_p7), %s259_s9, 4294901760  ;;  %s4453_s4 = sshll.u32 %s6030_s21, 5  ;;  %s4455_s17 = sshll.u32 %s6034_s22, 1 }
  0x43   : > { %p303_p10 = scmp.lt.s32.totalorder %s4453_s4, 63  ;;  %p311_p5 = scmp.lt.s32.totalorder %s4455_s17, 3 }
  0x44   : > { %s4456_s29 = sshll.u32 %s6034_s22, 5  ;;  %p321_p6 = scmp.lt.s32.totalorder %s6034_s22, 1 }
  0x45   : > { %s6972_s4 = smov (!%p303_p10, %s4453_s4), 63  ;;  %s6974_s17 = smov (!%p311_p5, %s4455_s17), 3 }
  0x46   : > { %s4454_s30 = sshll.u32 %s6972_s4, 2  ;;  %p316_p8 = scmp.lt.s32.totalorder %s4456_s29, 63 }
  0x47   : > { %s6214_s10 = scalar_lea.vmem %s6939_s0, %s4454_s30  ;;  %s313_s16 = scalar_lea.vmem %s6941_s2, %s6974_s17 }
  0x48   : > { %s6976_s29 = smov (!%p316_p8, %s4456_s29), 63  ;;  %p4459_p7 = scmp.ne.s32.totalorder %s6030_s21, 0 }
  0x49   : > { %s322_s18 = scalar_select %p321_p6, %s6034_s22, 1 }
  0x4a   : > { %s4457_s26 = sshll.u32 %s6976_s29, 3  ;;  %328 = sbr.rel (%p4459_p7) target bundleno = 81 (0x51), region = 48  ;;  %v6052_v0 = vmov (!%p4459_p7), 0.0  }
  0x4b   : > { %s6224_s6 = scalar_lea.vmem %s6942_s3, %s4457_s26  ;;  %s4458_s9 = sshll.u32 %s322_s18, 3  ;;  %329 = vst [vmem:[#allocation2] sm:$0xff] (!%p4459_p7), %v6052_v0  ;;  %330 = vst [vmem:[#allocation2 + $0x8] sm:$0xff] (!%p4459_p7), %v6052_v0 }
  0x4c   : > { %s6229_s28 = scalar_lea.vmem %s6944_s5, %s4458_s9 }
  0x51 PF: > { %v5150_v1 = vld [vmem:[%s6199_s11 + $0x4] ss:$8 sps:$4 sm:$0xff]   ;;  %v5154_v3 = vld [vmem:[%s6199_s11] ss:$8 sps:$4 sm:$0xff]   ;;  %v5156_v5 = vld [vmem:[%s6199_s11 + $0x14] ss:$8 sps:$4 sm:$0xff]  }
  0x52   : > { %v5152_v2 = vld [vmem:[%s6199_s11 + $0x104] ss:$8 sps:$4 sm:$0xff]   ;;  %3533 = vmatprep.subr.bf16.mxu0 %v5150_v1  ;;  %v5155_v4 = vld [vmem:[%s6199_s11 + $0x100] ss:$8 sps:$4 sm:$0xff]   ;;  %v5158_v6 = vld [vmem:[%s6199_s11 + $0x114] ss:$8 sps:$4 sm:$0xff]  }
  0x53   : > { %3574 = vmatprep.subr.bf16.mxu1 %v5152_v2  ;;  %3534 = vmatpush1.bf16.msra.mxu0 %v5154_v3  ;;  %v5160_v7 = vld [vmem:[%s6199_s11 + $0x10] ss:$8 sps:$4 sm:$0xff]   ;;  %v5162_v9 = vld [vmem:[%s6199_s11 + $0x24] ss:$8 sps:$4 sm:$0xff]   ;;  %v5166_v11 = vld [vmem:[%s6199_s11 + $0x20] ss:$8 sps:$4 sm:$0xff]  }
  0x54   : > { %3575 = vmatpush1.bf16.msra.mxu1 %v5155_v4  ;;  %3535 = vmatprep.subr.bf16.mxu0 %v5156_v5  ;;  %v5161_v8 = vld [vmem:[%s6199_s11 + $0x110] ss:$8 sps:$4 sm:$0xff]   ;;  %v5164_v10 = vld [vmem:[%s6199_s11 + $0x124] ss:$8 sps:$4 sm:$0xff]   ;;  %v5167_v12 = vld [vmem:[%s6199_s11 + $0x120] ss:$8 sps:$4 sm:$0xff]  }
  0x55   : > { %3576 = vmatprep.subr.bf16.mxu1 %v5158_v6  ;;  %v5168_v13 = vld [vmem:[%s6199_s11 + $0x34] ss:$8 sps:$4 sm:$0xff]   ;;  %v5172_v15 = vld [vmem:[%s6199_s11 + $0x30] ss:$8 sps:$4 sm:$0xff]   ;;  %v5174_v17 = vld [vmem:[%s6199_s11 + $0x44] ss:$8 sps:$4 sm:$0xff]  }
  0x56   : > { %v5170_v14 = vld [vmem:[%s6199_s11 + $0x134] ss:$8 sps:$4 sm:$0xff]   ;;  %v5173_v16 = vld [vmem:[%s6199_s11 + $0x130] ss:$8 sps:$4 sm:$0xff]   ;;  %v5176_v18 = vld [vmem:[%s6199_s11 + $0x144] ss:$8 sps:$4 sm:$0xff]  }
  0x57   : > { %3536 = vmatpush1.bf16.msra.mxu0 %v5160_v7  ;;  %v5178_v19 = vld [vmem:[%s6199_s11 + $0x40] ss:$8 sps:$4 sm:$0xff]   ;;  %v5180_v21 = vld [vmem:[%s6199_s11 + $0x54] ss:$8 sps:$4 sm:$0xff]   ;;  %v5184_v23 = vld [vmem:[%s6199_s11 + $0x50] ss:$8 sps:$4 sm:$0xff]  }
  0x58   : > { %3577 = vmatpush1.bf16.msra.mxu1 %v5161_v8  ;;  %3537 = vmatprep.subr.bf16.mxu0 %v5162_v9  ;;  %v5179_v20 = vld [vmem:[%s6199_s11 + $0x140] ss:$8 sps:$4 sm:$0xff]   ;;  %v5182_v22 = vld [vmem:[%s6199_s11 + $0x154] ss:$8 sps:$4 sm:$0xff]   ;;  %v5185_v24 = vld [vmem:[%s6199_s11 + $0x150] ss:$8 sps:$4 sm:$0xff]  }
  0x59   : > { %3578 = vmatprep.subr.bf16.mxu1 %v5164_v10  ;;  %v5186_v25 = vld [vmem:[%s6199_s11 + $0x64] ss:$8 sps:$4 sm:$0xff]   ;;  %v5190_v27 = vld [vmem:[%s6199_s11 + $0x60] ss:$8 sps:$4 sm:$0xff]   ;;  %v5192_v29 = vld [vmem:[%s6199_s11 + $0x74] ss:$8 sps:$4 sm:$0xff]  }
  0x5a   : > { %v5188_v26 = vld [vmem:[%s6199_s11 + $0x164] ss:$8 sps:$4 sm:$0xff]   ;;  %v5191_v28 = vld [vmem:[%s6199_s11 + $0x160] ss:$8 sps:$4 sm:$0xff]   ;;  %v5194_v30 = vld [vmem:[%s6199_s11 + $0x174] ss:$8 sps:$4 sm:$0xff]  }
  0x5b   : > { %3538 = vmatpush1.bf16.msra.mxu0 %v5166_v11  ;;  %v5196_v31 = vld [vmem:[%s6199_s11 + $0x70] ss:$8 sps:$4 sm:$0xff]   ;;  %v5198_v33 = vld [vmem:[%s6199_s11 + $0x84] ss:$8 sps:$4 sm:$0xff]   ;;  %v5202_v35 = vld [vmem:[%s6199_s11 + $0x80] ss:$8 sps:$4 sm:$0xff]  }
  0x5c   : > { %3579 = vmatpush1.bf16.msra.mxu1 %v5167_v12  ;;  %3539 = vmatprep.subr.bf16.mxu0 %v5168_v13  ;;  %v5197_v32 = vld [vmem:[%s6199_s11 + $0x170] ss:$8 sps:$4 sm:$0xff]   ;;  %v5200_v34 = vld [vmem:[%s6199_s11 + $0x184] ss:$8 sps:$4 sm:$0xff]   ;;  %v5203_v36 = vld [vmem:[%s6199_s11 + $0x180] ss:$8 sps:$4 sm:$0xff]  }
  0x5d   : > { %3580 = vmatprep.subr.bf16.mxu1 %v5170_v14  ;;  %v5204_v37 = vld [vmem:[%s6199_s11 + $0x94] ss:$8 sps:$4 sm:$0xff]   ;;  %v5208_v39 = vld [vmem:[%s6199_s11 + $0x90] ss:$8 sps:$4 sm:$0xff]   ;;  %v5210_v41 = vld [vmem:[%s6199_s11 + $0xa4] ss:$8 sps:$4 sm:$0xff]  }
  0x5e   : > { %v5206_v38 = vld [vmem:[%s6199_s11 + $0x194] ss:$8 sps:$4 sm:$0xff]   ;;  %v5209_v40 = vld [vmem:[%s6199_s11 + $0x190] ss:$8 sps:$4 sm:$0xff]   ;;  %v5212_v42 = vld [vmem:[%s6199_s11 + $0x1a4] ss:$8 sps:$4 sm:$0xff]  }
  0x5f   : > { %3540 = vmatpush1.bf16.msra.mxu0 %v5172_v15  ;;  %v5214_v43 = vld [vmem:[%s6199_s11 + $0xa0] ss:$8 sps:$4 sm:$0xff]   ;;  %v5216_v45 = vld [vmem:[%s6199_s11 + $0xb4] ss:$8 sps:$4 sm:$0xff]   ;;  %v5220_v50 = vld [vmem:[%s6199_s11 + $0xb0] ss:$8 sps:$4 sm:$0xff]  }
  0x60   : > { %3581 = vmatpush1.bf16.msra.mxu1 %v5173_v16  ;;  %3541 = vmatprep.subr.bf16.mxu0 %v5174_v17  ;;  %v5215_v44 = vld [vmem:[%s6199_s11 + $0x1a0] ss:$8 sps:$4 sm:$0xff]   ;;  %v5218_v46 = vld [vmem:[%s6199_s11 + $0x1b4] ss:$8 sps:$4 sm:$0xff]   ;;  %v5221_v51 = vld [vmem:[%s6199_s11 + $0x1b0] ss:$8 sps:$4 sm:$0xff]  }
  0x61   : > { %3582 = vmatprep.subr.bf16.mxu1 %v5176_v18  ;;  %v333_v47 = vld [vmem:[%s6214_s10] sm:$0xff]  ;;  %v334_v49 = vld [vmem:[%s6214_s10 + $0x8] sm:$0xff]  ;;  %v5222_v53 = vld [vmem:[%s6199_s11 + $0xc4] ss:$8 sps:$4 sm:$0xff]   ;;  %p5004_p9 = scmp.ne.s32.totalorder %s6030_s21, 1 }
  0x62   : > { %v4461_v48 = vcombine.high %v333_v47, %v333_v47  ;;  %v4463_v52 = vcombine.high %v334_v49, %v334_v49  ;;  %v5224_v54 = vld [vmem:[%s6199_s11 + $0x1c4] ss:$8 sps:$4 sm:$0xff]   ;;  %v5226_v55 = vld [vmem:[%s6199_s11 + $0xc0] ss:$8 sps:$4 sm:$0xff]   ;;  %v5228_v57 = vld [vmem:[%s6199_s11 + $0xd4] ss:$8 sps:$4 sm:$0xff]   ;;  %v4460_v7 = vcombine.low %v333_v47, %v333_v47  ;;  %v4462_v8 = vcombine.low %v334_v49, %v334_v49 }
  0x63   : > { %3542 = vmatpush1.bf16.msra.mxu0 %v5178_v19  ;;  %v5227_v56 = vld [vmem:[%s6199_s11 + $0x1c0] ss:$8 sps:$4 sm:$0xff]   ;;  %v5230_v58 = vld [vmem:[%s6199_s11 + $0x1d4] ss:$8 sps:$4 sm:$0xff]   ;;  %v5232_v59 = vld [vmem:[%s6199_s11 + $0xd0] ss:$8 sps:$4 sm:$0xff]  }
  0x64   : > { %3583 = vmatpush1.bf16.msra.mxu1 %v5179_v20  ;;  %3543 = vmatprep.subr.bf16.mxu0 %v5180_v21  ;;  %v5233_v60 = vld [vmem:[%s6199_s11 + $0x1d0] ss:$8 sps:$4 sm:$0xff]   ;;  %v5234_v61 = vld [vmem:[%s6199_s11 + $0xe4] ss:$8 sps:$4 sm:$0xff]   ;;  %v5238_v63 = vld [vmem:[%s6199_s11 + $0xe0] ss:$8 sps:$4 sm:$0xff]  }
  0x65   : > { %3584 = vmatprep.subr.bf16.mxu1 %v5182_v22  ;;  %3565 = vmatprep.mubr.bf16.mxu0 %v4461_v48  ;;  %v5236_v62 = vld [vmem:[%s6199_s11 + $0x1e4] ss:$8 sps:$4 sm:$0xff]   ;;  %v5239_v0 = vld [vmem:[%s6199_s11 + $0x1e0] ss:$8 sps:$4 sm:$0xff]   ;;  %v5240_v1 = vld [vmem:[%s6199_s11 + $0xf4] ss:$8 sps:$4 sm:$0xff]  }
  0x66   : > { %3606 = vmatprep.mubr.bf16.mxu1 %v4463_v52  ;;  %v5242_v2 = vld [vmem:[%s6199_s11 + $0x1f4] ss:$8 sps:$4 sm:$0xff]   ;;  %v5244_v3 = vld [vmem:[%s6199_s11 + $0xf0] ss:$8 sps:$4 sm:$0xff]   ;;  %v5252_v5 = vld [vmem:[%s6199_s11 + $0x204] ss:$8 sps:$4 sm:$0xff]  }
  0x67   : > { %3544 = vmatpush1.bf16.msra.mxu0 %v5184_v23  ;;  %v5245_v4 = vld [vmem:[%s6199_s11 + $0x1f0] ss:$8 sps:$4 sm:$0xff]   ;;  %v5255_v6 = vld [vmem:[%s6199_s11 + $0x304] ss:$8 sps:$4 sm:$0xff]   ;;  %v5250_v9 = vld [vmem:[%s6199_s11 + $0x200] ss:$8 sps:$4 sm:$0xff]  }
  0x68   : > { %3585 = vmatpush1.bf16.msra.mxu1 %v5185_v24  ;;  %3545 = vmatprep.subr.bf16.mxu0 %v5186_v25  ;;  %v5253_v10 = vld [vmem:[%s6199_s11 + $0x300] ss:$8 sps:$4 sm:$0xff]   ;;  %v5258_v11 = vld [vmem:[%s6199_s11 + $0x214] ss:$8 sps:$4 sm:$0xff]   ;;  %v5256_v13 = vld [vmem:[%s6199_s11 + $0x210] ss:$8 sps:$4 sm:$0xff]  }
  0x69   : > { %3586 = vmatprep.subr.bf16.mxu1 %v5188_v26  ;;  %v5261_v12 = vld [vmem:[%s6199_s11 + $0x314] ss:$8 sps:$4 sm:$0xff]   ;;  %v5259_v14 = vld [vmem:[%s6199_s11 + $0x310] ss:$8 sps:$4 sm:$0xff]   ;;  %v5264_v15 = vld [vmem:[%s6199_s11 + $0x224] ss:$8 sps:$4 sm:$0xff]  }
  0x6a   : > { %v5267_v16 = vld [vmem:[%s6199_s11 + $0x324] ss:$8 sps:$4 sm:$0xff]   ;;  %v5262_v17 = vld [vmem:[%s6199_s11 + $0x220] ss:$8 sps:$4 sm:$0xff]   ;;  %v5270_v19 = vld [vmem:[%s6199_s11 + $0x234] ss:$8 sps:$4 sm:$0xff]  }
  0x6b   : > { %3546 = vmatpush1.bf16.msra.mxu0 %v5190_v27  ;;  %v5265_v18 = vld [vmem:[%s6199_s11 + $0x320] ss:$8 sps:$4 sm:$0xff]   ;;  %v5273_v20 = vld [vmem:[%s6199_s11 + $0x334] ss:$8 sps:$4 sm:$0xff]   ;;  %v5268_v21 = vld [vmem:[%s6199_s11 + $0x230] ss:$8 sps:$4 sm:$0xff]  }
  0x6c   : > { %3587 = vmatpush1.bf16.msra.mxu1 %v5191_v28  ;;  %3547 = vmatprep.subr.bf16.mxu0 %v5192_v29  ;;  %v5271_v22 = vld [vmem:[%s6199_s11 + $0x330] ss:$8 sps:$4 sm:$0xff]   ;;  %v5276_v23 = vld [vmem:[%s6199_s11 + $0x244] ss:$8 sps:$4 sm:$0xff]   ;;  %v5274_v25 = vld [vmem:[%s6199_s11 + $0x240] ss:$8 sps:$4 sm:$0xff]  }
  0x6d   : > { %3588 = vmatprep.subr.bf16.mxu1 %v5194_v30  ;;  %v5279_v24 = vld [vmem:[%s6199_s11 + $0x344] ss:$8 sps:$4 sm:$0xff]   ;;  %v5277_v26 = vld [vmem:[%s6199_s11 + $0x340] ss:$8 sps:$4 sm:$0xff]   ;;  %v5282_v27 = vld [vmem:[%s6199_s11 + $0x254] ss:$8 sps:$4 sm:$0xff]  }
  0x6e   : > { %v5285_v28 = vld [vmem:[%s6199_s11 + $0x354] ss:$8 sps:$4 sm:$0xff]   ;;  %v5280_v29 = vld [vmem:[%s6199_s11 + $0x250] ss:$8 sps:$4 sm:$0xff]   ;;  %v5315_v52 = vld [vmem:[%s6199_s11 + $0x3a4] ss:$8 sps:$4 sm:$0xff]  }
  0x6f   : > { %3548 = vmatpush1.bf16.msra.mxu0 %v5196_v31  ;;  %v5283_v30 = vld [vmem:[%s6199_s11 + $0x350] ss:$8 sps:$4 sm:$0xff]   ;;  %v5288_v31 = vld [vmem:[%s6199_s11 + $0x264] ss:$8 sps:$4 sm:$0xff]   ;;  %v5306_v47 = vld [vmem:[%s6199_s11 + $0x294] ss:$8 sps:$4 sm:$0xff]  }
  0x70   : > { %3589 = vmatpush1.bf16.msra.mxu1 %v5197_v32  ;;  %3549 = vmatprep.subr.bf16.mxu0 %v5198_v33  ;;  %v5291_v32 = vld [vmem:[%s6199_s11 + $0x364] ss:$8 sps:$4 sm:$0xff]   ;;  %v5309_v48 = vld [vmem:[%s6199_s11 + $0x394] ss:$8 sps:$4 sm:$0xff]   ;;  %v5304_v49 = vld [vmem:[%s6199_s11 + $0x290] ss:$8 sps:$4 sm:$0xff]  }
  0x71   : > { %3590 = vmatprep.subr.bf16.mxu1 %v5200_v34  ;;  %v6325_v33 = vld [vmem:[%s6214_s10 + $0x10] sm:$0xff]  ;;  %v6328_v34 = vld [vmem:[%s6214_s10 + $0x18] sm:$0xff]  ;;  %p4248_p11 = scmp.eq.s32.totalorder (!%p5004_p9), %s6034_s22, 0  ;;  %s6955_s12 = sld [smem:[#allocation9_spill]] (!%p5004_p9) }
  0x73   : > { %3550 = vmatpush1.bf16.msra.mxu0 %v5202_v35  ;;  %v5286_v35 = vld [vmem:[%s6199_s11 + $0x260] ss:$8 sps:$4 sm:$0xff]  }
  0x74   : > { %3591 = vmatpush1.bf16.msra.mxu1 %v5203_v36  ;;  %3551 = vmatprep.subr.bf16.mxu0 %v5204_v37  ;;  %v5289_v36 = vld [vmem:[%s6199_s11 + $0x360] ss:$8 sps:$4 sm:$0xff]   ;;  %v4465_v37 = vcombine.high %v6325_v33, %v6325_v33 }
  0x75   : > { %3592 = vmatprep.subr.bf16.mxu1 %v5206_v38  ;;  %v4467_v38 = vcombine.high %v6328_v34, %v6328_v34 }
  0x77   : > { %3552 = vmatpush1.bf16.msra.mxu0 %v5208_v39  ;;  %v5294_v39 = vld [vmem:[%s6199_s11 + $0x274] ss:$8 sps:$4 sm:$0xff]  }
  0x78   : > { %3593 = vmatpush1.bf16.msra.mxu1 %v5209_v40  ;;  %3553 = vmatprep.subr.bf16.mxu0 %v5210_v41  ;;  %v5297_v40 = vld [vmem:[%s6199_s11 + $0x374] ss:$8 sps:$4 sm:$0xff]   ;;  %v5292_v41 = vld [vmem:[%s6199_s11 + $0x270] ss:$8 sps:$4 sm:$0xff]  }
  0x79   : > { %3594 = vmatprep.subr.bf16.mxu1 %v5212_v42  ;;  %v5295_v42 = vld [vmem:[%s6199_s11 + $0x370] ss:$8 sps:$4 sm:$0xff]  }
  0x7b   : > { %3554 = vmatpush1.bf16.msra.mxu0 %v5214_v43  ;;  %v5300_v43 = vld [vmem:[%s6199_s11 + $0x284] ss:$8 sps:$4 sm:$0xff]  }
  0x7c   : > { %3595 = vmatpush1.bf16.msra.mxu1 %v5215_v44  ;;  %3555 = vmatprep.subr.bf16.mxu0 %v5216_v45  ;;  %v5303_v44 = vld [vmem:[%s6199_s11 + $0x384] ss:$8 sps:$4 sm:$0xff]   ;;  %v5298_v45 = vld [vmem:[%s6199_s11 + $0x280] ss:$8 sps:$4 sm:$0xff]  }
  0x7d   : > { %3596 = vmatprep.subr.bf16.mxu1 %v5218_v46  ;;  %v5301_v46 = vld [vmem:[%s6199_s11 + $0x380] ss:$8 sps:$4 sm:$0xff]  }
  0x7f   : > { %3556 = vmatpush1.bf16.msra.mxu0 %v5220_v50  ;;  %v5307_v50 = vld [vmem:[%s6199_s11 + $0x390] ss:$8 sps:$4 sm:$0xff]  }
  0x80   : > { %3597 = vmatpush1.bf16.msra.mxu1 %v5221_v51  ;;  %3557 = vmatprep.subr.bf16.mxu0 %v5222_v53  ;;  %v5312_v51 = vld [vmem:[%s6199_s11 + $0x2a4] ss:$8 sps:$4 sm:$0xff]   ;;  %v5310_v53 = vld [vmem:[%s6199_s11 + $0x2a0] ss:$8 sps:$4 sm:$0xff]  }
  0x81   : > { %3598 = vmatprep.subr.bf16.mxu1 %v5224_v54  ;;  %v5313_v54 = vld [vmem:[%s6199_s11 + $0x3a0] ss:$8 sps:$4 sm:$0xff]  }
  0x83   : > { %3558 = vmatpush1.bf16.msra.mxu0 %v5226_v55  ;;  %v5318_v55 = vld [vmem:[%s6199_s11 + $0x2b4] ss:$8 sps:$4 sm:$0xff]  }
  0x84   : > { %3599 = vmatpush1.bf16.msra.mxu1 %v5227_v56  ;;  %3559 = vmatprep.subr.bf16.mxu0 %v5228_v57  ;;  %v5321_v56 = vld [vmem:[%s6199_s11 + $0x3b4] ss:$8 sps:$4 sm:$0xff]   ;;  %v5316_v57 = vld [vmem:[%s6199_s11 + $0x2b0] ss:$8 sps:$4 sm:$0xff]  }
  0x85   : > { %3600 = vmatprep.subr.bf16.mxu1 %v5230_v58  ;;  %v5319_v58 = vld [vmem:[%s6199_s11 + $0x3b0] ss:$8 sps:$4 sm:$0xff]  }
  0x87   : > { %3560 = vmatpush1.bf16.msra.mxu0 %v5232_v59  ;;  %v5324_v59 = vld [vmem:[%s6199_s11 + $0x2c4] ss:$8 sps:$4 sm:$0xff]  }
  0x88   : > { %3601 = vmatpush1.bf16.msra.mxu1 %v5233_v60  ;;  %3561 = vmatprep.subr.bf16.mxu0 %v5234_v61  ;;  %v5327_v60 = vld [vmem:[%s6199_s11 + $0x3c4] ss:$8 sps:$4 sm:$0xff]   ;;  %v5322_v61 = vld [vmem:[%s6199_s11 + $0x2c0] ss:$8 sps:$4 sm:$0xff]  }
  0x89   : > { %3602 = vmatprep.subr.bf16.mxu1 %v5236_v62  ;;  %v5325_v62 = vld [vmem:[%s6199_s11 + $0x3c0] ss:$8 sps:$4 sm:$0xff]  }
  0x8b   : > { %3562 = vmatpush1.bf16.msra.mxu0 %v5238_v63  ;;  %v5330_v63 = vld [vmem:[%s6199_s11 + $0x2d4] ss:$8 sps:$4 sm:$0xff]  }
  0x8c   : > { %3603 = vmatpush1.bf16.msra.mxu1 %v5239_v0  ;;  %3563 = vmatprep.subr.bf16.mxu0 %v5240_v1  ;;  %v5333_v0 = vld [vmem:[%s6199_s11 + $0x3d4] ss:$8 sps:$4 sm:$0xff]   ;;  %v5328_v1 = vld [vmem:[%s6199_s11 + $0x2d0] ss:$8 sps:$4 sm:$0xff]  }
  0x8d   : > { %3604 = vmatprep.subr.bf16.mxu1 %v5242_v2  ;;  %v5331_v2 = vld [vmem:[%s6199_s11 + $0x3d0] ss:$8 sps:$4 sm:$0xff]  }
  0x8f   : > { %3564 = vmatpush1.bf16.msra.mxu0 %v5244_v3  ;;  %v5336_v3 = vld [vmem:[%s6199_s11 + $0x2e4] ss:$8 sps:$4 sm:$0xff]  }
  0x90   : > { %3605 = vmatpush1.bf16.msra.mxu1 %v5245_v4  ;;  %3615 = vmatprep.subr.bf16.mxu0 %v5252_v5  ;;  %v5339_v4 = vld [vmem:[%s6199_s11 + $0x3e4] ss:$8 sps:$4 sm:$0xff]   ;;  %v5334_v5 = vld [vmem:[%s6199_s11 + $0x2e0] ss:$8 sps:$4 sm:$0xff]  }
  0x91   : > { %3656 = vmatprep.subr.bf16.mxu1 %v5255_v6  ;;  %v5337_v6 = vld [vmem:[%s6199_s11 + $0x3e0] ss:$8 sps:$4 sm:$0xff]  }
  0x92   : > { %3566 = vmatmul.mubr.bf16.vlgmr.msra.gmra.mrb[0].mxu0 %v4460_v7  ;;  %v5342_v7 = vld [vmem:[%s6199_s11 + $0x2f4] ss:$8 sps:$4 sm:$0xff]  }
  0x93   : > { %3607 = vmatmul.mubr.bf16.vlgmr.msra.gmra.mrb[0].mxu1 %v4462_v8  ;;  %3616 = vmatpush1.bf16.msra.mxu0 %v5250_v9  ;;  %v5345_v8 = vld [vmem:[%s6199_s11 + $0x3f4] ss:$8 sps:$4 sm:$0xff]   ;;  %v5340_v9 = vld [vmem:[%s6199_s11 + $0x2f0] ss:$8 sps:$4 sm:$0xff]  }
  0x94   : > { %3657 = vmatpush1.bf16.msra.mxu1 %v5253_v10  ;;  %3617 = vmatprep.subr.bf16.mxu0 %v5258_v11  ;;  %v5343_v10 = vld [vmem:[%s6199_s11 + $0x3f0] ss:$8 sps:$4 sm:$0xff]   ;;  %v5352_v11 = vld [vmem:[%s6199_s11 + $0x404] ss:$8 sps:$4 sm:$0xff]  }
  0x95   : > { %3658 = vmatprep.subr.bf16.mxu1 %v5261_v12  ;;  %3647 = vmatprep.mubr.bf16.mxu0 %v4465_v37  ;;  %v5355_v12 = vld [vmem:[%s6199_s11 + $0x504] ss:$8 sps:$4 sm:$0xff]   ;;  %v5382_v37 = vld [vmem:[%s6199_s11 + $0x454] ss:$8 sps:$4 sm:$0xff]  }
  0x96   : > { %3688 = vmatprep.mubr.bf16.mxu1 %v4467_v38  ;;  %v5385_v38 = vld [vmem:[%s6199_s11 + $0x554] ss:$8 sps:$4 sm:$0xff]  }
  0x97   : > { %3618 = vmatpush1.bf16.msra.mxu0 %v5256_v13  ;;  %v4464_v13 = vcombine.low %v6325_v33, %v6325_v33  ;;  %v5376_v33 = vld [vmem:[%s6199_s11 + $0x444] ss:$8 sps:$4 sm:$0xff]  }
  0x98   : > { %3659 = vmatpush1.bf16.msra.mxu1 %v5259_v14  ;;  %3619 = vmatprep.subr.bf16.mxu0 %v5264_v15  ;;  %v4466_v14 = vcombine.low %v6328_v34, %v6328_v34  ;;  %v5350_v15 = vld [vmem:[%s6199_s11 + $0x400] ss:$8 sps:$4 sm:$0xff]   ;;  %v5379_v34 = vld [vmem:[%s6199_s11 + $0x544] ss:$8 sps:$4 sm:$0xff]  }
  0x99   : > { %3660 = vmatprep.subr.bf16.mxu1 %v5267_v16  ;;  %v5353_v16 = vld [vmem:[%s6199_s11 + $0x500] ss:$8 sps:$4 sm:$0xff]  }
  0x9b   : > { %3620 = vmatpush1.bf16.msra.mxu0 %v5262_v17  ;;  %v5358_v17 = vld [vmem:[%s6199_s11 + $0x414] ss:$8 sps:$4 sm:$0xff]  }
  0x9c   : > { %3661 = vmatpush1.bf16.msra.mxu1 %v5265_v18  ;;  %3621 = vmatprep.subr.bf16.mxu0 %v5270_v19  ;;  %v5361_v18 = vld [vmem:[%s6199_s11 + $0x514] ss:$8 sps:$4 sm:$0xff]  }
  0x9d   : > { %3662 = vmatprep.subr.bf16.mxu1 %v5273_v20  ;;  %v6383_v19 = vld [vmem:[%s6214_s10 + $0x20] sm:$0xff]  ;;  %v6386_v20 = vld [vmem:[%s6214_s10 + $0x28] sm:$0xff] }
  0x9f   : > { %3622 = vmatpush1.bf16.msra.mxu0 %v5268_v21  ;;  %v4469_v21 = vcombine.high %v6383_v19, %v6383_v19 }
  0xa0   : > { %3663 = vmatpush1.bf16.msra.mxu1 %v5271_v22  ;;  %3623 = vmatprep.subr.bf16.mxu0 %v5276_v23  ;;  %v4471_v22 = vcombine.high %v6386_v20, %v6386_v20  ;;  %v5356_v23 = vld [vmem:[%s6199_s11 + $0x410] ss:$8 sps:$4 sm:$0xff]  }
  0xa1   : > { %3664 = vmatprep.subr.bf16.mxu1 %v5279_v24  ;;  %v5359_v24 = vld [vmem:[%s6199_s11 + $0x510] ss:$8 sps:$4 sm:$0xff]  }
  0xa3   : > { %3624 = vmatpush1.bf16.msra.mxu0 %v5274_v25  ;;  %v5364_v25 = vld [vmem:[%s6199_s11 + $0x424] ss:$8 sps:$4 sm:$0xff]  }
  0xa4   : > { %3665 = vmatpush1.bf16.msra.mxu1 %v5277_v26  ;;  %3625 = vmatprep.subr.bf16.mxu0 %v5282_v27  ;;  %v5367_v26 = vld [vmem:[%s6199_s11 + $0x524] ss:$8 sps:$4 sm:$0xff]   ;;  %v5362_v27 = vld [vmem:[%s6199_s11 + $0x420] ss:$8 sps:$4 sm:$0xff]  }
  0xa5   : > { %3666 = vmatprep.subr.bf16.mxu1 %v5285_v28  ;;  %v5365_v28 = vld [vmem:[%s6199_s11 + $0x520] ss:$8 sps:$4 sm:$0xff]  }
  0xa7   : > { %3626 = vmatpush1.bf16.msra.mxu0 %v5280_v29  ;;  %v5370_v29 = vld [vmem:[%s6199_s11 + $0x434] ss:$8 sps:$4 sm:$0xff]  }
  0xa8   : > { %3667 = vmatpush1.bf16.msra.mxu1 %v5283_v30  ;;  %3627 = vmatprep.subr.bf16.mxu0 %v5288_v31  ;;  %v5373_v30 = vld [vmem:[%s6199_s11 + $0x534] ss:$8 sps:$4 sm:$0xff]   ;;  %v5368_v31 = vld [vmem:[%s6199_s11 + $0x430] ss:$8 sps:$4 sm:$0xff]  }
  0xa9   : > { %3668 = vmatprep.subr.bf16.mxu1 %v5291_v32  ;;  %v5371_v32 = vld [vmem:[%s6199_s11 + $0x530] ss:$8 sps:$4 sm:$0xff]  }
  0xab   : > { %3628 = vmatpush1.bf16.msra.mxu0 %v5286_v35  ;;  %v5374_v35 = vld [vmem:[%s6199_s11 + $0x440] ss:$8 sps:$4 sm:$0xff]  }
  0xac   : > { %3669 = vmatpush1.bf16.msra.mxu1 %v5289_v36  ;;  %3629 = vmatprep.subr.bf16.mxu0 %v5294_v39  ;;  %v5377_v36 = vld [vmem:[%s6199_s11 + $0x540] ss:$8 sps:$4 sm:$0xff]   ;;  %v5380_v39 = vld [vmem:[%s6199_s11 + $0x450] ss:$8 sps:$4 sm:$0xff]  }
  0xad   : > { %3670 = vmatprep.subr.bf16.mxu1 %v5297_v40  ;;  %v5383_v40 = vld [vmem:[%s6199_s11 + $0x550] ss:$8 sps:$4 sm:$0xff]  }
  0xaf   : > { %3630 = vmatpush1.bf16.msra.mxu0 %v5292_v41  ;;  %v5388_v41 = vld [vmem:[%s6199_s11 + $0x464] ss:$8 sps:$4 sm:$0xff]  }
  0xb0   : > { %3671 = vmatpush1.bf16.msra.mxu1 %v5295_v42  ;;  %3631 = vmatprep.subr.bf16.mxu0 %v5300_v43  ;;  %v5391_v42 = vld [vmem:[%s6199_s11 + $0x564] ss:$8 sps:$4 sm:$0xff]   ;;  %v5386_v43 = vld [vmem:[%s6199_s11 + $0x460] ss:$8 sps:$4 sm:$0xff]  }
  0xb1   : > { %3672 = vmatprep.subr.bf16.mxu1 %v5303_v44  ;;  %v5389_v44 = vld [vmem:[%s6199_s11 + $0x560] ss:$8 sps:$4 sm:$0xff]  }
  0xb3   : > { %3632 = vmatpush1.bf16.msra.mxu0 %v5298_v45  ;;  %v5394_v45 = vld [vmem:[%s6199_s11 + $0x474] ss:$8 sps:$4 sm:$0xff]  }
  0xb4   : > { %3673 = vmatpush1.bf16.msra.mxu1 %v5301_v46  ;;  %3633 = vmatprep.subr.bf16.mxu0 %v5306_v47  ;;  %v5397_v46 = vld [vmem:[%s6199_s11 + $0x574] ss:$8 sps:$4 sm:$0xff]   ;;  %v5392_v47 = vld [vmem:[%s6199_s11 + $0x470] ss:$8 sps:$4 sm:$0xff]  }
  0xb5   : > { %3674 = vmatprep.subr.bf16.mxu1 %v5309_v48  ;;  %v5395_v48 = vld [vmem:[%s6199_s11 + $0x570] ss:$8 sps:$4 sm:$0xff]  }
  0xb7   : > { %3634 = vmatpush1.bf16.msra.mxu0 %v5304_v49  ;;  %v5400_v49 = vld [vmem:[%s6199_s11 + $0x484] ss:$8 sps:$4 sm:$0xff]  }
  0xb8   : > { %3675 = vmatpush1.bf16.msra.mxu1 %v5307_v50  ;;  %3635 = vmatprep.subr.bf16.mxu0 %v5312_v51  ;;  %v5403_v50 = vld [vmem:[%s6199_s11 + $0x584] ss:$8 sps:$4 sm:$0xff]   ;;  %v5398_v51 = vld [vmem:[%s6199_s11 + $0x480] ss:$8 sps:$4 sm:$0xff]  }
  0xb9   : > { %3676 = vmatprep.subr.bf16.mxu1 %v5315_v52  ;;  %v5401_v52 = vld [vmem:[%s6199_s11 + $0x580] ss:$8 sps:$4 sm:$0xff]  }
  0xbb   : > { %3636 = vmatpush1.bf16.msra.mxu0 %v5310_v53  ;;  %v5406_v53 = vld [vmem:[%s6199_s11 + $0x494] ss:$8 sps:$4 sm:$0xff]  }
  0xbc   : > { %3677 = vmatpush1.bf16.msra.mxu1 %v5313_v54  ;;  %3637 = vmatprep.subr.bf16.mxu0 %v5318_v55  ;;  %v5409_v54 = vld [vmem:[%s6199_s11 + $0x594] ss:$8 sps:$4 sm:$0xff]   ;;  %v5404_v55 = vld [vmem:[%s6199_s11 + $0x490] ss:$8 sps:$4 sm:$0xff]  }
  0xbd   : > { %3678 = vmatprep.subr.bf16.mxu1 %v5321_v56  ;;  %v5407_v56 = vld [vmem:[%s6199_s11 + $0x590] ss:$8 sps:$4 sm:$0xff]  }
  0xbf   : > { %3638 = vmatpush1.bf16.msra.mxu0 %v5316_v57  ;;  %v5412_v57 = vld [vmem:[%s6199_s11 + $0x4a4] ss:$8 sps:$4 sm:$0xff]  }
  0xc0   : > { %3679 = vmatpush1.bf16.msra.mxu1 %v5319_v58  ;;  %3639 = vmatprep.subr.bf16.mxu0 %v5324_v59  ;;  %v5415_v58 = vld [vmem:[%s6199_s11 + $0x5a4] ss:$8 sps:$4 sm:$0xff]   ;;  %v5410_v59 = vld [vmem:[%s6199_s11 + $0x4a0] ss:$8 sps:$4 sm:$0xff]  }
  0xc1   : > { %3680 = vmatprep.subr.bf16.mxu1 %v5327_v60  ;;  %v5413_v60 = vld [vmem:[%s6199_s11 + $0x5a0] ss:$8 sps:$4 sm:$0xff]  }
  0xc3   : > { %3640 = vmatpush1.bf16.msra.mxu0 %v5322_v61  ;;  %v5418_v61 = vld [vmem:[%s6199_s11 + $0x4b4] ss:$8 sps:$4 sm:$0xff]  }
  0xc4   : > { %3681 = vmatpush1.bf16.msra.mxu1 %v5325_v62  ;;  %3641 = vmatprep.subr.bf16.mxu0 %v5330_v63  ;;  %v5421_v62 = vld [vmem:[%s6199_s11 + $0x5b4] ss:$8 sps:$4 sm:$0xff]   ;;  %v5416_v63 = vld [vmem:[%s6199_s11 + $0x4b0] ss:$8 sps:$4 sm:$0xff]  }
  0xc5   : > { %3682 = vmatprep.subr.bf16.mxu1 %v5333_v0  ;;  %v5419_v0 = vld [vmem:[%s6199_s11 + $0x5b0] ss:$8 sps:$4 sm:$0xff]  }
  0xc7   : > { %3642 = vmatpush1.bf16.msra.mxu0 %v5328_v1  ;;  %v5424_v1 = vld [vmem:[%s6199_s11 + $0x4c4] ss:$8 sps:$4 sm:$0xff]  }
  0xc8   : > { %3683 = vmatpush1.bf16.msra.mxu1 %v5331_v2  ;;  %3643 = vmatprep.subr.bf16.mxu0 %v5336_v3  ;;  %v5427_v2 = vld [vmem:[%s6199_s11 + $0x5c4] ss:$8 sps:$4 sm:$0xff]   ;;  %v5422_v3 = vld [vmem:[%s6199_s11 + $0x4c0] ss:$8 sps:$4 sm:$0xff]  }
  0xc9   : > { %3684 = vmatprep.subr.bf16.mxu1 %v5339_v4  ;;  %v5425_v4 = vld [vmem:[%s6199_s11 + $0x5c0] ss:$8 sps:$4 sm:$0xff]  }
  0xcb   : > { %3644 = vmatpush1.bf16.msra.mxu0 %v5334_v5  ;;  %v5430_v5 = vld [vmem:[%s6199_s11 + $0x4d4] ss:$8 sps:$4 sm:$0xff]  }
  0xcc   : > { %3685 = vmatpush1.bf16.msra.mxu1 %v5337_v6  ;;  %3645 = vmatprep.subr.bf16.mxu0 %v5342_v7  ;;  %v5433_v6 = vld [vmem:[%s6199_s11 + $0x5d4] ss:$8 sps:$4 sm:$0xff]   ;;  %v5428_v7 = vld [vmem:[%s6199_s11 + $0x4d0] ss:$8 sps:$4 sm:$0xff]  }
  0xcd   : > { %3686 = vmatprep.subr.bf16.mxu1 %v5345_v8  ;;  %v5431_v8 = vld [vmem:[%s6199_s11 + $0x5d0] ss:$8 sps:$4 sm:$0xff]  }
  0xcf   : > { %3646 = vmatpush1.bf16.msra.mxu0 %v5340_v9  ;;  %v5436_v9 = vld [vmem:[%s6199_s11 + $0x4e4] ss:$8 sps:$4 sm:$0xff]  }
  0xd0   : > { %3687 = vmatpush1.bf16.msra.mxu1 %v5343_v10  ;;  %3697 = vmatprep.subr.bf16.mxu0 %v5352_v11  ;;  %v5439_v10 = vld [vmem:[%s6199_s11 + $0x5e4] ss:$8 sps:$4 sm:$0xff]   ;;  %v5434_v11 = vld [vmem:[%s6199_s11 + $0x4e0] ss:$8 sps:$4 sm:$0xff]  }
  0xd1   : > { %3738 = vmatprep.subr.bf16.mxu1 %v5355_v12  ;;  %v5437_v12 = vld [vmem:[%s6199_s11 + $0x5e0] ss:$8 sps:$4 sm:$0xff]  }
  0xd2   : > { %3648 = vmatmul.mubr.bf16.vlgmr.msra.gmra.mrb[4].mxu0 %v4464_v13  ;;  %v5442_v13 = vld [vmem:[%s6199_s11 + $0x4f4] ss:$8 sps:$4 sm:$0xff]  }
  0xd3   : > { %3689 = vmatmul.mubr.bf16.vlgmr.msra.gmra.mrb[4].mxu1 %v4466_v14  ;;  %3698 = vmatpush1.bf16.msra.mxu0 %v5350_v15  ;;  %v5445_v14 = vld [vmem:[%s6199_s11 + $0x5f4] ss:$8 sps:$4 sm:$0xff]   ;;  %v5440_v15 = vld [vmem:[%s6199_s11 + $0x4f0] ss:$8 sps:$4 sm:$0xff]  }
  0xd4   : > { %3739 = vmatpush1.bf16.msra.mxu1 %v5353_v16  ;;  %3699 = vmatprep.subr.bf16.mxu0 %v5358_v17  ;;  %v5443_v16 = vld [vmem:[%s6199_s11 + $0x5f0] ss:$8 sps:$4 sm:$0xff]   ;;  %v5452_v17 = vld [vmem:[%s6199_s11 + $0x604] ss:$8 sps:$4 sm:$0xff]  }
  0xd5   : > { %3740 = vmatprep.subr.bf16.mxu1 %v5361_v18  ;;  %3729 = vmatprep.mubr.bf16.mxu0 %v4469_v21  ;;  %v5455_v18 = vld [vmem:[%s6199_s11 + $0x704] ss:$8 sps:$4 sm:$0xff]   ;;  %v5450_v21 = vld [vmem:[%s6199_s11 + $0x600] ss:$8 sps:$4 sm:$0xff]  }
  0xd6   : > { %3770 = vmatprep.mubr.bf16.mxu1 %v4471_v22  ;;  %v5453_v22 = vld [vmem:[%s6199_s11 + $0x700] ss:$8 sps:$4 sm:$0xff]  }
  0xd7   : > { %3700 = vmatpush1.bf16.msra.mxu0 %v5356_v23  ;;  %v4468_v23 = vcombine.low %v6383_v19, %v6383_v19 }
  0xd8   : > { %3741 = vmatpush1.bf16.msra.mxu1 %v5359_v24  ;;  %3701 = vmatprep.subr.bf16.mxu0 %v5364_v25  ;;  %v4470_v24 = vcombine.low %v6386_v20, %v6386_v20  ;;  %v6459_v25 = vld [vmem:[%s6214_s10 + $0x30] sm:$0xff] }
  0xd9   : > { %3742 = vmatprep.subr.bf16.mxu1 %v5367_v26  ;;  %v6462_v26 = vld [vmem:[%s6214_s10 + $0x38] sm:$0xff]  ;;  %v4473_v19 = vcombine.high %v6459_v25, %v6459_v25 }
  0xda   : > { %v4475_v20 = vcombine.high %v6462_v26, %v6462_v26 }
  0xdb   : > { %3702 = vmatpush1.bf16.msra.mxu0 %v5362_v27  ;;  %v5458_v27 = vld [vmem:[%s6199_s11 + $0x614] ss:$8 sps:$4 sm:$0xff]  }
  0xdc   : > { %3743 = vmatpush1.bf16.msra.mxu1 %v5365_v28  ;;  %3703 = vmatprep.subr.bf16.mxu0 %v5370_v29  ;;  %v5461_v28 = vld [vmem:[%s6199_s11 + $0x714] ss:$8 sps:$4 sm:$0xff]   ;;  %v5456_v29 = vld [vmem:[%s6199_s11 + $0x610] ss:$8 sps:$4 sm:$0xff]  }
  0xdd   : > { %3744 = vmatprep.subr.bf16.mxu1 %v5373_v30  ;;  %v5459_v30 = vld [vmem:[%s6199_s11 + $0x710] ss:$8 sps:$4 sm:$0xff]  }
  0xdf   : > { %3704 = vmatpush1.bf16.msra.mxu0 %v5368_v31  ;;  %v5464_v31 = vld [vmem:[%s6199_s11 + $0x624] ss:$8 sps:$4 sm:$0xff]  }
  0xe0   : > { %3745 = vmatpush1.bf16.msra.mxu1 %v5371_v32  ;;  %3705 = vmatprep.subr.bf16.mxu0 %v5376_v33  ;;  %v5467_v32 = vld [vmem:[%s6199_s11 + $0x724] ss:$8 sps:$4 sm:$0xff]   ;;  %v5462_v33 = vld [vmem:[%s6199_s11 + $0x620] ss:$8 sps:$4 sm:$0xff]  }
  0xe1   : > { %3746 = vmatprep.subr.bf16.mxu1 %v5379_v34  ;;  %v5465_v34 = vld [vmem:[%s6199_s11 + $0x720] ss:$8 sps:$4 sm:$0xff]  }
  0xe3   : > { %3706 = vmatpush1.bf16.msra.mxu0 %v5374_v35  ;;  %v5470_v35 = vld [vmem:[%s6199_s11 + $0x634] ss:$8 sps:$4 sm:$0xff]  }
  0xe4   : > { %3747 = vmatpush1.bf16.msra.mxu1 %v5377_v36  ;;  %3707 = vmatprep.subr.bf16.mxu0 %v5382_v37  ;;  %v5473_v36 = vld [vmem:[%s6199_s11 + $0x734] ss:$8 sps:$4 sm:$0xff]   ;;  %v5468_v37 = vld [vmem:[%s6199_s11 + $0x630] ss:$8 sps:$4 sm:$0xff]  }
  0xe5   : > { %3748 = vmatprep.subr.bf16.mxu1 %v5385_v38  ;;  %v5471_v38 = vld [vmem:[%s6199_s11 + $0x730] ss:$8 sps:$4 sm:$0xff]  }
  0xe7   : > { %3708 = vmatpush1.bf16.msra.mxu0 %v5380_v39  ;;  %v5476_v39 = vld [vmem:[%s6199_s11 + $0x644] ss:$8 sps:$4 sm:$0xff]  }
  0xe8   : > { %3749 = vmatpush1.bf16.msra.mxu1 %v5383_v40  ;;  %3709 = vmatprep.subr.bf16.mxu0 %v5388_v41  ;;  %v5479_v40 = vld [vmem:[%s6199_s11 + $0x744] ss:$8 sps:$4 sm:$0xff]   ;;  %v5474_v41 = vld [vmem:[%s6199_s11 + $0x640] ss:$8 sps:$4 sm:$0xff]  }
  0xe9   : > { %3750 = vmatprep.subr.bf16.mxu1 %v5391_v42  ;;  %v5477_v42 = vld [vmem:[%s6199_s11 + $0x740] ss:$8 sps:$4 sm:$0xff]  }
  0xeb   : > { %3710 = vmatpush1.bf16.msra.mxu0 %v5386_v43  ;;  %v5482_v43 = vld [vmem:[%s6199_s11 + $0x654] ss:$8 sps:$4 sm:$0xff]  }
  0xec   : > { %3751 = vmatpush1.bf16.msra.mxu1 %v5389_v44  ;;  %3711 = vmatprep.subr.bf16.mxu0 %v5394_v45  ;;  %v5485_v44 = vld [vmem:[%s6199_s11 + $0x754] ss:$8 sps:$4 sm:$0xff]   ;;  %v5480_v45 = vld [vmem:[%s6199_s11 + $0x650] ss:$8 sps:$4 sm:$0xff]  }
  0xed   : > { %3752 = vmatprep.subr.bf16.mxu1 %v5397_v46  ;;  %v5483_v46 = vld [vmem:[%s6199_s11 + $0x750] ss:$8 sps:$4 sm:$0xff]  }
  0xef   : > { %3712 = vmatpush1.bf16.msra.mxu0 %v5392_v47  ;;  %v5488_v47 = vld [vmem:[%s6199_s11 + $0x664] ss:$8 sps:$4 sm:$0xff]  }
  0xf0   : > { %3753 = vmatpush1.bf16.msra.mxu1 %v5395_v48  ;;  %3713 = vmatprep.subr.bf16.mxu0 %v5400_v49  ;;  %v5491_v48 = vld [vmem:[%s6199_s11 + $0x764] ss:$8 sps:$4 sm:$0xff]   ;;  %v5486_v49 = vld [vmem:[%s6199_s11 + $0x660] ss:$8 sps:$4 sm:$0xff]  }
  0xf1   : > { %3754 = vmatprep.subr.bf16.mxu1 %v5403_v50  ;;  %v5489_v50 = vld [vmem:[%s6199_s11 + $0x760] ss:$8 sps:$4 sm:$0xff]  }
  0xf3   : > { %3714 = vmatpush1.bf16.msra.mxu0 %v5398_v51  ;;  %v5494_v51 = vld [vmem:[%s6199_s11 + $0x674] ss:$8 sps:$4 sm:$0xff]  }
  0xf4   : > { %3755 = vmatpush1.bf16.msra.mxu1 %v5401_v52  ;;  %3715 = vmatprep.subr.bf16.mxu0 %v5406_v53  ;;  %v5497_v52 = vld [vmem:[%s6199_s11 + $0x774] ss:$8 sps:$4 sm:$0xff]   ;;  %v5492_v53 = vld [vmem:[%s6199_s11 + $0x670] ss:$8 sps:$4 sm:$0xff]  }
  0xf5   : > { %3756 = vmatprep.subr.bf16.mxu1 %v5409_v54  ;;  %v5495_v54 = vld [vmem:[%s6199_s11 + $0x770] ss:$8 sps:$4 sm:$0xff]  }
  0xf7   : > { %3716 = vmatpush1.bf16.msra.mxu0 %v5404_v55  ;;  %v5500_v55 = vld [vmem:[%s6199_s11 + $0x684] ss:$8 sps:$4 sm:$0xff]  }
  0xf8   : > { %3757 = vmatpush1.bf16.msra.mxu1 %v5407_v56  ;;  %3717 = vmatprep.subr.bf16.mxu0 %v5412_v57  ;;  %v5503_v56 = vld [vmem:[%s6199_s11 + $0x784] ss:$8 sps:$4 sm:$0xff]   ;;  %v5498_v57 = vld [vmem:[%s6199_s11 + $0x680] ss:$8 sps:$4 sm:$0xff]  }
  0xf9   : > { %3758 = vmatprep.subr.bf16.mxu1 %v5415_v58  ;;  %v5501_v58 = vld [vmem:[%s6199_s11 + $0x780] ss:$8 sps:$4 sm:$0xff]  }
  0xfb   : > { %3718 = vmatpush1.bf16.msra.mxu0 %v5410_v59  ;;  %v5506_v59 = vld [vmem:[%s6199_s11 + $0x694] ss:$8 sps:$4 sm:$0xff]  }
  0xfc   : > { %3759 = vmatpush1.bf16.msra.mxu1 %v5413_v60  ;;  %3719 = vmatprep.subr.bf16.mxu0 %v5418_v61  ;;  %v5509_v60 = vld [vmem:[%s6199_s11 + $0x794] ss:$8 sps:$4 sm:$0xff]   ;;  %v5504_v61 = vld [vmem:[%s6199_s11 + $0x690] ss:$8 sps:$4 sm:$0xff]  }
  0xfd   : > { %3760 = vmatprep.subr.bf16.mxu1 %v5421_v62  ;;  %v5507_v62 = vld [vmem:[%s6199_s11 + $0x790] ss:$8 sps:$4 sm:$0xff]  }
  0xff   : > { %3720 = vmatpush1.bf16.msra.mxu0 %v5416_v63  ;;  %v5512_v63 = vld [vmem:[%s6199_s11 + $0x6a4] ss:$8 sps:$4 sm:$0xff]  }
 0x100   : > { %3761 = vmatpush1.bf16.msra.mxu1 %v5419_v0  ;;  %3721 = vmatprep.subr.bf16.mxu0 %v5424_v1  ;;  %v5515_v0 = vld [vmem:[%s6199_s11 + $0x7a4] ss:$8 sps:$4 sm:$0xff]   ;;  %v5510_v1 = vld [vmem:[%s6199_s11 + $0x6a0] ss:$8 sps:$4 sm:$0xff]  }
 0x101   : > { %3762 = vmatprep.subr.bf16.mxu1 %v5427_v2  ;;  %v5513_v2 = vld [vmem:[%s6199_s11 + $0x7a0] ss:$8 sps:$4 sm:$0xff]  }
 0x103   : > { %3722 = vmatpush1.bf16.msra.mxu0 %v5422_v3  ;;  %v5518_v3 = vld [vmem:[%s6199_s11 + $0x6b4] ss:$8 sps:$4 sm:$0xff]  }
 0x104   : > { %3763 = vmatpush1.bf16.msra.mxu1 %v5425_v4  ;;  %3723 = vmatprep.subr.bf16.mxu0 %v5430_v5  ;;  %v5521_v4 = vld [vmem:[%s6199_s11 + $0x7b4] ss:$8 sps:$4 sm:$0xff]   ;;  %v5516_v5 = vld [vmem:[%s6199_s11 + $0x6b0] ss:$8 sps:$4 sm:$0xff]  }
 0x105   : > { %3764 = vmatprep.subr.bf16.mxu1 %v5433_v6  ;;  %v5519_v6 = vld [vmem:[%s6199_s11 + $0x7b0] ss:$8 sps:$4 sm:$0xff]  }
 0x107   : > { %3724 = vmatpush1.bf16.msra.mxu0 %v5428_v7  ;;  %v5524_v7 = vld [vmem:[%s6199_s11 + $0x6c4] ss:$8 sps:$4 sm:$0xff]  }
 0x108   : > { %3765 = vmatpush1.bf16.msra.mxu1 %v5431_v8  ;;  %3725 = vmatprep.subr.bf16.mxu0 %v5436_v9  ;;  %v5527_v8 = vld [vmem:[%s6199_s11 + $0x7c4] ss:$8 sps:$4 sm:$0xff]   ;;  %v5522_v9 = vld [vmem:[%s6199_s11 + $0x6c0] ss:$8 sps:$4 sm:$0xff]  }
 0x109   : > { %3766 = vmatprep.subr.bf16.mxu1 %v5439_v10  ;;  %v5525_v10 = vld [vmem:[%s6199_s11 + $0x7c0] ss:$8 sps:$4 sm:$0xff]  }
 0x10b   : > { %3726 = vmatpush1.bf16.msra.mxu0 %v5434_v11  ;;  %v5530_v11 = vld [vmem:[%s6199_s11 + $0x6d4] ss:$8 sps:$4 sm:$0xff]  }
 0x10c   : > { %3767 = vmatpush1.bf16.msra.mxu1 %v5437_v12  ;;  %3727 = vmatprep.subr.bf16.mxu0 %v5442_v13  ;;  %v5533_v12 = vld [vmem:[%s6199_s11 + $0x7d4] ss:$8 sps:$4 sm:$0xff]   ;;  %v5528_v13 = vld [vmem:[%s6199_s11 + $0x6d0] ss:$8 sps:$4 sm:$0xff]  }
 0x10d   : > { %3768 = vmatprep.subr.bf16.mxu1 %v5445_v14  ;;  %v5531_v14 = vld [vmem:[%s6199_s11 + $0x7d0] ss:$8 sps:$4 sm:$0xff]  }
 0x10f   : > { %3728 = vmatpush1.bf16.msra.mxu0 %v5440_v15  ;;  %v5536_v15 = vld [vmem:[%s6199_s11 + $0x6e4] ss:$8 sps:$4 sm:$0xff]  }
 0x110   : > { %3769 = vmatpush1.bf16.msra.mxu1 %v5443_v16  ;;  %3779 = vmatprep.subr.bf16.mxu0 %v5452_v17  ;;  %v5539_v16 = vld [vmem:[%s6199_s11 + $0x7e4] ss:$8 sps:$4 sm:$0xff]   ;;  %v5534_v17 = vld [vmem:[%s6199_s11 + $0x6e0] ss:$8 sps:$4 sm:$0xff]  }
 0x111   : > { %3820 = vmatprep.subr.bf16.mxu1 %v5455_v18  ;;  %v5537_v18 = vld [vmem:[%s6199_s11 + $0x7e0] ss:$8 sps:$4 sm:$0xff]  }
 0x112   : > { %3730 = vmatmul.mubr.bf16.vlgmr.msra.gmra.mrb[8].mxu0 %v4468_v23  ;;  %v5540_v23 = vld [vmem:[%s6199_s11 + $0x6f0] ss:$8 sps:$4 sm:$0xff]  }
 0x113   : > { %3771 = vmatmul.mubr.bf16.vlgmr.msra.gmra.mrb[8].mxu1 %v4470_v24  ;;  %3780 = vmatpush1.bf16.msra.mxu0 %v5450_v21  ;;  %v5542_v21 = vld [vmem:[%s6199_s11 + $0x6f4] ss:$8 sps:$4 sm:$0xff]   ;;  %v5543_v24 = vld [vmem:[%s6199_s11 + $0x7f0] ss:$8 sps:$4 sm:$0xff]  }
 0x114   : > { %3821 = vmatpush1.bf16.msra.mxu1 %v5453_v22  ;;  %3781 = vmatprep.subr.bf16.mxu0 %v5458_v27  ;;  %v5545_v22 = vld [vmem:[%s6199_s11 + $0x7f4] ss:$8 sps:$4 sm:$0xff]   ;;  %v5552_v27 = vld [vmem:[%s6199_s11 + $0x804] ss:$8 sps:$4 sm:$0xff]  }
 0x115   : > { %3822 = vmatprep.subr.bf16.mxu1 %v5461_v28  ;;  %3811 = vmatprep.mubr.bf16.mxu0 %v4473_v19  ;;  %v5555_v28 = vld [vmem:[%s6199_s11 + $0x904] ss:$8 sps:$4 sm:$0xff]   ;;  %v6531_v19 = vld [vmem:[%s6214_s10 + $0x40] sm:$0xff] }
 0x116   : > { %3852 = vmatprep.mubr.bf16.mxu1 %v4475_v20  ;;  %v4472_v20 = vcombine.low %v6459_v25, %v6459_v25  ;;  %v4477_v25 = vcombine.high %v6531_v19, %v6531_v19 }
 0x117   : > { %3782 = vmatpush1.bf16.msra.mxu0 %v5456_v29  ;;  %v4474_v29 = vcombine.low %v6462_v26, %v6462_v26 }
 0x118   : > { %3823 = vmatpush1.bf16.msra.mxu1 %v5459_v30  ;;  %3783 = vmatprep.subr.bf16.mxu0 %v5464_v31  ;;  %v6538_v30 = vld [vmem:[%s6214_s10 + $0x48] sm:$0xff]  ;;  %v5550_v31 = vld [vmem:[%s6199_s11 + $0x800] ss:$8 sps:$4 sm:$0xff]  }
 0x119   : > { %3824 = vmatprep.subr.bf16.mxu1 %v5467_v32  ;;  %v5553_v32 = vld [vmem:[%s6199_s11 + $0x900] ss:$8 sps:$4 sm:$0xff]   ;;  %v4479_v26 = vcombine.high %v6538_v30, %v6538_v30 }
 0x11b   : > { %3784 = vmatpush1.bf16.msra.mxu0 %v5462_v33  ;;  %v5558_v33 = vld [vmem:[%s6199_s11 + $0x814] ss:$8 sps:$4 sm:$0xff]  }
 0x11c   : > { %3825 = vmatpush1.bf16.msra.mxu1 %v5465_v34  ;;  %3785 = vmatprep.subr.bf16.mxu0 %v5470_v35  ;;  %v5561_v34 = vld [vmem:[%s6199_s11 + $0x914] ss:$8 sps:$4 sm:$0xff]   ;;  %v5556_v35 = vld [vmem:[%s6199_s11 + $0x810] ss:$8 sps:$4 sm:$0xff]  }
 0x11d   : > { %3826 = vmatprep.subr.bf16.mxu1 %v5473_v36  ;;  %v5559_v36 = vld [vmem:[%s6199_s11 + $0x910] ss:$8 sps:$4 sm:$0xff]  }
 0x11f   : > { %3786 = vmatpush1.bf16.msra.mxu0 %v5468_v37  ;;  %v5564_v37 = vld [vmem:[%s6199_s11 + $0x824] ss:$8 sps:$4 sm:$0xff]  }
 0x120   : > { %3827 = vmatpush1.bf16.msra.mxu1 %v5471_v38  ;;  %3787 = vmatprep.subr.bf16.mxu0 %v5476_v39  ;;  %v5567_v38 = vld [vmem:[%s6199_s11 + $0x924] ss:$8 sps:$4 sm:$0xff]   ;;  %v5562_v39 = vld [vmem:[%s6199_s11 + $0x820] ss:$8 sps:$4 sm:$0xff]  }
 0x121   : > { %3828 = vmatprep.subr.bf16.mxu1 %v5479_v40  ;;  %v5565_v40 = vld [vmem:[%s6199_s11 + $0x920] ss:$8 sps:$4 sm:$0xff]  }
 0x123   : > { %3788 = vmatpush1.bf16.msra.mxu0 %v5474_v41  ;;  %v5570_v41 = vld [vmem:[%s6199_s11 + $0x834] ss:$8 sps:$4 sm:$0xff]  }
 0x124   : > { %3829 = vmatpush1.bf16.msra.mxu1 %v5477_v42  ;;  %3789 = vmatprep.subr.bf16.mxu0 %v5482_v43  ;;  %v5573_v42 = vld [vmem:[%s6199_s11 + $0x934] ss:$8 sps:$4 sm:$0xff]   ;;  %v5568_v43 = vld [vmem:[%s6199_s11 + $0x830] ss:$8 sps:$4 sm:$0xff]  }
 0x125   : > { %3830 = vmatprep.subr.bf16.mxu1 %v5485_v44  ;;  %v5571_v44 = vld [vmem:[%s6199_s11 + $0x930] ss:$8 sps:$4 sm:$0xff]  }
 0x127   : > { %3790 = vmatpush1.bf16.msra.mxu0 %v5480_v45  ;;  %v5576_v45 = vld [vmem:[%s6199_s11 + $0x844] ss:$8 sps:$4 sm:$0xff]  }
 0x128   : > { %3831 = vmatpush1.bf16.msra.mxu1 %v5483_v46  ;;  %3791 = vmatprep.subr.bf16.mxu0 %v5488_v47  ;;  %v5579_v46 = vld [vmem:[%s6199_s11 + $0x944] ss:$8 sps:$4 sm:$0xff]   ;;  %v5574_v47 = vld [vmem:[%s6199_s11 + $0x840] ss:$8 sps:$4 sm:$0xff]  }
 0x129   : > { %3832 = vmatprep.subr.bf16.mxu1 %v5491_v48  ;;  %v5577_v48 = vld [vmem:[%s6199_s11 + $0x940] ss:$8 sps:$4 sm:$0xff]  }
 0x12b   : > { %3792 = vmatpush1.bf16.msra.mxu0 %v5486_v49  ;;  %v5582_v49 = vld [vmem:[%s6199_s11 + $0x854] ss:$8 sps:$4 sm:$0xff]  }
 0x12c   : > { %3833 = vmatpush1.bf16.msra.mxu1 %v5489_v50  ;;  %3793 = vmatprep.subr.bf16.mxu0 %v5494_v51  ;;  %v5585_v50 = vld [vmem:[%s6199_s11 + $0x954] ss:$8 sps:$4 sm:$0xff]   ;;  %v5580_v51 = vld [vmem:[%s6199_s11 + $0x850] ss:$8 sps:$4 sm:$0xff]  }
 0x12d   : > { %3834 = vmatprep.subr.bf16.mxu1 %v5497_v52  ;;  %v5583_v52 = vld [vmem:[%s6199_s11 + $0x950] ss:$8 sps:$4 sm:$0xff]  }
 0x12f   : > { %3794 = vmatpush1.bf16.msra.mxu0 %v5492_v53  ;;  %v5588_v53 = vld [vmem:[%s6199_s11 + $0x864] ss:$8 sps:$4 sm:$0xff]  }
 0x130   : > { %3835 = vmatpush1.bf16.msra.mxu1 %v5495_v54  ;;  %3795 = vmatprep.subr.bf16.mxu0 %v5500_v55  ;;  %v5591_v54 = vld [vmem:[%s6199_s11 + $0x964] ss:$8 sps:$4 sm:$0xff]  }
 0x131   : > { %3836 = vmatprep.subr.bf16.mxu1 %v5503_v56 }
 0x133   : > { %3796 = vmatpush1.bf16.msra.mxu0 %v5498_v57  ;;  %v5586_v57 = vld [vmem:[%s6199_s11 + $0x860] ss:$8 sps:$4 sm:$0xff]  }
 0x134   : > { %3837 = vmatpush1.bf16.msra.mxu1 %v5501_v58  ;;  %3797 = vmatprep.subr.bf16.mxu0 %v5506_v59  ;;  %v5589_v58 = vld [vmem:[%s6199_s11 + $0x960] ss:$8 sps:$4 sm:$0xff]  }
 0x135   : > { %3838 = vmatprep.subr.bf16.mxu1 %v5509_v60 }
 0x137   : > { %3798 = vmatpush1.bf16.msra.mxu0 %v5504_v61 }
 0x138   : > { %3839 = vmatpush1.bf16.msra.mxu1 %v5507_v62  ;;  %3799 = vmatprep.subr.bf16.mxu0 %v5512_v63 }
 0x139   : > { %3840 = vmatprep.subr.bf16.mxu1 %v5515_v0 }
 0x13b   : > { %3800 = vmatpush1.bf16.msra.mxu0 %v5510_v1 }
 0x13c   : > { %3841 = vmatpush1.bf16.msra.mxu1 %v5513_v2  ;;  %3801 = vmatprep.subr.bf16.mxu0 %v5518_v3  ;;  %v5594_v3 = vld [vmem:[%s6199_s11 + $0x874] ss:$8 sps:$4 sm:$0xff]  }
 0x13d   : > { %3842 = vmatprep.subr.bf16.mxu1 %v5521_v4  ;;  %v5597_v4 = vld [vmem:[%s6199_s11 + $0x974] ss:$8 sps:$4 sm:$0xff]  }
 0x13f   : > { %3802 = vmatpush1.bf16.msra.mxu0 %v5516_v5  ;;  %v5592_v5 = vld [vmem:[%s6199_s11 + $0x870] ss:$8 sps:$4 sm:$0xff]  }
 0x140   : > { %3843 = vmatpush1.bf16.msra.mxu1 %v5519_v6  ;;  %3803 = vmatprep.subr.bf16.mxu0 %v5524_v7  ;;  %v5595_v6 = vld [vmem:[%s6199_s11 + $0x970] ss:$8 sps:$4 sm:$0xff]   ;;  %v5600_v7 = vld [vmem:[%s6199_s11 + $0x884] ss:$8 sps:$4 sm:$0xff]  }
 0x141   : > { %3844 = vmatprep.subr.bf16.mxu1 %v5527_v8  ;;  %v5603_v8 = vld [vmem:[%s6199_s11 + $0x984] ss:$8 sps:$4 sm:$0xff]  }
 0x143   : > { %3804 = vmatpush1.bf16.msra.mxu0 %v5522_v9  ;;  %v5598_v9 = vld [vmem:[%s6199_s11 + $0x880] ss:$8 sps:$4 sm:$0xff]  }
 0x144   : > { %3845 = vmatpush1.bf16.msra.mxu1 %v5525_v10  ;;  %3805 = vmatprep.subr.bf16.mxu0 %v5530_v11  ;;  %v5601_v10 = vld [vmem:[%s6199_s11 + $0x980] ss:$8 sps:$4 sm:$0xff]   ;;  %v5606_v11 = vld [vmem:[%s6199_s11 + $0x894] ss:$8 sps:$4 sm:$0xff]  }
 0x145   : > { %3846 = vmatprep.subr.bf16.mxu1 %v5533_v12  ;;  %v5609_v12 = vld [vmem:[%s6199_s11 + $0x994] ss:$8 sps:$4 sm:$0xff]  }
 0x147   : > { %3806 = vmatpush1.bf16.msra.mxu0 %v5528_v13  ;;  %v5604_v13 = vld [vmem:[%s6199_s11 + $0x890] ss:$8 sps:$4 sm:$0xff]  }
 0x148   : > { %3847 = vmatpush1.bf16.msra.mxu1 %v5531_v14  ;;  %3807 = vmatprep.subr.bf16.mxu0 %v5536_v15  ;;  %v5607_v14 = vld [vmem:[%s6199_s11 + $0x990] ss:$8 sps:$4 sm:$0xff]   ;;  %v5612_v15 = vld [vmem:[%s6199_s11 + $0x8a4] ss:$8 sps:$4 sm:$0xff]  }
 0x149   : > { %3848 = vmatprep.subr.bf16.mxu1 %v5539_v16  ;;  %v5615_v16 = vld [vmem:[%s6199_s11 + $0x9a4] ss:$8 sps:$4 sm:$0xff]  }
 0x14b   : > { %3808 = vmatpush1.bf16.msra.mxu0 %v5534_v17  ;;  %v5610_v17 = vld [vmem:[%s6199_s11 + $0x8a0] ss:$8 sps:$4 sm:$0xff]  }
 0x14c   : > { %3849 = vmatpush1.bf16.msra.mxu1 %v5537_v18  ;;  %3809 = vmatprep.subr.bf16.mxu0 %v5542_v21  ;;  %v5613_v18 = vld [vmem:[%s6199_s11 + $0x9a0] ss:$8 sps:$4 sm:$0xff]   ;;  %v5618_v21 = vld [vmem:[%s6199_s11 + $0x8b4] ss:$8 sps:$4 sm:$0xff]  }
 0x14d   : > { %3850 = vmatprep.subr.bf16.mxu1 %v5545_v22  ;;  %v5621_v22 = vld [vmem:[%s6199_s11 + $0x9b4] ss:$8 sps:$4 sm:$0xff]  }
 0x14f   : > { %3810 = vmatpush1.bf16.msra.mxu0 %v5540_v23  ;;  %v5616_v23 = vld [vmem:[%s6199_s11 + $0x8b0] ss:$8 sps:$4 sm:$0xff]  }
 0x150   : > { %3851 = vmatpush1.bf16.msra.mxu1 %v5543_v24  ;;  %3861 = vmatprep.subr.bf16.mxu0 %v5552_v27  ;;  %v5619_v24 = vld [vmem:[%s6199_s11 + $0x9b0] ss:$8 sps:$4 sm:$0xff]   ;;  %v5624_v27 = vld [vmem:[%s6199_s11 + $0x8c4] ss:$8 sps:$4 sm:$0xff]  }
 0x151   : > { %3902 = vmatprep.subr.bf16.mxu1 %v5555_v28  ;;  %v5627_v28 = vld [vmem:[%s6199_s11 + $0x9c4] ss:$8 sps:$4 sm:$0xff]  }
 0x152   : > { %3812 = vmatmul.mubr.bf16.vlgmr.msra.gmra.mrb[12].mxu0 %v4472_v20  ;;  %v5622_v20 = vld [vmem:[%s6199_s11 + $0x8c0] ss:$8 sps:$4 sm:$0xff]  }
 0x153   : > { %3853 = vmatmul.mubr.bf16.vlgmr.msra.gmra.mrb[12].mxu1 %v4474_v29  ;;  %3862 = vmatpush1.bf16.msra.mxu0 %v5550_v31  ;;  %v5625_v29 = vld [vmem:[%s6199_s11 + $0x9c0] ss:$8 sps:$4 sm:$0xff]   ;;  %v5630_v31 = vld [vmem:[%s6199_s11 + $0x8d4] ss:$8 sps:$4 sm:$0xff]  }
 0x154   : > { %3903 = vmatpush1.bf16.msra.mxu1 %v5553_v32  ;;  %3863 = vmatprep.subr.bf16.mxu0 %v5558_v33  ;;  %v5633_v32 = vld [vmem:[%s6199_s11 + $0x9d4] ss:$8 sps:$4 sm:$0xff]   ;;  %v5628_v33 = vld [vmem:[%s6199_s11 + $0x8d0] ss:$8 sps:$4 sm:$0xff]  }
 0x155   : > { %3904 = vmatprep.subr.bf16.mxu1 %v5561_v34  ;;  %3893 = vmatprep.mubr.bf16.mxu0 %v4477_v25  ;;  %v5631_v34 = vld [vmem:[%s6199_s11 + $0x9d0] ss:$8 sps:$4 sm:$0xff]   ;;  %v5636_v25 = vld [vmem:[%s6199_s11 + $0x8e4] ss:$8 sps:$4 sm:$0xff]  }
 0x156   : > { %3934 = vmatprep.mubr.bf16.mxu1 %v4479_v26  ;;  %v5639_v26 = vld [vmem:[%s6199_s11 + $0x9e4] ss:$8 sps:$4 sm:$0xff]  }
 0x157   : > { %3864 = vmatpush1.bf16.msra.mxu0 %v5556_v35  ;;  %v5634_v35 = vld [vmem:[%s6199_s11 + $0x8e0] ss:$8 sps:$4 sm:$0xff]  }
 0x158   : > { %3905 = vmatpush1.bf16.msra.mxu1 %v5559_v36  ;;  %3865 = vmatprep.subr.bf16.mxu0 %v5564_v37  ;;  %v5637_v36 = vld [vmem:[%s6199_s11 + $0x9e0] ss:$8 sps:$4 sm:$0xff]   ;;  %v5642_v37 = vld [vmem:[%s6199_s11 + $0x8f4] ss:$8 sps:$4 sm:$0xff]  }
 0x159   : > { %3906 = vmatprep.subr.bf16.mxu1 %v5567_v38  ;;  %v5645_v38 = vld [vmem:[%s6199_s11 + $0x9f4] ss:$8 sps:$4 sm:$0xff]  }
 0x15b   : > { %3866 = vmatpush1.bf16.msra.mxu0 %v5562_v39  ;;  %v5640_v39 = vld [vmem:[%s6199_s11 + $0x8f0] ss:$8 sps:$4 sm:$0xff]  }
 0x15c   : > { %3907 = vmatpush1.bf16.msra.mxu1 %v5565_v40  ;;  %3867 = vmatprep.subr.bf16.mxu0 %v5570_v41  ;;  %v5643_v40 = vld [vmem:[%s6199_s11 + $0x9f0] ss:$8 sps:$4 sm:$0xff]   ;;  %v5652_v41 = vld [vmem:[%s6199_s11 + $0xa04] ss:$8 sps:$4 sm:$0xff]  }
 0x15d   : > { %3908 = vmatprep.subr.bf16.mxu1 %v5573_v42  ;;  %v5655_v42 = vld [vmem:[%s6199_s11 + $0xb04] ss:$8 sps:$4 sm:$0xff]  }
 0x15f   : > { %3868 = vmatpush1.bf16.msra.mxu0 %v5568_v43  ;;  %v5650_v43 = vld [vmem:[%s6199_s11 + $0xa00] ss:$8 sps:$4 sm:$0xff]  }
 0x160   : > { %3909 = vmatpush1.bf16.msra.mxu1 %v5571_v44  ;;  %3869 = vmatprep.subr.bf16.mxu0 %v5576_v45  ;;  %v5653_v44 = vld [vmem:[%s6199_s11 + $0xb00] ss:$8 sps:$4 sm:$0xff]   ;;  %v4476_v45 = vcombine.low %v6531_v19, %v6531_v19 }
 0x161   : > { %3910 = vmatprep.subr.bf16.mxu1 %v5579_v46  ;;  %v4478_v46 = vcombine.low %v6538_v30, %v6538_v30 }
 0x163   : > { %3870 = vmatpush1.bf16.msra.mxu0 %v5574_v47  ;;  %v6619_v47 = vld [vmem:[%s6214_s10 + $0x50] sm:$0xff] }
 0x164   : > { %3911 = vmatpush1.bf16.msra.mxu1 %v5577_v48  ;;  %3871 = vmatprep.subr.bf16.mxu0 %v5582_v49  ;;  %v6622_v48 = vld [vmem:[%s6214_s10 + $0x58] sm:$0xff]  ;;  %v5658_v49 = vld [vmem:[%s6199_s11 + $0xa14] ss:$8 sps:$4 sm:$0xff]   ;;  %v4481_v19 = vcombine.high %v6619_v47, %v6619_v47 }
 0x165   : > { %3912 = vmatprep.subr.bf16.mxu1 %v5585_v50  ;;  %v3567_v55 = vpop.f32.mrb[0].mxu0  ;;  %v5661_v50 = vld [vmem:[%s6199_s11 + $0xb14] ss:$8 sps:$4 sm:$0xff]   ;;  %v4483_v30 = vcombine.high %v6622_v48, %v6622_v48 }
 0x166   : > { %v3608_v56 = vpop.f32.mrb[0].mxu1  ;;  %v3569_v60 = vpop.f32.mrb[1].mxu0 }
 0x167   : > { %v6570_v59 = vadd.f32 %v3608_v56, %v3567_v55  ;;  %v3610_v61 = vpop.f32.mrb[1].mxu1  ;;  %v3571_v63 = vpop.f32.mrb[2].mxu0  ;;  %3872 = vmatpush1.bf16.msra.mxu0 %v5580_v51  ;;  %v5656_v51 = vld [vmem:[%s6199_s11 + $0xa10] ss:$8 sps:$4 sm:$0xff]   ;;  %v5662_v55 = vld [vmem:[%s6199_s11 + $0xa20] ss:$8 sps:$4 sm:$0xff]  }
 0x168   : > { %v6572_v62 = vadd.f32 %v3610_v61, %v3569_v60  ;;  %v3612_v0 = vpop.f32.mrb[2].mxu1  ;;  %3913 = vmatpush1.bf16.msra.mxu1 %v5583_v52  ;;  %v3572_v1 = vpop.f32.mrb[3].mxu0  ;;  %3873 = vmatprep.subr.bf16.mxu0 %v5588_v53  ;;  %v5659_v52 = vld [vmem:[%s6199_s11 + $0xb10] ss:$8 sps:$4 sm:$0xff]   ;;  %v5664_v53 = vld [vmem:[%s6199_s11 + $0xa24] ss:$8 sps:$4 sm:$0xff]  }
 0x169   : > { %v3613_v2 = vpop.f32.mrb[3].mxu1  ;;  %3914 = vmatprep.subr.bf16.mxu1 %v5591_v54  ;;  %v5667_v54 = vld [vmem:[%s6199_s11 + $0xb24] ss:$8 sps:$4 sm:$0xff]   ;;  %v5665_v56 = vld [vmem:[%s6199_s11 + $0xb20] ss:$8 sps:$4 sm:$0xff]  }
 0x16a   : > { %v5668_v60 = vld [vmem:[%s6199_s11 + $0xa30] ss:$8 sps:$4 sm:$0xff]   ;;  %v5676_v63 = vld [vmem:[%s6199_s11 + $0xa44] ss:$8 sps:$4 sm:$0xff]   ;;  %v5674_v1 = vld [vmem:[%s6199_s11 + $0xa40] ss:$8 sps:$4 sm:$0xff]  }
 0x16b   : > { %3874 = vmatpush1.bf16.msra.mxu0 %v5586_v57  ;;  %v5670_v57 = vld [vmem:[%s6199_s11 + $0xa34] ss:$8 sps:$4 sm:$0xff]   ;;  %v5671_v61 = vld [vmem:[%s6199_s11 + $0xb30] ss:$8 sps:$4 sm:$0xff]   ;;  %v5679_v0 = vld [vmem:[%s6199_s11 + $0xb44] ss:$8 sps:$4 sm:$0xff]  }
 0x16c   : > { %3915 = vmatpush1.bf16.msra.mxu1 %v5589_v58  ;;  %3875 = vmatprep.subr.bf16.mxu0 %v5594_v3  ;;  %v5673_v58 = vld [vmem:[%s6199_s11 + $0xb34] ss:$8 sps:$4 sm:$0xff]   ;;  %v5677_v2 = vld [vmem:[%s6199_s11 + $0xb40] ss:$8 sps:$4 sm:$0xff]  }
 0x16d   : > { %3916 = vmatprep.subr.bf16.mxu1 %v5597_v4  ;;  %v5682_v3 = vld [vmem:[%s6199_s11 + $0xa54] ss:$8 sps:$4 sm:$0xff]  }
 0x16e   : > { %v5685_v4 = vld [vmem:[%s6199_s11 + $0xb54] ss:$8 sps:$4 sm:$0xff]  }
 0x16f   : > { %3876 = vmatpush1.bf16.msra.mxu0 %v5592_v5  ;;  %v5680_v5 = vld [vmem:[%s6199_s11 + $0xa50] ss:$8 sps:$4 sm:$0xff]  }
 0x170   : > { %3917 = vmatpush1.bf16.msra.mxu1 %v5595_v6  ;;  %3877 = vmatprep.subr.bf16.mxu0 %v5600_v7  ;;  %v5683_v6 = vld [vmem:[%s6199_s11 + $0xb50] ss:$8 sps:$4 sm:$0xff]   ;;  %v5688_v7 = vld [vmem:[%s6199_s11 + $0xa64] ss:$8 sps:$4 sm:$0xff]  }
 0x171   : > { %3918 = vmatprep.subr.bf16.mxu1 %v5603_v8  ;;  %v5691_v8 = vld [vmem:[%s6199_s11 + $0xb64] ss:$8 sps:$4 sm:$0xff]  }
 0x173   : > { %3878 = vmatpush1.bf16.msra.mxu0 %v5598_v9 }
 0x174   : > { %3919 = vmatpush1.bf16.msra.mxu1 %v5601_v10  ;;  %3879 = vmatprep.subr.bf16.mxu0 %v5606_v11 }
 0x175   : > { %3920 = vmatprep.subr.bf16.mxu1 %v5609_v12 }
 0x177   : > { %3880 = vmatpush1.bf16.msra.mxu0 %v5604_v13 }
 0x178   : > { %3921 = vmatpush1.bf16.msra.mxu1 %v5607_v14  ;;  %3881 = vmatprep.subr.bf16.mxu0 %v5612_v15 }
 0x179   : > { %3922 = vmatprep.subr.bf16.mxu1 %v5615_v16 }
 0x17b   : > { %3882 = vmatpush1.bf16.msra.mxu0 %v5610_v17  ;;  %v5686_v17 = vld [vmem:[%s6199_s11 + $0xa60] ss:$8 sps:$4 sm:$0xff]  }
 0x17c   : > { %3923 = vmatpush1.bf16.msra.mxu1 %v5613_v18  ;;  %3883 = vmatprep.subr.bf16.mxu0 %v5618_v21  ;;  %v5689_v18 = vld [vmem:[%s6199_s11 + $0xb60] ss:$8 sps:$4 sm:$0xff]  }
 0x17d   : > { %3924 = vmatprep.subr.bf16.mxu1 %v5621_v22 }
 0x17f   : > { %3884 = vmatpush1.bf16.msra.mxu0 %v5616_v23 }
 0x180   : > { %3925 = vmatpush1.bf16.msra.mxu1 %v5619_v24  ;;  %3885 = vmatprep.subr.bf16.mxu0 %v5624_v27  ;;  %v5692_v27 = vld [vmem:[%s6199_s11 + $0xa70] ss:$8 sps:$4 sm:$0xff]  }
 0x181   : > { %3926 = vmatprep.subr.bf16.mxu1 %v5627_v28  ;;  %v5695_v28 = vld [vmem:[%s6199_s11 + $0xb70] ss:$8 sps:$4 sm:$0xff]  }
 0x183   : > { %3886 = vmatpush1.bf16.msra.mxu0 %v5622_v20  ;;  %v5700_v20 = vld [vmem:[%s6199_s11 + $0xa84] ss:$8 sps:$4 sm:$0xff]  }
 0x184   : > { %3927 = vmatpush1.bf16.msra.mxu1 %v5625_v29  ;;  %3887 = vmatprep.subr.bf16.mxu0 %v5630_v31  ;;  %v5703_v29 = vld [vmem:[%s6199_s11 + $0xb84] ss:$8 sps:$4 sm:$0xff]   ;;  %v5698_v31 = vld [vmem:[%s6199_s11 + $0xa80] ss:$8 sps:$4 sm:$0xff]  }
 0x185   : > { %3928 = vmatprep.subr.bf16.mxu1 %v5633_v32  ;;  %v5701_v32 = vld [vmem:[%s6199_s11 + $0xb80] ss:$8 sps:$4 sm:$0xff]  }
 0x187   : > { %3888 = vmatpush1.bf16.msra.mxu0 %v5628_v33  ;;  %v5706_v33 = vld [vmem:[%s6199_s11 + $0xa94] ss:$8 sps:$4 sm:$0xff]  }
 0x188   : > { %3929 = vmatpush1.bf16.msra.mxu1 %v5631_v34  ;;  %3889 = vmatprep.subr.bf16.mxu0 %v5636_v25  ;;  %v5709_v34 = vld [vmem:[%s6199_s11 + $0xb94] ss:$8 sps:$4 sm:$0xff]   ;;  %v5704_v25 = vld [vmem:[%s6199_s11 + $0xa90] ss:$8 sps:$4 sm:$0xff]  }
 0x189   : > { %3930 = vmatprep.subr.bf16.mxu1 %v5639_v26  ;;  %v5707_v26 = vld [vmem:[%s6199_s11 + $0xb90] ss:$8 sps:$4 sm:$0xff]  }
 0x18b   : > { %3890 = vmatpush1.bf16.msra.mxu0 %v5634_v35  ;;  %v5712_v35 = vld [vmem:[%s6199_s11 + $0xaa4] ss:$8 sps:$4 sm:$0xff]  }
 0x18c   : > { %3931 = vmatpush1.bf16.msra.mxu1 %v5637_v36  ;;  %3891 = vmatprep.subr.bf16.mxu0 %v5642_v37  ;;  %v5715_v36 = vld [vmem:[%s6199_s11 + $0xba4] ss:$8 sps:$4 sm:$0xff]   ;;  %v5710_v37 = vld [vmem:[%s6199_s11 + $0xaa0] ss:$8 sps:$4 sm:$0xff]  }
 0x18d   : > { %3932 = vmatprep.subr.bf16.mxu1 %v5645_v38  ;;  %v5713_v38 = vld [vmem:[%s6199_s11 + $0xba0] ss:$8 sps:$4 sm:$0xff]  }
 0x18f   : > { %3892 = vmatpush1.bf16.msra.mxu0 %v5640_v39  ;;  %v5718_v39 = vld [vmem:[%s6199_s11 + $0xab4] ss:$8 sps:$4 sm:$0xff]  }
 0x190   : > { %3933 = vmatpush1.bf16.msra.mxu1 %v5643_v40  ;;  %3943 = vmatprep.subr.bf16.mxu0 %v5652_v41  ;;  %v5721_v40 = vld [vmem:[%s6199_s11 + $0xbb4] ss:$8 sps:$4 sm:$0xff]   ;;  %v5716_v41 = vld [vmem:[%s6199_s11 + $0xab0] ss:$8 sps:$4 sm:$0xff]  }
 0x191   : > { %3984 = vmatprep.subr.bf16.mxu1 %v5655_v42  ;;  %v5719_v42 = vld [vmem:[%s6199_s11 + $0xbb0] ss:$8 sps:$4 sm:$0xff]  }
 0x192   : > { %3894 = vmatmul.mubr.bf16.vlgmr.msra.gmra.mrb[16].mxu0 %v4476_v45  ;;  %v5722_v45 = vld [vmem:[%s6199_s11 + $0xac0] ss:$8 sps:$4 sm:$0xff]  }
 0x193   : > { %3935 = vmatmul.mubr.bf16.vlgmr.msra.gmra.mrb[16].mxu1 %v4478_v46  ;;  %3944 = vmatpush1.bf16.msra.mxu0 %v5650_v43  ;;  %v5724_v43 = vld [vmem:[%s6199_s11 + $0xac4] ss:$8 sps:$4 sm:$0xff]   ;;  %v5725_v46 = vld [vmem:[%s6199_s11 + $0xbc0] ss:$8 sps:$4 sm:$0xff]  }
 0x194   : > { %3985 = vmatpush1.bf16.msra.mxu1 %v5653_v44  ;;  %3945 = vmatprep.subr.bf16.mxu0 %v5658_v49  ;;  %v5727_v44 = vld [vmem:[%s6199_s11 + $0xbc4] ss:$8 sps:$4 sm:$0xff]   ;;  %v5730_v49 = vld [vmem:[%s6199_s11 + $0xad4] ss:$8 sps:$4 sm:$0xff]  }
 0x195   : > { %3986 = vmatprep.subr.bf16.mxu1 %v5661_v50  ;;  %3975 = vmatprep.mubr.bf16.mxu0 %v4481_v19  ;;  %v5733_v50 = vld [vmem:[%s6199_s11 + $0xbd4] ss:$8 sps:$4 sm:$0xff]   ;;  %v5728_v19 = vld [vmem:[%s6199_s11 + $0xad0] ss:$8 sps:$4 sm:$0xff]  }
 0x196   : > { %4016 = vmatprep.mubr.bf16.mxu1 %v4483_v30  ;;  %v5731_v30 = vld [vmem:[%s6199_s11 + $0xbd0] ss:$8 sps:$4 sm:$0xff]  }
 0x197   : > { %3946 = vmatpush1.bf16.msra.mxu0 %v5656_v51  ;;  %v5736_v51 = vld [vmem:[%s6199_s11 + $0xae4] ss:$8 sps:$4 sm:$0xff]  }
 0x198   : > { %3987 = vmatpush1.bf16.msra.mxu1 %v5659_v52  ;;  %3947 = vmatprep.subr.bf16.mxu0 %v5664_v53  ;;  %v5739_v52 = vld [vmem:[%s6199_s11 + $0xbe4] ss:$8 sps:$4 sm:$0xff]   ;;  %v5734_v53 = vld [vmem:[%s6199_s11 + $0xae0] ss:$8 sps:$4 sm:$0xff]  }
 0x199   : > { %3988 = vmatprep.subr.bf16.mxu1 %v5667_v54  ;;  %v5737_v54 = vld [vmem:[%s6199_s11 + $0xbe0] ss:$8 sps:$4 sm:$0xff]  }
 0x19b   : > { %3948 = vmatpush1.bf16.msra.mxu0 %v5662_v55  ;;  %v5742_v55 = vld [vmem:[%s6199_s11 + $0xaf4] ss:$8 sps:$4 sm:$0xff]  }
 0x19c   : > { %3989 = vmatpush1.bf16.msra.mxu1 %v5665_v56  ;;  %3949 = vmatprep.subr.bf16.mxu0 %v5670_v57  ;;  %v5745_v56 = vld [vmem:[%s6199_s11 + $0xbf4] ss:$8 sps:$4 sm:$0xff]   ;;  %v5740_v57 = vld [vmem:[%s6199_s11 + $0xaf0] ss:$8 sps:$4 sm:$0xff]  }
 0x19d   : > { %3990 = vmatprep.subr.bf16.mxu1 %v5673_v58  ;;  %v5743_v58 = vld [vmem:[%s6199_s11 + $0xbf0] ss:$8 sps:$4 sm:$0xff]  }
 0x19f   : > { %3950 = vmatpush1.bf16.msra.mxu0 %v5668_v60  ;;  %v5752_v60 = vld [vmem:[%s6199_s11 + $0xc04] ss:$8 sps:$4 sm:$0xff]  }
 0x1a0   : > { %3991 = vmatpush1.bf16.msra.mxu1 %v5671_v61  ;;  %3951 = vmatprep.subr.bf16.mxu0 %v5676_v63  ;;  %v5755_v61 = vld [vmem:[%s6199_s11 + $0xd04] ss:$8 sps:$4 sm:$0xff]   ;;  %v4480_v63 = vcombine.low %v6619_v47, %v6619_v47 }
 0x1a1   : > { %3992 = vmatprep.subr.bf16.mxu1 %v5679_v0  ;;  %v4482_v0 = vcombine.low %v6622_v48, %v6622_v48 }
 0x1a3   : > { %3952 = vmatpush1.bf16.msra.mxu0 %v5674_v1  ;;  %v6701_v1 = vld [vmem:[%s6214_s10 + $0x60] sm:$0xff] }
 0x1a4   : > { %3993 = vmatpush1.bf16.msra.mxu1 %v5677_v2  ;;  %3953 = vmatprep.subr.bf16.mxu0 %v5682_v3  ;;  %v6704_v2 = vld [vmem:[%s6214_s10 + $0x68] sm:$0xff]  ;;  %v5750_v3 = vld [vmem:[%s6199_s11 + $0xc00] ss:$8 sps:$4 sm:$0xff]   ;;  %v4485_v47 = vcombine.high %v6701_v1, %v6701_v1 }
 0x1a5   : > { %3994 = vmatprep.subr.bf16.mxu1 %v5685_v4  ;;  %v3649_v9 = vpop.f32.mrb[4].mxu0  ;;  %v5753_v4 = vld [vmem:[%s6199_s11 + $0xd00] ss:$8 sps:$4 sm:$0xff]   ;;  %v4487_v48 = vcombine.high %v6704_v2, %v6704_v2 }
 0x1a6   : > { %v3690_v10 = vpop.f32.mrb[4].mxu1  ;;  %v3650_v11 = vadd.f32 %v3649_v9, %v6570_v59  ;;  %v3651_v12 = vpop.f32.mrb[5].mxu0  ;;  %v5694_v59 = vld [vmem:[%s6199_s11 + $0xa74] ss:$8 sps:$4 sm:$0xff]   ;;  %v5764_v9 = vld [vmem:[%s6199_s11 + $0xc24] ss:$8 sps:$4 sm:$0xff]  }
 0x1a7   : > { %v3692_v13 = vpop.f32.mrb[5].mxu1  ;;  %v3652_v14 = vadd.f32 %v3651_v12, %v6572_v62  ;;  %v3653_v15 = vpop.f32.mrb[6].mxu0  ;;  %3954 = vmatpush1.bf16.msra.mxu0 %v5680_v5  ;;  %v5697_v62 = vld [vmem:[%s6199_s11 + $0xb74] ss:$8 sps:$4 sm:$0xff]   ;;  %v5765_v12 = vld [vmem:[%s6199_s11 + $0xd20] ss:$8 sps:$4 sm:$0xff]  }
 0x1a8   : > { %v3694_v16 = vpop.f32.mrb[6].mxu1  ;;  %3995 = vmatpush1.bf16.msra.mxu1 %v5683_v6  ;;  %v6654_v21 = vadd.f32 %v3690_v10, %v3650_v11  ;;  %v3654_v22 = vpop.f32.mrb[7].mxu0  ;;  %3955 = vmatprep.subr.bf16.mxu0 %v5688_v7  ;;  %v5758_v5 = vld [vmem:[%s6199_s11 + $0xc14] ss:$8 sps:$4 sm:$0xff]   ;;  %v5756_v7 = vld [vmem:[%s6199_s11 + $0xc10] ss:$8 sps:$4 sm:$0xff]  }
 0x1a9   : > { %v3695_v23 = vpop.f32.mrb[7].mxu1  ;;  %3996 = vmatprep.subr.bf16.mxu1 %v5691_v8  ;;  %v6658_v24 = vadd.f32 %v3692_v13, %v3652_v14  ;;  %v5761_v6 = vld [vmem:[%s6199_s11 + $0xd14] ss:$8 sps:$4 sm:$0xff]   ;;  %v5759_v8 = vld [vmem:[%s6199_s11 + $0xd10] ss:$8 sps:$4 sm:$0xff]  }
 0x1aa   : > { %v5767_v10 = vld [vmem:[%s6199_s11 + $0xd24] ss:$8 sps:$4 sm:$0xff]   ;;  %v5762_v11 = vld [vmem:[%s6199_s11 + $0xc20] ss:$8 sps:$4 sm:$0xff]   ;;  %v5770_v13 = vld [vmem:[%s6199_s11 + $0xc34] ss:$8 sps:$4 sm:$0xff]  }
 0x1ab   : > { %3956 = vmatpush1.bf16.msra.mxu0 %v5686_v17  ;;  %v5773_v14 = vld [vmem:[%s6199_s11 + $0xd34] ss:$8 sps:$4 sm:$0xff]   ;;  %v5768_v15 = vld [vmem:[%s6199_s11 + $0xc30] ss:$8 sps:$4 sm:$0xff]   ;;  %v5776_v17 = vld [vmem:[%s6199_s11 + $0xc44] ss:$8 sps:$4 sm:$0xff]  }
 0x1ac   : > { %3997 = vmatpush1.bf16.msra.mxu1 %v5689_v18  ;;  %3957 = vmatprep.subr.bf16.mxu0 %v5694_v59  ;;  %v5771_v16 = vld [vmem:[%s6199_s11 + $0xd30] ss:$8 sps:$4 sm:$0xff]   ;;  %v5779_v18 = vld [vmem:[%s6199_s11 + $0xd44] ss:$8 sps:$4 sm:$0xff]   ;;  %v5774_v22 = vld [vmem:[%s6199_s11 + $0xc40] ss:$8 sps:$4 sm:$0xff]  }
 0x1ad   : > { %3998 = vmatprep.subr.bf16.mxu1 %v5697_v62  ;;  %v5777_v23 = vld [vmem:[%s6199_s11 + $0xd40] ss:$8 sps:$4 sm:$0xff]   ;;  %v5782_v59 = vld [vmem:[%s6199_s11 + $0xc54] ss:$8 sps:$4 sm:$0xff]  }
 0x1ae   : > { %v5785_v62 = vld [vmem:[%s6199_s11 + $0xd54] ss:$8 sps:$4 sm:$0xff]  }
 0x1af   : > { %3958 = vmatpush1.bf16.msra.mxu0 %v5692_v27  ;;  %v5780_v27 = vld [vmem:[%s6199_s11 + $0xc50] ss:$8 sps:$4 sm:$0xff]  }
 0x1b0   : > { %3999 = vmatpush1.bf16.msra.mxu1 %v5695_v28  ;;  %3959 = vmatprep.subr.bf16.mxu0 %v5700_v20  ;;  %v5783_v28 = vld [vmem:[%s6199_s11 + $0xd50] ss:$8 sps:$4 sm:$0xff]   ;;  %v5788_v20 = vld [vmem:[%s6199_s11 + $0xc64] ss:$8 sps:$4 sm:$0xff]  }
 0x1b1   : > { %4000 = vmatprep.subr.bf16.mxu1 %v5703_v29  ;;  %v5791_v29 = vld [vmem:[%s6199_s11 + $0xd64] ss:$8 sps:$4 sm:$0xff]  }
 0x1b3   : > { %3960 = vmatpush1.bf16.msra.mxu0 %v5698_v31 }
 0x1b4   : > { %4001 = vmatpush1.bf16.msra.mxu1 %v5701_v32  ;;  %3961 = vmatprep.subr.bf16.mxu0 %v5706_v33 }
 0x1b5   : > { %4002 = vmatprep.subr.bf16.mxu1 %v5709_v34 }
 0x1b7   : > { %3962 = vmatpush1.bf16.msra.mxu0 %v5704_v25 }
 0x1b8   : > { %4003 = vmatpush1.bf16.msra.mxu1 %v5707_v26  ;;  %3963 = vmatprep.subr.bf16.mxu0 %v5712_v35 }
 0x1b9   : > { %4004 = vmatprep.subr.bf16.mxu1 %v5715_v36 }
 0x1bb   : > { %3964 = vmatpush1.bf16.msra.mxu0 %v5710_v37  ;;  %v5786_v37 = vld [vmem:[%s6199_s11 + $0xc60] ss:$8 sps:$4 sm:$0xff]  }
 0x1bc   : > { %4005 = vmatpush1.bf16.msra.mxu1 %v5713_v38  ;;  %3965 = vmatprep.subr.bf16.mxu0 %v5718_v39  ;;  %v5789_v38 = vld [vmem:[%s6199_s11 + $0xd60] ss:$8 sps:$4 sm:$0xff]  }
 0x1bd   : > { %4006 = vmatprep.subr.bf16.mxu1 %v5721_v40 }
 0x1bf   : > { %3966 = vmatpush1.bf16.msra.mxu0 %v5716_v41 }
 0x1c0   : > { %4007 = vmatpush1.bf16.msra.mxu1 %v5719_v42  ;;  %3967 = vmatprep.subr.bf16.mxu0 %v5724_v43  ;;  %v5792_v43 = vld [vmem:[%s6199_s11 + $0xc70] ss:$8 sps:$4 sm:$0xff]  }
 0x1c1   : > { %4008 = vmatprep.subr.bf16.mxu1 %v5727_v44  ;;  %v5795_v44 = vld [vmem:[%s6199_s11 + $0xd70] ss:$8 sps:$4 sm:$0xff]  }
 0x1c3   : > { %3968 = vmatpush1.bf16.msra.mxu0 %v5722_v45  ;;  %v5800_v45 = vld [vmem:[%s6199_s11 + $0xc84] ss:$8 sps:$4 sm:$0xff]  }
 0x1c4   : > { %4009 = vmatpush1.bf16.msra.mxu1 %v5725_v46  ;;  %3969 = vmatprep.subr.bf16.mxu0 %v5730_v49  ;;  %v5803_v46 = vld [vmem:[%s6199_s11 + $0xd84] ss:$8 sps:$4 sm:$0xff]   ;;  %v5798_v49 = vld [vmem:[%s6199_s11 + $0xc80] ss:$8 sps:$4 sm:$0xff]  }
 0x1c5   : > { %4010 = vmatprep.subr.bf16.mxu1 %v5733_v50  ;;  %v5801_v50 = vld [vmem:[%s6199_s11 + $0xd80] ss:$8 sps:$4 sm:$0xff]  }
 0x1c7   : > { %3970 = vmatpush1.bf16.msra.mxu0 %v5728_v19  ;;  %v5806_v19 = vld [vmem:[%s6199_s11 + $0xc94] ss:$8 sps:$4 sm:$0xff]  }
 0x1c8   : > { %4011 = vmatpush1.bf16.msra.mxu1 %v5731_v30  ;;  %3971 = vmatprep.subr.bf16.mxu0 %v5736_v51  ;;  %v5809_v30 = vld [vmem:[%s6199_s11 + $0xd94] ss:$8 sps:$4 sm:$0xff]   ;;  %v5804_v51 = vld [vmem:[%s6199_s11 + $0xc90] ss:$8 sps:$4 sm:$0xff]  }
 0x1c9   : > { %4012 = vmatprep.subr.bf16.mxu1 %v5739_v52  ;;  %v5807_v52 = vld [vmem:[%s6199_s11 + $0xd90] ss:$8 sps:$4 sm:$0xff]  }
 0x1cb   : > { %3972 = vmatpush1.bf16.msra.mxu0 %v5734_v53  ;;  %v5812_v53 = vld [vmem:[%s6199_s11 + $0xca4] ss:$8 sps:$4 sm:$0xff]  }
 0x1cc   : > { %4013 = vmatpush1.bf16.msra.mxu1 %v5737_v54  ;;  %3973 = vmatprep.subr.bf16.mxu0 %v5742_v55  ;;  %v5815_v54 = vld [vmem:[%s6199_s11 + $0xda4] ss:$8 sps:$4 sm:$0xff]   ;;  %v5810_v55 = vld [vmem:[%s6199_s11 + $0xca0] ss:$8 sps:$4 sm:$0xff]  }
 0x1cd   : > { %4014 = vmatprep.subr.bf16.mxu1 %v5745_v56  ;;  %v5813_v56 = vld [vmem:[%s6199_s11 + $0xda0] ss:$8 sps:$4 sm:$0xff]  }
 0x1cf   : > { %3974 = vmatpush1.bf16.msra.mxu0 %v5740_v57  ;;  %v5818_v57 = vld [vmem:[%s6199_s11 + $0xcb4] ss:$8 sps:$4 sm:$0xff]  }
 0x1d0   : > { %4015 = vmatpush1.bf16.msra.mxu1 %v5743_v58  ;;  %4025 = vmatprep.subr.bf16.mxu0 %v5752_v60  ;;  %v5821_v58 = vld [vmem:[%s6199_s11 + $0xdb4] ss:$8 sps:$4 sm:$0xff]   ;;  %v5816_v60 = vld [vmem:[%s6199_s11 + $0xcb0] ss:$8 sps:$4 sm:$0xff]  }
 0x1d1   : > { %4066 = vmatprep.subr.bf16.mxu1 %v5755_v61  ;;  %v5819_v61 = vld [vmem:[%s6199_s11 + $0xdb0] ss:$8 sps:$4 sm:$0xff]  }
 0x1d2   : > { %3976 = vmatmul.mubr.bf16.vlgmr.msra.gmra.mrb[20].mxu0 %v4480_v63  ;;  %v5824_v63 = vld [vmem:[%s6199_s11 + $0xcc4] ss:$8 sps:$4 sm:$0xff]  }
 0x1d3   : > { %4017 = vmatmul.mubr.bf16.vlgmr.msra.gmra.mrb[20].mxu1 %v4482_v0  ;;  %4026 = vmatpush1.bf16.msra.mxu0 %v5750_v3  ;;  %v5827_v0 = vld [vmem:[%s6199_s11 + $0xdc4] ss:$8 sps:$4 sm:$0xff]   ;;  %v5822_v3 = vld [vmem:[%s6199_s11 + $0xcc0] ss:$8 sps:$4 sm:$0xff]  }
 0x1d4   : > { %4067 = vmatpush1.bf16.msra.mxu1 %v5753_v4  ;;  %4027 = vmatprep.subr.bf16.mxu0 %v5758_v5  ;;  %v5825_v4 = vld [vmem:[%s6199_s11 + $0xdc0] ss:$8 sps:$4 sm:$0xff]   ;;  %v5830_v5 = vld [vmem:[%s6199_s11 + $0xcd4] ss:$8 sps:$4 sm:$0xff]  }
 0x1d5   : > { %4068 = vmatprep.subr.bf16.mxu1 %v5761_v6  ;;  %4057 = vmatprep.mubr.bf16.mxu0 %v4485_v47  ;;  %v5833_v6 = vld [vmem:[%s6199_s11 + $0xdd4] ss:$8 sps:$4 sm:$0xff]   ;;  %v5828_v47 = vld [vmem:[%s6199_s11 + $0xcd0] ss:$8 sps:$4 sm:$0xff]  }
 0x1d6   : > { %4098 = vmatprep.mubr.bf16.mxu1 %v4487_v48  ;;  %v5831_v48 = vld [vmem:[%s6199_s11 + $0xdd0] ss:$8 sps:$4 sm:$0xff]  }
 0x1d7   : > { %4028 = vmatpush1.bf16.msra.mxu0 %v5756_v7  ;;  %v5836_v7 = vld [vmem:[%s6199_s11 + $0xce4] ss:$8 sps:$4 sm:$0xff]  }
 0x1d8   : > { %4069 = vmatpush1.bf16.msra.mxu1 %v5759_v8  ;;  %4029 = vmatprep.subr.bf16.mxu0 %v5764_v9  ;;  %v5839_v8 = vld [vmem:[%s6199_s11 + $0xde4] ss:$8 sps:$4 sm:$0xff]   ;;  %v5834_v9 = vld [vmem:[%s6199_s11 + $0xce0] ss:$8 sps:$4 sm:$0xff]  }
 0x1d9   : > { %4070 = vmatprep.subr.bf16.mxu1 %v5767_v10  ;;  %v5837_v10 = vld [vmem:[%s6199_s11 + $0xde0] ss:$8 sps:$4 sm:$0xff]  }
 0x1db   : > { %4030 = vmatpush1.bf16.msra.mxu0 %v5762_v11  ;;  %v5842_v11 = vld [vmem:[%s6199_s11 + $0xcf4] ss:$8 sps:$4 sm:$0xff]  }
 0x1dc   : > { %4071 = vmatpush1.bf16.msra.mxu1 %v5765_v12  ;;  %4031 = vmatprep.subr.bf16.mxu0 %v5770_v13  ;;  %v5845_v12 = vld [vmem:[%s6199_s11 + $0xdf4] ss:$8 sps:$4 sm:$0xff]   ;;  %v5840_v13 = vld [vmem:[%s6199_s11 + $0xcf0] ss:$8 sps:$4 sm:$0xff]  }
 0x1dd   : > { %4072 = vmatprep.subr.bf16.mxu1 %v5773_v14  ;;  %v5843_v14 = vld [vmem:[%s6199_s11 + $0xdf0] ss:$8 sps:$4 sm:$0xff]  }
 0x1df   : > { %4032 = vmatpush1.bf16.msra.mxu0 %v5768_v15  ;;  %v5852_v15 = vld [vmem:[%s6199_s11 + $0xe04] ss:$8 sps:$4 sm:$0xff]  }
 0x1e0   : > { %4073 = vmatpush1.bf16.msra.mxu1 %v5771_v16  ;;  %4033 = vmatprep.subr.bf16.mxu0 %v5776_v17  ;;  %v5855_v16 = vld [vmem:[%s6199_s11 + $0xf04] ss:$8 sps:$4 sm:$0xff]   ;;  %v4484_v17 = vcombine.low %v6701_v1, %v6701_v1 }
 0x1e1   : > { %4074 = vmatprep.subr.bf16.mxu1 %v5779_v18  ;;  %v4486_v18 = vcombine.low %v6704_v2, %v6704_v2 }
 0x1e3   : > { %4034 = vmatpush1.bf16.msra.mxu0 %v5774_v22  ;;  %v6785_v22 = vld [vmem:[%s6214_s10 + $0x70] sm:$0xff] }
 0x1e4   : > { %4075 = vmatpush1.bf16.msra.mxu1 %v5777_v23  ;;  %4035 = vmatprep.subr.bf16.mxu0 %v5782_v59  ;;  %v6788_v23 = vld [vmem:[%s6214_s10 + $0x78] sm:$0xff]  ;;  %v4489_v1 = vcombine.high %v6785_v22, %v6785_v22 }
 0x1e5   : > { %4076 = vmatprep.subr.bf16.mxu1 %v5785_v62  ;;  %v3731_v31 = vpop.f32.mrb[8].mxu0  ;;  %v5850_v59 = vld [vmem:[%s6199_s11 + $0xe00] ss:$8 sps:$4 sm:$0xff]   ;;  %v4491_v2 = vcombine.high %v6788_v23, %v6788_v23 }
 0x1e6   : > { %v3772_v32 = vpop.f32.mrb[8].mxu1  ;;  %v3732_v33 = vadd.f32 %v3731_v31, %v6654_v21  ;;  %v3733_v34 = vpop.f32.mrb[9].mxu0  ;;  %v5794_v21 = vld [vmem:[%s6199_s11 + $0xc74] ss:$8 sps:$4 sm:$0xff]   ;;  %v5853_v62 = vld [vmem:[%s6199_s11 + $0xf00] ss:$8 sps:$4 sm:$0xff]  }
 0x1e7   : > { %v3774_v25 = vpop.f32.mrb[9].mxu1  ;;  %v3734_v26 = vadd.f32 %v3733_v34, %v6658_v24  ;;  %v3735_v35 = vpop.f32.mrb[10].mxu0  ;;  %4036 = vmatpush1.bf16.msra.mxu0 %v5780_v27  ;;  %v5797_v24 = vld [vmem:[%s6199_s11 + $0xd74] ss:$8 sps:$4 sm:$0xff]   ;;  %v5864_v31 = vld [vmem:[%s6199_s11 + $0xe24] ss:$8 sps:$4 sm:$0xff]  }
 0x1e8   : > { %v3776_v36 = vpop.f32.mrb[10].mxu1  ;;  %4077 = vmatpush1.bf16.msra.mxu1 %v5783_v28  ;;  %v6738_v39 = vadd.f32 %v3772_v32, %v3732_v33  ;;  %v3736_v40 = vpop.f32.mrb[11].mxu0  ;;  %4037 = vmatprep.subr.bf16.mxu0 %v5788_v20  ;;  %v5858_v27 = vld [vmem:[%s6199_s11 + $0xe14] ss:$8 sps:$4 sm:$0xff]   ;;  %v5856_v20 = vld [vmem:[%s6199_s11 + $0xe10] ss:$8 sps:$4 sm:$0xff]  }
 0x1e9   : > { %v3777_v41 = vpop.f32.mrb[11].mxu1  ;;  %4078 = vmatprep.subr.bf16.mxu1 %v5791_v29  ;;  %v6742_v42 = vadd.f32 %v3774_v25, %v3734_v26  ;;  %v5861_v28 = vld [vmem:[%s6199_s11 + $0xf14] ss:$8 sps:$4 sm:$0xff]   ;;  %v5859_v29 = vld [vmem:[%s6199_s11 + $0xf10] ss:$8 sps:$4 sm:$0xff]  }
 0x1ea   : > { %v5867_v32 = vld [vmem:[%s6199_s11 + $0xf24] ss:$8 sps:$4 sm:$0xff]   ;;  %v5862_v33 = vld [vmem:[%s6199_s11 + $0xe20] ss:$8 sps:$4 sm:$0xff]   ;;  %v5870_v25 = vld [vmem:[%s6199_s11 + $0xe34] ss:$8 sps:$4 sm:$0xff]  }
 0x1eb   : > { %4038 = vmatpush1.bf16.msra.mxu0 %v5786_v37  ;;  %v5865_v34 = vld [vmem:[%s6199_s11 + $0xf20] ss:$8 sps:$4 sm:$0xff]   ;;  %v5873_v26 = vld [vmem:[%s6199_s11 + $0xf34] ss:$8 sps:$4 sm:$0xff]   ;;  %v5868_v35 = vld [vmem:[%s6199_s11 + $0xe30] ss:$8 sps:$4 sm:$0xff]  }
 0x1ec   : > { %4079 = vmatpush1.bf16.msra.mxu1 %v5789_v38  ;;  %4039 = vmatprep.subr.bf16.mxu0 %v5794_v21  ;;  %v5871_v36 = vld [vmem:[%s6199_s11 + $0xf30] ss:$8 sps:$4 sm:$0xff]   ;;  %v5876_v37 = vld [vmem:[%s6199_s11 + $0xe44] ss:$8 sps:$4 sm:$0xff]   ;;  %v5874_v40 = vld [vmem:[%s6199_s11 + $0xe40] ss:$8 sps:$4 sm:$0xff]  }
 0x1ed   : > { %4080 = vmatprep.subr.bf16.mxu1 %v5797_v24  ;;  %v5879_v38 = vld [vmem:[%s6199_s11 + $0xf44] ss:$8 sps:$4 sm:$0xff]   ;;  %v5877_v41 = vld [vmem:[%s6199_s11 + $0xf40] ss:$8 sps:$4 sm:$0xff]   ;;  %v5882_v21 = vld [vmem:[%s6199_s11 + $0xe54] ss:$8 sps:$4 sm:$0xff]  }
 0x1ee   : > { %v5885_v24 = vld [vmem:[%s6199_s11 + $0xf54] ss:$8 sps:$4 sm:$0xff]  }
 0x1ef   : > { %4040 = vmatpush1.bf16.msra.mxu0 %v5792_v43  ;;  %v5880_v43 = vld [vmem:[%s6199_s11 + $0xe50] ss:$8 sps:$4 sm:$0xff]  }
 0x1f0   : > { %4081 = vmatpush1.bf16.msra.mxu1 %v5795_v44  ;;  %4041 = vmatprep.subr.bf16.mxu0 %v5800_v45  ;;  %v5883_v44 = vld [vmem:[%s6199_s11 + $0xf50] ss:$8 sps:$4 sm:$0xff]   ;;  %v5888_v45 = vld [vmem:[%s6199_s11 + $0xe64] ss:$8 sps:$4 sm:$0xff]  }
 0x1f1   : > { %4082 = vmatprep.subr.bf16.mxu1 %v5803_v46  ;;  %v5891_v46 = vld [vmem:[%s6199_s11 + $0xf64] ss:$8 sps:$4 sm:$0xff]  }
 0x1f3   : > { %4042 = vmatpush1.bf16.msra.mxu0 %v5798_v49 }
 0x1f4   : > { %4083 = vmatpush1.bf16.msra.mxu1 %v5801_v50  ;;  %4043 = vmatprep.subr.bf16.mxu0 %v5806_v19 }
 0x1f5   : > { %4084 = vmatprep.subr.bf16.mxu1 %v5809_v30 }
 0x1f7   : > { %4044 = vmatpush1.bf16.msra.mxu0 %v5804_v51 }
 0x1f8   : > { %4085 = vmatpush1.bf16.msra.mxu1 %v5807_v52  ;;  %4045 = vmatprep.subr.bf16.mxu0 %v5812_v53 }
 0x1f9   : > { %4086 = vmatprep.subr.bf16.mxu1 %v5815_v54 }
 0x1fb   : > { %4046 = vmatpush1.bf16.msra.mxu0 %v5810_v55  ;;  %v5886_v55 = vld [vmem:[%s6199_s11 + $0xe60] ss:$8 sps:$4 sm:$0xff]  }
 0x1fc   : > { %4087 = vmatpush1.bf16.msra.mxu1 %v5813_v56  ;;  %4047 = vmatprep.subr.bf16.mxu0 %v5818_v57  ;;  %v5889_v56 = vld [vmem:[%s6199_s11 + $0xf60] ss:$8 sps:$4 sm:$0xff]  }
 0x1fd   : > { %4088 = vmatprep.subr.bf16.mxu1 %v5821_v58 }
 0x1ff   : > { %4048 = vmatpush1.bf16.msra.mxu0 %v5816_v60 }
 0x200   : > { %4089 = vmatpush1.bf16.msra.mxu1 %v5819_v61  ;;  %4049 = vmatprep.subr.bf16.mxu0 %v5824_v63  ;;  %v5892_v63 = vld [vmem:[%s6199_s11 + $0xe70] ss:$8 sps:$4 sm:$0xff]  }
 0x201   : > { %4090 = vmatprep.subr.bf16.mxu1 %v5827_v0  ;;  %v5895_v0 = vld [vmem:[%s6199_s11 + $0xf70] ss:$8 sps:$4 sm:$0xff]  }
 0x203   : > { %4050 = vmatpush1.bf16.msra.mxu0 %v5822_v3  ;;  %v5900_v3 = vld [vmem:[%s6199_s11 + $0xe84] ss:$8 sps:$4 sm:$0xff]  }
 0x204   : > { %4091 = vmatpush1.bf16.msra.mxu1 %v5825_v4  ;;  %4051 = vmatprep.subr.bf16.mxu0 %v5830_v5  ;;  %v5903_v4 = vld [vmem:[%s6199_s11 + $0xf84] ss:$8 sps:$4 sm:$0xff]   ;;  %v5898_v5 = vld [vmem:[%s6199_s11 + $0xe80] ss:$8 sps:$4 sm:$0xff]  }
 0x205   : > { %4092 = vmatprep.subr.bf16.mxu1 %v5833_v6  ;;  %v5901_v6 = vld [vmem:[%s6199_s11 + $0xf80] ss:$8 sps:$4 sm:$0xff]  }
 0x207   : > { %4052 = vmatpush1.bf16.msra.mxu0 %v5828_v47  ;;  %v5906_v47 = vld [vmem:[%s6199_s11 + $0xe94] ss:$8 sps:$4 sm:$0xff]  }
 0x208   : > { %4093 = vmatpush1.bf16.msra.mxu1 %v5831_v48  ;;  %4053 = vmatprep.subr.bf16.mxu0 %v5836_v7  ;;  %v5909_v48 = vld [vmem:[%s6199_s11 + $0xf94] ss:$8 sps:$4 sm:$0xff]   ;;  %v5904_v7 = vld [vmem:[%s6199_s11 + $0xe90] ss:$8 sps:$4 sm:$0xff]  }
 0x209   : > { %4094 = vmatprep.subr.bf16.mxu1 %v5839_v8  ;;  %v5907_v8 = vld [vmem:[%s6199_s11 + $0xf90] ss:$8 sps:$4 sm:$0xff]  }
 0x20b   : > { %4054 = vmatpush1.bf16.msra.mxu0 %v5834_v9  ;;  %v5912_v9 = vld [vmem:[%s6199_s11 + $0xea4] ss:$8 sps:$4 sm:$0xff]  }
 0x20c   : > { %4095 = vmatpush1.bf16.msra.mxu1 %v5837_v10  ;;  %4055 = vmatprep.subr.bf16.mxu0 %v5842_v11  ;;  %v5915_v10 = vld [vmem:[%s6199_s11 + $0xfa4] ss:$8 sps:$4 sm:$0xff]   ;;  %v5910_v11 = vld [vmem:[%s6199_s11 + $0xea0] ss:$8 sps:$4 sm:$0xff]  }
 0x20d   : > { %4096 = vmatprep.subr.bf16.mxu1 %v5845_v12  ;;  %v5913_v12 = vld [vmem:[%s6199_s11 + $0xfa0] ss:$8 sps:$4 sm:$0xff]  }
 0x20f   : > { %4056 = vmatpush1.bf16.msra.mxu0 %v5840_v13  ;;  %v5918_v13 = vld [vmem:[%s6199_s11 + $0xeb4] ss:$8 sps:$4 sm:$0xff]  }
 0x210   : > { %4097 = vmatpush1.bf16.msra.mxu1 %v5843_v14  ;;  %4107 = vmatprep.subr.bf16.mxu0 %v5852_v15  ;;  %v5921_v14 = vld [vmem:[%s6199_s11 + $0xfb4] ss:$8 sps:$4 sm:$0xff]   ;;  %v5916_v15 = vld [vmem:[%s6199_s11 + $0xeb0] ss:$8 sps:$4 sm:$0xff]  }
 0x211   : > { %4148 = vmatprep.subr.bf16.mxu1 %v5855_v16  ;;  %v5919_v16 = vld [vmem:[%s6199_s11 + $0xfb0] ss:$8 sps:$4 sm:$0xff]  }
 0x212   : > { %4058 = vmatmul.mubr.bf16.vlgmr.msra.gmra.mrb[24].mxu0 %v4484_v17  ;;  %v5924_v17 = vld [vmem:[%s6199_s11 + $0xec4] ss:$8 sps:$4 sm:$0xff]  }
 0x213   : > { %4099 = vmatmul.mubr.bf16.vlgmr.msra.gmra.mrb[24].mxu1 %v4486_v18  ;;  %4108 = vmatpush1.bf16.msra.mxu0 %v5850_v59  ;;  %v5927_v18 = vld [vmem:[%s6199_s11 + $0xfc4] ss:$8 sps:$4 sm:$0xff]   ;;  %v5922_v59 = vld [vmem:[%s6199_s11 + $0xec0] ss:$8 sps:$4 sm:$0xff]  }
 0x214   : > { %4149 = vmatpush1.bf16.msra.mxu1 %v5853_v62  ;;  %4109 = vmatprep.subr.bf16.mxu0 %v5858_v27  ;;  %v5925_v62 = vld [vmem:[%s6199_s11 + $0xfc0] ss:$8 sps:$4 sm:$0xff]   ;;  %v5930_v27 = vld [vmem:[%s6199_s11 + $0xed4] ss:$8 sps:$4 sm:$0xff]  }
 0x215   : > { %4150 = vmatprep.subr.bf16.mxu1 %v5861_v28  ;;  %4139 = vmatprep.mubr.bf16.mxu0 %v4489_v1  ;;  %v5933_v28 = vld [vmem:[%s6199_s11 + $0xfd4] ss:$8 sps:$4 sm:$0xff]   ;;  %v5928_v1 = vld [vmem:[%s6199_s11 + $0xed0] ss:$8 sps:$4 sm:$0xff]  }
 0x216   : > { %4180 = vmatprep.mubr.bf16.mxu1 %v4491_v2  ;;  %v5931_v2 = vld [vmem:[%s6199_s11 + $0xfd0] ss:$8 sps:$4 sm:$0xff]  }
 0x217   : > { %4110 = vmatpush1.bf16.msra.mxu0 %v5856_v20  ;;  %v5936_v20 = vld [vmem:[%s6199_s11 + $0xee4] ss:$8 sps:$4 sm:$0xff]  }
 0x218   : > { %4151 = vmatpush1.bf16.msra.mxu1 %v5859_v29  ;;  %4111 = vmatprep.subr.bf16.mxu0 %v5864_v31  ;;  %v5939_v29 = vld [vmem:[%s6199_s11 + $0xfe4] ss:$8 sps:$4 sm:$0xff]   ;;  %v5934_v31 = vld [vmem:[%s6199_s11 + $0xee0] ss:$8 sps:$4 sm:$0xff]  }
 0x219   : > { %4152 = vmatprep.subr.bf16.mxu1 %v5867_v32  ;;  %v5937_v32 = vld [vmem:[%s6199_s11 + $0xfe0] ss:$8 sps:$4 sm:$0xff]  }
 0x21b   : > { %4112 = vmatpush1.bf16.msra.mxu0 %v5862_v33  ;;  %v5942_v33 = vld [vmem:[%s6199_s11 + $0xef4] ss:$8 sps:$4 sm:$0xff]  }
 0x21c   : > { %4153 = vmatpush1.bf16.msra.mxu1 %v5865_v34  ;;  %4113 = vmatprep.subr.bf16.mxu0 %v5870_v25  ;;  %v5945_v34 = vld [vmem:[%s6199_s11 + $0xff4] ss:$8 sps:$4 sm:$0xff]   ;;  %v5940_v25 = vld [vmem:[%s6199_s11 + $0xef0] ss:$8 sps:$4 sm:$0xff]  }
 0x21d   : > { %4154 = vmatprep.subr.bf16.mxu1 %v5873_v26  ;;  %v5943_v26 = vld [vmem:[%s6199_s11 + $0xff0] ss:$8 sps:$4 sm:$0xff]  }
 0x21f   : > { %4114 = vmatpush1.bf16.msra.mxu0 %v5868_v35  ;;  %v4488_v35 = vcombine.low %v6785_v22, %v6785_v22 }
 0x220   : > { %4155 = vmatpush1.bf16.msra.mxu1 %v5871_v36  ;;  %4115 = vmatprep.subr.bf16.mxu0 %v5876_v37  ;;  %v4490_v36 = vcombine.low %v6788_v23, %v6788_v23 }
 0x221   : > { %4156 = vmatprep.subr.bf16.mxu1 %v5879_v38 }
 0x223   : > { %4116 = vmatpush1.bf16.msra.mxu0 %v5874_v40 }
 0x224   : > { %4157 = vmatpush1.bf16.msra.mxu1 %v5877_v41  ;;  %4117 = vmatprep.subr.bf16.mxu0 %v5882_v21 }
 0x225   : > { %4158 = vmatprep.subr.bf16.mxu1 %v5885_v24  ;;  %v3813_v49 = vpop.f32.mrb[12].mxu0 }
 0x226   : > { %v3854_v50 = vpop.f32.mrb[12].mxu1  ;;  %v3814_v19 = vadd.f32 %v3813_v49, %v6738_v39  ;;  %v3815_v30 = vpop.f32.mrb[13].mxu0  ;;  %v5894_v39 = vld [vmem:[%s6199_s11 + $0xe74] ss:$8 sps:$4 sm:$0xff]  }
 0x227   : > { %v3856_v51 = vpop.f32.mrb[13].mxu1  ;;  %v3816_v52 = vadd.f32 %v3815_v30, %v6742_v42  ;;  %v3817_v53 = vpop.f32.mrb[14].mxu0  ;;  %4118 = vmatpush1.bf16.msra.mxu0 %v5880_v43  ;;  %v5897_v42 = vld [vmem:[%s6199_s11 + $0xf74] ss:$8 sps:$4 sm:$0xff]  }
 0x228   : > { %v3858_v54 = vpop.f32.mrb[14].mxu1  ;;  %4159 = vmatpush1.bf16.msra.mxu1 %v5883_v44  ;;  %v6822_v57 = vadd.f32 %v3854_v50, %v3814_v19  ;;  %v3818_v58 = vpop.f32.mrb[15].mxu0  ;;  %4119 = vmatprep.subr.bf16.mxu0 %v5888_v45 }
 0x229   : > { %v3859_v60 = vpop.f32.mrb[15].mxu1  ;;  %4160 = vmatprep.subr.bf16.mxu1 %v5891_v46  ;;  %v6826_v61 = vadd.f32 %v3856_v51, %v3816_v52 }
 0x22b   : > { %4120 = vmatpush1.bf16.msra.mxu0 %v5886_v55 }
 0x22c   : > { %4161 = vmatpush1.bf16.msra.mxu1 %v5889_v56  ;;  %4121 = vmatprep.subr.bf16.mxu0 %v5894_v39 }
 0x22d   : > { %4162 = vmatprep.subr.bf16.mxu1 %v5897_v42 }
 0x22f   : > { %4122 = vmatpush1.bf16.msra.mxu0 %v5892_v63 }
 0x230   : > { %4163 = vmatpush1.bf16.msra.mxu1 %v5895_v0  ;;  %4123 = vmatprep.subr.bf16.mxu0 %v5900_v3 }
 0x231   : > { %4164 = vmatprep.subr.bf16.mxu1 %v5903_v4 }
 0x233   : > { %4124 = vmatpush1.bf16.msra.mxu0 %v5898_v5 }
 0x234   : > { %4165 = vmatpush1.bf16.msra.mxu1 %v5901_v6  ;;  %4125 = vmatprep.subr.bf16.mxu0 %v5906_v47 }
 0x235   : > { %4166 = vmatprep.subr.bf16.mxu1 %v5909_v48 }
 0x237   : > { %4126 = vmatpush1.bf16.msra.mxu0 %v5904_v7 }
 0x238   : > { %4167 = vmatpush1.bf16.msra.mxu1 %v5907_v8  ;;  %4127 = vmatprep.subr.bf16.mxu0 %v5912_v9 }
 0x239   : > { %4168 = vmatprep.subr.bf16.mxu1 %v5915_v10 }
 0x23b   : > { %4128 = vmatpush1.bf16.msra.mxu0 %v5910_v11 }
 0x23c   : > { %4169 = vmatpush1.bf16.msra.mxu1 %v5913_v12  ;;  %4129 = vmatprep.subr.bf16.mxu0 %v5918_v13  ;;  %v331_v12 = vld [vmem:[#allocation2] sm:$0xff] }
 0x23d   : > { %4170 = vmatprep.subr.bf16.mxu1 %v5921_v14 }
 0x23f   : > { %4130 = vmatpush1.bf16.msra.mxu0 %v5916_v15 }
 0x240   : > { %4171 = vmatpush1.bf16.msra.mxu1 %v5919_v16  ;;  %4131 = vmatprep.subr.bf16.mxu0 %v5924_v17  ;;  %v332_v17 = vld [vmem:[#allocation2 + $0x8] sm:$0xff] }
 0x241   : > { %4172 = vmatprep.subr.bf16.mxu1 %v5927_v18 }
 0x243   : > { %4132 = vmatpush1.bf16.msra.mxu0 %v5922_v59 }
 0x244   : > { %4173 = vmatpush1.bf16.msra.mxu1 %v5925_v62  ;;  %4133 = vmatprep.subr.bf16.mxu0 %v5930_v27 }
 0x245   : > { %4174 = vmatprep.subr.bf16.mxu1 %v5933_v28 }
 0x247   : > { %4134 = vmatpush1.bf16.msra.mxu0 %v5928_v1  ;;  %v4231_v1 = vld [vmem:[%s6224_s6 + $0x80] sm:$0xff] (!%p5004_p9) }
 0x248   : > { %4175 = vmatpush1.bf16.msra.mxu1 %v5931_v2  ;;  %4135 = vmatprep.subr.bf16.mxu0 %v5936_v20  ;;  %v4232_v2 = vld [vmem:[%s6224_s6 + $0x88] sm:$0xff] (!%p5004_p9)  ;;  %v4215_v20 = vld [vmem:[%s6224_s6] sm:$0xff] (!%p5004_p9) }
 0x249   : > { %4176 = vmatprep.subr.bf16.mxu1 %v5939_v29  ;;  %v4201_v29 = vlaneseq (!%p5004_p9) }
 0x24b   : > { %4136 = vmatpush1.bf16.msra.mxu0 %v5934_v31  ;;  %v5043_v31 = vpack.c.bf16 (!%p5004_p9), %v4232_v2, %v4231_v1 }
 0x24c   : > { %4177 = vmatpush1.bf16.msra.mxu1 %v5937_v32  ;;  %4137 = vmatprep.subr.bf16.mxu0 %v5942_v33  ;;  %v4216_v32 = vld [vmem:[%s6224_s6 + $0x8] sm:$0xff] (!%p5004_p9)  ;;  %v4233_v33 = vld [vmem:[%s6224_s6 + $0x90] sm:$0xff] (!%p5004_p9) }
 0x24d   : > { %4178 = vmatprep.subr.bf16.mxu1 %v5945_v34  ;;  %v4234_v34 = vld [vmem:[%s6224_s6 + $0x98] sm:$0xff] (!%p5004_p9) }
 0x24f   : > { %4138 = vmatpush1.bf16.msra.mxu0 %v5940_v25  ;;  %v5045_v25 = vpack.c.bf16 (!%p5004_p9), %v4216_v32, %v4215_v20 }
 0x250   : > { %4179 = vmatpush1.bf16.msra.mxu1 %v5943_v26  ;;  %v5047_v26 = vpack.c.bf16 (!%p5004_p9), %v4234_v34, %v4233_v33  ;;  %5044 = vmatprep.subr.bf16.mxu0 (!%p5004_p9), %v5043_v31 }
 0x252   : > { %4140 = vmatmul.mubr.bf16.vlgmr.msra.gmra.mrb[28].mxu0 %v4488_v35  ;;  %v4217_v35 = vld [vmem:[%s6224_s6 + $0x10] sm:$0xff] (!%p5004_p9) }
 0x253   : > { %4181 = vmatmul.mubr.bf16.vlgmr.msra.gmra.mrb[28].mxu1 %v4490_v36  ;;  %v4218_v36 = vld [vmem:[%s6224_s6 + $0x18] sm:$0xff] (!%p5004_p9)  ;;  %5046 = vmatpush3.bf16.msra.mxu0 (!%p5004_p9), %v5045_v25 }
 0x254   : > { %5048 = vmatprep.subr.bf16.mxu0 (!%p5004_p9), %v5047_v26 }
 0x265   : > { %v3895_v37 = vpop.f32.mrb[16].mxu0 }
 0x266   : > { %v3936_v38 = vpop.f32.mrb[16].mxu1  ;;  %v3896_v40 = vadd.f32 %v3895_v37, %v6822_v57  ;;  %v3897_v41 = vpop.f32.mrb[17].mxu0  ;;  %v4235_v37 = vld [vmem:[%s6224_s6 + $0xa0] sm:$0xff] (!%p5004_p9) }
 0x267   : > { %v3938_v21 = vpop.f32.mrb[17].mxu1  ;;  %v3898_v24 = vadd.f32 %v3897_v41, %v6826_v61  ;;  %v3899_v43 = vpop.f32.mrb[18].mxu0  ;;  %v6879_v41 = vshrl.u32 (!%p5004_p9), %v4201_v29, 7 }
 0x268   : > { %v3940_v44 = vpop.f32.mrb[18].mxu1  ;;  %v3937_v45 = vadd.f32 %v3936_v38, %v3896_v40  ;;  %v3900_v46 = vpop.f32.mrb[19].mxu0  ;;  %v4236_v38 = vld [vmem:[%s6224_s6 + $0xa8] sm:$0xff] (!%p5004_p9)  ;;  %v5049_v40 = vpack.c.bf16 (!%p5004_p9), %v4218_v36, %v4217_v35 }
 0x269   : > { %v3941_v22 = vpop.f32.mrb[19].mxu1  ;;  %v3939_v49 = vadd.f32 %v3938_v21, %v3898_v24  ;;  %v5051_v21 = vpack.c.bf16 (!%p5004_p9), %v4236_v38, %v4235_v37  ;;  %v4219_v24 = vld [vmem:[%s6224_s6 + $0x20] sm:$0xff] (!%p5004_p9)  ;;  %v4220_v43 = vld [vmem:[%s6224_s6 + $0x28] sm:$0xff] (!%p5004_p9)  ;;  %v4237_v44 = vld [vmem:[%s6224_s6 + $0xb0] sm:$0xff] (!%p5004_p9) }
 0x26a   : > { %5050 = vmatpush3.bf16.msra.mxu0 (!%p5004_p9), %v5049_v40  ;;  %v5053_v46 = vpack.c.bf16 (!%p5004_p9), %v4220_v43, %v4219_v24  ;;  %v4207_v22 = vsub.s32 (!%p5004_p9), 1, %v6879_v41 }
 0x26b   : > { %5052 = vmatprep.subr.bf16.mxu0 (!%p5004_p9), %v5051_v21 }
 0x26e   : > { %5054 = vmatpush3.bf16.msra.mxu0 (!%p5004_p9), %v5053_v46 }
 0x2a5   : > { %v3977_v50 = vpop.f32.mrb[20].mxu0 }
 0x2a6   : > { %v4018_v23 = vpop.f32.mrb[20].mxu1  ;;  %v3978_v19 = vadd.f32 %v3977_v50, %v3937_v45  ;;  %v3979_v30 = vpop.f32.mrb[21].mxu0  ;;  %v4238_v45 = vld [vmem:[%s6224_s6 + $0xb8] sm:$0xff] (!%p5004_p9)  ;;  %v4221_v50 = vld [vmem:[%s6224_s6 + $0x30] sm:$0xff] (!%p5004_p9) }
 0x2a7   : > { %v4020_v51 = vpop.f32.mrb[21].mxu1  ;;  %v3980_v52 = vadd.f32 %v3979_v30, %v3939_v49  ;;  %v3981_v53 = vpop.f32.mrb[22].mxu0  ;;  %v5055_v49 = vpack.c.bf16 (!%p5004_p9), %v4238_v45, %v4237_v44  ;;  %v4240_v30 = vld [vmem:[%s6224_s6 + $0xc8] sm:$0xff] (!%p5004_p9) }
 0x2a8   : > { %v4022_v54 = vpop.f32.mrb[22].mxu1  ;;  %v4019_v55 = vadd.f32 %v4018_v23, %v3978_v19  ;;  %v3982_v56 = vpop.f32.mrb[23].mxu0  ;;  %v4222_v23 = vld [vmem:[%s6224_s6 + $0x38] sm:$0xff] (!%p5004_p9)  ;;  %v4239_v19 = vld [vmem:[%s6224_s6 + $0xc0] sm:$0xff] (!%p5004_p9) }
 0x2a9   : > { %v4023_v57 = vpop.f32.mrb[23].mxu1  ;;  %v4021_v58 = vadd.f32 %v4020_v51, %v3980_v52  ;;  %v4199_v52 = vld [vmem:[%s313_s16] sm:$0x3] (!%p5004_p9)  ;;  %v5057_v53 = vpack.c.bf16 (!%p5004_p9), %v4222_v23, %v4221_v50  ;;  %5056 = vmatprep.subr.bf16.mxu0 (!%p5004_p9), %v5055_v49 }
 0x2aa   : > { %v4208_v54 = vrot.slane (!%p5004_p9), %v4199_v52, %v4207_v22  ;;  %v4223_v56 = vld [vmem:[%s6224_s6 + $0x40] sm:$0xff] (!%p5004_p9)  ;;  %v4224_v57 = vld [vmem:[%s6224_s6 + $0x48] sm:$0xff] (!%p5004_p9) }
 0x2ab   : > { %5058 = vmatpush3.bf16.msra.mxu0 (!%p5004_p9), %v5057_v53 }
 0x2e5   : > { %v4059_v60 = vpop.f32.mrb[24].mxu0 }
 0x2e6   : > { %v4100_v39 = vpop.f32.mrb[24].mxu1  ;;  %v4060_v42 = vadd.f32 %v4059_v60, %v4019_v55  ;;  %v4061_v61 = vpop.f32.mrb[25].mxu0  ;;  %v5059_v55 = vpack.c.bf16 (!%p5004_p9), %v4240_v30, %v4239_v19  ;;  %v4242_v60 = vld [vmem:[%s6224_s6 + $0xd8] sm:$0xff] (!%p5004_p9) }
 0x2e7   : > { %v4102_v63 = vpop.f32.mrb[25].mxu1  ;;  %v4062_v0 = vadd.f32 %v4061_v61, %v4021_v58  ;;  %v4063_v3 = vpop.f32.mrb[26].mxu0  ;;  %v4241_v58 = vld [vmem:[%s6224_s6 + $0xd0] sm:$0xff] (!%p5004_p9) }
 0x2e8   : > { %v4104_v4 = vpop.f32.mrb[26].mxu1  ;;  %v4101_v5 = vadd.f32 %v4100_v39, %v4060_v42  ;;  %v4064_v6 = vpop.f32.mrb[27].mxu0  ;;  %v5061_v42 = vpack.c.bf16 (!%p5004_p9), %v4224_v57, %v4223_v56  ;;  %5060 = vmatprep.subr.bf16.mxu0 (!%p5004_p9), %v5059_v55  ;;  %v4226_v3 = vld [vmem:[%s6224_s6 + $0x58] sm:$0xff] (!%p5004_p9) }
 0x2e9   : > { %v4105_v47 = vpop.f32.mrb[27].mxu1  ;;  %v4103_v48 = vadd.f32 %v4102_v63, %v4062_v0  ;;  %v5063_v63 = vpack.c.bf16 (!%p5004_p9), %v4242_v60, %v4241_v58  ;;  %v4225_v0 = vld [vmem:[%s6224_s6 + $0x50] sm:$0xff] (!%p5004_p9)  ;;  %v4243_v4 = vld [vmem:[%s6224_s6 + $0xe0] sm:$0xff] (!%p5004_p9)  ;;  %v4203_v6 = vsub.s32 (!%p5004_p9), 0, %v6879_v41 }
 0x2ea   : > { %5062 = vmatpush3.bf16.msra.mxu0 (!%p5004_p9), %v5061_v42  ;;  %v5065_v47 = vpack.c.bf16 (!%p5004_p9), %v4226_v3, %v4225_v0 }
 0x2eb   : > { %5064 = vmatprep.subr.bf16.mxu0 (!%p5004_p9), %v5063_v63 }
 0x2ee   : > { %5066 = vmatpush3.bf16.msra.mxu0 (!%p5004_p9), %v5065_v47 }
 0x325   : > { %v4141_v7 = vpop.f32.mrb[28].mxu0 }
 0x326   : > { %v4182_v8 = vpop.f32.mrb[28].mxu1  ;;  %v4142_v9 = vadd.f32 %v4141_v7, %v4101_v5  ;;  %v4143_v10 = vpop.f32.mrb[29].mxu0  ;;  %v4244_v5 = vld [vmem:[%s6224_s6 + $0xe8] sm:$0xff] (!%p5004_p9)  ;;  %v4227_v7 = vld [vmem:[%s6224_s6 + $0x60] sm:$0xff] (!%p5004_p9) }
 0x327   : > { %v4184_v11 = vpop.f32.mrb[29].mxu1  ;;  %v4144_v13 = vadd.f32 %v4143_v10, %v4103_v48  ;;  %v4145_v14 = vpop.f32.mrb[30].mxu0  ;;  %4196 = sbr.rel (%p5004_p9) target bundleno = 1044 (0x414), region = 52  ;;  %v5067_v48 = vpack.c.bf16 (!%p5004_p9), %v4244_v5, %v4243_v4  ;;  %v4246_v10 = vld [vmem:[%s6224_s6 + $0xf8] sm:$0xff] (!%p5004_p9) }
 0x328   : > { %v4186_v15 = vpop.f32.mrb[30].mxu1  ;;  %v4183_v16 = vadd.f32 %v4182_v8, %v4142_v9  ;;  %v4146_v18 = vpop.f32.mrb[31].mxu0  ;;  %v4228_v8 = vld [vmem:[%s6224_s6 + $0x68] sm:$0xff] (!%p5004_p9)  ;;  %v4245_v9 = vld [vmem:[%s6224_s6 + $0xf0] sm:$0xff] (!%p5004_p9) }
 0x329   : > { %v4187_v59 = vpop.f32.mrb[31].mxu1  ;;  %v4185_v62 = vadd.f32 %v4184_v11, %v4144_v13  ;;  %v4204_v11 = vrot.slane (!%p5004_p9), %v4199_v52, %v4203_v6  ;;  %5068 = vmatprep.subr.bf16.mxu0 (!%p5004_p9), %v5067_v48  ;;  %v5071_v14 = vpack.c.bf16 (!%p5004_p9), %v4246_v10, %v4245_v9  ;;  %v4229_v15 = vld [vmem:[%s6224_s6 + $0x70] sm:$0xff] (!%p5004_p9) }
 0x32a   : > { %v4189_v27 = vadd.f32 %v4183_v16, %v331_v12  ;;  %v5069_v12 = vpack.c.bf16 (!%p5004_p9), %v4228_v8, %v4227_v7  ;;  %v4230_v16 = vld [vmem:[%s6224_s6 + $0x78] sm:$0xff] (!%p5004_p9) }
 0x32b   : > { %v4190_v28 = vadd.f32 %v4185_v62, %v332_v17  ;;  %v5073_v18 = vpack.c.bf16 (!%p5004_p9), %v4230_v16, %v4229_v15  ;;  %v4247_v62 = vld [vmem:[%s6955_s12] sm:$0x1] (!%p5004_p9) }
 0x32c   : > { %4191 = vst [vmem:[#allocation2] sm:$0xff] %v4189_v27  ;;  %5070 = vmatpush3.bf16.msra.mxu0 (!%p5004_p9), %v5069_v12 }
 0x32d   : > { %4192 = vst [vmem:[#allocation2 + $0x8] sm:$0xff] %v4190_v28  ;;  %5072 = vmatprep.subr.bf16.mxu0 (!%p5004_p9), %v5071_v14 }
 0x32e   : > { %s4249_s11 = scalar_select %p4248_p11, 1, 0 }
 0x330   : > { %5074 = vmatpush3.bf16.msra.mxu0 %v5073_v18  ;;  %s4250_s17 = scvt.s32.f32 %s4249_s11 }
 0x332   : > { %v4251_v27 = vstv %s4250_s17 }
 0x333   : > { %v4197_v13 = vld [vmem:[#allocation2] sm:$0xff]  ;;  %v4252_v28 = vmul.f32 %v4251_v27, %v4247_v62 }
 0x334   : > { %v4198_v51 = vld [vmem:[#allocation2 + $0x8] sm:$0xff]  ;;  %v4211_v17 = vadd.f32 %v4204_v11, %v4197_v13 }
 0x335   : > { %v4212_v39 = vadd.f32 %v4208_v54, %v4198_v51  ;;  %v4257_v2 = vrot.slane %v4252_v28, %v4203_v6 }
 0x336   : > { %v4213_v59 = vmax.f32 %v4211_v17, 0.0 }
 0x337   : > { %v4214_v61 = vmax.f32 %v4212_v39, 0.0 }
 0x339   : > { %4323 = vmatprep.mubr.f32.mxu0 %v4214_v61 }
 0x33a   : > { %4324 = vmatmul.mubr.f32.vlgmr.msra.gmra.mrb[0].mxu0 %v4213_v59 }
 0x40d   : > { %v5040_v1 = vpop.f32.mrb[0].mxu0 }
 0x40e   : > { %v5041_v20 = vpop.f32.mrb[1].mxu0 }
 0x40f   : > { %v5042_v29 = vadd.f32 %v5041_v20, %v5040_v1 }
 0x411   : > { %v4326_v31 = vadd.f32 %v5042_v29, %v4257_v2 }
 0x413   : > { %4329 = vst [vmem:[%s6229_s28] sm:$0xff] %v4326_v31 }
 0x414 PF: > { %s18_s25 = sadd.s32 1, %s6046_s25   ;;  %s6956_s7 = sld [smem:[#allocation6_spill]] }
 0x415   : > { %p15_p13 = scmp.ge.s32.totalorder %s18_s25, 6   ;;  %s6957_s10 = sld [smem:[#allocation7_spill]] }
 0x416   : > { %s6958_s18 = smov %s6022_s19  ;;  %s6959_s19 = smov %s6026_s20 }
 0x417   : > { %s6960_s20 = smov %s6150_s13  ;;  %s6961_s21 = smov %s6038_s23 }
 0x418   : > { %s6962_s22 = smov %s6042_s24  ;;  %17 = sbr.rel (!%p15_p13) target bundleno = 8 (0x8), region = 97 }
 0x41a   : > { %s6963_s23 = smov %s6956_s7 }
 0x41b   : > { %s6964_s24 = smov %s6957_s10 }
 0x41f   :  { %4349 = vsyncpa [#allocation4], 1 }
 0x420   :  { %4351 = vsyncpa [#allocation4 + $0x1], 1 }

// kernel: chess_cnn_forward.2
= control target key start
LH: loop header
LB: loop body
LE: loop exit
PB: predicated region body
PF: predicated region fallthrough
CT: control target
= control target key end

     0   :  { %13 = vsyncpa [#allocation3], 0  ;;  %s16323_s0 = inlined_call_operand.vmem [shape: bf16[2,64,64], index: 0, kind: input, shape index: {}]   ;;  %s16324_s1 = inlined_call_operand.vmem [shape: bf16[64,128], index: 1, kind: input, shape index: {}]   ;;  %s16325_s2 = inlined_call_operand.hbm [shape: bf16[3,128,512], index: 2, kind: input, shape index: {}]   ;;  %s16326_s3 = inlined_call_operand.hbm [shape: f32[1,512], index: 3, kind: input, shape index: {}]   ;;  %s16327_s4 = inlined_call_operand.hbm [shape: bf16[3,512,512], index: 4, kind: input, shape index: {}]   ;;  %s16328_s5 = inlined_call_operand.hbm [shape: f32[1,512], index: 5, kind: input, shape index: {}]   ;;  %s16329_s6 = inlined_call_operand.hbm [shape: bf16[3,512,1024], index: 6, kind: input, shape index: {}]   ;;  %s16330_s7 = inlined_call_operand.hbm [shape: f32[1,1024], index: 7, kind: input, shape index: {}]   ;;  %s16331_s8 = inlined_call_operand.vmem [shape: bf16[64,1024], index: 8, kind: output, shape index: {}]  }
   0x1   :  { %14 = vsyncpa [#allocation5], 0 }
   0x2   :  { %15 = vsyncpa [#allocation8], 0 }
   0x3   :  { %16 = vsyncpa [#allocation11], 0  ;;  %s15163_s27 = smov [#allocation4]   ;;  %s15164_s29 = smov [#allocation7]  }
   0x4   :  { %s39_s28 = sshll.u32 %s15163_s27, 4  ;;  %s61_s30 = sshll.u32 %s15164_s29, 4  ;;  %s40_s28 = int_to_ptr.vmem [resolvable:$true] %s39_s28  ;;  %s62_s30 = int_to_ptr.vmem [resolvable:$true] %s61_s30 }
   0x5   :  { %s15023_s11 = scalar_lea.hbm %s16326_s3, 64 }
   0x6   :  { %p15024_p0 = scmp.ne.s32.totalorder %s16326_s3, %s15023_s11  ;;  %p15027_p1 = scmp.lt.u32.totalorder %s15023_s11, %s16326_s3 }
   0x8   :  { %p15029_p2 = pnand %p15027_p1, %p15024_p0 }
   0xa   :  { %15032 = shalt.err (!%p15029_p2)
}
   0xb   :  { %s15033_s16 = scalar_lea.vmem %s40_s28, 64  ;;  %p15038_p4 = scmp.lt.s32.totalorder %s40_s28, %s40_s28 }
   0xc   :  { %p15034_p3 = scmp.ne.s32.totalorder %s40_s28, %s15033_s16  ;;  %p15039_p5 = scmp.lt.s32.totalorder %s15033_s16, %s15033_s16 }
   0xe   :  { %p15040_p6 = por %p15039_p5, %p15038_p4 }
  0x10   :  { %p15041_p7 = pnand %p15040_p6, %p15034_p3 }
  0x12   :  { %15044 = shalt.err (!%p15041_p7)
}
  0x13   :  { %42 = dma.hbm_to_vmem [thread:$0]  %s16326_s3, 64, %s40_s28, [#allocation5]  }
  0x14   :  { %s15045_s21 = scalar_lea.hbm %s16328_s5, 64 }
  0x15   :  { %p15046_p8 = scmp.ne.s32.totalorder %s16328_s5, %s15045_s21  ;;  %p15049_p9 = scmp.lt.u32.totalorder %s15045_s21, %s16328_s5 }
  0x17   :  { %p15051_p10 = pnand %p15049_p9, %p15046_p8 }
  0x19   :  { %15054 = shalt.err (!%p15051_p10)
}
  0x1a   :  { %s15055_s26 = scalar_lea.vmem %s62_s30, 64  ;;  %p15060_p12 = scmp.lt.s32.totalorder %s62_s30, %s62_s30 }
  0x1b   :  { %p15056_p11 = scmp.ne.s32.totalorder %s62_s30, %s15055_s26  ;;  %p15061_p13 = scmp.lt.s32.totalorder %s15055_s26, %s15055_s26 }
  0x1d   :  { %p15062_p0 = por %p15061_p13, %p15060_p12 }
  0x1f   :  { %p15063_p1 = pnand %p15062_p0, %p15056_p11 }
  0x21   :  { %15066 = shalt.err (!%p15063_p1)
}
  0x22   :  { %64 = dma.hbm_to_vmem [thread:$0]  %s16328_s5, 64, %s62_s30, [#allocation8]  }
  0x23   :  { %s15165_s28 = smov [#allocation2]   ;;  %s15067_s11 = scalar_lea.hbm %s16325_s2, 12288 }
  0x24   :  { %s26_s29 = sshll.u32 %s15165_s28, 4  ;;  %p15068_p2 = scmp.ne.s32.totalorder %s16325_s2, %s15067_s11  ;;  %s27_s29 = int_to_ptr.vmem [resolvable:$true] %s26_s29 }
  0x25   :  { %p15071_p3 = scmp.lt.u32.totalorder %s15067_s11, %s16325_s2 }
  0x27   :  { %p15073_p4 = pnand %p15071_p3, %p15068_p2 }
  0x29   :  { %15076 = shalt.err (!%p15073_p4)
}
  0x2a   :  { %s15077_s16 = scalar_lea.vmem %s27_s29, 12288  ;;  %p15082_p6 = scmp.lt.s32.totalorder %s27_s29, %s27_s29 }
  0x2b   :  { %p15078_p5 = scmp.ne.s32.totalorder %s27_s29, %s15077_s16  ;;  %p15083_p7 = scmp.lt.s32.totalorder %s15077_s16, %s15077_s16 }
  0x2d   :  { %p15084_p8 = por %p15083_p7, %p15082_p6 }
  0x2f   :  { %p15085_p9 = pnand %p15084_p8, %p15078_p5 }
  0x31   :  { %15088 = shalt.err (!%p15085_p9)
}
  0x32   :  { %s15166_s5 = smov 256   ;;  %s15167_s30 = smov 16  }
  0x33   :  { %32 = dma.hbm_to_vmem [thread:$0]  %s16325_s2, 12288, %s27_s29, [#allocation3], %s15166_s5, %s15166_s5, %s15167_s30  }
  0x34   :  { %s15168_s19 = smov [#allocation6]   ;;  %s15169_s21 = smov [#allocation9]  }
  0x35   :  { %s48_s20 = sshll.u32 %s15168_s19, 4  ;;  %s70_s22 = sshll.u32 %s15169_s21, 4  ;;  %s49_s20 = int_to_ptr.vmem [resolvable:$true] %s48_s20  ;;  %s71_s22 = int_to_ptr.vmem [resolvable:$true] %s70_s22 }
  0x36   :  { %s15089_s25 = scalar_lea.hbm %s16327_s4, 49152 }
  0x37   :  { %p15090_p10 = scmp.ne.s32.totalorder %s16327_s4, %s15089_s25  ;;  %p15093_p11 = scmp.lt.u32.totalorder %s15089_s25, %s16327_s4 }
  0x39   :  { %p15095_p12 = pnand %p15093_p11, %p15090_p10 }
  0x3b   :  { %15098 = shalt.err (!%p15095_p12)
}
  0x3c   :  { %s15099_s2 = scalar_lea.vmem %s49_s20, 49152  ;;  %p15104_p0 = scmp.lt.s32.totalorder %s49_s20, %s49_s20 }
  0x3d   :  { %p15100_p13 = scmp.ne.s32.totalorder %s49_s20, %s15099_s2  ;;  %p15105_p1 = scmp.lt.s32.totalorder %s15099_s2, %s15099_s2 }
  0x3f   :  { %p15106_p2 = por %p15105_p1, %p15104_p0 }
  0x41   :  { %p15107_p3 = pnand %p15106_p2, %p15100_p13 }
  0x43   :  { %15110 = shalt.err (!%p15107_p3)
}
  0x44   :  { %54 = dma.hbm_to_vmem [thread:$0]  %s16327_s4, 49152, %s49_s20, [#allocation5], %s15166_s5, %s15166_s5, %s15167_s30  }
  0x45   :  { %s15111_s12 = scalar_lea.hbm %s16329_s6, 98304 }
  0x46   :  { %p15112_p4 = scmp.ne.s32.totalorder %s16329_s6, %s15111_s12  ;;  %p15115_p5 = scmp.lt.u32.totalorder %s15111_s12, %s16329_s6 }
  0x48   :  { %p15117_p6 = pnand %p15115_p5, %p15112_p4 }
  0x4a   :  { %15120 = shalt.err (!%p15117_p6)
}
  0x4b   :  { %s15121_s17 = scalar_lea.vmem %s71_s22, 98304  ;;  %p15126_p8 = scmp.lt.s32.totalorder %s71_s22, %s71_s22 }
  0x4c   :  { %p15122_p7 = scmp.ne.s32.totalorder %s71_s22, %s15121_s17  ;;  %p15127_p9 = scmp.lt.s32.totalorder %s15121_s17, %s15121_s17 }
  0x4e   :  { %p15128_p10 = por %p15127_p9, %p15126_p8 }
  0x50   :  { %p15129_p11 = pnand %p15128_p10, %p15122_p7 }
  0x52   :  { %15132 = shalt.err (!%p15129_p11)
}
  0x53   :  { %s15170_s4 = smov 512   ;;  %s15171_s5 = smov 32  }
  0x54   :  { %76 = dma.hbm_to_vmem [thread:$0]  %s16329_s6, 98304, %s71_s22, [#allocation8], %s15170_s4, %s15170_s4, %s15171_s5  }
  0x55   :  { %s15172_s19 = smov [#allocation10]   ;;  %s15133_s24 = scalar_lea.hbm %s16330_s7, 128 }
  0x56   :  { %s83_s20 = sshll.u32 %s15172_s19, 4  ;;  %p15134_p12 = scmp.ne.s32.totalorder %s16330_s7, %s15133_s24  ;;  %s84_s20 = int_to_ptr.vmem [resolvable:$true] %s83_s20 }
  0x57   :  { %p15137_p13 = scmp.lt.u32.totalorder %s15133_s24, %s16330_s7 }
  0x59   :  { %p15139_p0 = pnand %p15137_p13, %p15134_p12 }
  0x5b   :  { %15142 = shalt.err (!%p15139_p0)
}
  0x5c   :  { %s15143_s28 = scalar_lea.vmem %s84_s20, 128  ;;  %p15148_p2 = scmp.lt.s32.totalorder %s84_s20, %s84_s20 }
  0x5d   :  { %p15144_p1 = scmp.ne.s32.totalorder %s84_s20, %s15143_s28  ;;  %p15149_p3 = scmp.lt.s32.totalorder %s15143_s28, %s15143_s28 }
  0x5f   :  { %p15150_p4 = por %p15149_p3, %p15148_p2 }
  0x61   :  { %p15151_p5 = pnand %p15150_p4, %p15144_p1 }
  0x63   :  { %15154 = shalt.err (!%p15151_p5)
}
  0x64   :  { %86 = dma.hbm_to_vmem [thread:$0]  %s16330_s7, 128, %s84_s20, [#allocation11]  }
  0x65   :  { %15155 = dma.done.wait [#allocation3], 12288  }
  0x66   :  { %15156 = vsyncadd [#allocation3], 4294955008 }
  0x67   :  { %15157 = dma.done.wait [#allocation5], 49216  }
  0x68   :  { %15158 = vsyncadd [#allocation5], 4294918080 }
  0x69   :  { %15159 = dma.done.wait [#allocation8], 98368  }
  0x6a   :  { %15160 = vsyncadd [#allocation8], 4294868928 }
  0x6b   :  { %15161 = dma.done.wait [#allocation11], 128  }
  0x6c   :  { %15162 = vsyncadd [#allocation11], 4294967168  ;;  %v15294_v0 = vld [vmem:[%s16324_s1] sm:$0xff]   ;;  %v15299_v1 = vld [vmem:[%s16324_s1 + $0x8] sm:$0xff]   ;;  %vm175_vm0 = vcmask 523264   ;;  %v15173_v28 = vmov 0  }
  0x6d   :  { %13688 = vmatprep.subr.bf16.mxu0 %v15294_v0  ;;  %13704 = vmatprep.subr.bf16.mxu1 %v15294_v0  ;;  %v15307_v2 = vld [vmem:[%s16324_s1 + $0x10] sm:$0xff]   ;;  %v14279_v3 = vld [vmem:[%s16323_s0] sm:$0xff]   ;;  %v15320_v4 = vld [vmem:[%s16324_s1 + $0x18] sm:$0xff]  }
  0x6e   :  { %13689 = vmatpush3.bf16.msra.mxu0 %v15294_v0  ;;  %13705 = vmatpush3.bf16.msra.mxu1 %v15294_v0  ;;  %v14283_v5 = vld [vmem:[%s16323_s0 + $0x20] sm:$0xff]   ;;  %v14280_v6 = vld [vmem:[%s16323_s0 + $0x8] sm:$0xff]   ;;  %v14281_v8 = vld [vmem:[%s16323_s0 + $0x10] sm:$0xff]  }
  0x6f   :  { %13690 = vmatprep.subr.bf16.mxu0 %v15299_v1  ;;  %13706 = vmatprep.subr.bf16.mxu1 %v15299_v1  ;;  %v14284_v7 = vld [vmem:[%s16323_s0 + $0x28] sm:$0xff]   ;;  %v14289_v9 = vld [vmem:[#allocation2 + $0x104] ss:$16 sps:$4 sm:$0xff]   ;;  %v14287_v12 = vld [vmem:[#allocation2 + $0x100] ss:$16 sps:$4 sm:$0xff]  }
  0x70   :  { %13696 = vmatprep.mubr.msk.bf16.mxu0 %vm175_vm0, %v14279_v3  ;;  %13712 = vmatprep.mubr.msk.bf16.mxu1 %vm175_vm0, %v14283_v5  ;;  %v14285_v10 = vld [vmem:[%s16323_s0 + $0x30] sm:$0xff]   ;;  %v14292_v11 = vld [vmem:[#allocation2 + $0x10c] ss:$16 sps:$4 sm:$0xff]   ;;  %v14290_v13 = vld [vmem:[#allocation2 + $0x108] ss:$16 sps:$4 sm:$0xff]  }
  0x71   :  { %v14295_v14 = vld [vmem:[#allocation2 + $0x124] ss:$16 sps:$4 sm:$0xff]   ;;  %v14298_v15 = vld [vmem:[#allocation2 + $0x12c] ss:$16 sps:$4 sm:$0xff]   ;;  %v14293_v16 = vld [vmem:[#allocation2 + $0x120] ss:$16 sps:$4 sm:$0xff]  }
  0x72   :  { %13691 = vmatpush3.bf16.msra.mxu0 %v15299_v1  ;;  %13707 = vmatpush3.bf16.msra.mxu1 %v15299_v1  ;;  %v14296_v17 = vld [vmem:[#allocation2 + $0x128] ss:$16 sps:$4 sm:$0xff]   ;;  %v14301_v18 = vld [vmem:[#allocation2 + $0x144] ss:$16 sps:$4 sm:$0xff]   ;;  %v14304_v19 = vld [vmem:[#allocation2 + $0x14c] ss:$16 sps:$4 sm:$0xff]  }
  0x73   :  { %13692 = vmatprep.subr.bf16.mxu0 %v15307_v2  ;;  %13708 = vmatprep.subr.bf16.mxu1 %v15307_v2  ;;  %v14282_v20 = vld [vmem:[%s16323_s0 + $0x18] sm:$0xff]   ;;  %v14299_v22 = vld [vmem:[#allocation2 + $0x140] ss:$16 sps:$4 sm:$0xff]   ;;  %v14307_v24 = vld [vmem:[#allocation2 + $0x164] ss:$16 sps:$4 sm:$0xff]  }
  0x74   :  { %v14286_v21 = vld [vmem:[%s16323_s0 + $0x38] sm:$0xff]   ;;  %v14305_v26 = vld [vmem:[#allocation2 + $0x160] ss:$16 sps:$4 sm:$0xff]   ;;  %v14313_v29 = vld [vmem:[#allocation2 + $0x184] ss:$16 sps:$4 sm:$0xff]  }
  0x75   :  { %v14302_v23 = vld [vmem:[#allocation2 + $0x148] ss:$16 sps:$4 sm:$0xff]   ;;  %v14310_v25 = vld [vmem:[#allocation2 + $0x16c] ss:$16 sps:$4 sm:$0xff]   ;;  %v14311_v31 = vld [vmem:[#allocation2 + $0x180] ss:$16 sps:$4 sm:$0xff]  }
  0x76   :  { %13693 = vmatpush3.bf16.msra.mxu0 %v15307_v2  ;;  %13709 = vmatpush3.bf16.msra.mxu1 %v15307_v2  ;;  %v14308_v27 = vld [vmem:[#allocation2 + $0x168] ss:$16 sps:$4 sm:$0xff]   ;;  %v14316_v30 = vld [vmem:[#allocation2 + $0x18c] ss:$16 sps:$4 sm:$0xff]   ;;  %v14319_v33 = vld [vmem:[#allocation2 + $0x1a4] ss:$16 sps:$4 sm:$0xff]  }
  0x77   :  { %13694 = vmatprep.subr.bf16.mxu0 %v15320_v4  ;;  %13710 = vmatprep.subr.bf16.mxu1 %v15320_v4  ;;  %v14314_v32 = vld [vmem:[#allocation2 + $0x188] ss:$16 sps:$4 sm:$0xff]   ;;  %v14322_v34 = vld [vmem:[#allocation2 + $0x1ac] ss:$16 sps:$4 sm:$0xff]   ;;  %v14317_v35 = vld [vmem:[#allocation2 + $0x1a0] ss:$16 sps:$4 sm:$0xff]  }
  0x78   :  { %v14320_v36 = vld [vmem:[#allocation2 + $0x1a8] ss:$16 sps:$4 sm:$0xff]   ;;  %v14325_v37 = vld [vmem:[#allocation2 + $0x1c4] ss:$16 sps:$4 sm:$0xff]   ;;  %v14328_v38 = vld [vmem:[#allocation2 + $0x1cc] ss:$16 sps:$4 sm:$0xff]  }
  0x79   :  { %v14323_v39 = vld [vmem:[#allocation2 + $0x1c0] ss:$16 sps:$4 sm:$0xff]   ;;  %v14326_v40 = vld [vmem:[#allocation2 + $0x1c8] ss:$16 sps:$4 sm:$0xff]   ;;  %v14331_v41 = vld [vmem:[#allocation2 + $0x1e4] ss:$16 sps:$4 sm:$0xff]  }
  0x7a   :  { %13695 = vmatpush3.bf16.msra.mxu0 %v15320_v4  ;;  %13711 = vmatpush3.bf16.msra.mxu1 %v15320_v4  ;;  %v14334_v42 = vld [vmem:[#allocation2 + $0x1ec] ss:$16 sps:$4 sm:$0xff]   ;;  %v14329_v43 = vld [vmem:[#allocation2 + $0x1e0] ss:$16 sps:$4 sm:$0xff]   ;;  %v14332_v44 = vld [vmem:[#allocation2 + $0x1e8] ss:$16 sps:$4 sm:$0xff]  }
  0x7b   :  { %583 = vmatprep.subr.bf16.mxu0 %v14289_v9  ;;  %656 = vmatprep.subr.bf16.mxu1 %v14292_v11  ;;  %v14337_v45 = vld [vmem:[#allocation2 + $0x4] ss:$16 sps:$4 sm:$0xff]   ;;  %v14340_v46 = vld [vmem:[#allocation2 + $0xc] ss:$16 sps:$4 sm:$0xff]   ;;  %v14335_v47 = vld [vmem:[#allocation2] ss:$16 sps:$4 sm:$0xff]  }
  0x7c   :  { %v14338_v48 = vld [vmem:[#allocation2 + $0x8] ss:$16 sps:$4 sm:$0xff]   ;;  %v14343_v49 = vld [vmem:[#allocation2 + $0x24] ss:$16 sps:$4 sm:$0xff]   ;;  %v14346_v50 = vld [vmem:[#allocation2 + $0x2c] ss:$16 sps:$4 sm:$0xff]  }
  0x7d   :  { %13697 = vmatmul.mubr.msk.bf16.vlgmr.msra.gmra.mrb[0].mxu0 %vm175_vm0, %v14280_v6  ;;  %13713 = vmatmul.mubr.msk.bf16.vlgmr.msra.gmra.mrb[0].mxu1 %vm175_vm0, %v14284_v7  ;;  %v14341_v51 = vld [vmem:[#allocation2 + $0x20] ss:$16 sps:$4 sm:$0xff]   ;;  %v14344_v52 = vld [vmem:[#allocation2 + $0x28] ss:$16 sps:$4 sm:$0xff]   ;;  %v14349_v53 = vld [vmem:[#allocation2 + $0x44] ss:$16 sps:$4 sm:$0xff]  }
  0x7e   :  { %13700 = vmatprep.mubr.msk.bf16.mxu0 %vm175_vm0, %v14281_v8  ;;  %13716 = vmatprep.mubr.msk.bf16.mxu1 %vm175_vm0, %v14285_v10  ;;  %v14352_v54 = vld [vmem:[#allocation2 + $0x4c] ss:$16 sps:$4 sm:$0xff]   ;;  %v14347_v55 = vld [vmem:[#allocation2 + $0x40] ss:$16 sps:$4 sm:$0xff]   ;;  %v14350_v56 = vld [vmem:[#allocation2 + $0x48] ss:$16 sps:$4 sm:$0xff]  }
  0x7f   :  { %584 = vmatpush1.bf16.msra.mxu0 %v14287_v12  ;;  %657 = vmatpush1.bf16.msra.mxu1 %v14290_v13  ;;  %v14355_v57 = vld [vmem:[#allocation2 + $0x64] ss:$16 sps:$4 sm:$0xff]   ;;  %v14358_v58 = vld [vmem:[#allocation2 + $0x6c] ss:$16 sps:$4 sm:$0xff]   ;;  %v14353_v59 = vld [vmem:[#allocation2 + $0x60] ss:$16 sps:$4 sm:$0xff]  }
  0x80   :  { %585 = vmatprep.subr.bf16.mxu0 %v14295_v14  ;;  %658 = vmatprep.subr.bf16.mxu1 %v14298_v15  ;;  %v14356_v60 = vld [vmem:[#allocation2 + $0x68] ss:$16 sps:$4 sm:$0xff]   ;;  %v14361_v61 = vld [vmem:[#allocation2 + $0x84] ss:$16 sps:$4 sm:$0xff]   ;;  %v14364_v62 = vld [vmem:[#allocation2 + $0x8c] ss:$16 sps:$4 sm:$0xff]  }
  0x81   :  { %v14359_v63 = vld [vmem:[#allocation2 + $0x80] ss:$16 sps:$4 sm:$0xff]   ;;  %v14367_v3 = vld [vmem:[#allocation2 + $0xa4] ss:$16 sps:$4 sm:$0xff]   ;;  %v14370_v5 = vld [vmem:[#allocation2 + $0xac] ss:$16 sps:$4 sm:$0xff]  }
  0x82   :  { %v14365_v6 = vld [vmem:[#allocation2 + $0xa0] ss:$16 sps:$4 sm:$0xff]   ;;  %v14373_v7 = vld [vmem:[#allocation2 + $0xc4] ss:$16 sps:$4 sm:$0xff]   ;;  %v14376_v8 = vld [vmem:[#allocation2 + $0xcc] ss:$16 sps:$4 sm:$0xff]  }
  0x83   :  { %586 = vmatpush1.bf16.msra.mxu0 %v14293_v16  ;;  %659 = vmatpush1.bf16.msra.mxu1 %v14296_v17  ;;  %v14371_v9 = vld [vmem:[#allocation2 + $0xc0] ss:$16 sps:$4 sm:$0xff]   ;;  %v14374_v10 = vld [vmem:[#allocation2 + $0xc8] ss:$16 sps:$4 sm:$0xff]   ;;  %v14382_v11 = vld [vmem:[#allocation2 + $0xec] ss:$16 sps:$4 sm:$0xff]  }
  0x84   :  { %587 = vmatprep.subr.bf16.mxu0 %v14301_v18  ;;  %660 = vmatprep.subr.bf16.mxu1 %v14304_v19  ;;  %v14377_v12 = vld [vmem:[#allocation2 + $0xe0] ss:$16 sps:$4 sm:$0xff]   ;;  %v14380_v13 = vld [vmem:[#allocation2 + $0xe8] ss:$16 sps:$4 sm:$0xff]   ;;  %v14385_v14 = vld [vmem:[#allocation2 + $0x204] ss:$16 sps:$4 sm:$0xff]  }
  0x85   :  { %13701 = vmatmul.mubr.msk.bf16.gmra.mrb[4].mxu0 %vm175_vm0, %v14282_v20  ;;  %13717 = vmatmul.mubr.msk.bf16.gmra.mrb[4].mxu1 %vm175_vm0, %v14286_v21  ;;  %v14388_v15 = vld [vmem:[#allocation2 + $0x20c] ss:$16 sps:$4 sm:$0xff]  }
  0x86   :  { %615 = vmatprep.mubr.bf16.mxu0 %v15173_v28  ;;  %688 = vmatprep.mubr.bf16.mxu1 %v15173_v28 }
  0x87   :  { %588 = vmatpush1.bf16.msra.mxu0 %v14299_v22  ;;  %661 = vmatpush1.bf16.msra.mxu1 %v14302_v23  ;;  %v14383_v23 = vld [vmem:[#allocation2 + $0x200] ss:$16 sps:$4 sm:$0xff]  }
  0x88   :  { %589 = vmatprep.subr.bf16.mxu0 %v14307_v24  ;;  %662 = vmatprep.subr.bf16.mxu1 %v14310_v25  ;;  %v14386_v24 = vld [vmem:[#allocation2 + $0x208] ss:$16 sps:$4 sm:$0xff]  }
  0x8b   :  { %590 = vmatpush1.bf16.msra.mxu0 %v14305_v26  ;;  %663 = vmatpush1.bf16.msra.mxu1 %v14308_v27 }
  0x8c   :  { %591 = vmatprep.subr.bf16.mxu0 %v14313_v29  ;;  %664 = vmatprep.subr.bf16.mxu1 %v14316_v30  ;;  %v14391_v29 = vld [vmem:[#allocation2 + $0x224] ss:$16 sps:$4 sm:$0xff]   ;;  %v14394_v30 = vld [vmem:[#allocation2 + $0x22c] ss:$16 sps:$4 sm:$0xff]  }
  0x8f   :  { %592 = vmatpush1.bf16.msra.mxu0 %v14311_v31  ;;  %665 = vmatpush1.bf16.msra.mxu1 %v14314_v32  ;;  %v14389_v32 = vld [vmem:[#allocation2 + $0x220] ss:$16 sps:$4 sm:$0xff]  }
  0x90   :  { %593 = vmatprep.subr.bf16.mxu0 %v14319_v33  ;;  %666 = vmatprep.subr.bf16.mxu1 %v14322_v34  ;;  %v14392_v33 = vld [vmem:[#allocation2 + $0x228] ss:$16 sps:$4 sm:$0xff]  }
  0x93   :  { %594 = vmatpush1.bf16.msra.mxu0 %v14317_v35  ;;  %667 = vmatpush1.bf16.msra.mxu1 %v14320_v36  ;;  %v14397_v35 = vld [vmem:[#allocation2 + $0x244] ss:$16 sps:$4 sm:$0xff]   ;;  %v14400_v36 = vld [vmem:[#allocation2 + $0x24c] ss:$16 sps:$4 sm:$0xff]  }
  0x94   :  { %595 = vmatprep.subr.bf16.mxu0 %v14325_v37  ;;  %668 = vmatprep.subr.bf16.mxu1 %v14328_v38 }
  0x97   :  { %596 = vmatpush1.bf16.msra.mxu0 %v14323_v39  ;;  %669 = vmatpush1.bf16.msra.mxu1 %v14326_v40 }
  0x98   :  { %597 = vmatprep.subr.bf16.mxu0 %v14331_v41  ;;  %670 = vmatprep.subr.bf16.mxu1 %v14334_v42  ;;  %v14395_v42 = vld [vmem:[#allocation2 + $0x240] ss:$16 sps:$4 sm:$0xff]  }
  0x9b   :  { %598 = vmatpush1.bf16.msra.mxu0 %v14329_v43  ;;  %671 = vmatpush1.bf16.msra.mxu1 %v14332_v44  ;;  %v14398_v43 = vld [vmem:[#allocation2 + $0x248] ss:$16 sps:$4 sm:$0xff]  }
  0x9c   :  { %889 = vmatprep.subr.bf16.mxu0 %v14337_v45  ;;  %962 = vmatprep.subr.bf16.mxu1 %v14340_v46 }
  0x9e   :  { %616 = vmatmul.mubr.bf16.vlgmr.msra.gmra.mrb[8].mxu0 %v15294_v0  ;;  %689 = vmatmul.mubr.bf16.vlgmr.msra.gmra.mrb[8].mxu1 %v15294_v0  ;;  %v14362_v0 = vld [vmem:[#allocation2 + $0x88] ss:$16 sps:$4 sm:$0xff]  }
  0x9f   :  { %890 = vmatpush1.bf16.msra.mxu0 %v14335_v47  ;;  %963 = vmatpush1.bf16.msra.mxu1 %v14338_v48 }
  0xa0   :  { %891 = vmatprep.subr.bf16.mxu0 %v14343_v49  ;;  %964 = vmatprep.subr.bf16.mxu1 %v14346_v50  ;;  %v14403_v49 = vld [vmem:[#allocation2 + $0x264] ss:$16 sps:$4 sm:$0xff]   ;;  %v14406_v50 = vld [vmem:[#allocation2 + $0x26c] ss:$16 sps:$4 sm:$0xff]  }
  0xa1   :  { %625 = vmatprep.mubr.bf16.mxu0 %v15173_v28  ;;  %698 = vmatprep.mubr.bf16.mxu1 %v15173_v28 }
  0xa3   :  { %892 = vmatpush1.bf16.msra.mxu0 %v14341_v51  ;;  %965 = vmatpush1.bf16.msra.mxu1 %v14344_v52  ;;  %v14401_v52 = vld [vmem:[#allocation2 + $0x260] ss:$16 sps:$4 sm:$0xff]  }
  0xa4   :  { %893 = vmatprep.subr.bf16.mxu0 %v14349_v53  ;;  %966 = vmatprep.subr.bf16.mxu1 %v14352_v54  ;;  %v14404_v53 = vld [vmem:[#allocation2 + $0x268] ss:$16 sps:$4 sm:$0xff]   ;;  %v14409_v54 = vld [vmem:[#allocation2 + $0x284] ss:$16 sps:$4 sm:$0xff]  }
  0xa6   :  { %626 = vmatmul.mubr.bf16.gmra.mrb[12].mxu0 %v15299_v1  ;;  %699 = vmatmul.mubr.bf16.gmra.mrb[12].mxu1 %v15299_v1  ;;  %v14368_v1 = vld [vmem:[#allocation2 + $0xa8] ss:$16 sps:$4 sm:$0xff]  }
  0xa7   :  { %894 = vmatpush1.bf16.msra.mxu0 %v14347_v55  ;;  %967 = vmatpush1.bf16.msra.mxu1 %v14350_v56  ;;  %v14412_v55 = vld [vmem:[#allocation2 + $0x28c] ss:$16 sps:$4 sm:$0xff]   ;;  %v14407_v56 = vld [vmem:[#allocation2 + $0x280] ss:$16 sps:$4 sm:$0xff]  }
  0xa8   :  { %895 = vmatprep.subr.bf16.mxu0 %v14355_v57  ;;  %968 = vmatprep.subr.bf16.mxu1 %v14358_v58  ;;  %v14410_v57 = vld [vmem:[#allocation2 + $0x288] ss:$16 sps:$4 sm:$0xff]   ;;  %v14415_v58 = vld [vmem:[#allocation2 + $0x2a4] ss:$16 sps:$4 sm:$0xff]  }
  0xa9   :  { %635 = vmatprep.mubr.bf16.mxu0 %v15173_v28  ;;  %708 = vmatprep.mubr.bf16.mxu1 %v15173_v28 }
  0xab   :  { %896 = vmatpush1.bf16.msra.mxu0 %v14353_v59  ;;  %969 = vmatpush1.bf16.msra.mxu1 %v14356_v60  ;;  %v14418_v59 = vld [vmem:[#allocation2 + $0x2ac] ss:$16 sps:$4 sm:$0xff]   ;;  %v14413_v60 = vld [vmem:[#allocation2 + $0x2a0] ss:$16 sps:$4 sm:$0xff]  }
  0xac   :  { %897 = vmatprep.subr.bf16.mxu0 %v14361_v61  ;;  %970 = vmatprep.subr.bf16.mxu1 %v14364_v62  ;;  %v14416_v61 = vld [vmem:[#allocation2 + $0x2a8] ss:$16 sps:$4 sm:$0xff]   ;;  %v14421_v62 = vld [vmem:[#allocation2 + $0x2c4] ss:$16 sps:$4 sm:$0xff]  }
  0xae   :  { %636 = vmatmul.mubr.bf16.gmra.mrb[16].mxu0 %v15307_v2  ;;  %709 = vmatmul.mubr.bf16.gmra.mrb[16].mxu1 %v15307_v2  ;;  %v14379_v2 = vld [vmem:[#allocation2 + $0xe4] ss:$16 sps:$4 sm:$0xff]  }
  0xaf   :  { %898 = vmatpush1.bf16.msra.mxu0 %v14359_v63  ;;  %971 = vmatpush1.bf16.msra.mxu1 %v14362_v0  ;;  %v14424_v63 = vld [vmem:[#allocation2 + $0x2cc] ss:$16 sps:$4 sm:$0xff]   ;;  %v14419_v0 = vld [vmem:[#allocation2 + $0x2c0] ss:$16 sps:$4 sm:$0xff]  }
  0xb0   :  { %899 = vmatprep.subr.bf16.mxu0 %v14367_v3  ;;  %972 = vmatprep.subr.bf16.mxu1 %v14370_v5  ;;  %v14422_v3 = vld [vmem:[#allocation2 + $0x2c8] ss:$16 sps:$4 sm:$0xff]   ;;  %v14427_v5 = vld [vmem:[#allocation2 + $0x2e4] ss:$16 sps:$4 sm:$0xff]  }
  0xb1   :  { %645 = vmatprep.mubr.bf16.mxu0 %v15173_v28  ;;  %718 = vmatprep.mubr.bf16.mxu1 %v15173_v28 }
  0xb3   :  { %900 = vmatpush1.bf16.msra.mxu0 %v14365_v6  ;;  %973 = vmatpush1.bf16.msra.mxu1 %v14368_v1  ;;  %v14430_v6 = vld [vmem:[#allocation2 + $0x2ec] ss:$16 sps:$4 sm:$0xff]   ;;  %v14425_v1 = vld [vmem:[#allocation2 + $0x2e0] ss:$16 sps:$4 sm:$0xff]  }
  0xb4   :  { %901 = vmatprep.subr.bf16.mxu0 %v14373_v7  ;;  %974 = vmatprep.subr.bf16.mxu1 %v14376_v8  ;;  %v14428_v7 = vld [vmem:[#allocation2 + $0x2e8] ss:$16 sps:$4 sm:$0xff]   ;;  %v1408_v8 = vlaneseq }
  0xb6   :  { %646 = vmatmul.mubr.bf16.gmra.mrb[20].mxu0 %v15320_v4  ;;  %719 = vmatmul.mubr.bf16.gmra.mrb[20].mxu1 %v15320_v4 }
  0xb7   :  { %902 = vmatpush1.bf16.msra.mxu0 %v14371_v9  ;;  %975 = vmatpush1.bf16.msra.mxu1 %v14374_v10  ;;  %v15405_v9 = vshrl.u32 %v1408_v8, 7 }
  0xb8   :  { %921 = vmatprep.mubr.bf16.mxu0 %v15173_v28  ;;  %994 = vmatprep.mubr.bf16.mxu1 %v15173_v28 }
  0xb9   :  { %903 = vmatprep.subr.bf16.mxu0 %v14379_v2  ;;  %976 = vmatprep.subr.bf16.mxu1 %v14382_v11  ;;  %16339 = vst [vmem:[#allocation16_spill] sm:$0xff] %v15405_v9  ;;  %v15408_v10 = vsub.s32 0, %v15405_v9  ;;  %v15411_v2 = vsub.s32 2, %v15405_v9  ;;  %v1406_v11 = vld [vmem:[#allocation4] sm:$0xf] }
  0xbb   :  { %904 = vmatpush1.bf16.msra.mxu0 %v14377_v12  ;;  %977 = vmatpush1.bf16.msra.mxu1 %v14380_v13  ;;  %16340 = vst [vmem:[#allocation17_spill] sm:$0xff] %v15408_v10  ;;  %16341 = vst [vmem:[#allocation18_spill] sm:$0xff] %v15411_v2  ;;  %v15414_v12 = vsub.s32 1, %v15405_v9  ;;  %v15417_v13 = vsub.s32 3, %v15405_v9  ;;  %v5956_v9 = vld [vmem:[#allocation9 + $0xf18] sm:$0xff] }
  0xbc   :  { %1228 = vmatprep.subr.bf16.mxu0 %v14385_v14  ;;  %1301 = vmatprep.subr.bf16.mxu1 %v14388_v15  ;;  %v15420_v14 = vrot.slane %v1406_v11, %v15408_v10  ;;  %v15423_v15 = vrot.slane %v1406_v11, %v15411_v2 }
  0xbd   :  { %16342 = vst [vmem:[#allocation19_spill] sm:$0xff] %v15414_v12  ;;  %16343 = vst [vmem:[#allocation20_spill] sm:$0xff] %v15417_v13 }
 0x150   :  { %v13698_v16 = vpop.f32.mrb[0].mxu0  ;;  %v13714_v4 = vpop.f32.mrb[0].mxu1 }
 0x151   :  { %v222_v17 = vpop.f32.mrb[1].mxu0  ;;  %v323_v18 = vpop.f32.mrb[1].mxu1 }
 0x152   :  { %v13699_v19 = vpop.f32.mrb[2].mxu0  ;;  %v13715_v20 = vpop.f32.mrb[2].mxu1 }
 0x153   :  { %v254_v21 = vpack.c.bf16 %v13699_v19, %v13698_v16  ;;  %v225_v22 = vpop.f32.mrb[3].mxu0  ;;  %v15377_v25 = vpack.c.bf16 %v13715_v20, %v13714_v4  ;;  %v326_v26 = vpop.f32.mrb[3].mxu1  ;;  %v15426_v16 = vrot.slane %v1406_v11, %v15414_v12  ;;  %v15429_v4 = vrot.slane %v1406_v11, %v15417_v13 }
 0x154   :  { %v253_v27 = vpack.c.bf16 %v225_v22, %v222_v17  ;;  %v15379_v31 = vpack.c.bf16 %v326_v26, %v323_v18 }
 0x156   :  { %922 = vmatmul.mubr.bf16.vlgmr.msra.gmra.mrb[8].mxu0 %v253_v27  ;;  %995 = vmatmul.mubr.bf16.vlgmr.msra.gmra.mrb[8].mxu1 %v253_v27 }
 0x157   :  { %1229 = vmatpush1.bf16.msra.mxu0 %v14383_v23  ;;  %1302 = vmatpush1.bf16.msra.mxu1 %v14386_v24 }
 0x158   :  { %1230 = vmatprep.subr.bf16.mxu0 %v14391_v29  ;;  %1303 = vmatprep.subr.bf16.mxu1 %v14394_v30  ;;  %v13702_v34 = vpop.f32.mrb[4].mxu0  ;;  %v13718_v37 = vpop.f32.mrb[4].mxu1 }
 0x159   :  { %931 = vmatprep.mubr.bf16.mxu0 %v15173_v28  ;;  %1004 = vmatprep.mubr.bf16.mxu1 %v15173_v28  ;;  %v238_v38 = vpop.f32.mrb[5].mxu0  ;;  %v339_v39 = vpop.f32.mrb[5].mxu1 }
 0x15a   :  { %v13703_v40 = vpop.f32.mrb[6].mxu0  ;;  %v13719_v41 = vpop.f32.mrb[6].mxu1 }
 0x15b   :  { %1231 = vmatpush1.bf16.msra.mxu0 %v14389_v32  ;;  %1304 = vmatpush1.bf16.msra.mxu1 %v14392_v33  ;;  %v256_v44 = vpack.c.bf16 %v13703_v40, %v13702_v34  ;;  %v241_v45 = vpop.f32.mrb[7].mxu0  ;;  %v15383_v46 = vpack.c.bf16 %v13719_v41, %v13718_v37  ;;  %v342_v47 = vpop.f32.mrb[7].mxu1 }
 0x15c   :  { %1232 = vmatprep.subr.bf16.mxu0 %v14397_v35  ;;  %1305 = vmatprep.subr.bf16.mxu1 %v14400_v36  ;;  %v255_v48 = vpack.c.bf16 %v241_v45, %v238_v38  ;;  %v356_v51 = vpack.c.bf16 %v342_v47, %v339_v39 }
 0x15e   :  { %932 = vmatmul.mubr.bf16.gmra.mrb[12].mxu0 %v254_v21  ;;  %1005 = vmatmul.mubr.bf16.gmra.mrb[12].mxu1 %v254_v21 }
 0x15f   :  { %1233 = vmatpush1.bf16.msra.mxu0 %v14395_v42  ;;  %1306 = vmatpush1.bf16.msra.mxu1 %v14398_v43 }
 0x160   :  { %1234 = vmatprep.subr.bf16.mxu0 %v14403_v49  ;;  %1307 = vmatprep.subr.bf16.mxu1 %v14406_v50 }
 0x161   :  { %941 = vmatprep.mubr.bf16.mxu0 %v15173_v28  ;;  %1014 = vmatprep.mubr.bf16.mxu1 %v15173_v28 }
 0x163   :  { %1235 = vmatpush1.bf16.msra.mxu0 %v14401_v52  ;;  %1308 = vmatpush1.bf16.msra.mxu1 %v14404_v53 }
 0x164   :  { %1236 = vmatprep.subr.bf16.mxu0 %v14409_v54  ;;  %1309 = vmatprep.subr.bf16.mxu1 %v14412_v55 }
 0x166   :  { %942 = vmatmul.mubr.bf16.gmra.mrb[16].mxu0 %v255_v48  ;;  %1015 = vmatmul.mubr.bf16.gmra.mrb[16].mxu1 %v255_v48 }
 0x167   :  { %1237 = vmatpush1.bf16.msra.mxu0 %v14407_v56  ;;  %1310 = vmatpush1.bf16.msra.mxu1 %v14410_v57 }
 0x168   :  { %1238 = vmatprep.subr.bf16.mxu0 %v14415_v58  ;;  %1311 = vmatprep.subr.bf16.mxu1 %v14418_v59 }
 0x169   :  { %951 = vmatprep.mubr.bf16.mxu0 %v15173_v28  ;;  %1024 = vmatprep.mubr.bf16.mxu1 %v15173_v28 }
 0x16b   :  { %1239 = vmatpush1.bf16.msra.mxu0 %v14413_v60  ;;  %1312 = vmatpush1.bf16.msra.mxu1 %v14416_v61 }
 0x16c   :  { %1240 = vmatprep.subr.bf16.mxu0 %v14421_v62  ;;  %1313 = vmatprep.subr.bf16.mxu1 %v14424_v63 }
 0x16e   :  { %952 = vmatmul.mubr.bf16.gmra.mrb[20].mxu0 %v256_v44  ;;  %1025 = vmatmul.mubr.bf16.gmra.mrb[20].mxu1 %v256_v44 }
 0x16f   :  { %1241 = vmatpush1.bf16.msra.mxu0 %v14419_v0  ;;  %1314 = vmatpush1.bf16.msra.mxu1 %v14422_v3 }
 0x170   :  { %1242 = vmatprep.subr.bf16.mxu0 %v14427_v5  ;;  %1315 = vmatprep.subr.bf16.mxu1 %v14430_v6 }
 0x171   :  { %1260 = vmatprep.mubr.bf16.mxu0 %v15173_v28  ;;  %1333 = vmatprep.mubr.bf16.mxu1 %v15173_v28 }
 0x173   :  { %1243 = vmatpush1.bf16.msra.mxu0 %v14425_v1  ;;  %1316 = vmatpush1.bf16.msra.mxu1 %v14428_v7 }
 0x176   :  { %1261 = vmatmul.mubr.bf16.vlgmr.msra.gmra.mrb[8].mxu0 %v15379_v31  ;;  %1334 = vmatmul.mubr.bf16.vlgmr.msra.gmra.mrb[8].mxu1 %v15379_v31 }
 0x177   :  { %1270 = vmatprep.mubr.bf16.mxu0 %v15173_v28  ;;  %1343 = vmatprep.mubr.bf16.mxu1 %v15173_v28 }
 0x17e   :  { %1271 = vmatmul.mubr.bf16.gmra.mrb[12].mxu0 %v15377_v25  ;;  %1344 = vmatmul.mubr.bf16.gmra.mrb[12].mxu1 %v15377_v25 }
 0x17f   :  { %1280 = vmatprep.mubr.bf16.mxu0 %v15173_v28  ;;  %1353 = vmatprep.mubr.bf16.mxu1 %v15173_v28 }
 0x186   :  { %1281 = vmatmul.mubr.bf16.gmra.mrb[16].mxu0 %v356_v51  ;;  %1354 = vmatmul.mubr.bf16.gmra.mrb[16].mxu1 %v356_v51 }
 0x187   :  { %1290 = vmatprep.mubr.bf16.mxu0 %v15173_v28  ;;  %1363 = vmatprep.mubr.bf16.mxu1 %v15173_v28 }
 0x18e   :  { %1291 = vmatmul.mubr.bf16.gmra.mrb[20].mxu0 %v15383_v46  ;;  %1364 = vmatmul.mubr.bf16.gmra.mrb[20].mxu1 %v15383_v46 }
 0x18f   :  { %1540 = vmatprep.mubr.bf16.mxu0 %v15173_v28  ;;  %1613 = vmatprep.mubr.bf16.mxu1 %v15173_v28 }
 0x249   :  { %v1262_v17 = vpop.f32.mrb[8].mxu0  ;;  %v1335_v18 = vpop.f32.mrb[8].mxu1 }
 0x24a   :  { %v1428_v19 = vadd.f32 %v15420_v14, %v1262_v17  ;;  %v1430_v20 = vadd.f32 %v15423_v15, %v1335_v18  ;;  %v1264_v21 = vpop.f32.mrb[9].mxu0  ;;  %v1337_v22 = vpop.f32.mrb[9].mxu1 }
 0x24b   :  { %v1429_v23 = vadd.f32 %v15426_v16, %v1264_v21  ;;  %v1431_v24 = vadd.f32 %v15429_v4, %v1337_v22  ;;  %v1266_v25 = vpop.f32.mrb[10].mxu0  ;;  %v1339_v26 = vpop.f32.mrb[10].mxu1 }
 0x24c   :  { %v1432_v27 = vadd.f32 %v15420_v14, %v1266_v25  ;;  %v1434_v29 = vadd.f32 %v15423_v15, %v1339_v26  ;;  %v1268_v30 = vpop.f32.mrb[11].mxu0  ;;  %v1341_v31 = vpop.f32.mrb[11].mxu1  ;;  %v1460_v34 = vmax.f32 %v1428_v19, 0.0  ;;  %v1462_v35 = vmax.f32 %v1430_v20, 0.0 }
 0x24d   :  { %v1433_v32 = vadd.f32 %v15426_v16, %v1268_v30  ;;  %v1435_v33 = vadd.f32 %v15429_v4, %v1341_v31  ;;  %v1461_v38 = vmax.f32 %v1429_v23, 0.0  ;;  %v1463_v39 = vmax.f32 %v1431_v24, 0.0 }
 0x24e   :  { %v1464_v36 = vmax.f32 %v1432_v27, 0.0  ;;  %v1466_v37 = vmax.f32 %v1434_v29, 0.0 }
 0x24f   :  { %v1465_v40 = vmax.f32 %v1433_v32, 0.0  ;;  %v1467_v41 = vmax.f32 %v1435_v33, 0.0 }
 0x250   :  { %v15439_v42 = vpack.c.bf16 %v1464_v36, %v1460_v34  ;;  %v15441_v43 = vpack.c.bf16 %v1466_v37, %v1462_v35 }
 0x251   :  { %v15443_v44 = vpack.c.bf16 %v1465_v40, %v1461_v38  ;;  %v15445_v45 = vpack.c.bf16 %v1467_v41, %v1463_v39  ;;  %v1272_v46 = vpop.f32.mrb[12].mxu0  ;;  %v1345_v47 = vpop.f32.mrb[12].mxu1 }
 0x252   :  { %v1436_v48 = vadd.f32 %v15420_v14, %v1272_v46  ;;  %v1438_v49 = vadd.f32 %v15423_v15, %v1345_v47  ;;  %v1274_v50 = vpop.f32.mrb[13].mxu0  ;;  %v1347_v51 = vpop.f32.mrb[13].mxu1 }
 0x253   :  { %v1437_v52 = vadd.f32 %v15426_v16, %v1274_v50  ;;  %v1439_v53 = vadd.f32 %v15429_v4, %v1347_v51  ;;  %v1276_v54 = vpop.f32.mrb[14].mxu0  ;;  %v1349_v55 = vpop.f32.mrb[14].mxu1  ;;  %1508 = vmatprep.subr.bf16.mxu0 %v15443_v44  ;;  %1581 = vmatprep.subr.bf16.mxu1 %v15445_v45 }
 0x254   :  { %v1440_v56 = vadd.f32 %v15420_v14, %v1276_v54  ;;  %v1442_v57 = vadd.f32 %v15423_v15, %v1349_v55  ;;  %v1278_v58 = vpop.f32.mrb[15].mxu0  ;;  %v1351_v59 = vpop.f32.mrb[15].mxu1  ;;  %1509 = vmatpush1.bf16.msra.mxu0 %v15439_v42  ;;  %1582 = vmatpush1.bf16.msra.mxu1 %v15441_v43  ;;  %v1468_v62 = vmax.f32 %v1436_v48, 0.0  ;;  %v1470_v63 = vmax.f32 %v1438_v49, 0.0 }
 0x255   :  { %v1441_v60 = vadd.f32 %v15426_v16, %v1278_v58  ;;  %v1443_v61 = vadd.f32 %v15429_v4, %v1351_v59  ;;  %v1469_v5 = vmax.f32 %v1437_v52, 0.0  ;;  %v1471_v6 = vmax.f32 %v1439_v53, 0.0 }
 0x256   :  { %v1472_v0 = vmax.f32 %v1440_v56, 0.0  ;;  %v1474_v3 = vmax.f32 %v1442_v57, 0.0 }
 0x257   :  { %v1473_v1 = vmax.f32 %v1441_v60, 0.0  ;;  %v1475_v7 = vmax.f32 %v1443_v61, 0.0 }
 0x258   :  { %v15459_v8 = vpack.c.bf16 %v1472_v0, %v1468_v62  ;;  %v15461_v11 = vpack.c.bf16 %v1474_v3, %v1470_v63 }
 0x259   :  { %v15463_v17 = vpack.c.bf16 %v1473_v1, %v1469_v5  ;;  %v15465_v18 = vpack.c.bf16 %v1475_v7, %v1471_v6  ;;  %v1282_v19 = vpop.f32.mrb[16].mxu0  ;;  %v1355_v20 = vpop.f32.mrb[16].mxu1 }
 0x25a   :  { %v1444_v21 = vadd.f32 %v15420_v14, %v1282_v19  ;;  %v1446_v22 = vadd.f32 %v15423_v15, %v1355_v20  ;;  %v1284_v23 = vpop.f32.mrb[17].mxu0  ;;  %v1357_v24 = vpop.f32.mrb[17].mxu1 }
 0x25b   :  { %v1445_v25 = vadd.f32 %v15426_v16, %v1284_v23  ;;  %v1447_v26 = vadd.f32 %v15429_v4, %v1357_v24  ;;  %v1286_v27 = vpop.f32.mrb[18].mxu0  ;;  %v1359_v29 = vpop.f32.mrb[18].mxu1  ;;  %1510 = vmatprep.subr.bf16.mxu0 %v15463_v17  ;;  %1583 = vmatprep.subr.bf16.mxu1 %v15465_v18 }
 0x25c   :  { %v1448_v30 = vadd.f32 %v15420_v14, %v1286_v27  ;;  %v1450_v31 = vadd.f32 %v15423_v15, %v1359_v29  ;;  %v1288_v32 = vpop.f32.mrb[19].mxu0  ;;  %v1361_v33 = vpop.f32.mrb[19].mxu1  ;;  %1511 = vmatpush1.bf16.msra.mxu0 %v15459_v8  ;;  %1584 = vmatpush1.bf16.msra.mxu1 %v15461_v11  ;;  %v1476_v36 = vmax.f32 %v1444_v21, 0.0  ;;  %v1478_v37 = vmax.f32 %v1446_v22, 0.0  ;;  %v14433_v27 = vld [vmem:[#allocation6 + $0x404] ss:$16 sps:$4 sm:$0xff]  }
 0x25d   :  { %v1449_v34 = vadd.f32 %v15426_v16, %v1288_v32  ;;  %v1451_v35 = vadd.f32 %v15429_v4, %v1361_v33  ;;  %v1477_v40 = vmax.f32 %v1445_v25, 0.0  ;;  %v1479_v41 = vmax.f32 %v1447_v26, 0.0  ;;  %v14436_v29 = vld [vmem:[#allocation6 + $0x40c] ss:$16 sps:$4 sm:$0xff]   ;;  %v14431_v32 = vld [vmem:[#allocation6 + $0x400] ss:$16 sps:$4 sm:$0xff]  }
 0x25e   :  { %v1480_v38 = vmax.f32 %v1448_v30, 0.0  ;;  %v1482_v39 = vmax.f32 %v1450_v31, 0.0  ;;  %v15009_v30 = vld [vmem:[%s16323_s0 + $0x10] sm:$0xff]   ;;  %v15010_v31 = vld [vmem:[%s16323_s0 + $0x18] sm:$0xff]  }
 0x25f   :  { %v1481_v46 = vmax.f32 %v1449_v34, 0.0  ;;  %v1483_v47 = vmax.f32 %v1451_v35, 0.0  ;;  %v14434_v33 = vld [vmem:[#allocation6 + $0x408] ss:$16 sps:$4 sm:$0xff]   ;;  %v14439_v34 = vld [vmem:[#allocation6 + $0x424] ss:$16 sps:$4 sm:$0xff]  }
 0x260   :  { %v15479_v48 = vpack.c.bf16 %v1480_v38, %v1476_v36  ;;  %v15481_v49 = vpack.c.bf16 %v1482_v39, %v1478_v37  ;;  %v14442_v35 = vld [vmem:[#allocation6 + $0x42c] ss:$16 sps:$4 sm:$0xff]   ;;  %v14437_v37 = vld [vmem:[#allocation6 + $0x420] ss:$16 sps:$4 sm:$0xff]   ;;  %v14440_v38 = vld [vmem:[#allocation6 + $0x428] ss:$16 sps:$4 sm:$0xff]  }
 0x261   :  { %v15483_v50 = vpack.c.bf16 %v1481_v46, %v1477_v40  ;;  %v15485_v51 = vpack.c.bf16 %v1483_v47, %v1479_v41  ;;  %v1292_v52 = vpop.f32.mrb[20].mxu0  ;;  %v1365_v53 = vpop.f32.mrb[20].mxu1  ;;  %v15011_v36 = vld [vmem:[%s16323_s0 + $0x20] sm:$0xff]   ;;  %v14445_v39 = vld [vmem:[#allocation6 + $0x444] ss:$16 sps:$4 sm:$0xff]  }
 0x262   :  { %v1452_v54 = vadd.f32 %v15420_v14, %v1292_v52  ;;  %v1454_v55 = vadd.f32 %v15423_v15, %v1365_v53  ;;  %v1294_v56 = vpop.f32.mrb[21].mxu0  ;;  %v1367_v57 = vpop.f32.mrb[21].mxu1  ;;  %v14448_v40 = vld [vmem:[#allocation6 + $0x44c] ss:$16 sps:$4 sm:$0xff]   ;;  %v14443_v41 = vld [vmem:[#allocation6 + $0x440] ss:$16 sps:$4 sm:$0xff]  }
 0x263   :  { %v1453_v58 = vadd.f32 %v15426_v16, %v1294_v56  ;;  %v1455_v59 = vadd.f32 %v15429_v4, %v1367_v57  ;;  %v1296_v60 = vpop.f32.mrb[22].mxu0  ;;  %v1369_v61 = vpop.f32.mrb[22].mxu1  ;;  %1512 = vmatprep.subr.bf16.mxu0 %v15483_v50  ;;  %1585 = vmatprep.subr.bf16.mxu1 %v15485_v51  ;;  %v14446_v46 = vld [vmem:[#allocation6 + $0x448] ss:$16 sps:$4 sm:$0xff]   ;;  %v14451_v47 = vld [vmem:[#allocation6 + $0x464] ss:$16 sps:$4 sm:$0xff]  }
 0x264   :  { %v1456_v62 = vadd.f32 %v15420_v14, %v1296_v60  ;;  %v1458_v63 = vadd.f32 %v15423_v15, %v1369_v61  ;;  %v1298_v0 = vpop.f32.mrb[23].mxu0  ;;  %v1371_v3 = vpop.f32.mrb[23].mxu1  ;;  %1513 = vmatpush1.bf16.msra.mxu0 %v15479_v48  ;;  %1586 = vmatpush1.bf16.msra.mxu1 %v15481_v49  ;;  %v1484_v1 = vmax.f32 %v1452_v54, 0.0  ;;  %v1486_v7 = vmax.f32 %v1454_v55, 0.0  ;;  %v14454_v52 = vld [vmem:[#allocation6 + $0x46c] ss:$16 sps:$4 sm:$0xff]  }
 0x265   :  { %v1457_v5 = vadd.f32 %v15426_v16, %v1298_v0  ;;  %v1459_v6 = vadd.f32 %v15429_v4, %v1371_v3  ;;  %v1485_v21 = vmax.f32 %v1453_v58, 0.0  ;;  %v1487_v22 = vmax.f32 %v1455_v59, 0.0  ;;  %v15007_v16 = vld [vmem:[%s16323_s0] sm:$0xff]   ;;  %v15008_v4 = vld [vmem:[%s16323_s0 + $0x8] sm:$0xff]  }
 0x266   :  { %v1488_v19 = vmax.f32 %v1456_v62, 0.0  ;;  %v1490_v20 = vmax.f32 %v1458_v63, 0.0  ;;  %v15012_v53 = vld [vmem:[%s16323_s0 + $0x28] sm:$0xff]   ;;  %v14449_v54 = vld [vmem:[#allocation6 + $0x460] ss:$16 sps:$4 sm:$0xff]  }
 0x267   :  { %v1489_v23 = vmax.f32 %v1457_v5, 0.0  ;;  %v1491_v14 = vmax.f32 %v1459_v6, 0.0  ;;  %v14452_v55 = vld [vmem:[#allocation6 + $0x468] ss:$16 sps:$4 sm:$0xff]   ;;  %v14457_v56 = vld [vmem:[#allocation6 + $0x484] ss:$16 sps:$4 sm:$0xff]  }
 0x268   :  { %v15499_v24 = vpack.c.bf16 %v1488_v19, %v1484_v1  ;;  %v15501_v15 = vpack.c.bf16 %v1490_v20, %v1486_v7  ;;  %v14460_v57 = vld [vmem:[#allocation6 + $0x48c] ss:$16 sps:$4 sm:$0xff]   ;;  %v14455_v58 = vld [vmem:[#allocation6 + $0x480] ss:$16 sps:$4 sm:$0xff]   ;;  %v14458_v59 = vld [vmem:[#allocation6 + $0x488] ss:$16 sps:$4 sm:$0xff]  }
 0x269   :  { %v15503_v25 = vpack.c.bf16 %v1489_v23, %v1485_v21  ;;  %v15505_v26 = vpack.c.bf16 %v1491_v14, %v1487_v22  ;;  %v14463_v60 = vld [vmem:[#allocation6 + $0x4a4] ss:$16 sps:$4 sm:$0xff]   ;;  %v14466_v61 = vld [vmem:[#allocation6 + $0x4ac] ss:$16 sps:$4 sm:$0xff]   ;;  %v14461_v63 = vld [vmem:[#allocation6 + $0x4a0] ss:$16 sps:$4 sm:$0xff]  }
 0x26a   :  { %v15013_v62 = vld [vmem:[%s16323_s0 + $0x30] sm:$0xff]   ;;  %v14464_v0 = vld [vmem:[#allocation6 + $0x4a8] ss:$16 sps:$4 sm:$0xff]   ;;  %v14469_v3 = vld [vmem:[#allocation6 + $0x4c4] ss:$16 sps:$4 sm:$0xff]  }
 0x26b   :  { %1514 = vmatprep.subr.bf16.mxu0 %v15503_v25  ;;  %1587 = vmatprep.subr.bf16.mxu1 %v15505_v26  ;;  %v14472_v5 = vld [vmem:[#allocation6 + $0x4cc] ss:$16 sps:$4 sm:$0xff]   ;;  %v14467_v6 = vld [vmem:[#allocation6 + $0x4c0] ss:$16 sps:$4 sm:$0xff]   ;;  %v14470_v1 = vld [vmem:[#allocation6 + $0x4c8] ss:$16 sps:$4 sm:$0xff]  }
 0x26c   :  { %1515 = vmatpush1.bf16.msra.mxu0 %v15499_v24  ;;  %1588 = vmatpush1.bf16.msra.mxu1 %v15501_v15  ;;  %v14475_v7 = vld [vmem:[#allocation6 + $0x4e4] ss:$16 sps:$4 sm:$0xff]   ;;  %v14478_v19 = vld [vmem:[#allocation6 + $0x4ec] ss:$16 sps:$4 sm:$0xff]   ;;  %v14473_v21 = vld [vmem:[#allocation6 + $0x4e0] ss:$16 sps:$4 sm:$0xff]  }
 0x26d   :  { %1670 = vmatprep.subr.bf16.mxu0 %v15443_v44  ;;  %1743 = vmatprep.subr.bf16.mxu1 %v15445_v45  ;;  %v15014_v20 = vld [vmem:[%s16323_s0 + $0x38] sm:$0xff]   ;;  %v14484_v14 = vld [vmem:[#allocation6 + $0x50c] ss:$16 sps:$4 sm:$0xff]  }
 0x26e   :  { %v14476_v22 = vld [vmem:[#allocation6 + $0x4e8] ss:$16 sps:$4 sm:$0xff]   ;;  %v14481_v23 = vld [vmem:[#allocation6 + $0x504] ss:$16 sps:$4 sm:$0xff]  }
 0x26f   :  { %12424 = vmatmul.mubr.msk.bf16.vlgmr.msra.gmra.mrb[24].mxu0 %vm175_vm0, %v15007_v16  ;;  %12428 = vmatmul.mubr.msk.bf16.vlgmr.msra.gmra.mrb[24].mxu1 %vm175_vm0, %v15007_v16  ;;  %v14479_v16 = vld [vmem:[#allocation6 + $0x500] ss:$16 sps:$4 sm:$0xff]  }
 0x270   :  { %1671 = vmatpush1.bf16.msra.mxu0 %v15439_v42  ;;  %1744 = vmatpush1.bf16.msra.mxu1 %v15441_v43 }
 0x271   :  { %1672 = vmatprep.subr.bf16.mxu0 %v15463_v17  ;;  %1745 = vmatprep.subr.bf16.mxu1 %v15465_v18 }
 0x272   :  { %1550 = vmatprep.mubr.bf16.mxu0 %v15173_v28  ;;  %1623 = vmatprep.mubr.bf16.mxu1 %v15173_v28 }
 0x274   :  { %1673 = vmatpush1.bf16.msra.mxu0 %v15459_v8  ;;  %1746 = vmatpush1.bf16.msra.mxu1 %v15461_v11 }
 0x275   :  { %1674 = vmatprep.subr.bf16.mxu0 %v15483_v50  ;;  %1747 = vmatprep.subr.bf16.mxu1 %v15485_v51 }
 0x277   :  { %12425 = vmatmul.mubr.msk.bf16.gmra.mrb[28].mxu0 %vm175_vm0, %v15008_v4  ;;  %12429 = vmatmul.mubr.msk.bf16.gmra.mrb[28].mxu1 %vm175_vm0, %v15008_v4  ;;  %v14482_v4 = vld [vmem:[#allocation6 + $0x508] ss:$16 sps:$4 sm:$0xff]  }
 0x278   :  { %1675 = vmatpush1.bf16.msra.mxu0 %v15479_v48  ;;  %1748 = vmatpush1.bf16.msra.mxu1 %v15481_v49 }
 0x279   :  { %1676 = vmatprep.subr.bf16.mxu0 %v15503_v25  ;;  %1749 = vmatprep.subr.bf16.mxu1 %v15505_v26 }
 0x27a   :  { %1560 = vmatprep.mubr.bf16.mxu0 %v15173_v28  ;;  %1633 = vmatprep.mubr.bf16.mxu1 %v15173_v28 }
 0x27c   :  { %1677 = vmatpush1.bf16.msra.mxu0 %v15499_v24  ;;  %1750 = vmatpush1.bf16.msra.mxu1 %v15501_v15 }
 0x27d   :  { %2729 = vmatprep.subr.bf16.mxu0 %v14433_v27  ;;  %2875 = vmatprep.subr.bf16.mxu1 %v14436_v29  ;;  %v14487_v27 = vld [vmem:[#allocation6 + $0x524] ss:$16 sps:$4 sm:$0xff]   ;;  %v14490_v29 = vld [vmem:[#allocation6 + $0x52c] ss:$16 sps:$4 sm:$0xff]  }
 0x27f   :  { %12426 = vmatmul.mubr.msk.bf16.gmra.mrb[32].mxu0 %vm175_vm0, %v15009_v30  ;;  %12430 = vmatmul.mubr.msk.bf16.gmra.mrb[32].mxu1 %vm175_vm0, %v15009_v30  ;;  %v14485_v30 = vld [vmem:[#allocation6 + $0x520] ss:$16 sps:$4 sm:$0xff]  }
 0x280   :  { %1570 = vmatprep.mubr.bf16.mxu0 %v15173_v28  ;;  %1643 = vmatprep.mubr.bf16.mxu1 %v15173_v28 }
 0x287   :  { %12427 = vmatmul.mubr.msk.bf16.gmra.mrb[36].mxu0 %vm175_vm0, %v15010_v31  ;;  %12431 = vmatmul.mubr.msk.bf16.gmra.mrb[36].mxu1 %vm175_vm0, %v15010_v31  ;;  %v14488_v31 = vld [vmem:[#allocation6 + $0x528] ss:$16 sps:$4 sm:$0xff]  }
 0x288   :  { %1702 = vmatprep.mubr.bf16.mxu0 %v15173_v28  ;;  %1775 = vmatprep.mubr.bf16.mxu1 %v15173_v28 }
 0x28f   :  { %12432 = vmatmul.mubr.msk.bf16.vlgmr.msra.gmra.mrb[40].mxu0 %vm175_vm0, %v15011_v36  ;;  %12436 = vmatmul.mubr.msk.bf16.vlgmr.msra.gmra.mrb[40].mxu1 %vm175_vm0, %v15011_v36  ;;  %v14502_v36 = vld [vmem:[#allocation6 + $0x56c] ss:$16 sps:$4 sm:$0xff]  }
 0x290   :  { %2730 = vmatpush1.bf16.msra.mxu0 %v14431_v32  ;;  %2876 = vmatpush1.bf16.msra.mxu1 %v14434_v33  ;;  %v14493_v32 = vld [vmem:[#allocation6 + $0x544] ss:$16 sps:$4 sm:$0xff]   ;;  %v14491_v33 = vld [vmem:[#allocation6 + $0x540] ss:$16 sps:$4 sm:$0xff]  }
 0x291   :  { %2731 = vmatprep.subr.bf16.mxu0 %v14439_v34  ;;  %2877 = vmatprep.subr.bf16.mxu1 %v14442_v35  ;;  %v14494_v34 = vld [vmem:[#allocation6 + $0x548] ss:$16 sps:$4 sm:$0xff]   ;;  %v14499_v35 = vld [vmem:[#allocation6 + $0x564] ss:$16 sps:$4 sm:$0xff]  }
 0x292   :  { %1712 = vmatprep.mubr.bf16.mxu0 %v15173_v28  ;;  %1785 = vmatprep.mubr.bf16.mxu1 %v15173_v28 }
 0x294   :  { %2732 = vmatpush1.bf16.msra.mxu0 %v14437_v37  ;;  %2878 = vmatpush1.bf16.msra.mxu1 %v14440_v38  ;;  %v14497_v37 = vld [vmem:[#allocation6 + $0x560] ss:$16 sps:$4 sm:$0xff]   ;;  %v14500_v38 = vld [vmem:[#allocation6 + $0x568] ss:$16 sps:$4 sm:$0xff]  }
 0x295   :  { %2733 = vmatprep.subr.bf16.mxu0 %v14445_v39  ;;  %2879 = vmatprep.subr.bf16.mxu1 %v14448_v40  ;;  %v14505_v39 = vld [vmem:[#allocation6 + $0x584] ss:$16 sps:$4 sm:$0xff]   ;;  %v14508_v40 = vld [vmem:[#allocation6 + $0x58c] ss:$16 sps:$4 sm:$0xff]  }
 0x297   :  { %12433 = vmatmul.mubr.msk.bf16.gmra.mrb[44].mxu0 %vm175_vm0, %v15012_v53  ;;  %12437 = vmatmul.mubr.msk.bf16.gmra.mrb[44].mxu1 %vm175_vm0, %v15012_v53  ;;  %v14509_v53 = vld [vmem:[#allocation6 + $0x5a0] ss:$16 sps:$4 sm:$0xff]  }
 0x298   :  { %2734 = vmatpush1.bf16.msra.mxu0 %v14443_v41  ;;  %2880 = vmatpush1.bf16.msra.mxu1 %v14446_v46  ;;  %v14503_v41 = vld [vmem:[#allocation6 + $0x580] ss:$16 sps:$4 sm:$0xff]   ;;  %v14506_v46 = vld [vmem:[#allocation6 + $0x588] ss:$16 sps:$4 sm:$0xff]  }
 0x299   :  { %2735 = vmatprep.subr.bf16.mxu0 %v14451_v47  ;;  %2881 = vmatprep.subr.bf16.mxu1 %v14454_v52  ;;  %v14511_v47 = vld [vmem:[#allocation6 + $0x5a4] ss:$16 sps:$4 sm:$0xff]   ;;  %v14514_v52 = vld [vmem:[#allocation6 + $0x5ac] ss:$16 sps:$4 sm:$0xff]  }
 0x29a   :  { %1722 = vmatprep.mubr.bf16.mxu0 %v15173_v28  ;;  %1795 = vmatprep.mubr.bf16.mxu1 %v15173_v28 }
 0x29c   :  { %2736 = vmatpush1.bf16.msra.mxu0 %v14449_v54  ;;  %2882 = vmatpush1.bf16.msra.mxu1 %v14452_v55  ;;  %v14512_v54 = vld [vmem:[#allocation6 + $0x5a8] ss:$16 sps:$4 sm:$0xff]   ;;  %v14517_v55 = vld [vmem:[#allocation6 + $0x5c4] ss:$16 sps:$4 sm:$0xff]  }
 0x29d   :  { %2737 = vmatprep.subr.bf16.mxu0 %v14457_v56  ;;  %2883 = vmatprep.subr.bf16.mxu1 %v14460_v57  ;;  %v14520_v56 = vld [vmem:[#allocation6 + $0x5cc] ss:$16 sps:$4 sm:$0xff]   ;;  %v14515_v57 = vld [vmem:[#allocation6 + $0x5c0] ss:$16 sps:$4 sm:$0xff]  }
 0x29f   :  { %12434 = vmatmul.mubr.msk.bf16.gmra.mrb[48].mxu0 %vm175_vm0, %v15013_v62  ;;  %12438 = vmatmul.mubr.msk.bf16.gmra.mrb[48].mxu1 %vm175_vm0, %v15013_v62  ;;  %v14524_v62 = vld [vmem:[#allocation6 + $0x5e8] ss:$16 sps:$4 sm:$0xff]  }
 0x2a0   :  { %2738 = vmatpush1.bf16.msra.mxu0 %v14455_v58  ;;  %2884 = vmatpush1.bf16.msra.mxu1 %v14458_v59  ;;  %v14518_v58 = vld [vmem:[#allocation6 + $0x5c8] ss:$16 sps:$4 sm:$0xff]   ;;  %v14523_v59 = vld [vmem:[#allocation6 + $0x5e4] ss:$16 sps:$4 sm:$0xff]  }
 0x2a1   :  { %2739 = vmatprep.subr.bf16.mxu0 %v14463_v60  ;;  %2885 = vmatprep.subr.bf16.mxu1 %v14466_v61  ;;  %v14526_v60 = vld [vmem:[#allocation6 + $0x5ec] ss:$16 sps:$4 sm:$0xff]   ;;  %v14521_v61 = vld [vmem:[#allocation6 + $0x5e0] ss:$16 sps:$4 sm:$0xff]  }
 0x2a2   :  { %1732 = vmatprep.mubr.bf16.mxu0 %v15173_v28  ;;  %1805 = vmatprep.mubr.bf16.mxu1 %v15173_v28 }
 0x2a4   :  { %2740 = vmatpush1.bf16.msra.mxu0 %v14461_v63  ;;  %2886 = vmatpush1.bf16.msra.mxu1 %v14464_v0  ;;  %v14529_v63 = vld [vmem:[#allocation6 + $0x604] ss:$16 sps:$4 sm:$0xff]   ;;  %v14532_v0 = vld [vmem:[#allocation6 + $0x60c] ss:$16 sps:$4 sm:$0xff]  }
 0x2a5   :  { %2741 = vmatprep.subr.bf16.mxu0 %v14469_v3  ;;  %2887 = vmatprep.subr.bf16.mxu1 %v14472_v5  ;;  %v14527_v3 = vld [vmem:[#allocation6 + $0x600] ss:$16 sps:$4 sm:$0xff]   ;;  %v14530_v5 = vld [vmem:[#allocation6 + $0x608] ss:$16 sps:$4 sm:$0xff]  }
 0x2a7   :  { %12435 = vmatmul.mubr.msk.bf16.gmra.mrb[52].mxu0 %vm175_vm0, %v15014_v20  ;;  %12439 = vmatmul.mubr.msk.bf16.gmra.mrb[52].mxu1 %vm175_vm0, %v15014_v20  ;;  %v14541_v20 = vld [vmem:[#allocation6 + $0x644] ss:$16 sps:$4 sm:$0xff]  }
 0x2a8   :  { %2742 = vmatpush1.bf16.msra.mxu0 %v14467_v6  ;;  %2888 = vmatpush1.bf16.msra.mxu1 %v14470_v1  ;;  %v14535_v6 = vld [vmem:[#allocation6 + $0x624] ss:$16 sps:$4 sm:$0xff]   ;;  %v14538_v1 = vld [vmem:[#allocation6 + $0x62c] ss:$16 sps:$4 sm:$0xff]  }
 0x2a9   :  { %2761 = vmatprep.mubr.bf16.mxu0 %v15443_v44  ;;  %2907 = vmatprep.mubr.bf16.mxu1 %v15443_v44  ;;  %v14496_v44 = vld [vmem:[#allocation6 + $0x54c] ss:$16 sps:$4 sm:$0xff]  }
 0x2aa   :  { %2743 = vmatprep.subr.bf16.mxu0 %v14475_v7  ;;  %2889 = vmatprep.subr.bf16.mxu1 %v14478_v19  ;;  %v14533_v7 = vld [vmem:[#allocation6 + $0x620] ss:$16 sps:$4 sm:$0xff]   ;;  %v14536_v19 = vld [vmem:[#allocation6 + $0x628] ss:$16 sps:$4 sm:$0xff]  }
 0x2ac   :  { %2744 = vmatpush1.bf16.msra.mxu0 %v14473_v21  ;;  %2890 = vmatpush1.bf16.msra.mxu1 %v14476_v22  ;;  %v14544_v21 = vld [vmem:[#allocation6 + $0x64c] ss:$16 sps:$4 sm:$0xff]   ;;  %v14539_v22 = vld [vmem:[#allocation6 + $0x640] ss:$16 sps:$4 sm:$0xff]  }
 0x2ad   :  { %2745 = vmatprep.subr.bf16.mxu0 %v14481_v23  ;;  %2891 = vmatprep.subr.bf16.mxu1 %v14484_v14  ;;  %v14542_v23 = vld [vmem:[#allocation6 + $0x648] ss:$16 sps:$4 sm:$0xff]   ;;  %v14547_v14 = vld [vmem:[#allocation6 + $0x664] ss:$16 sps:$4 sm:$0xff]  }
 0x2b0   :  { %2746 = vmatpush1.bf16.msra.mxu0 %v14479_v16  ;;  %2892 = vmatpush1.bf16.msra.mxu1 %v14482_v4  ;;  %v14548_v16 = vld [vmem:[#allocation6 + $0x668] ss:$16 sps:$4 sm:$0xff]   ;;  %v14553_v4 = vld [vmem:[#allocation6 + $0x684] ss:$16 sps:$4 sm:$0xff]  }
 0x2b1   :  { %2747 = vmatprep.subr.bf16.mxu0 %v14487_v27  ;;  %2893 = vmatprep.subr.bf16.mxu1 %v14490_v29  ;;  %v14556_v27 = vld [vmem:[#allocation6 + $0x68c] ss:$16 sps:$4 sm:$0xff]   ;;  %v14551_v29 = vld [vmem:[#allocation6 + $0x680] ss:$16 sps:$4 sm:$0xff]  }
 0x2b4   :  { %2748 = vmatpush1.bf16.msra.mxu0 %v14485_v30  ;;  %2894 = vmatpush1.bf16.msra.mxu1 %v14488_v31  ;;  %v14554_v30 = vld [vmem:[#allocation6 + $0x688] ss:$16 sps:$4 sm:$0xff]   ;;  %v14559_v31 = vld [vmem:[#allocation6 + $0x6a4] ss:$16 sps:$4 sm:$0xff]  }
 0x2b5   :  { %2749 = vmatprep.subr.bf16.mxu0 %v14493_v32  ;;  %2895 = vmatprep.subr.bf16.mxu1 %v14496_v44  ;;  %v14560_v32 = vld [vmem:[#allocation6 + $0x6a8] ss:$16 sps:$4 sm:$0xff]   ;;  %v14565_v44 = vld [vmem:[#allocation6 + $0x6c4] ss:$16 sps:$4 sm:$0xff]  }
 0x2b8   :  { %2750 = vmatpush1.bf16.msra.mxu0 %v14491_v33  ;;  %2896 = vmatpush1.bf16.msra.mxu1 %v14494_v34  ;;  %v14568_v33 = vld [vmem:[#allocation6 + $0x6cc] ss:$16 sps:$4 sm:$0xff]   ;;  %v14563_v34 = vld [vmem:[#allocation6 + $0x6c0] ss:$16 sps:$4 sm:$0xff]  }
 0x2b9   :  { %2751 = vmatprep.subr.bf16.mxu0 %v14499_v35  ;;  %2897 = vmatprep.subr.bf16.mxu1 %v14502_v36  ;;  %v14566_v35 = vld [vmem:[#allocation6 + $0x6c8] ss:$16 sps:$4 sm:$0xff]   ;;  %v14571_v36 = vld [vmem:[#allocation6 + $0x6e4] ss:$16 sps:$4 sm:$0xff]  }
 0x2bc   :  { %2752 = vmatpush1.bf16.msra.mxu0 %v14497_v37  ;;  %2898 = vmatpush1.bf16.msra.mxu1 %v14500_v38  ;;  %v14572_v37 = vld [vmem:[#allocation6 + $0x6e8] ss:$16 sps:$4 sm:$0xff]   ;;  %v14577_v38 = vld [vmem:[#allocation6 + $0x704] ss:$16 sps:$4 sm:$0xff]  }
 0x2bd   :  { %2753 = vmatprep.subr.bf16.mxu0 %v14505_v39  ;;  %2899 = vmatprep.subr.bf16.mxu1 %v14508_v40  ;;  %v14580_v39 = vld [vmem:[#allocation6 + $0x70c] ss:$16 sps:$4 sm:$0xff]   ;;  %v14575_v40 = vld [vmem:[#allocation6 + $0x700] ss:$16 sps:$4 sm:$0xff]  }
 0x2c0   :  { %2754 = vmatpush1.bf16.msra.mxu0 %v14503_v41  ;;  %2900 = vmatpush1.bf16.msra.mxu1 %v14506_v46  ;;  %v14578_v41 = vld [vmem:[#allocation6 + $0x708] ss:$16 sps:$4 sm:$0xff]   ;;  %v14583_v46 = vld [vmem:[#allocation6 + $0x724] ss:$16 sps:$4 sm:$0xff]  }
 0x2c1   :  { %2755 = vmatprep.subr.bf16.mxu0 %v14511_v47  ;;  %2901 = vmatprep.subr.bf16.mxu1 %v14514_v52  ;;  %v14581_v47 = vld [vmem:[#allocation6 + $0x720] ss:$16 sps:$4 sm:$0xff]   ;;  %v14584_v52 = vld [vmem:[#allocation6 + $0x728] ss:$16 sps:$4 sm:$0xff]  }
 0x2c4   :  { %2756 = vmatpush1.bf16.msra.mxu0 %v14509_v53  ;;  %2902 = vmatpush1.bf16.msra.mxu1 %v14512_v54  ;;  %v14589_v53 = vld [vmem:[#allocation6 + $0x744] ss:$16 sps:$4 sm:$0xff]   ;;  %v14587_v54 = vld [vmem:[#allocation6 + $0x740] ss:$16 sps:$4 sm:$0xff]  }
 0x2c5   :  { %2757 = vmatprep.subr.bf16.mxu0 %v14517_v55  ;;  %2903 = vmatprep.subr.bf16.mxu1 %v14520_v56  ;;  %v14590_v55 = vld [vmem:[#allocation6 + $0x748] ss:$16 sps:$4 sm:$0xff]   ;;  %v14595_v56 = vld [vmem:[#allocation6 + $0x764] ss:$16 sps:$4 sm:$0xff]  }
 0x2c8   :  { %2758 = vmatpush1.bf16.msra.mxu0 %v14515_v57  ;;  %2904 = vmatpush1.bf16.msra.mxu1 %v14518_v58  ;;  %v14598_v57 = vld [vmem:[#allocation6 + $0x76c] ss:$16 sps:$4 sm:$0xff]   ;;  %v14593_v58 = vld [vmem:[#allocation6 + $0x760] ss:$16 sps:$4 sm:$0xff]  }
 0x2c9   :  { %2759 = vmatprep.subr.bf16.mxu0 %v14523_v59  ;;  %2905 = vmatprep.subr.bf16.mxu1 %v14526_v60  ;;  %v14596_v59 = vld [vmem:[#allocation6 + $0x768] ss:$16 sps:$4 sm:$0xff]   ;;  %v14601_v60 = vld [vmem:[#allocation6 + $0x784] ss:$16 sps:$4 sm:$0xff]  }
 0x2cc   :  { %2760 = vmatpush1.bf16.msra.mxu0 %v14521_v61  ;;  %2906 = vmatpush1.bf16.msra.mxu1 %v14524_v62  ;;  %v14604_v61 = vld [vmem:[#allocation6 + $0x78c] ss:$16 sps:$4 sm:$0xff]   ;;  %v14599_v62 = vld [vmem:[#allocation6 + $0x780] ss:$16 sps:$4 sm:$0xff]  }
 0x2cd   :  { %2802 = vmatprep.subr.bf16.mxu0 %v14529_v63  ;;  %2948 = vmatprep.subr.bf16.mxu1 %v14532_v0  ;;  %v14602_v63 = vld [vmem:[#allocation6 + $0x788] ss:$16 sps:$4 sm:$0xff]   ;;  %v14607_v0 = vld [vmem:[#allocation6 + $0x7a4] ss:$16 sps:$4 sm:$0xff]  }
 0x2cf   :  { %2762 = vmatmul.mubr.bf16.vlgmr.msra.gmra.mrb[56].mxu0 %v15439_v42  ;;  %2908 = vmatmul.mubr.bf16.vlgmr.msra.gmra.mrb[56].mxu1 %v15439_v42  ;;  %v14550_v42 = vld [vmem:[#allocation6 + $0x66c] ss:$16 sps:$4 sm:$0xff]  }
 0x2d0   :  { %2771 = vmatprep.mubr.bf16.mxu0 %v15463_v17  ;;  %2803 = vmatpush1.bf16.msra.mxu0 %v14527_v3  ;;  %v14610_v3 = vld [vmem:[#allocation6 + $0x7ac] ss:$16 sps:$4 sm:$0xff]  }
 0x2d1   :  { %2917 = vmatprep.mubr.bf16.mxu1 %v15463_v17  ;;  %2949 = vmatpush1.bf16.msra.mxu1 %v14530_v5  ;;  %v14545_v17 = vld [vmem:[#allocation6 + $0x660] ss:$16 sps:$4 sm:$0xff]  }
 0x2d2   :  { %2804 = vmatprep.subr.bf16.mxu0 %v14535_v6  ;;  %2950 = vmatprep.subr.bf16.mxu1 %v14538_v1  ;;  %v14605_v5 = vld [vmem:[#allocation6 + $0x7a0] ss:$16 sps:$4 sm:$0xff]   ;;  %v14608_v6 = vld [vmem:[#allocation6 + $0x7a8] ss:$16 sps:$4 sm:$0xff]   ;;  %v14613_v1 = vld [vmem:[#allocation6 + $0x7c4] ss:$16 sps:$4 sm:$0xff]  }
 0x2d4   :  { %2805 = vmatpush1.bf16.msra.mxu0 %v14533_v7  ;;  %v14616_v7 = vld [vmem:[#allocation6 + $0x7cc] ss:$16 sps:$4 sm:$0xff]  }
 0x2d5   :  { %2951 = vmatpush1.bf16.msra.mxu1 %v14536_v19  ;;  %2806 = vmatprep.subr.bf16.mxu0 %v14541_v20  ;;  %v14611_v19 = vld [vmem:[#allocation6 + $0x7c0] ss:$16 sps:$4 sm:$0xff]   ;;  %v14614_v20 = vld [vmem:[#allocation6 + $0x7c8] ss:$16 sps:$4 sm:$0xff]  }
 0x2d6   :  { %2952 = vmatprep.subr.bf16.mxu1 %v14544_v21  ;;  %v14619_v21 = vld [vmem:[#allocation6 + $0x7e4] ss:$16 sps:$4 sm:$0xff]  }
 0x2d7   :  { %2772 = vmatmul.mubr.bf16.gmra.mrb[60].mxu0 %v15459_v8  ;;  %2918 = vmatmul.mubr.bf16.gmra.mrb[60].mxu1 %v15459_v8  ;;  %v14562_v8 = vld [vmem:[#allocation6 + $0x6ac] ss:$16 sps:$4 sm:$0xff]  }
 0x2d8   :  { %2781 = vmatprep.mubr.bf16.mxu0 %v15483_v50  ;;  %2807 = vmatpush1.bf16.msra.mxu0 %v14539_v22  ;;  %v14622_v22 = vld [vmem:[#allocation6 + $0x7ec] ss:$16 sps:$4 sm:$0xff]  }
 0x2d9   :  { %2927 = vmatprep.mubr.bf16.mxu1 %v15483_v50  ;;  %2953 = vmatpush1.bf16.msra.mxu1 %v14542_v23  ;;  %v14557_v50 = vld [vmem:[#allocation6 + $0x6a0] ss:$16 sps:$4 sm:$0xff]  }
 0x2da   :  { %2808 = vmatprep.subr.bf16.mxu0 %v14547_v14  ;;  %2954 = vmatprep.subr.bf16.mxu1 %v14550_v42  ;;  %v14617_v23 = vld [vmem:[#allocation6 + $0x7e0] ss:$16 sps:$4 sm:$0xff]   ;;  %v14620_v14 = vld [vmem:[#allocation6 + $0x7e8] ss:$16 sps:$4 sm:$0xff]   ;;  %v14625_v42 = vld [vmem:[#allocation6 + $0x4] ss:$16 sps:$4 sm:$0xff]  }
 0x2dc   :  { %2809 = vmatpush1.bf16.msra.mxu0 %v14545_v17  ;;  %v14628_v17 = vld [vmem:[#allocation6 + $0xc] ss:$16 sps:$4 sm:$0xff]  }
 0x2dd   :  { %2955 = vmatpush1.bf16.msra.mxu1 %v14548_v16  ;;  %2810 = vmatprep.subr.bf16.mxu0 %v14553_v4  ;;  %v14623_v16 = vld [vmem:[#allocation6] ss:$16 sps:$4 sm:$0xff]   ;;  %v14626_v4 = vld [vmem:[#allocation6 + $0x8] ss:$16 sps:$4 sm:$0xff]  }
 0x2de   :  { %2956 = vmatprep.subr.bf16.mxu1 %v14556_v27  ;;  %v14631_v27 = vld [vmem:[#allocation6 + $0x24] ss:$16 sps:$4 sm:$0xff]  }
 0x2df   :  { %2782 = vmatmul.mubr.bf16.gmra.mrb[64].mxu0 %v15479_v48  ;;  %2928 = vmatmul.mubr.bf16.gmra.mrb[64].mxu1 %v15479_v48  ;;  %v14574_v48 = vld [vmem:[#allocation6 + $0x6ec] ss:$16 sps:$4 sm:$0xff]  }
 0x2e0   :  { %2791 = vmatprep.mubr.bf16.mxu0 %v15503_v25  ;;  %2811 = vmatpush1.bf16.msra.mxu0 %v14551_v29  ;;  %v14634_v29 = vld [vmem:[#allocation6 + $0x2c] ss:$16 sps:$4 sm:$0xff]  }
 0x2e1   :  { %2937 = vmatprep.mubr.bf16.mxu1 %v15503_v25  ;;  %2957 = vmatpush1.bf16.msra.mxu1 %v14554_v30  ;;  %v14569_v25 = vld [vmem:[#allocation6 + $0x6e0] ss:$16 sps:$4 sm:$0xff]  }
 0x2e2   :  { %2812 = vmatprep.subr.bf16.mxu0 %v14559_v31  ;;  %2958 = vmatprep.subr.bf16.mxu1 %v14562_v8  ;;  %v14629_v30 = vld [vmem:[#allocation6 + $0x20] ss:$16 sps:$4 sm:$0xff]   ;;  %v14632_v31 = vld [vmem:[#allocation6 + $0x28] ss:$16 sps:$4 sm:$0xff]   ;;  %v14637_v8 = vld [vmem:[#allocation6 + $0x44] ss:$16 sps:$4 sm:$0xff]  }
 0x2e4   :  { %2813 = vmatpush1.bf16.msra.mxu0 %v14557_v50  ;;  %v14640_v50 = vld [vmem:[#allocation6 + $0x4c] ss:$16 sps:$4 sm:$0xff]  }
 0x2e5   :  { %2959 = vmatpush1.bf16.msra.mxu1 %v14560_v32  ;;  %2814 = vmatprep.subr.bf16.mxu0 %v14565_v44  ;;  %v14635_v32 = vld [vmem:[#allocation6 + $0x40] ss:$16 sps:$4 sm:$0xff]   ;;  %v14638_v44 = vld [vmem:[#allocation6 + $0x48] ss:$16 sps:$4 sm:$0xff]  }
 0x2e6   :  { %2960 = vmatprep.subr.bf16.mxu1 %v14568_v33  ;;  %v14643_v33 = vld [vmem:[#allocation6 + $0x64] ss:$16 sps:$4 sm:$0xff]  }
 0x2e7   :  { %2792 = vmatmul.mubr.bf16.gmra.mrb[68].mxu0 %v15499_v24  ;;  %2938 = vmatmul.mubr.bf16.gmra.mrb[68].mxu1 %v15499_v24  ;;  %v14586_v24 = vld [vmem:[#allocation6 + $0x72c] ss:$16 sps:$4 sm:$0xff]  }
 0x2e8   :  { %2815 = vmatpush1.bf16.msra.mxu0 %v14563_v34  ;;  %2834 = vmatprep.mubr.bf16.mxu0 %v15445_v45  ;;  %v14644_v34 = vld [vmem:[#allocation6 + $0x68] ss:$16 sps:$4 sm:$0xff]  }
 0x2e9   :  { %2961 = vmatpush1.bf16.msra.mxu1 %v14566_v35  ;;  %2980 = vmatprep.mubr.bf16.mxu1 %v15445_v45  ;;  %v14592_v45 = vld [vmem:[#allocation6 + $0x74c] ss:$16 sps:$4 sm:$0xff]   ;;  %v14649_v35 = vld [vmem:[#allocation6 + $0x84] ss:$16 sps:$4 sm:$0xff]  }
 0x2ea   :  { %2816 = vmatprep.subr.bf16.mxu0 %v14571_v36  ;;  %2962 = vmatprep.subr.bf16.mxu1 %v14574_v48  ;;  %v14652_v36 = vld [vmem:[#allocation6 + $0x8c] ss:$16 sps:$4 sm:$0xff]   ;;  %v14647_v48 = vld [vmem:[#allocation6 + $0x80] ss:$16 sps:$4 sm:$0xff]  }
 0x2ec   :  { %2817 = vmatpush1.bf16.msra.mxu0 %v14569_v25  ;;  %v14650_v25 = vld [vmem:[#allocation6 + $0x88] ss:$16 sps:$4 sm:$0xff]  }
 0x2ed   :  { %2963 = vmatpush1.bf16.msra.mxu1 %v14572_v37  ;;  %2818 = vmatprep.subr.bf16.mxu0 %v14577_v38  ;;  %v14655_v37 = vld [vmem:[#allocation6 + $0xa4] ss:$16 sps:$4 sm:$0xff]   ;;  %v14656_v38 = vld [vmem:[#allocation6 + $0xa8] ss:$16 sps:$4 sm:$0xff]  }
 0x2ee   :  { %2964 = vmatprep.subr.bf16.mxu1 %v14580_v39  ;;  %v14661_v39 = vld [vmem:[#allocation6 + $0xc4] ss:$16 sps:$4 sm:$0xff]  }
 0x2f0   :  { %2819 = vmatpush1.bf16.msra.mxu0 %v14575_v40  ;;  %v14664_v40 = vld [vmem:[#allocation6 + $0xcc] ss:$16 sps:$4 sm:$0xff]  }
 0x2f1   :  { %2965 = vmatpush1.bf16.msra.mxu1 %v14578_v41  ;;  %2820 = vmatprep.subr.bf16.mxu0 %v14583_v46  ;;  %v14659_v41 = vld [vmem:[#allocation6 + $0xc0] ss:$16 sps:$4 sm:$0xff]   ;;  %v14662_v46 = vld [vmem:[#allocation6 + $0xc8] ss:$16 sps:$4 sm:$0xff]  }
 0x2f2   :  { %2966 = vmatprep.subr.bf16.mxu1 %v14586_v24  ;;  %v14667_v24 = vld [vmem:[#allocation6 + $0xe4] ss:$16 sps:$4 sm:$0xff]  }
 0x2f4   :  { %2821 = vmatpush1.bf16.msra.mxu0 %v14581_v47  ;;  %v14668_v47 = vld [vmem:[#allocation6 + $0xe8] ss:$16 sps:$4 sm:$0xff]  }
 0x2f5   :  { %2967 = vmatpush1.bf16.msra.mxu1 %v14584_v52  ;;  %2822 = vmatprep.subr.bf16.mxu0 %v14589_v53  ;;  %v14673_v52 = vld [vmem:[#allocation6 + $0x104] ss:$16 sps:$4 sm:$0xff]   ;;  %v14676_v53 = vld [vmem:[#allocation6 + $0x10c] ss:$16 sps:$4 sm:$0xff]  }
 0x2f6   :  { %2968 = vmatprep.subr.bf16.mxu1 %v14592_v45  ;;  %v14671_v45 = vld [vmem:[#allocation6 + $0x100] ss:$16 sps:$4 sm:$0xff]  }
 0x2f8   :  { %2823 = vmatpush1.bf16.msra.mxu0 %v14587_v54  ;;  %v14674_v54 = vld [vmem:[#allocation6 + $0x108] ss:$16 sps:$4 sm:$0xff]  }
 0x2f9   :  { %2969 = vmatpush1.bf16.msra.mxu1 %v14590_v55  ;;  %2824 = vmatprep.subr.bf16.mxu0 %v14595_v56  ;;  %v14679_v55 = vld [vmem:[#allocation6 + $0x124] ss:$16 sps:$4 sm:$0xff]   ;;  %v14682_v56 = vld [vmem:[#allocation6 + $0x12c] ss:$16 sps:$4 sm:$0xff]  }
 0x2fa   :  { %2970 = vmatprep.subr.bf16.mxu1 %v14598_v57  ;;  %v14677_v57 = vld [vmem:[#allocation6 + $0x120] ss:$16 sps:$4 sm:$0xff]  }
 0x2fc   :  { %2825 = vmatpush1.bf16.msra.mxu0 %v14593_v58  ;;  %v14685_v58 = vld [vmem:[#allocation6 + $0x144] ss:$16 sps:$4 sm:$0xff]  }
 0x2fd   :  { %2971 = vmatpush1.bf16.msra.mxu1 %v14596_v59  ;;  %2826 = vmatprep.subr.bf16.mxu0 %v14601_v60  ;;  %v14688_v59 = vld [vmem:[#allocation6 + $0x14c] ss:$16 sps:$4 sm:$0xff]   ;;  %v14683_v60 = vld [vmem:[#allocation6 + $0x140] ss:$16 sps:$4 sm:$0xff]  }
 0x2fe   :  { %2972 = vmatprep.subr.bf16.mxu1 %v14604_v61  ;;  %v14686_v61 = vld [vmem:[#allocation6 + $0x148] ss:$16 sps:$4 sm:$0xff]  }
 0x300   :  { %2827 = vmatpush1.bf16.msra.mxu0 %v14599_v62  ;;  %v14691_v62 = vld [vmem:[#allocation6 + $0x164] ss:$16 sps:$4 sm:$0xff]  }
 0x301   :  { %2973 = vmatpush1.bf16.msra.mxu1 %v14602_v63  ;;  %2828 = vmatprep.subr.bf16.mxu0 %v14607_v0  ;;  %v14694_v63 = vld [vmem:[#allocation6 + $0x16c] ss:$16 sps:$4 sm:$0xff]   ;;  %v14689_v0 = vld [vmem:[#allocation6 + $0x160] ss:$16 sps:$4 sm:$0xff]  }
 0x302   :  { %2974 = vmatprep.subr.bf16.mxu1 %v14610_v3  ;;  %v14692_v3 = vld [vmem:[#allocation6 + $0x168] ss:$16 sps:$4 sm:$0xff]  }
 0x304   :  { %2829 = vmatpush1.bf16.msra.mxu0 %v14605_v5  ;;  %v14697_v5 = vld [vmem:[#allocation6 + $0x184] ss:$16 sps:$4 sm:$0xff]  }
 0x305   :  { %2975 = vmatpush1.bf16.msra.mxu1 %v14608_v6  ;;  %2830 = vmatprep.subr.bf16.mxu0 %v14613_v1  ;;  %v14700_v6 = vld [vmem:[#allocation6 + $0x18c] ss:$16 sps:$4 sm:$0xff]   ;;  %v14695_v1 = vld [vmem:[#allocation6 + $0x180] ss:$16 sps:$4 sm:$0xff]  }
 0x306   :  { %2976 = vmatprep.subr.bf16.mxu1 %v14616_v7  ;;  %v14698_v7 = vld [vmem:[#allocation6 + $0x188] ss:$16 sps:$4 sm:$0xff]  }
 0x308   :  { %2831 = vmatpush1.bf16.msra.mxu0 %v14611_v19  ;;  %v14703_v19 = vld [vmem:[#allocation6 + $0x1a4] ss:$16 sps:$4 sm:$0xff]  }
 0x309   :  { %2977 = vmatpush1.bf16.msra.mxu1 %v14614_v20  ;;  %2832 = vmatprep.subr.bf16.mxu0 %v14619_v21  ;;  %v14706_v20 = vld [vmem:[#allocation6 + $0x1ac] ss:$16 sps:$4 sm:$0xff]   ;;  %v14701_v21 = vld [vmem:[#allocation6 + $0x1a0] ss:$16 sps:$4 sm:$0xff]  }
 0x30a   :  { %2978 = vmatprep.subr.bf16.mxu1 %v14622_v22 }
 0x30c   :  { %2833 = vmatpush1.bf16.msra.mxu0 %v14617_v23 }
 0x30d   :  { %2979 = vmatpush1.bf16.msra.mxu1 %v14620_v14  ;;  %3661 = vmatprep.subr.bf16.mxu0 %v14625_v42  ;;  %v14704_v14 = vld [vmem:[#allocation6 + $0x1a8] ss:$16 sps:$4 sm:$0xff]   ;;  %v14709_v42 = vld [vmem:[#allocation6 + $0x1c4] ss:$16 sps:$4 sm:$0xff]  }
 0x30e   :  { %3807 = vmatprep.subr.bf16.mxu1 %v14628_v17 }
 0x30f   :  { %2835 = vmatmul.mubr.bf16.vlgmr.msra.gmra.mrb[56].mxu0 %v15441_v43 }
 0x310   :  { %2981 = vmatmul.mubr.bf16.vlgmr.msra.gmra.mrb[56].mxu1 %v15441_v43  ;;  %2844 = vmatprep.mubr.bf16.mxu0 %v15465_v18  ;;  %v14646_v43 = vld [vmem:[#allocation6 + $0x6c] ss:$16 sps:$4 sm:$0xff]  }
 0x311   :  { %2990 = vmatprep.mubr.bf16.mxu1 %v15465_v18  ;;  %3662 = vmatpush1.bf16.msra.mxu0 %v14623_v16  ;;  %v14641_v18 = vld [vmem:[#allocation6 + $0x60] ss:$16 sps:$4 sm:$0xff]  }
 0x312   :  { %3808 = vmatpush1.bf16.msra.mxu1 %v14626_v4  ;;  %3663 = vmatprep.subr.bf16.mxu0 %v14631_v27  ;;  %v14712_v4 = vld [vmem:[#allocation6 + $0x1cc] ss:$16 sps:$4 sm:$0xff]  }
 0x313   :  { %3809 = vmatprep.subr.bf16.mxu1 %v14634_v29 }
 0x315   :  { %3664 = vmatpush1.bf16.msra.mxu0 %v14629_v30 }
 0x316   :  { %3810 = vmatpush1.bf16.msra.mxu1 %v14632_v31  ;;  %3665 = vmatprep.subr.bf16.mxu0 %v14637_v8 }
 0x317   :  { %2845 = vmatmul.mubr.bf16.gmra.mrb[60].mxu0 %v15461_v11  ;;  %3811 = vmatprep.subr.bf16.mxu1 %v14640_v50 }
 0x318   :  { %2991 = vmatmul.mubr.bf16.gmra.mrb[60].mxu1 %v15461_v11  ;;  %2854 = vmatprep.mubr.bf16.mxu0 %v15485_v51  ;;  %v14658_v11 = vld [vmem:[#allocation6 + $0xac] ss:$16 sps:$4 sm:$0xff]  }
 0x319   :  { %3000 = vmatprep.mubr.bf16.mxu1 %v15485_v51  ;;  %3666 = vmatpush1.bf16.msra.mxu0 %v14635_v32  ;;  %v14653_v51 = vld [vmem:[#allocation6 + $0xa0] ss:$16 sps:$4 sm:$0xff]  }
 0x31a   :  { %3812 = vmatpush1.bf16.msra.mxu1 %v14638_v44  ;;  %3667 = vmatprep.subr.bf16.mxu0 %v14643_v33  ;;  %v14707_v32 = vld [vmem:[#allocation6 + $0x1c0] ss:$16 sps:$4 sm:$0xff]  }
 0x31b   :  { %3813 = vmatprep.subr.bf16.mxu1 %v14646_v43  ;;  %v14710_v43 = vld [vmem:[#allocation6 + $0x1c8] ss:$16 sps:$4 sm:$0xff]  }
 0x31d   :  { %3668 = vmatpush1.bf16.msra.mxu0 %v14641_v18  ;;  %v14715_v18 = vld [vmem:[#allocation6 + $0x1e4] ss:$16 sps:$4 sm:$0xff]  }
 0x31e   :  { %3814 = vmatpush1.bf16.msra.mxu1 %v14644_v34  ;;  %3669 = vmatprep.subr.bf16.mxu0 %v14649_v35  ;;  %v14718_v34 = vld [vmem:[#allocation6 + $0x1ec] ss:$16 sps:$4 sm:$0xff]   ;;  %v14713_v35 = vld [vmem:[#allocation6 + $0x1e0] ss:$16 sps:$4 sm:$0xff]  }
 0x31f   :  { %2855 = vmatmul.mubr.bf16.gmra.mrb[64].mxu0 %v15481_v49  ;;  %3815 = vmatprep.subr.bf16.mxu1 %v14652_v36 }
 0x320   :  { %3001 = vmatmul.mubr.bf16.gmra.mrb[64].mxu1 %v15481_v49  ;;  %2864 = vmatprep.mubr.bf16.mxu0 %v15505_v26  ;;  %v14670_v49 = vld [vmem:[#allocation6 + $0xec] ss:$16 sps:$4 sm:$0xff]  }
 0x321   :  { %3010 = vmatprep.mubr.bf16.mxu1 %v15505_v26  ;;  %3670 = vmatpush1.bf16.msra.mxu0 %v14647_v48  ;;  %v14665_v26 = vld [vmem:[#allocation6 + $0xe0] ss:$16 sps:$4 sm:$0xff]  }
 0x322   :  { %3816 = vmatpush1.bf16.msra.mxu1 %v14650_v25  ;;  %3671 = vmatprep.subr.bf16.mxu0 %v14655_v37  ;;  %v14716_v25 = vld [vmem:[#allocation6 + $0x1e8] ss:$16 sps:$4 sm:$0xff]   ;;  %v14721_v37 = vld [vmem:[#allocation6 + $0x204] ss:$16 sps:$4 sm:$0xff]  }
 0x323   :  { %3817 = vmatprep.subr.bf16.mxu1 %v14658_v11 }
 0x325   :  { %3672 = vmatpush1.bf16.msra.mxu0 %v14653_v51 }
 0x326   :  { %3818 = vmatpush1.bf16.msra.mxu1 %v14656_v38  ;;  %3673 = vmatprep.subr.bf16.mxu0 %v14661_v39  ;;  %v14724_v38 = vld [vmem:[#allocation6 + $0x20c] ss:$16 sps:$4 sm:$0xff]  }
 0x327   :  { %2865 = vmatmul.mubr.bf16.gmra.mrb[68].mxu0 %v15501_v15  ;;  %3819 = vmatprep.subr.bf16.mxu1 %v14664_v40 }
 0x328   :  { %3011 = vmatmul.mubr.bf16.gmra.mrb[68].mxu1 %v15501_v15  ;;  %v14680_v15 = vld [vmem:[#allocation6 + $0x128] ss:$16 sps:$4 sm:$0xff]  }
 0x329   :  { %3674 = vmatpush1.bf16.msra.mxu0 %v14659_v41 }
 0x32a   :  { %3820 = vmatpush1.bf16.msra.mxu1 %v14662_v46  ;;  %3675 = vmatprep.subr.bf16.mxu0 %v14667_v24 }
 0x32b   :  { %3821 = vmatprep.subr.bf16.mxu1 %v14670_v49 }
 0x32d   :  { %3676 = vmatpush1.bf16.msra.mxu0 %v14665_v26  ;;  %v14719_v26 = vld [vmem:[#allocation6 + $0x200] ss:$16 sps:$4 sm:$0xff]  }
 0x32e   :  { %3822 = vmatpush1.bf16.msra.mxu1 %v14668_v47  ;;  %3677 = vmatprep.subr.bf16.mxu0 %v14673_v52 }
 0x32f   :  { %3823 = vmatprep.subr.bf16.mxu1 %v14676_v53  ;;  %v14722_v53 = vld [vmem:[#allocation6 + $0x208] ss:$16 sps:$4 sm:$0xff]  }
 0x331   :  { %3678 = vmatpush1.bf16.msra.mxu0 %v14671_v45  ;;  %v14727_v45 = vld [vmem:[#allocation6 + $0x224] ss:$16 sps:$4 sm:$0xff]  }
 0x332   :  { %3824 = vmatpush1.bf16.msra.mxu1 %v14674_v54  ;;  %3679 = vmatprep.subr.bf16.mxu0 %v14679_v55  ;;  %v14730_v54 = vld [vmem:[#allocation6 + $0x22c] ss:$16 sps:$4 sm:$0xff]   ;;  %v14725_v55 = vld [vmem:[#allocation6 + $0x220] ss:$16 sps:$4 sm:$0xff]  }
 0x333   :  { %3825 = vmatprep.subr.bf16.mxu1 %v14682_v56 }
 0x335   :  { %3680 = vmatpush1.bf16.msra.mxu0 %v14677_v57 }
 0x336   :  { %3826 = vmatpush1.bf16.msra.mxu1 %v14680_v15  ;;  %3681 = vmatprep.subr.bf16.mxu0 %v14685_v58  ;;  %v14728_v15 = vld [vmem:[#allocation6 + $0x228] ss:$16 sps:$4 sm:$0xff]   ;;  %v14733_v58 = vld [vmem:[#allocation6 + $0x244] ss:$16 sps:$4 sm:$0xff]  }
 0x337   :  { %3827 = vmatprep.subr.bf16.mxu1 %v14688_v59 }
 0x339   :  { %3682 = vmatpush1.bf16.msra.mxu0 %v14683_v60 }
 0x33a   :  { %3828 = vmatpush1.bf16.msra.mxu1 %v14686_v61  ;;  %3683 = vmatprep.subr.bf16.mxu0 %v14691_v62  ;;  %v14736_v61 = vld [vmem:[#allocation6 + $0x24c] ss:$16 sps:$4 sm:$0xff]  }
 0x33b   :  { %3829 = vmatprep.subr.bf16.mxu1 %v14694_v63 }
 0x33d   :  { %3684 = vmatpush1.bf16.msra.mxu0 %v14689_v0 }
 0x33e   :  { %3830 = vmatpush1.bf16.msra.mxu1 %v14692_v3  ;;  %3685 = vmatprep.subr.bf16.mxu0 %v14697_v5 }
 0x33f   :  { %3831 = vmatprep.subr.bf16.mxu1 %v14700_v6 }
 0x341   :  { %3686 = vmatpush1.bf16.msra.mxu0 %v14695_v1  ;;  %v14731_v1 = vld [vmem:[#allocation6 + $0x240] ss:$16 sps:$4 sm:$0xff]  }
 0x342   :  { %3832 = vmatpush1.bf16.msra.mxu1 %v14698_v7  ;;  %v1542_v22 = vpop.f32.mrb[24].mxu0  ;;  %v1615_v23 = vpop.f32.mrb[24].mxu1  ;;  %3687 = vmatprep.subr.bf16.mxu0 %v14703_v19 }
 0x343   :  { %3833 = vmatprep.subr.bf16.mxu1 %v14706_v20  ;;  %v1544_v17 = vpop.f32.mrb[25].mxu0  ;;  %v1617_v16 = vpop.f32.mrb[25].mxu1  ;;  %v14734_v20 = vld [vmem:[#allocation6 + $0x248] ss:$16 sps:$4 sm:$0xff]  }
 0x344   :  { %v1546_v27 = vpop.f32.mrb[26].mxu0  ;;  %v1619_v29 = vpop.f32.mrb[26].mxu1 }
 0x345   :  { %3688 = vmatpush1.bf16.msra.mxu0 %v14701_v21  ;;  %v1654_v30 = vpack.c.bf16 %v1546_v27, %v1542_v22  ;;  %v15613_v31 = vpack.c.bf16 %v1619_v29, %v1615_v23  ;;  %v1548_v8 = vpop.f32.mrb[27].mxu0  ;;  %v1621_v50 = vpop.f32.mrb[27].mxu1  ;;  %v14739_v21 = vld [vmem:[#allocation6 + $0x264] ss:$16 sps:$4 sm:$0xff]   ;;  %v14742_v22 = vld [vmem:[#allocation6 + $0x26c] ss:$16 sps:$4 sm:$0xff]  }
 0x346   :  { %3834 = vmatpush1.bf16.msra.mxu1 %v14704_v14  ;;  %v1655_v44 = vpack.c.bf16 %v1548_v8, %v1544_v17  ;;  %v15615_v33 = vpack.c.bf16 %v1621_v50, %v1617_v16  ;;  %3689 = vmatprep.subr.bf16.mxu0 %v14709_v42  ;;  %v14737_v23 = vld [vmem:[#allocation6 + $0x260] ss:$16 sps:$4 sm:$0xff]   ;;  %v14740_v17 = vld [vmem:[#allocation6 + $0x268] ss:$16 sps:$4 sm:$0xff]   ;;  %v14745_v16 = vld [vmem:[#allocation6 + $0x284] ss:$16 sps:$4 sm:$0xff]  }
 0x347   :  { %3835 = vmatprep.subr.bf16.mxu1 %v14712_v4  ;;  %v14748_v29 = vld [vmem:[#allocation6 + $0x28c] ss:$16 sps:$4 sm:$0xff]  }
 0x348   :  { %3693 = vmatprep.mubr.bf16.mxu0 %v1655_v44  ;;  %3839 = vmatprep.mubr.bf16.mxu1 %v1655_v44 }
 0x349   :  { %3690 = vmatpush1.bf16.msra.mxu0 %v14707_v32 }
 0x34a   :  { %3836 = vmatpush1.bf16.msra.mxu1 %v14710_v43  ;;  %v1552_v36 = vpop.f32.mrb[28].mxu0  ;;  %v1625_v48 = vpop.f32.mrb[28].mxu1  ;;  %3691 = vmatprep.subr.bf16.mxu0 %v14715_v18  ;;  %v14743_v18 = vld [vmem:[#allocation6 + $0x280] ss:$16 sps:$4 sm:$0xff]  }
 0x34b   :  { %3837 = vmatprep.subr.bf16.mxu1 %v14718_v34  ;;  %v1554_v11 = vpop.f32.mrb[29].mxu0  ;;  %v1627_v51 = vpop.f32.mrb[29].mxu1 }
 0x34c   :  { %v1556_v39 = vpop.f32.mrb[30].mxu0  ;;  %v1629_v40 = vpop.f32.mrb[30].mxu1 }
 0x34d   :  { %3692 = vmatpush1.bf16.msra.mxu0 %v14713_v35  ;;  %v1658_v41 = vpack.c.bf16 %v1556_v39, %v1552_v36  ;;  %v15617_v46 = vpack.c.bf16 %v1629_v40, %v1625_v48  ;;  %v1558_v24 = vpop.f32.mrb[31].mxu0  ;;  %v1631_v49 = vpop.f32.mrb[31].mxu1  ;;  %v14746_v36 = vld [vmem:[#allocation6 + $0x288] ss:$16 sps:$4 sm:$0xff]   ;;  %v14751_v48 = vld [vmem:[#allocation6 + $0x2a4] ss:$16 sps:$4 sm:$0xff]  }
 0x34e   :  { %3838 = vmatpush1.bf16.msra.mxu1 %v14716_v25  ;;  %v1659_v47 = vpack.c.bf16 %v1558_v24, %v1554_v11  ;;  %v15619_v52 = vpack.c.bf16 %v1631_v49, %v1627_v51  ;;  %3734 = vmatprep.subr.bf16.mxu0 %v14721_v37  ;;  %v14754_v25 = vld [vmem:[#allocation6 + $0x2ac] ss:$16 sps:$4 sm:$0xff]   ;;  %v14749_v37 = vld [vmem:[#allocation6 + $0x2a0] ss:$16 sps:$4 sm:$0xff]   ;;  %v14757_v39 = vld [vmem:[#allocation6 + $0x2c4] ss:$16 sps:$4 sm:$0xff]  }
 0x34f   :  { %3880 = vmatprep.subr.bf16.mxu1 %v14724_v38  ;;  %v14752_v38 = vld [vmem:[#allocation6 + $0x2a8] ss:$16 sps:$4 sm:$0xff]   ;;  %v14760_v24 = vld [vmem:[#allocation6 + $0x2cc] ss:$16 sps:$4 sm:$0xff]  }
 0x350   :  { %3694 = vmatmul.mubr.bf16.vlgmr.msra.gmra.mrb[56].mxu0 %v1654_v30 }
 0x351   :  { %3840 = vmatmul.mubr.bf16.vlgmr.msra.gmra.mrb[56].mxu1 %v1654_v30  ;;  %3735 = vmatpush1.bf16.msra.mxu0 %v14719_v26 }
 0x352   :  { %3881 = vmatpush1.bf16.msra.mxu1 %v14722_v53  ;;  %3703 = vmatprep.mubr.bf16.mxu0 %v1659_v47  ;;  %v1562_v56 = vpop.f32.mrb[32].mxu0  ;;  %v1635_v57 = vpop.f32.mrb[32].mxu1 }
 0x353   :  { %3849 = vmatprep.mubr.bf16.mxu1 %v1659_v47  ;;  %3736 = vmatprep.subr.bf16.mxu0 %v14727_v45  ;;  %v1564_v59 = vpop.f32.mrb[33].mxu0  ;;  %v1637_v60 = vpop.f32.mrb[33].mxu1 }
 0x354   :  { %3882 = vmatprep.subr.bf16.mxu1 %v14730_v54  ;;  %v1566_v62 = vpop.f32.mrb[34].mxu0  ;;  %v1639_v63 = vpop.f32.mrb[34].mxu1 }
 0x355   :  { %3737 = vmatpush1.bf16.msra.mxu0 %v14725_v55  ;;  %v1662_v0 = vpack.c.bf16 %v1566_v62, %v1562_v56  ;;  %v15621_v3 = vpack.c.bf16 %v1639_v63, %v1635_v57  ;;  %v1568_v5 = vpop.f32.mrb[35].mxu0  ;;  %v1641_v6 = vpop.f32.mrb[35].mxu1  ;;  %v14755_v55 = vld [vmem:[#allocation6 + $0x2c0] ss:$16 sps:$4 sm:$0xff]   ;;  %v14769_v62 = vld [vmem:[#allocation6 + $0x304] ss:$16 sps:$4 sm:$0xff]  }
 0x356   :  { %3883 = vmatpush1.bf16.msra.mxu1 %v14728_v15  ;;  %v1663_v7 = vpack.c.bf16 %v1568_v5, %v1564_v59  ;;  %v15623_v19 = vpack.c.bf16 %v1641_v6, %v1637_v60  ;;  %3738 = vmatprep.subr.bf16.mxu0 %v14733_v58  ;;  %v14758_v15 = vld [vmem:[#allocation6 + $0x2c8] ss:$16 sps:$4 sm:$0xff]   ;;  %v14763_v58 = vld [vmem:[#allocation6 + $0x2e4] ss:$16 sps:$4 sm:$0xff]   ;;  %v14766_v59 = vld [vmem:[#allocation6 + $0x2ec] ss:$16 sps:$4 sm:$0xff]  }
 0x357   :  { %3884 = vmatprep.subr.bf16.mxu1 %v14736_v61  ;;  %v14761_v60 = vld [vmem:[#allocation6 + $0x2e0] ss:$16 sps:$4 sm:$0xff]   ;;  %v14764_v61 = vld [vmem:[#allocation6 + $0x2e8] ss:$16 sps:$4 sm:$0xff]   ;;  %v14772_v5 = vld [vmem:[#allocation6 + $0x30c] ss:$16 sps:$4 sm:$0xff]  }
 0x358   :  { %3704 = vmatmul.mubr.bf16.gmra.mrb[60].mxu0 %v1658_v41 }
 0x359   :  { %3850 = vmatmul.mubr.bf16.gmra.mrb[60].mxu1 %v1658_v41  ;;  %3739 = vmatpush1.bf16.msra.mxu0 %v14731_v1 }
 0x35a   :  { %3885 = vmatpush1.bf16.msra.mxu1 %v14734_v20  ;;  %3713 = vmatprep.mubr.bf16.mxu0 %v1663_v7  ;;  %v1572_v14 = vpop.f32.mrb[36].mxu0  ;;  %v1645_v42 = vpop.f32.mrb[36].mxu1 }
 0x35b   :  { %3859 = vmatprep.mubr.bf16.mxu1 %v1663_v7  ;;  %3740 = vmatprep.subr.bf16.mxu0 %v14739_v21  ;;  %v1574_v4 = vpop.f32.mrb[37].mxu0  ;;  %v1647_v27 = vpop.f32.mrb[37].mxu1  ;;  %v14767_v21 = vld [vmem:[#allocation6 + $0x300] ss:$16 sps:$4 sm:$0xff]  }
 0x35c   :  { %3886 = vmatprep.subr.bf16.mxu1 %v14742_v22  ;;  %v1576_v30 = vpop.f32.mrb[38].mxu0  ;;  %v1649_v8 = vpop.f32.mrb[38].mxu1 }
 0x35d   :  { %3741 = vmatpush1.bf16.msra.mxu0 %v14737_v23  ;;  %v1666_v50 = vpack.c.bf16 %v1576_v30, %v1572_v14  ;;  %v15625_v32 = vpack.c.bf16 %v1649_v8, %v1645_v42  ;;  %v1578_v44 = vpop.f32.mrb[39].mxu0  ;;  %v1651_v43 = vpop.f32.mrb[39].mxu1  ;;  %v14776_v30 = vld [vmem:[#allocation6 + $0x328] ss:$16 sps:$4 sm:$0xff]   ;;  %v14781_v8 = vld [vmem:[#allocation6 + $0x344] ss:$16 sps:$4 sm:$0xff]  }
 0x35e   :  { %3887 = vmatpush1.bf16.msra.mxu1 %v14740_v17  ;;  %v1667_v34 = vpack.c.bf16 %v1578_v44, %v1574_v4  ;;  %v15627_v35 = vpack.c.bf16 %v1651_v43, %v1647_v27  ;;  %3742 = vmatprep.subr.bf16.mxu0 %v14745_v16  ;;  %v14770_v17 = vld [vmem:[#allocation6 + $0x308] ss:$16 sps:$4 sm:$0xff]   ;;  %v14775_v16 = vld [vmem:[#allocation6 + $0x324] ss:$16 sps:$4 sm:$0xff]   ;;  %v14778_v27 = vld [vmem:[#allocation6 + $0x32c] ss:$16 sps:$4 sm:$0xff]  }
 0x35f   :  { %3888 = vmatprep.subr.bf16.mxu1 %v14748_v29  ;;  %v14773_v29 = vld [vmem:[#allocation6 + $0x320] ss:$16 sps:$4 sm:$0xff]   ;;  %v14784_v43 = vld [vmem:[#allocation6 + $0x34c] ss:$16 sps:$4 sm:$0xff]  }
 0x360   :  { %3714 = vmatmul.mubr.bf16.gmra.mrb[64].mxu0 %v1662_v0 }
 0x361   :  { %3860 = vmatmul.mubr.bf16.gmra.mrb[64].mxu1 %v1662_v0  ;;  %3743 = vmatpush1.bf16.msra.mxu0 %v14743_v18 }
 0x362   :  { %3889 = vmatpush1.bf16.msra.mxu1 %v14746_v36  ;;  %3723 = vmatprep.mubr.bf16.mxu0 %v1667_v34  ;;  %v1704_v11 = vpop.f32.mrb[40].mxu0  ;;  %v1777_v51 = vpop.f32.mrb[40].mxu1 }
 0x363   :  { %3869 = vmatprep.mubr.bf16.mxu1 %v1667_v34  ;;  %3744 = vmatprep.subr.bf16.mxu0 %v14751_v48  ;;  %v1706_v40 = vpop.f32.mrb[41].mxu0  ;;  %v1779_v41 = vpop.f32.mrb[41].mxu1 }
 0x364   :  { %3890 = vmatprep.subr.bf16.mxu1 %v14754_v25  ;;  %v1708_v49 = vpop.f32.mrb[42].mxu0  ;;  %v1781_v26 = vpop.f32.mrb[42].mxu1  ;;  %v14779_v25 = vld [vmem:[#allocation6 + $0x340] ss:$16 sps:$4 sm:$0xff]  }
 0x365   :  { %3745 = vmatpush1.bf16.msra.mxu0 %v14749_v37  ;;  %v15629_v47 = vpack.c.bf16 %v1708_v49, %v1704_v11  ;;  %v15631_v53 = vpack.c.bf16 %v1781_v26, %v1777_v51  ;;  %v1710_v45 = vpop.f32.mrb[43].mxu0  ;;  %v1783_v54 = vpop.f32.mrb[43].mxu1  ;;  %v14790_v49 = vld [vmem:[#allocation6 + $0x36c] ss:$16 sps:$4 sm:$0xff]   ;;  %v14785_v26 = vld [vmem:[#allocation6 + $0x360] ss:$16 sps:$4 sm:$0xff]  }
 0x366   :  { %3891 = vmatpush1.bf16.msra.mxu1 %v14752_v38  ;;  %v15633_v56 = vpack.c.bf16 %v1710_v45, %v1706_v40  ;;  %v15635_v57 = vpack.c.bf16 %v1783_v54, %v1779_v41  ;;  %3746 = vmatprep.subr.bf16.mxu0 %v14757_v39  ;;  %v14782_v39 = vld [vmem:[#allocation6 + $0x348] ss:$16 sps:$4 sm:$0xff]   ;;  %v14787_v40 = vld [vmem:[#allocation6 + $0x364] ss:$16 sps:$4 sm:$0xff]  }
 0x367   :  { %3892 = vmatprep.subr.bf16.mxu1 %v14760_v24  ;;  %v14788_v45 = vld [vmem:[#allocation6 + $0x368] ss:$16 sps:$4 sm:$0xff]   ;;  %v14793_v54 = vld [vmem:[#allocation6 + $0x384] ss:$16 sps:$4 sm:$0xff]  }
 0x368   :  { %3724 = vmatmul.mubr.bf16.gmra.mrb[68].mxu0 %v1666_v50 }
 0x369   :  { %3870 = vmatmul.mubr.bf16.gmra.mrb[68].mxu1 %v1666_v50  ;;  %3747 = vmatpush1.bf16.msra.mxu0 %v14755_v55 }
 0x36a   :  { %3766 = vmatprep.mubr.bf16.mxu0 %v15615_v33  ;;  %3893 = vmatpush1.bf16.msra.mxu1 %v14758_v15  ;;  %v1714_v63 = vpop.f32.mrb[44].mxu0  ;;  %v1787_v0 = vpop.f32.mrb[44].mxu1 }
 0x36b   :  { %3912 = vmatprep.mubr.bf16.mxu1 %v15615_v33  ;;  %3748 = vmatprep.subr.bf16.mxu0 %v14763_v58  ;;  %v1716_v6 = vpop.f32.mrb[45].mxu0  ;;  %v1789_v1 = vpop.f32.mrb[45].mxu1  ;;  %v14796_v58 = vld [vmem:[#allocation6 + $0x38c] ss:$16 sps:$4 sm:$0xff]  }
 0x36c   :  { %3894 = vmatprep.subr.bf16.mxu1 %v14766_v59  ;;  %v1718_v7 = vpop.f32.mrb[46].mxu0  ;;  %v1791_v20 = vpop.f32.mrb[46].mxu1 }
 0x36d   :  { %3749 = vmatpush1.bf16.msra.mxu0 %v14761_v60  ;;  %v15639_v22 = vpack.c.bf16 %v1718_v7, %v1714_v63  ;;  %v15641_v23 = vpack.c.bf16 %v1791_v20, %v1787_v0  ;;  %v1720_v14 = vpop.f32.mrb[47].mxu0  ;;  %v1793_v42 = vpop.f32.mrb[47].mxu1  ;;  %v14791_v63 = vld [vmem:[#allocation6 + $0x380] ss:$16 sps:$4 sm:$0xff]   ;;  %v14794_v7 = vld [vmem:[#allocation6 + $0x388] ss:$16 sps:$4 sm:$0xff]  }
 0x36e   :  { %3895 = vmatpush1.bf16.msra.mxu1 %v14764_v61  ;;  %3750 = vmatprep.subr.bf16.mxu0 %v14769_v62  ;;  %v15643_v33 = vpack.c.bf16 %v1720_v14, %v1716_v6  ;;  %v15645_v4 = vpack.c.bf16 %v1793_v42, %v1789_v1  ;;  %v14799_v20 = vld [vmem:[#allocation6 + $0x3a4] ss:$16 sps:$4 sm:$0xff]   ;;  %v14802_v42 = vld [vmem:[#allocation6 + $0x3ac] ss:$16 sps:$4 sm:$0xff]  }
 0x36f   :  { %3896 = vmatprep.subr.bf16.mxu1 %v14772_v5 }
 0x371   :  { %3751 = vmatpush1.bf16.msra.mxu0 %v14767_v21 }
 0x372   :  { %3897 = vmatpush1.bf16.msra.mxu1 %v14770_v17  ;;  %3752 = vmatprep.subr.bf16.mxu0 %v14775_v16  ;;  %v1724_v50 = vpop.f32.mrb[48].mxu0  ;;  %v1797_v44 = vpop.f32.mrb[48].mxu1  ;;  %v14797_v17 = vld [vmem:[#allocation6 + $0x3a0] ss:$16 sps:$4 sm:$0xff]   ;;  %v14800_v16 = vld [vmem:[#allocation6 + $0x3a8] ss:$16 sps:$4 sm:$0xff]  }
 0x373   :  { %3898 = vmatprep.subr.bf16.mxu1 %v14778_v27  ;;  %v1726_v18 = vpop.f32.mrb[49].mxu0  ;;  %v1799_v34 = vpop.f32.mrb[49].mxu1  ;;  %v14805_v27 = vld [vmem:[#allocation6 + $0x3c4] ss:$16 sps:$4 sm:$0xff]  }
 0x374   :  { %v1728_v36 = vpop.f32.mrb[50].mxu0  ;;  %v1801_v48 = vpop.f32.mrb[50].mxu1 }
 0x375   :  { %3753 = vmatpush1.bf16.msra.mxu0 %v14773_v29  ;;  %v15647_v37 = vpack.c.bf16 %v1728_v36, %v1724_v50  ;;  %v15649_v11 = vpack.c.bf16 %v1801_v48, %v1797_v44  ;;  %v1730_v51 = vpop.f32.mrb[51].mxu0  ;;  %v1803_v38 = vpop.f32.mrb[51].mxu1  ;;  %v14808_v29 = vld [vmem:[#allocation6 + $0x3cc] ss:$16 sps:$4 sm:$0xff]   ;;  %v14811_v50 = vld [vmem:[#allocation6 + $0x3e4] ss:$16 sps:$4 sm:$0xff]  }
 0x376   :  { %3899 = vmatpush1.bf16.msra.mxu1 %v14776_v30  ;;  %3754 = vmatprep.subr.bf16.mxu0 %v14781_v8  ;;  %v15651_v41 = vpack.c.bf16 %v1730_v51, %v1726_v18  ;;  %v15653_v24 = vpack.c.bf16 %v1803_v38, %v1799_v34  ;;  %v14803_v30 = vld [vmem:[#allocation6 + $0x3c0] ss:$16 sps:$4 sm:$0xff]   ;;  %v14806_v8 = vld [vmem:[#allocation6 + $0x3c8] ss:$16 sps:$4 sm:$0xff]   ;;  %v14814_v44 = vld [vmem:[#allocation6 + $0x3ec] ss:$16 sps:$4 sm:$0xff]  }
 0x377   :  { %3900 = vmatprep.subr.bf16.mxu1 %v14784_v43  ;;  %v14809_v43 = vld [vmem:[#allocation6 + $0x3e0] ss:$16 sps:$4 sm:$0xff]   ;;  %v14812_v18 = vld [vmem:[#allocation6 + $0x3e8] ss:$16 sps:$4 sm:$0xff]   ;;  %v14817_v34 = vld [vmem:[#allocation6 + $0x804] ss:$16 sps:$4 sm:$0xff]  }
 0x378   :  { %v14820_v36 = vld [vmem:[#allocation6 + $0x80c] ss:$16 sps:$4 sm:$0xff]   ;;  %v14815_v48 = vld [vmem:[#allocation6 + $0x800] ss:$16 sps:$4 sm:$0xff]   ;;  %v14823_v51 = vld [vmem:[#allocation6 + $0x824] ss:$16 sps:$4 sm:$0xff]  }
 0x379   :  { %3755 = vmatpush1.bf16.msra.mxu0 %v14779_v25  ;;  %v14818_v25 = vld [vmem:[#allocation6 + $0x808] ss:$16 sps:$4 sm:$0xff]   ;;  %v14826_v38 = vld [vmem:[#allocation6 + $0x82c] ss:$16 sps:$4 sm:$0xff]  }
 0x37a   :  { %3901 = vmatpush1.bf16.msra.mxu1 %v14782_v39  ;;  %3756 = vmatprep.subr.bf16.mxu0 %v14787_v40  ;;  %v1734_v55 = vpop.f32.mrb[52].mxu0  ;;  %v1807_v15 = vpop.f32.mrb[52].mxu1  ;;  %v14821_v39 = vld [vmem:[#allocation6 + $0x820] ss:$16 sps:$4 sm:$0xff]   ;;  %v14824_v40 = vld [vmem:[#allocation6 + $0x828] ss:$16 sps:$4 sm:$0xff]  }
 0x37b   :  { %3902 = vmatprep.subr.bf16.mxu1 %v14790_v49  ;;  %v1736_v59 = vpop.f32.mrb[53].mxu0  ;;  %v1809_v60 = vpop.f32.mrb[53].mxu1  ;;  %v14829_v49 = vld [vmem:[#allocation6 + $0x844] ss:$16 sps:$4 sm:$0xff]  }
 0x37c   :  { %v1738_v61 = vpop.f32.mrb[54].mxu0  ;;  %v1811_v62 = vpop.f32.mrb[54].mxu1 }
 0x37d   :  { %3757 = vmatpush1.bf16.msra.mxu0 %v14785_v26  ;;  %v15655_v0 = vpack.c.bf16 %v1738_v61, %v1734_v55  ;;  %v15657_v5 = vpack.c.bf16 %v1811_v62, %v1807_v15  ;;  %v1740_v6 = vpop.f32.mrb[55].mxu0  ;;  %v1813_v1 = vpop.f32.mrb[55].mxu1  ;;  %v14832_v26 = vld [vmem:[#allocation6 + $0x84c] ss:$16 sps:$4 sm:$0xff]   ;;  %v14835_v55 = vld [vmem:[#allocation6 + $0x864] ss:$16 sps:$4 sm:$0xff]  }
 0x37e   :  { %3903 = vmatpush1.bf16.msra.mxu1 %v14788_v45  ;;  %3758 = vmatprep.subr.bf16.mxu0 %v14793_v54  ;;  %v15659_v21 = vpack.c.bf16 %v1740_v6, %v1736_v59  ;;  %v15661_v14 = vpack.c.bf16 %v1813_v1, %v1809_v60  ;;  %v14827_v45 = vld [vmem:[#allocation6 + $0x840] ss:$16 sps:$4 sm:$0xff]   ;;  %v14830_v54 = vld [vmem:[#allocation6 + $0x848] ss:$16 sps:$4 sm:$0xff]   ;;  %v14844_v59 = vld [vmem:[#allocation6 + $0x88c] ss:$16 sps:$4 sm:$0xff]  }
 0x37f   :  { %3904 = vmatprep.subr.bf16.mxu1 %v14796_v58  ;;  %v14836_v15 = vld [vmem:[#allocation6 + $0x868] ss:$16 sps:$4 sm:$0xff]   ;;  %v14841_v58 = vld [vmem:[#allocation6 + $0x884] ss:$16 sps:$4 sm:$0xff]   ;;  %v14839_v60 = vld [vmem:[#allocation6 + $0x880] ss:$16 sps:$4 sm:$0xff]  }
 0x380   :  { %v14842_v61 = vld [vmem:[#allocation6 + $0x888] ss:$16 sps:$4 sm:$0xff]   ;;  %v14847_v62 = vld [vmem:[#allocation6 + $0x8a4] ss:$16 sps:$4 sm:$0xff]   ;;  %v14856_v1 = vld [vmem:[#allocation6 + $0x8cc] ss:$16 sps:$4 sm:$0xff]  }
 0x381   :  { %3759 = vmatpush1.bf16.msra.mxu0 %v14791_v63  ;;  %v14848_v63 = vld [vmem:[#allocation6 + $0x8a8] ss:$16 sps:$4 sm:$0xff]   ;;  %v14853_v6 = vld [vmem:[#allocation6 + $0x8c4] ss:$16 sps:$4 sm:$0xff]  }
 0x382   :  { %3905 = vmatpush1.bf16.msra.mxu1 %v14794_v7  ;;  %3760 = vmatprep.subr.bf16.mxu0 %v14799_v20  ;;  %v14851_v7 = vld [vmem:[#allocation6 + $0x8c0] ss:$16 sps:$4 sm:$0xff]   ;;  %v14854_v20 = vld [vmem:[#allocation6 + $0x8c8] ss:$16 sps:$4 sm:$0xff]  }
 0x383   :  { %3906 = vmatprep.subr.bf16.mxu1 %v14802_v42  ;;  %v14859_v42 = vld [vmem:[#allocation6 + $0x8e4] ss:$16 sps:$4 sm:$0xff]  }
 0x385   :  { %3761 = vmatpush1.bf16.msra.mxu0 %v14797_v17  ;;  %v14860_v17 = vld [vmem:[#allocation6 + $0x8e8] ss:$16 sps:$4 sm:$0xff]  }
 0x386   :  { %3907 = vmatpush1.bf16.msra.mxu1 %v14800_v16  ;;  %3762 = vmatprep.subr.bf16.mxu0 %v14805_v27  ;;  %v14865_v16 = vld [vmem:[#allocation6 + $0x904] ss:$16 sps:$4 sm:$0xff]   ;;  %v14868_v27 = vld [vmem:[#allocation6 + $0x90c] ss:$16 sps:$4 sm:$0xff]  }
 0x387   :  { %3908 = vmatprep.subr.bf16.mxu1 %v14808_v29  ;;  %v14863_v29 = vld [vmem:[#allocation6 + $0x900] ss:$16 sps:$4 sm:$0xff]  }
 0x389   :  { %3763 = vmatpush1.bf16.msra.mxu0 %v14803_v30  ;;  %v14866_v30 = vld [vmem:[#allocation6 + $0x908] ss:$16 sps:$4 sm:$0xff]  }
 0x38a   :  { %3909 = vmatpush1.bf16.msra.mxu1 %v14806_v8  ;;  %3764 = vmatprep.subr.bf16.mxu0 %v14811_v50  ;;  %v14871_v8 = vld [vmem:[#allocation6 + $0x924] ss:$16 sps:$4 sm:$0xff]   ;;  %v14869_v50 = vld [vmem:[#allocation6 + $0x920] ss:$16 sps:$4 sm:$0xff]  }
 0x38b   :  { %3910 = vmatprep.subr.bf16.mxu1 %v14814_v44  ;;  %v14877_v44 = vld [vmem:[#allocation6 + $0x944] ss:$16 sps:$4 sm:$0xff]  }
 0x38d   :  { %3765 = vmatpush1.bf16.msra.mxu0 %v14809_v43  ;;  %v14880_v43 = vld [vmem:[#allocation6 + $0x94c] ss:$16 sps:$4 sm:$0xff]  }
 0x38e   :  { %3911 = vmatpush1.bf16.msra.mxu1 %v14812_v18  ;;  %4722 = vmatprep.subr.bf16.mxu0 %v14817_v34  ;;  %v14875_v18 = vld [vmem:[#allocation6 + $0x940] ss:$16 sps:$4 sm:$0xff]   ;;  %v14878_v34 = vld [vmem:[#allocation6 + $0x948] ss:$16 sps:$4 sm:$0xff]  }
 0x38f   :  { %4868 = vmatprep.subr.bf16.mxu1 %v14820_v36  ;;  %v14883_v36 = vld [vmem:[#allocation6 + $0x964] ss:$16 sps:$4 sm:$0xff]  }
 0x390   :  { %3767 = vmatmul.mubr.bf16.vlgmr.msra.gmra.mrb[56].mxu0 %v15613_v31 }
 0x391   :  { %3913 = vmatmul.mubr.bf16.vlgmr.msra.gmra.mrb[56].mxu1 %v15613_v31  ;;  %3776 = vmatprep.mubr.bf16.mxu0 %v15619_v52  ;;  %v14838_v31 = vld [vmem:[#allocation6 + $0x86c] ss:$16 sps:$4 sm:$0xff]  }
 0x392   :  { %3922 = vmatprep.mubr.bf16.mxu1 %v15619_v52  ;;  %4723 = vmatpush1.bf16.msra.mxu0 %v14815_v48  ;;  %v14833_v52 = vld [vmem:[#allocation6 + $0x860] ss:$16 sps:$4 sm:$0xff]   ;;  %v14886_v48 = vld [vmem:[#allocation6 + $0x96c] ss:$16 sps:$4 sm:$0xff]  }
 0x393   :  { %4869 = vmatpush1.bf16.msra.mxu1 %v14818_v25  ;;  %4724 = vmatprep.subr.bf16.mxu0 %v14823_v51  ;;  %v14881_v25 = vld [vmem:[#allocation6 + $0x960] ss:$16 sps:$4 sm:$0xff]   ;;  %v14884_v51 = vld [vmem:[#allocation6 + $0x968] ss:$16 sps:$4 sm:$0xff]  }
 0x394   :  { %4870 = vmatprep.subr.bf16.mxu1 %v14826_v38  ;;  %v14889_v38 = vld [vmem:[#allocation6 + $0x984] ss:$16 sps:$4 sm:$0xff]  }
 0x396   :  { %4725 = vmatpush1.bf16.msra.mxu0 %v14821_v39  ;;  %v14892_v39 = vld [vmem:[#allocation6 + $0x98c] ss:$16 sps:$4 sm:$0xff]  }
 0x397   :  { %4871 = vmatpush1.bf16.msra.mxu1 %v14824_v40  ;;  %4726 = vmatprep.subr.bf16.mxu0 %v14829_v49  ;;  %v14887_v40 = vld [vmem:[#allocation6 + $0x980] ss:$16 sps:$4 sm:$0xff]   ;;  %v14890_v49 = vld [vmem:[#allocation6 + $0x988] ss:$16 sps:$4 sm:$0xff]  }
 0x398   :  { %3777 = vmatmul.mubr.bf16.gmra.mrb[60].mxu0 %v15617_v46  ;;  %4872 = vmatprep.subr.bf16.mxu1 %v14832_v26  ;;  %v14895_v26 = vld [vmem:[#allocation6 + $0x9a4] ss:$16 sps:$4 sm:$0xff]  }
 0x399   :  { %3923 = vmatmul.mubr.bf16.gmra.mrb[60].mxu1 %v15617_v46  ;;  %3786 = vmatprep.mubr.bf16.mxu0 %v15623_v19  ;;  %v14850_v46 = vld [vmem:[#allocation6 + $0x8ac] ss:$16 sps:$4 sm:$0xff]  }
 0x39a   :  { %3932 = vmatprep.mubr.bf16.mxu1 %v15623_v19  ;;  %4727 = vmatpush1.bf16.msra.mxu0 %v14827_v45  ;;  %v14845_v19 = vld [vmem:[#allocation6 + $0x8a0] ss:$16 sps:$4 sm:$0xff]   ;;  %v14898_v45 = vld [vmem:[#allocation6 + $0x9ac] ss:$16 sps:$4 sm:$0xff]  }
 0x39b   :  { %4873 = vmatpush1.bf16.msra.mxu1 %v14830_v54  ;;  %4728 = vmatprep.subr.bf16.mxu0 %v14835_v55  ;;  %v14893_v54 = vld [vmem:[#allocation6 + $0x9a0] ss:$16 sps:$4 sm:$0xff]   ;;  %v14896_v55 = vld [vmem:[#allocation6 + $0x9a8] ss:$16 sps:$4 sm:$0xff]  }
 0x39c   :  { %4874 = vmatprep.subr.bf16.mxu1 %v14838_v31  ;;  %v14901_v31 = vld [vmem:[#allocation6 + $0x9c4] ss:$16 sps:$4 sm:$0xff]  }
 0x39e   :  { %4729 = vmatpush1.bf16.msra.mxu0 %v14833_v52  ;;  %v14904_v52 = vld [vmem:[#allocation6 + $0x9cc] ss:$16 sps:$4 sm:$0xff]  }
 0x39f   :  { %4875 = vmatpush1.bf16.msra.mxu1 %v14836_v15  ;;  %4730 = vmatprep.subr.bf16.mxu0 %v14841_v58  ;;  %v14899_v15 = vld [vmem:[#allocation6 + $0x9c0] ss:$16 sps:$4 sm:$0xff]   ;;  %v14902_v58 = vld [vmem:[#allocation6 + $0x9c8] ss:$16 sps:$4 sm:$0xff]  }
 0x3a0   :  { %3787 = vmatmul.mubr.bf16.gmra.mrb[64].mxu0 %v15621_v3  ;;  %4876 = vmatprep.subr.bf16.mxu1 %v14844_v59  ;;  %v14907_v59 = vld [vmem:[#allocation6 + $0x9e4] ss:$16 sps:$4 sm:$0xff]  }
 0x3a1   :  { %3933 = vmatmul.mubr.bf16.gmra.mrb[64].mxu1 %v15621_v3  ;;  %3796 = vmatprep.mubr.bf16.mxu0 %v15627_v35  ;;  %v14862_v3 = vld [vmem:[#allocation6 + $0x8ec] ss:$16 sps:$4 sm:$0xff]  }
 0x3a2   :  { %3942 = vmatprep.mubr.bf16.mxu1 %v15627_v35  ;;  %4731 = vmatpush1.bf16.msra.mxu0 %v14839_v60  ;;  %v14857_v35 = vld [vmem:[#allocation6 + $0x8e0] ss:$16 sps:$4 sm:$0xff]   ;;  %v14910_v60 = vld [vmem:[#allocation6 + $0x9ec] ss:$16 sps:$4 sm:$0xff]  }
 0x3a3   :  { %4877 = vmatpush1.bf16.msra.mxu1 %v14842_v61  ;;  %4732 = vmatprep.subr.bf16.mxu0 %v14847_v62  ;;  %v14905_v61 = vld [vmem:[#allocation6 + $0x9e0] ss:$16 sps:$4 sm:$0xff]   ;;  %v14908_v62 = vld [vmem:[#allocation6 + $0x9e8] ss:$16 sps:$4 sm:$0xff]  }
 0x3a4   :  { %4878 = vmatprep.subr.bf16.mxu1 %v14850_v46  ;;  %v14913_v46 = vld [vmem:[#allocation6 + $0xa04] ss:$16 sps:$4 sm:$0xff]  }
 0x3a6   :  { %4733 = vmatpush1.bf16.msra.mxu0 %v14845_v19  ;;  %v14916_v19 = vld [vmem:[#allocation6 + $0xa0c] ss:$16 sps:$4 sm:$0xff]  }
 0x3a7   :  { %4879 = vmatpush1.bf16.msra.mxu1 %v14848_v63  ;;  %4734 = vmatprep.subr.bf16.mxu0 %v14853_v6  ;;  %v14911_v63 = vld [vmem:[#allocation6 + $0xa00] ss:$16 sps:$4 sm:$0xff]   ;;  %v14914_v6 = vld [vmem:[#allocation6 + $0xa08] ss:$16 sps:$4 sm:$0xff]  }
 0x3a8   :  { %3797 = vmatmul.mubr.bf16.gmra.mrb[68].mxu0 %v15625_v32  ;;  %4880 = vmatprep.subr.bf16.mxu1 %v14856_v1  ;;  %v14919_v1 = vld [vmem:[#allocation6 + $0xa24] ss:$16 sps:$4 sm:$0xff]  }
 0x3a9   :  { %3943 = vmatmul.mubr.bf16.gmra.mrb[68].mxu1 %v15625_v32  ;;  %4754 = vmatprep.mubr.bf16.mxu0 %v15633_v56  ;;  %v14874_v32 = vld [vmem:[#allocation6 + $0x92c] ss:$16 sps:$4 sm:$0xff]  }
 0x3aa   :  { %4735 = vmatpush1.bf16.msra.mxu0 %v14851_v7  ;;  %4900 = vmatprep.mubr.bf16.mxu1 %v15633_v56  ;;  %v14872_v56 = vld [vmem:[#allocation6 + $0x928] ss:$16 sps:$4 sm:$0xff]   ;;  %v14922_v7 = vld [vmem:[#allocation6 + $0xa2c] ss:$16 sps:$4 sm:$0xff]  }
 0x3ab   :  { %4881 = vmatpush1.bf16.msra.mxu1 %v14854_v20  ;;  %4736 = vmatprep.subr.bf16.mxu0 %v14859_v42  ;;  %v14917_v20 = vld [vmem:[#allocation6 + $0xa20] ss:$16 sps:$4 sm:$0xff]   ;;  %v14920_v42 = vld [vmem:[#allocation6 + $0xa28] ss:$16 sps:$4 sm:$0xff]  }
 0x3ac   :  { %4882 = vmatprep.subr.bf16.mxu1 %v14862_v3  ;;  %v14925_v3 = vld [vmem:[#allocation6 + $0xa44] ss:$16 sps:$4 sm:$0xff]  }
 0x3ae   :  { %4737 = vmatpush1.bf16.msra.mxu0 %v14857_v35  ;;  %v14928_v35 = vld [vmem:[#allocation6 + $0xa4c] ss:$16 sps:$4 sm:$0xff]  }
 0x3af   :  { %4883 = vmatpush1.bf16.msra.mxu1 %v14860_v17  ;;  %4738 = vmatprep.subr.bf16.mxu0 %v14865_v16  ;;  %v14923_v17 = vld [vmem:[#allocation6 + $0xa40] ss:$16 sps:$4 sm:$0xff]   ;;  %v14926_v16 = vld [vmem:[#allocation6 + $0xa48] ss:$16 sps:$4 sm:$0xff]  }
 0x3b0   :  { %4884 = vmatprep.subr.bf16.mxu1 %v14868_v27  ;;  %v14931_v27 = vld [vmem:[#allocation6 + $0xa64] ss:$16 sps:$4 sm:$0xff]  }
 0x3b2   :  { %4739 = vmatpush1.bf16.msra.mxu0 %v14863_v29  ;;  %v14932_v29 = vld [vmem:[#allocation6 + $0xa68] ss:$16 sps:$4 sm:$0xff]  }
 0x3b3   :  { %4885 = vmatpush1.bf16.msra.mxu1 %v14866_v30  ;;  %4740 = vmatprep.subr.bf16.mxu0 %v14871_v8  ;;  %v14937_v30 = vld [vmem:[#allocation6 + $0xa84] ss:$16 sps:$4 sm:$0xff]   ;;  %v14940_v8 = vld [vmem:[#allocation6 + $0xa8c] ss:$16 sps:$4 sm:$0xff]  }
 0x3b4   :  { %4886 = vmatprep.subr.bf16.mxu1 %v14874_v32  ;;  %v14935_v32 = vld [vmem:[#allocation6 + $0xa80] ss:$16 sps:$4 sm:$0xff]  }
 0x3b6   :  { %4741 = vmatpush1.bf16.msra.mxu0 %v14869_v50  ;;  %v14938_v50 = vld [vmem:[#allocation6 + $0xa88] ss:$16 sps:$4 sm:$0xff]  }
 0x3b7   :  { %4887 = vmatpush1.bf16.msra.mxu1 %v14872_v56  ;;  %4742 = vmatprep.subr.bf16.mxu0 %v14877_v44  ;;  %v14943_v56 = vld [vmem:[#allocation6 + $0xaa4] ss:$16 sps:$4 sm:$0xff]   ;;  %v14944_v44 = vld [vmem:[#allocation6 + $0xaa8] ss:$16 sps:$4 sm:$0xff]  }
 0x3b8   :  { %4888 = vmatprep.subr.bf16.mxu1 %v14880_v43  ;;  %v14949_v43 = vld [vmem:[#allocation6 + $0xac4] ss:$16 sps:$4 sm:$0xff]  }
 0x3ba   :  { %4743 = vmatpush1.bf16.msra.mxu0 %v14875_v18  ;;  %v14952_v18 = vld [vmem:[#allocation6 + $0xacc] ss:$16 sps:$4 sm:$0xff]  }
 0x3bb   :  { %4889 = vmatpush1.bf16.msra.mxu1 %v14878_v34  ;;  %4744 = vmatprep.subr.bf16.mxu0 %v14883_v36  ;;  %v14947_v34 = vld [vmem:[#allocation6 + $0xac0] ss:$16 sps:$4 sm:$0xff]   ;;  %v14950_v36 = vld [vmem:[#allocation6 + $0xac8] ss:$16 sps:$4 sm:$0xff]  }
 0x3bc   :  { %4890 = vmatprep.subr.bf16.mxu1 %v14886_v48  ;;  %v14955_v48 = vld [vmem:[#allocation6 + $0xae4] ss:$16 sps:$4 sm:$0xff]  }
 0x3be   :  { %4745 = vmatpush1.bf16.msra.mxu0 %v14881_v25  ;;  %v14956_v25 = vld [vmem:[#allocation6 + $0xae8] ss:$16 sps:$4 sm:$0xff]  }
 0x3bf   :  { %4891 = vmatpush1.bf16.msra.mxu1 %v14884_v51  ;;  %4746 = vmatprep.subr.bf16.mxu0 %v14889_v38  ;;  %v14961_v51 = vld [vmem:[#allocation6 + $0xb04] ss:$16 sps:$4 sm:$0xff]   ;;  %v14964_v38 = vld [vmem:[#allocation6 + $0xb0c] ss:$16 sps:$4 sm:$0xff]  }
 0x3c0   :  { %4892 = vmatprep.subr.bf16.mxu1 %v14892_v39  ;;  %v14959_v39 = vld [vmem:[#allocation6 + $0xb00] ss:$16 sps:$4 sm:$0xff]  }
 0x3c2   :  { %4747 = vmatpush1.bf16.msra.mxu0 %v14887_v40  ;;  %v14962_v40 = vld [vmem:[#allocation6 + $0xb08] ss:$16 sps:$4 sm:$0xff]  }
 0x3c3   :  { %4893 = vmatpush1.bf16.msra.mxu1 %v14890_v49  ;;  %4748 = vmatprep.subr.bf16.mxu0 %v14895_v26  ;;  %v14967_v49 = vld [vmem:[#allocation6 + $0xb24] ss:$16 sps:$4 sm:$0xff]   ;;  %v14965_v26 = vld [vmem:[#allocation6 + $0xb20] ss:$16 sps:$4 sm:$0xff]  }
 0x3c4   :  { %4894 = vmatprep.subr.bf16.mxu1 %v14898_v45  ;;  %v14973_v45 = vld [vmem:[#allocation6 + $0xb44] ss:$16 sps:$4 sm:$0xff]  }
 0x3c6   :  { %4749 = vmatpush1.bf16.msra.mxu0 %v14893_v54  ;;  %v14976_v54 = vld [vmem:[#allocation6 + $0xb4c] ss:$16 sps:$4 sm:$0xff]  }
 0x3c7   :  { %4895 = vmatpush1.bf16.msra.mxu1 %v14896_v55  ;;  %4750 = vmatprep.subr.bf16.mxu0 %v14901_v31  ;;  %v14971_v55 = vld [vmem:[#allocation6 + $0xb40] ss:$16 sps:$4 sm:$0xff]   ;;  %v14974_v31 = vld [vmem:[#allocation6 + $0xb48] ss:$16 sps:$4 sm:$0xff]  }
 0x3c8   :  { %4896 = vmatprep.subr.bf16.mxu1 %v14904_v52  ;;  %v14979_v52 = vld [vmem:[#allocation6 + $0xb64] ss:$16 sps:$4 sm:$0xff]  }
 0x3ca   :  { %4751 = vmatpush1.bf16.msra.mxu0 %v14899_v15  ;;  %v14982_v15 = vld [vmem:[#allocation6 + $0xb6c] ss:$16 sps:$4 sm:$0xff]  }
 0x3cb   :  { %4897 = vmatpush1.bf16.msra.mxu1 %v14902_v58  ;;  %4752 = vmatprep.subr.bf16.mxu0 %v14907_v59  ;;  %v14977_v58 = vld [vmem:[#allocation6 + $0xb60] ss:$16 sps:$4 sm:$0xff]   ;;  %v14980_v59 = vld [vmem:[#allocation6 + $0xb68] ss:$16 sps:$4 sm:$0xff]  }
 0x3cc   :  { %4898 = vmatprep.subr.bf16.mxu1 %v14910_v60  ;;  %v14985_v60 = vld [vmem:[#allocation6 + $0xb84] ss:$16 sps:$4 sm:$0xff]  }
 0x3ce   :  { %4753 = vmatpush1.bf16.msra.mxu0 %v14905_v61  ;;  %v14988_v61 = vld [vmem:[#allocation6 + $0xb8c] ss:$16 sps:$4 sm:$0xff]  }
 0x3cf   :  { %4899 = vmatpush1.bf16.msra.mxu1 %v14908_v62  ;;  %4795 = vmatprep.subr.bf16.mxu0 %v14913_v46  ;;  %v14983_v62 = vld [vmem:[#allocation6 + $0xb80] ss:$16 sps:$4 sm:$0xff]   ;;  %v14986_v46 = vld [vmem:[#allocation6 + $0xb88] ss:$16 sps:$4 sm:$0xff]  }
 0x3d0   :  { %4941 = vmatprep.subr.bf16.mxu1 %v14916_v19  ;;  %v14991_v19 = vld [vmem:[#allocation6 + $0xba4] ss:$16 sps:$4 sm:$0xff]  }
 0x3d1   :  { %4755 = vmatmul.mubr.bf16.vlgmr.msra.gmra.mrb[56].mxu0 %v15629_v47 }
 0x3d2   :  { %4901 = vmatmul.mubr.bf16.vlgmr.msra.gmra.mrb[56].mxu1 %v15629_v47  ;;  %4764 = vmatprep.mubr.bf16.mxu0 %v15643_v33  ;;  %v14934_v47 = vld [vmem:[#allocation6 + $0xa6c] ss:$16 sps:$4 sm:$0xff]  }
 0x3d3   :  { %4796 = vmatpush1.bf16.msra.mxu0 %v14911_v63  ;;  %4910 = vmatprep.mubr.bf16.mxu1 %v15643_v33  ;;  %v14929_v33 = vld [vmem:[#allocation6 + $0xa60] ss:$16 sps:$4 sm:$0xff]   ;;  %v14994_v63 = vld [vmem:[#allocation6 + $0xbac] ss:$16 sps:$4 sm:$0xff]  }
 0x3d4   :  { %4942 = vmatpush1.bf16.msra.mxu1 %v14914_v6  ;;  %4797 = vmatprep.subr.bf16.mxu0 %v14919_v1  ;;  %v14989_v6 = vld [vmem:[#allocation6 + $0xba0] ss:$16 sps:$4 sm:$0xff]   ;;  %v14992_v1 = vld [vmem:[#allocation6 + $0xba8] ss:$16 sps:$4 sm:$0xff]  }
 0x3d5   :  { %4943 = vmatprep.subr.bf16.mxu1 %v14922_v7  ;;  %v14997_v7 = vld [vmem:[#allocation6 + $0xbc4] ss:$16 sps:$4 sm:$0xff]  }
 0x3d7   :  { %4798 = vmatpush1.bf16.msra.mxu0 %v14917_v20  ;;  %v15000_v20 = vld [vmem:[#allocation6 + $0xbcc] ss:$16 sps:$4 sm:$0xff]  }
 0x3d8   :  { %4944 = vmatpush1.bf16.msra.mxu1 %v14920_v42  ;;  %4799 = vmatprep.subr.bf16.mxu0 %v14925_v3  ;;  %v14995_v42 = vld [vmem:[#allocation6 + $0xbc0] ss:$16 sps:$4 sm:$0xff]   ;;  %v14998_v3 = vld [vmem:[#allocation6 + $0xbc8] ss:$16 sps:$4 sm:$0xff]  }
 0x3d9   :  { %4765 = vmatmul.mubr.bf16.gmra.mrb[60].mxu0 %v15639_v22  ;;  %4945 = vmatprep.subr.bf16.mxu1 %v14928_v35  ;;  %v15003_v35 = vld [vmem:[#allocation6 + $0xbe4] ss:$16 sps:$4 sm:$0xff]  }
 0x3da   :  { %4911 = vmatmul.mubr.bf16.gmra.mrb[60].mxu1 %v15639_v22  ;;  %4774 = vmatprep.mubr.bf16.mxu0 %v15651_v41  ;;  %v14946_v22 = vld [vmem:[#allocation6 + $0xaac] ss:$16 sps:$4 sm:$0xff]  }
 0x3db   :  { %4800 = vmatpush1.bf16.msra.mxu0 %v14923_v17  ;;  %4920 = vmatprep.mubr.bf16.mxu1 %v15651_v41  ;;  %v14941_v41 = vld [vmem:[#allocation6 + $0xaa0] ss:$16 sps:$4 sm:$0xff]   ;;  %v15006_v17 = vld [vmem:[#allocation6 + $0xbec] ss:$16 sps:$4 sm:$0xff]  }
 0x3dc   :  { %4946 = vmatpush1.bf16.msra.mxu1 %v14926_v16  ;;  %4801 = vmatprep.subr.bf16.mxu0 %v14931_v27  ;;  %v15001_v16 = vld [vmem:[#allocation6 + $0xbe0] ss:$16 sps:$4 sm:$0xff]   ;;  %v15004_v27 = vld [vmem:[#allocation6 + $0xbe8] ss:$16 sps:$4 sm:$0xff]  }
 0x3dd   :  { %4947 = vmatprep.subr.bf16.mxu1 %v14934_v47 }
 0x3df   :  { %4802 = vmatpush1.bf16.msra.mxu0 %v14929_v33 }
 0x3e0   :  { %4948 = vmatpush1.bf16.msra.mxu1 %v14932_v29  ;;  %4803 = vmatprep.subr.bf16.mxu0 %v14937_v30 }
 0x3e1   :  { %4775 = vmatmul.mubr.bf16.gmra.mrb[64].mxu0 %v15647_v37  ;;  %4949 = vmatprep.subr.bf16.mxu1 %v14940_v8 }
 0x3e2   :  { %4921 = vmatmul.mubr.bf16.gmra.mrb[64].mxu1 %v15647_v37  ;;  %4784 = vmatprep.mubr.bf16.mxu0 %v15659_v21  ;;  %v14958_v37 = vld [vmem:[#allocation6 + $0xaec] ss:$16 sps:$4 sm:$0xff]  }
 0x3e3   :  { %4804 = vmatpush1.bf16.msra.mxu0 %v14935_v32  ;;  %4930 = vmatprep.mubr.bf16.mxu1 %v15659_v21  ;;  %v14953_v21 = vld [vmem:[#allocation6 + $0xae0] ss:$16 sps:$4 sm:$0xff]  }
 0x3e4   :  { %4950 = vmatpush1.bf16.msra.mxu1 %v14938_v50  ;;  %4805 = vmatprep.subr.bf16.mxu0 %v14943_v56 }
 0x3e5   :  { %4951 = vmatprep.subr.bf16.mxu1 %v14946_v22 }
 0x3e7   :  { %4806 = vmatpush1.bf16.msra.mxu0 %v14941_v41 }
 0x3e8   :  { %4952 = vmatpush1.bf16.msra.mxu1 %v14944_v44  ;;  %4807 = vmatprep.subr.bf16.mxu0 %v14949_v43 }
 0x3e9   :  { %4785 = vmatmul.mubr.bf16.gmra.mrb[68].mxu0 %v15655_v0  ;;  %4953 = vmatprep.subr.bf16.mxu1 %v14952_v18 }
 0x3ea   :  { %4931 = vmatmul.mubr.bf16.gmra.mrb[68].mxu1 %v15655_v0  ;;  %4827 = vmatprep.mubr.bf16.mxu0 %v15635_v57  ;;  %v14970_v0 = vld [vmem:[#allocation6 + $0xb2c] ss:$16 sps:$4 sm:$0xff]  }
 0x3eb   :  { %4808 = vmatpush1.bf16.msra.mxu0 %v14947_v34  ;;  %4973 = vmatprep.mubr.bf16.mxu1 %v15635_v57  ;;  %v14968_v57 = vld [vmem:[#allocation6 + $0xb28] ss:$16 sps:$4 sm:$0xff]  }
 0x3ec   :  { %4954 = vmatpush1.bf16.msra.mxu1 %v14950_v36  ;;  %4809 = vmatprep.subr.bf16.mxu0 %v14955_v48 }
 0x3ed   :  { %4955 = vmatprep.subr.bf16.mxu1 %v14958_v37 }
 0x3ef   :  { %4810 = vmatpush1.bf16.msra.mxu0 %v14953_v21 }
 0x3f0   :  { %4956 = vmatpush1.bf16.msra.mxu1 %v14956_v25  ;;  %4811 = vmatprep.subr.bf16.mxu0 %v14961_v51 }
 0x3f1   :  { %4957 = vmatprep.subr.bf16.mxu1 %v14964_v38 }
 0x3f3   :  { %4812 = vmatpush1.bf16.msra.mxu0 %v14959_v39 }
 0x3f4   :  { %4958 = vmatpush1.bf16.msra.mxu1 %v14962_v40  ;;  %4813 = vmatprep.subr.bf16.mxu0 %v14967_v49 }
 0x3f5   :  { %4959 = vmatprep.subr.bf16.mxu1 %v14970_v0 }
 0x3f7   :  { %4814 = vmatpush1.bf16.msra.mxu0 %v14965_v26 }
 0x3f8   :  { %4960 = vmatpush1.bf16.msra.mxu1 %v14968_v57  ;;  %4815 = vmatprep.subr.bf16.mxu0 %v14973_v45 }
 0x3f9   :  { %4961 = vmatprep.subr.bf16.mxu1 %v14976_v54 }
 0x3fb   :  { %4816 = vmatpush1.bf16.msra.mxu0 %v14971_v55 }
 0x3fc   :  { %4962 = vmatpush1.bf16.msra.mxu1 %v14974_v31  ;;  %4817 = vmatprep.subr.bf16.mxu0 %v14979_v52 }
 0x3fd   :  { %4963 = vmatprep.subr.bf16.mxu1 %v14982_v15 }
 0x3ff   :  { %4818 = vmatpush1.bf16.msra.mxu0 %v14977_v58 }
 0x400   :  { %4964 = vmatpush1.bf16.msra.mxu1 %v14980_v59  ;;  %4819 = vmatprep.subr.bf16.mxu0 %v14985_v60 }
 0x401   :  { %4965 = vmatprep.subr.bf16.mxu1 %v14988_v61 }
 0x403   :  { %4820 = vmatpush1.bf16.msra.mxu0 %v14983_v62 }
 0x404   :  { %4966 = vmatpush1.bf16.msra.mxu1 %v14986_v46  ;;  %4821 = vmatprep.subr.bf16.mxu0 %v14991_v19 }
 0x405   :  { %4967 = vmatprep.subr.bf16.mxu1 %v14994_v63 }
 0x407   :  { %4822 = vmatpush1.bf16.msra.mxu0 %v14989_v6 }
 0x408   :  { %4968 = vmatpush1.bf16.msra.mxu1 %v14992_v1  ;;  %4823 = vmatprep.subr.bf16.mxu0 %v14997_v7 }
 0x409   :  { %4969 = vmatprep.subr.bf16.mxu1 %v15000_v20 }
 0x40b   :  { %4824 = vmatpush1.bf16.msra.mxu0 %v14995_v42 }
 0x40c   :  { %4970 = vmatpush1.bf16.msra.mxu1 %v14998_v3  ;;  %4825 = vmatprep.subr.bf16.mxu0 %v15003_v35 }
 0x40d   :  { %4971 = vmatprep.subr.bf16.mxu1 %v15006_v17 }
 0x40f   :  { %4826 = vmatpush1.bf16.msra.mxu0 %v15001_v16 }
 0x410   :  { %4972 = vmatpush1.bf16.msra.mxu1 %v15004_v27 }
 0x412   :  { %4828 = vmatmul.mubr.bf16.vlgmr.msra.gmra.mrb[56].mxu0 %v15631_v53 }
 0x413   :  { %4974 = vmatmul.mubr.bf16.vlgmr.msra.gmra.mrb[56].mxu1 %v15631_v53  ;;  %4837 = vmatprep.mubr.bf16.mxu0 %v15645_v4  ;;  %v5046_v53 = vld [vmem:[#allocation7] sm:$0xf] }
 0x414   :  { %4983 = vmatprep.mubr.bf16.mxu1 %v15645_v4  ;;  %v15715_v4 = vrot.slane %v5046_v53, %v15411_v2  ;;  %v5968_v2 = vld [vmem:[#allocation9 + $0xf78] sm:$0xff] }
 0x41a   :  { %4838 = vmatmul.mubr.bf16.gmra.mrb[60].mxu0 %v15641_v23 }
 0x41b   :  { %4984 = vmatmul.mubr.bf16.gmra.mrb[60].mxu1 %v15641_v23  ;;  %4847 = vmatprep.mubr.bf16.mxu0 %v15653_v24  ;;  %v15712_v23 = vrot.slane %v5046_v53, %v15408_v10  ;;  %v5972_v10 = vld [vmem:[#allocation9 + $0xf98] sm:$0xff] }
 0x41c   :  { %4993 = vmatprep.mubr.bf16.mxu1 %v15653_v24  ;;  %v15721_v24 = vrot.slane %v5046_v53, %v15417_v13  ;;  %v5960_v13 = vld [vmem:[#allocation9 + $0xf38] sm:$0xff] }
 0x422   :  { %4848 = vmatmul.mubr.bf16.gmra.mrb[64].mxu0 %v15649_v11 }
 0x423   :  { %4994 = vmatmul.mubr.bf16.gmra.mrb[64].mxu1 %v15649_v11  ;;  %4857 = vmatprep.mubr.bf16.mxu0 %v15661_v14  ;;  %v15718_v11 = vrot.slane %v5046_v53, %v15414_v12 }
 0x424   :  { %5003 = vmatprep.mubr.bf16.mxu1 %v15661_v14 }
 0x42a   :  { %4858 = vmatmul.mubr.bf16.gmra.mrb[68].mxu0 %v15657_v5 }
 0x42b   :  { %5004 = vmatmul.mubr.bf16.gmra.mrb[68].mxu1 %v15657_v5  ;;  %5180 = vmatprep.mubr.bf16.mxu0 %v15173_v28 }
 0x42c   :  { %5253 = vmatprep.mubr.bf16.mxu1 %v15173_v28 }
 0x4e5   :  { %v4829_v14 = vpop.f32.mrb[56].mxu0 }
 0x4e6   :  { %v5068_v5 = vadd.f32 %v15712_v23, %v4829_v14  ;;  %v4975_v47 = vpop.f32.mrb[56].mxu1  ;;  %v4831_v33 = vpop.f32.mrb[57].mxu0 }
 0x4e7   :  { %v5070_v29 = vadd.f32 %v15715_v4, %v4975_v47  ;;  %v5069_v30 = vadd.f32 %v15718_v11, %v4831_v33  ;;  %v4977_v8 = vpop.f32.mrb[57].mxu1  ;;  %v4833_v32 = vpop.f32.mrb[58].mxu0 }
 0x4e8   :  { %v5071_v50 = vadd.f32 %v15721_v24, %v4977_v8  ;;  %v5072_v56 = vadd.f32 %v15712_v23, %v4833_v32  ;;  %v4979_v22 = vpop.f32.mrb[58].mxu1  ;;  %v4835_v41 = vpop.f32.mrb[59].mxu0  ;;  %v5100_v34 = vmax.f32 %v5068_v5, 0.0 }
 0x4e9   :  { %v5074_v44 = vadd.f32 %v15715_v4, %v4979_v22  ;;  %v5073_v43 = vadd.f32 %v15718_v11, %v4835_v41  ;;  %v4981_v18 = vpop.f32.mrb[59].mxu1  ;;  %v5102_v37 = vmax.f32 %v5070_v29, 0.0  ;;  %v5101_v21 = vmax.f32 %v5069_v30, 0.0 }
 0x4ea   :  { %v5104_v36 = vmax.f32 %v5072_v56, 0.0  ;;  %v5075_v48 = vadd.f32 %v15721_v24, %v4981_v18  ;;  %v5103_v38 = vmax.f32 %v5071_v50, 0.0 }
 0x4eb   :  { %v5106_v25 = vmax.f32 %v5074_v44, 0.0  ;;  %v5105_v51 = vmax.f32 %v5073_v43, 0.0 }
 0x4ec   :  { %v15731_v39 = vpack.c.bf16 %v5104_v36, %v5100_v34  ;;  %v5107_v40 = vmax.f32 %v5075_v48, 0.0 }
 0x4ed   :  { %v15733_v49 = vpack.c.bf16 %v5106_v25, %v5102_v37  ;;  %v15735_v0 = vpack.c.bf16 %v5105_v51, %v5101_v21  ;;  %v4839_v26 = vpop.f32.mrb[60].mxu0 }
 0x4ee   :  { %v15737_v57 = vpack.c.bf16 %v5107_v40, %v5103_v38  ;;  %v5076_v45 = vadd.f32 %v15712_v23, %v4839_v26  ;;  %v4985_v54 = vpop.f32.mrb[60].mxu1  ;;  %v4841_v55 = vpop.f32.mrb[61].mxu0 }
 0x4ef   :  { %v5078_v31 = vadd.f32 %v15715_v4, %v4985_v54  ;;  %v5077_v52 = vadd.f32 %v15718_v11, %v4841_v55  ;;  %v4987_v15 = vpop.f32.mrb[61].mxu1  ;;  %v4843_v58 = vpop.f32.mrb[62].mxu0  ;;  %5148 = vmatprep.subr.bf16.mxu0 %v15735_v0 }
 0x4f0   :  { %v5079_v59 = vadd.f32 %v15721_v24, %v4987_v15  ;;  %v5080_v60 = vadd.f32 %v15712_v23, %v4843_v58  ;;  %v4989_v61 = vpop.f32.mrb[62].mxu1  ;;  %5221 = vmatprep.subr.bf16.mxu1 %v15737_v57  ;;  %v4845_v62 = vpop.f32.mrb[63].mxu0  ;;  %5149 = vmatpush1.bf16.msra.mxu0 %v15731_v39  ;;  %v5108_v6 = vmax.f32 %v5076_v45, 0.0 }
 0x4f1   :  { %v5082_v46 = vadd.f32 %v15715_v4, %v4989_v61  ;;  %v5081_v19 = vadd.f32 %v15718_v11, %v4845_v62  ;;  %v4991_v63 = vpop.f32.mrb[63].mxu1  ;;  %5222 = vmatpush1.bf16.msra.mxu1 %v15733_v49  ;;  %v5110_v20 = vmax.f32 %v5078_v31, 0.0  ;;  %v5109_v42 = vmax.f32 %v5077_v52, 0.0 }
 0x4f2   :  { %v5112_v1 = vmax.f32 %v5080_v60, 0.0  ;;  %v5083_v7 = vadd.f32 %v15721_v24, %v4991_v63  ;;  %v5111_v17 = vmax.f32 %v5079_v59, 0.0 }
 0x4f3   :  { %v5114_v3 = vmax.f32 %v5082_v46, 0.0  ;;  %v5113_v35 = vmax.f32 %v5081_v19, 0.0 }
 0x4f4   :  { %v15751_v16 = vpack.c.bf16 %v5112_v1, %v5108_v6  ;;  %v5115_v27 = vmax.f32 %v5083_v7, 0.0 }
 0x4f5   :  { %v15753_v53 = vpack.c.bf16 %v5114_v3, %v5110_v20  ;;  %v15755_v14 = vpack.c.bf16 %v5113_v35, %v5109_v42  ;;  %v4849_v5 = vpop.f32.mrb[64].mxu0 }
 0x4f6   :  { %v15757_v47 = vpack.c.bf16 %v5115_v27, %v5111_v17  ;;  %v5084_v33 = vadd.f32 %v15712_v23, %v4849_v5  ;;  %v4995_v29 = vpop.f32.mrb[64].mxu1  ;;  %v4851_v30 = vpop.f32.mrb[65].mxu0 }
 0x4f7   :  { %v5086_v8 = vadd.f32 %v15715_v4, %v4995_v29  ;;  %v5085_v32 = vadd.f32 %v15718_v11, %v4851_v30  ;;  %v4997_v50 = vpop.f32.mrb[65].mxu1  ;;  %v4853_v56 = vpop.f32.mrb[66].mxu0  ;;  %5150 = vmatprep.subr.bf16.mxu0 %v15755_v14 }
 0x4f8   :  { %v5087_v22 = vadd.f32 %v15721_v24, %v4997_v50  ;;  %v5088_v41 = vadd.f32 %v15712_v23, %v4853_v56  ;;  %v4999_v44 = vpop.f32.mrb[66].mxu1  ;;  %5223 = vmatprep.subr.bf16.mxu1 %v15757_v47  ;;  %v4855_v43 = vpop.f32.mrb[67].mxu0  ;;  %5151 = vmatpush1.bf16.msra.mxu0 %v15751_v16  ;;  %v5116_v48 = vmax.f32 %v5084_v33, 0.0  ;;  %v5729_v56 = vld [vmem:[#allocation9 + $0x800] sm:$0xff] }
 0x4f9   :  { %v5090_v18 = vadd.f32 %v15715_v4, %v4999_v44  ;;  %v5089_v34 = vadd.f32 %v15718_v11, %v4855_v43  ;;  %v5001_v36 = vpop.f32.mrb[67].mxu1  ;;  %5224 = vmatpush1.bf16.msra.mxu1 %v15753_v53  ;;  %v5118_v25 = vmax.f32 %v5086_v8, 0.0  ;;  %v5117_v51 = vmax.f32 %v5085_v32, 0.0  ;;  %v5730_v44 = vld [vmem:[#allocation9 + $0x808] sm:$0xff] }
 0x4fa   :  { %v5120_v37 = vmax.f32 %v5088_v41, 0.0  ;;  %v5091_v21 = vadd.f32 %v15721_v24, %v5001_v36  ;;  %v5119_v26 = vmax.f32 %v5087_v22, 0.0  ;;  %v5733_v22 = vld [vmem:[#allocation9 + $0x820] sm:$0xff]  ;;  %v5734_v43 = vld [vmem:[#allocation9 + $0x828] sm:$0xff] }
 0x4fb   :  { %v5122_v38 = vmax.f32 %v5090_v18, 0.0  ;;  %v5121_v40 = vmax.f32 %v5089_v34, 0.0  ;;  %v15016_v41 = vld [vmem:[%s16323_s0 + $0x8] sm:$0xff]   ;;  %v12841_v18 = vcombine.high %v5729_v56, %v5733_v22  ;;  %v12843_v34 = vcombine.high %v5730_v44, %v5734_v43  ;;  %v15017_v36 = vld [vmem:[%s16323_s0 + $0x10] sm:$0xff]  }
 0x4fc   :  { %v15771_v45 = vpack.c.bf16 %v5120_v37, %v5116_v48  ;;  %v5123_v54 = vmax.f32 %v5091_v21, 0.0  ;;  %v15018_v48 = vld [vmem:[%s16323_s0 + $0x18] sm:$0xff]   ;;  %v5737_v37 = vld [vmem:[#allocation9 + $0x840] sm:$0xff] }
 0x4fd   :  { %v15773_v55 = vpack.c.bf16 %v5122_v38, %v5118_v25  ;;  %v15775_v31 = vpack.c.bf16 %v5121_v40, %v5117_v51  ;;  %v4859_v52 = vpop.f32.mrb[68].mxu0  ;;  %v5741_v21 = vld [vmem:[#allocation9 + $0x860] sm:$0xff]  ;;  %v5738_v25 = vld [vmem:[#allocation9 + $0x848] sm:$0xff]  ;;  %v12840_v38 = vcombine.low %v5729_v56, %v5733_v22  ;;  %v12842_v40 = vcombine.low %v5730_v44, %v5734_v43 }
 0x4fe   :  { %v15777_v15 = vpack.c.bf16 %v5123_v54, %v5119_v26  ;;  %v5092_v58 = vadd.f32 %v15712_v23, %v4859_v52  ;;  %v5005_v59 = vpop.f32.mrb[68].mxu1  ;;  %v4861_v60 = vpop.f32.mrb[69].mxu0  ;;  %v5742_v51 = vld [vmem:[#allocation9 + $0x868] sm:$0xff]  ;;  %v12849_v26 = vcombine.high %v5737_v37, %v5741_v21  ;;  %v5745_v52 = vld [vmem:[#allocation9 + $0x880] sm:$0xff] }
 0x4ff   :  { %v5094_v61 = vadd.f32 %v15715_v4, %v5005_v59  ;;  %v5093_v62 = vadd.f32 %v15718_v11, %v4861_v60  ;;  %v5007_v46 = vpop.f32.mrb[69].mxu1  ;;  %v4863_v19 = vpop.f32.mrb[70].mxu0  ;;  %5152 = vmatprep.subr.bf16.mxu0 %v15775_v31  ;;  %v12851_v54 = vcombine.high %v5738_v25, %v5742_v51  ;;  %v15019_v59 = vld [vmem:[%s16323_s0 + $0x20] sm:$0xff]   ;;  %v5746_v60 = vld [vmem:[#allocation9 + $0x888] sm:$0xff]  ;;  %v5769_v22 = vld [vmem:[#allocation9 + $0x940] sm:$0xff] }
 0x500   :  { %v5095_v63 = vadd.f32 %v15721_v24, %v5007_v46  ;;  %v5096_v6 = vadd.f32 %v15712_v23, %v4863_v19  ;;  %v5009_v1 = vpop.f32.mrb[70].mxu1  ;;  %5225 = vmatprep.subr.bf16.mxu1 %v15777_v15  ;;  %v4865_v7 = vpop.f32.mrb[71].mxu0  ;;  %5153 = vmatpush1.bf16.msra.mxu0 %v15771_v45  ;;  %v5124_v35 = vmax.f32 %v5092_v58, 0.0  ;;  %v5749_v58 = vld [vmem:[#allocation9 + $0x8a0] sm:$0xff]  ;;  %v12850_v46 = vcombine.low %v5738_v25, %v5742_v51  ;;  %v5770_v44 = vld [vmem:[#allocation9 + $0x948] sm:$0xff] }
 0x501   :  { %v5098_v20 = vadd.f32 %v15715_v4, %v5009_v1  ;;  %v5097_v42 = vadd.f32 %v15718_v11, %v4865_v7  ;;  %v5011_v3 = vpop.f32.mrb[71].mxu1  ;;  %5226 = vmatpush1.bf16.msra.mxu1 %v15773_v55  ;;  %v5126_v5 = vmax.f32 %v5094_v61, 0.0  ;;  %v5125_v33 = vmax.f32 %v5093_v62, 0.0  ;;  %v5750_v61 = vld [vmem:[#allocation9 + $0x8a8] sm:$0xff]  ;;  %v5757_v1 = vld [vmem:[#allocation9 + $0x8e0] sm:$0xff] }
 0x502   :  { %v5128_v17 = vmax.f32 %v5096_v6, 0.0  ;;  %v5099_v27 = vadd.f32 %v15721_v24, %v5011_v3  ;;  %v5127_v30 = vmax.f32 %v5095_v63, 0.0  ;;  %v15015_v24 = vld [vmem:[%s16323_s0] sm:$0xff]   ;;  %v12848_v62 = vcombine.low %v5737_v37, %v5741_v21  ;;  %v5753_v6 = vld [vmem:[#allocation9 + $0x8c0] sm:$0xff]  ;;  %v5754_v7 = vld [vmem:[#allocation9 + $0x8c8] sm:$0xff] }
 0x503   :  { %v5130_v23 = vmax.f32 %v5098_v20, 0.0  ;;  %v5129_v29 = vmax.f32 %v5097_v42, 0.0  ;;  %v12857_v19 = vcombine.high %v5745_v52, %v5749_v58  ;;  %v12859_v63 = vcombine.high %v5746_v60, %v5750_v61  ;;  %v5758_v20 = vld [vmem:[#allocation9 + $0x8e8] sm:$0xff]  ;;  %v5777_v37 = vld [vmem:[#allocation9 + $0x980] sm:$0xff] }
 0x504   :  { %v15791_v8 = vpack.c.bf16 %v5128_v17, %v5124_v35  ;;  %v5131_v32 = vmax.f32 %v5099_v27, 0.0  ;;  %v12856_v42 = vcombine.low %v5745_v52, %v5749_v58  ;;  %v12858_v3 = vcombine.low %v5746_v60, %v5750_v61  ;;  %v5761_v27 = vld [vmem:[#allocation9 + $0x900] sm:$0xff]  ;;  %v5774_v43 = vld [vmem:[#allocation9 + $0x968] sm:$0xff] }
 0x505   :  { %v15793_v50 = vpack.c.bf16 %v5130_v23, %v5126_v5  ;;  %v15795_v4 = vpack.c.bf16 %v5129_v29, %v5125_v33  ;;  %v12865_v35 = vcombine.high %v5753_v6, %v5757_v1  ;;  %v12867_v17 = vcombine.high %v5754_v7, %v5758_v20  ;;  %v5765_v5 = vld [vmem:[#allocation9 + $0x920] sm:$0xff]  ;;  %v5762_v23 = vld [vmem:[#allocation9 + $0x908] sm:$0xff] }
 0x506   :  { %v15797_v11 = vpack.c.bf16 %v5131_v32, %v5127_v30  ;;  %v15020_v33 = vld [vmem:[%s16323_s0 + $0x28] sm:$0xff]   ;;  %v5766_v29 = vld [vmem:[#allocation9 + $0x928] sm:$0xff]  ;;  %v12864_v30 = vcombine.low %v5753_v6, %v5757_v1  ;;  %v12866_v32 = vcombine.low %v5754_v7, %v5758_v20  ;;  %v15022_v1 = vld [vmem:[%s16323_s0 + $0x38] sm:$0xff]  }
 0x507   :  { %5154 = vmatprep.subr.bf16.mxu0 %v15795_v4  ;;  %v12875_v56 = vcombine.high %v5762_v23, %v5766_v29  ;;  %v5781_v21 = vld [vmem:[#allocation9 + $0x9a0] sm:$0xff]  ;;  %v15021_v25 = vld [vmem:[%s16323_s0 + $0x30] sm:$0xff]  }
 0x508   :  { %5227 = vmatprep.subr.bf16.mxu1 %v15797_v11  ;;  %5155 = vmatpush1.bf16.msra.mxu0 %v15791_v8  ;;  %v5778_v51 = vld [vmem:[#allocation9 + $0x988] sm:$0xff]  ;;  %v5785_v58 = vld [vmem:[#allocation9 + $0x9c0] sm:$0xff]  ;;  %v12888_v60 = vcombine.low %v5777_v37, %v5781_v21 }
 0x509   :  { %5228 = vmatpush1.bf16.msra.mxu1 %v15793_v50  ;;  %5310 = vmatprep.subr.bf16.mxu0 %v15735_v0  ;;  %v5786_v61 = vld [vmem:[#allocation9 + $0x9c8] sm:$0xff]  ;;  %v5797_v6 = vld [vmem:[#allocation9 + $0xa20] sm:$0xff] }
 0x50a   :  { %5383 = vmatprep.subr.bf16.mxu1 %v15737_v57  ;;  %v5794_v7 = vld [vmem:[#allocation9 + $0xa08] sm:$0xff] }
 0x50b   :  { %12824 = vmatmul.mubr.msk.bf16.vlgmr.msra.gmra.mrb[72].mxu0 %vm175_vm0, %v15015_v24  ;;  %v5798_v20 = vld [vmem:[#allocation9 + $0xa28] sm:$0xff] }
 0x50c   :  { %12828 = vmatmul.mubr.msk.bf16.vlgmr.msra.gmra.mrb[72].mxu1 %vm175_vm0, %v15015_v24  ;;  %5311 = vmatpush1.bf16.msra.mxu0 %v15731_v39  ;;  %v12873_v24 = vcombine.high %v5761_v27, %v5765_v5 }
 0x50d   :  { %5384 = vmatpush1.bf16.msra.mxu1 %v15733_v49  ;;  %5312 = vmatprep.subr.bf16.mxu0 %v15755_v14 }
 0x50e   :  { %5385 = vmatprep.subr.bf16.mxu1 %v15757_v47  ;;  %5190 = vmatprep.mubr.bf16.mxu0 %v15173_v28 }
 0x50f   :  { %5263 = vmatprep.mubr.bf16.mxu1 %v15173_v28 }
 0x510   :  { %5313 = vmatpush1.bf16.msra.mxu0 %v15751_v16 }
 0x511   :  { %5386 = vmatpush1.bf16.msra.mxu1 %v15753_v53  ;;  %5314 = vmatprep.subr.bf16.mxu0 %v15775_v31 }
 0x512   :  { %5387 = vmatprep.subr.bf16.mxu1 %v15777_v15 }
 0x513   :  { %12825 = vmatmul.mubr.msk.bf16.gmra.mrb[76].mxu0 %vm175_vm0, %v15016_v41 }
 0x514   :  { %12829 = vmatmul.mubr.msk.bf16.gmra.mrb[76].mxu1 %vm175_vm0, %v15016_v41  ;;  %5315 = vmatpush1.bf16.msra.mxu0 %v15771_v45  ;;  %v5773_v41 = vld [vmem:[#allocation9 + $0x960] sm:$0xff] }
 0x515   :  { %5388 = vmatpush1.bf16.msra.mxu1 %v15773_v55  ;;  %5316 = vmatprep.subr.bf16.mxu0 %v15795_v4 }
 0x516   :  { %5389 = vmatprep.subr.bf16.mxu1 %v15797_v11  ;;  %5200 = vmatprep.mubr.bf16.mxu0 %v15173_v28 }
 0x517   :  { %5273 = vmatprep.mubr.bf16.mxu1 %v15173_v28 }
 0x518   :  { %5317 = vmatpush1.bf16.msra.mxu0 %v15791_v8 }
 0x519   :  { %5390 = vmatpush1.bf16.msra.mxu1 %v15793_v50  ;;  %7265 = vmatprep.subr.bf16.mxu0 %v12841_v18  ;;  %v12872_v18 = vcombine.low %v5761_v27, %v5765_v5  ;;  %v5801_v27 = vld [vmem:[#allocation9 + $0xa40] sm:$0xff] }
 0x51a   :  { %7411 = vmatprep.subr.bf16.mxu1 %v12843_v34  ;;  %v12874_v34 = vcombine.low %v5762_v23, %v5766_v29  ;;  %v5805_v5 = vld [vmem:[#allocation9 + $0xa60] sm:$0xff]  ;;  %v5806_v23 = vld [vmem:[#allocation9 + $0xa68] sm:$0xff] }
 0x51b   :  { %12826 = vmatmul.mubr.msk.bf16.gmra.mrb[80].mxu0 %vm175_vm0, %v15017_v36 }
 0x51c   :  { %12830 = vmatmul.mubr.msk.bf16.gmra.mrb[80].mxu1 %vm175_vm0, %v15017_v36  ;;  %5210 = vmatprep.mubr.bf16.mxu0 %v15173_v28  ;;  %v12881_v36 = vcombine.high %v5769_v22, %v5773_v41 }
 0x51d   :  { %5283 = vmatprep.mubr.bf16.mxu1 %v15173_v28 }
 0x523   :  { %12827 = vmatmul.mubr.msk.bf16.gmra.mrb[84].mxu0 %vm175_vm0, %v15018_v48 }
 0x524   :  { %12831 = vmatmul.mubr.msk.bf16.gmra.mrb[84].mxu1 %vm175_vm0, %v15018_v48  ;;  %5342 = vmatprep.mubr.bf16.mxu0 %v15173_v28  ;;  %v12883_v48 = vcombine.high %v5770_v44, %v5774_v43 }
 0x525   :  { %5415 = vmatprep.mubr.bf16.mxu1 %v15173_v28 }
 0x52b   :  { %12832 = vmatmul.mubr.msk.bf16.vlgmr.msra.gmra.mrb[88].mxu0 %vm175_vm0, %v15019_v59 }
 0x52c   :  { %12836 = vmatmul.mubr.msk.bf16.vlgmr.msra.gmra.mrb[88].mxu1 %vm175_vm0, %v15019_v59  ;;  %7266 = vmatpush1.bf16.msra.mxu0 %v12840_v38  ;;  %v5782_v38 = vld [vmem:[#allocation9 + $0x9a8] sm:$0xff]  ;;  %v5789_v59 = vld [vmem:[#allocation9 + $0x9e0] sm:$0xff] }
 0x52d   :  { %7412 = vmatpush1.bf16.msra.mxu1 %v12842_v40  ;;  %7267 = vmatprep.subr.bf16.mxu0 %v12849_v26  ;;  %v12880_v40 = vcombine.low %v5769_v22, %v5773_v41  ;;  %v12882_v26 = vcombine.low %v5770_v44, %v5774_v43  ;;  %v12891_v52 = vcombine.high %v5778_v51, %v5782_v38  ;;  %v5813_v22 = vld [vmem:[#allocation9 + $0xaa0] sm:$0xff]  ;;  %v5810_v41 = vld [vmem:[#allocation9 + $0xa88] sm:$0xff] }
 0x52e   :  { %7413 = vmatprep.subr.bf16.mxu1 %v12851_v54  ;;  %5352 = vmatprep.mubr.bf16.mxu0 %v15173_v28  ;;  %v12889_v54 = vcombine.high %v5777_v37, %v5781_v21  ;;  %v5814_v44 = vld [vmem:[#allocation9 + $0xaa8] sm:$0xff]  ;;  %v12912_v43 = vcombine.low %v5801_v27, %v5805_v5  ;;  %v5821_v37 = vld [vmem:[#allocation9 + $0xae0] sm:$0xff] }
 0x52f   :  { %5425 = vmatprep.mubr.bf16.mxu1 %v15173_v28  ;;  %v5818_v21 = vld [vmem:[#allocation9 + $0xac8] sm:$0xff] }
 0x530   :  { %7268 = vmatpush1.bf16.msra.mxu0 %v12848_v62  ;;  %v5790_v62 = vld [vmem:[#allocation9 + $0x9e8] sm:$0xff] }
 0x531   :  { %7414 = vmatpush1.bf16.msra.mxu1 %v12850_v46  ;;  %7269 = vmatprep.subr.bf16.mxu0 %v12857_v19  ;;  %v12890_v46 = vcombine.low %v5778_v51, %v5782_v38  ;;  %v12897_v19 = vcombine.high %v5785_v58, %v5789_v59  ;;  %v12922_v38 = vcombine.low %v5810_v41, %v5814_v44 }
 0x532   :  { %7415 = vmatprep.subr.bf16.mxu1 %v12859_v63  ;;  %v5793_v63 = vld [vmem:[#allocation9 + $0xa00] sm:$0xff] }
 0x533   :  { %12833 = vmatmul.mubr.msk.bf16.gmra.mrb[92].mxu0 %vm175_vm0, %v15020_v33  ;;  %v12904_v29 = vcombine.low %v5793_v63, %v5797_v6 }
 0x534   :  { %12837 = vmatmul.mubr.msk.bf16.gmra.mrb[92].mxu1 %vm175_vm0, %v15020_v33  ;;  %7270 = vmatpush1.bf16.msra.mxu0 %v12856_v42  ;;  %v12896_v42 = vcombine.low %v5785_v58, %v5789_v59  ;;  %v5802_v33 = vld [vmem:[#allocation9 + $0xa48] sm:$0xff] }
 0x535   :  { %7416 = vmatpush1.bf16.msra.mxu1 %v12858_v3  ;;  %7271 = vmatprep.subr.bf16.mxu0 %v12865_v35  ;;  %v12898_v3 = vcombine.low %v5786_v61, %v5790_v62  ;;  %v12905_v35 = vcombine.high %v5793_v63, %v5797_v6  ;;  %v5826_v58 = vld [vmem:[#allocation9 + $0xb08] sm:$0xff]  ;;  %v5837_v63 = vld [vmem:[#allocation9 + $0xb60] sm:$0xff] }
 0x536   :  { %7417 = vmatprep.subr.bf16.mxu1 %v12867_v17  ;;  %5362 = vmatprep.mubr.bf16.mxu0 %v15173_v28  ;;  %v12907_v17 = vcombine.high %v5794_v7, %v5798_v20  ;;  %v5830_v59 = vld [vmem:[#allocation9 + $0xb28] sm:$0xff] }
 0x537   :  { %5435 = vmatprep.mubr.bf16.mxu1 %v15173_v28  ;;  %v5834_v6 = vld [vmem:[#allocation9 + $0xb48] sm:$0xff] }
 0x538   :  { %7272 = vmatpush1.bf16.msra.mxu0 %v12864_v30  ;;  %v12906_v30 = vcombine.low %v5794_v7, %v5798_v20  ;;  %v12938_v7 = vcombine.low %v5826_v58, %v5830_v59 }
 0x539   :  { %7418 = vmatpush1.bf16.msra.mxu1 %v12866_v32  ;;  %7273 = vmatprep.subr.bf16.mxu0 %v12873_v24  ;;  %v12913_v32 = vcombine.high %v5801_v27, %v5805_v5  ;;  %v12915_v24 = vcombine.high %v5802_v33, %v5806_v23  ;;  %v5846_v27 = vld [vmem:[#allocation9 + $0xba8] sm:$0xff] }
 0x53a   :  { %7419 = vmatprep.subr.bf16.mxu1 %v12875_v56  ;;  %v5809_v56 = vld [vmem:[#allocation9 + $0xa80] sm:$0xff] }
 0x53b   :  { %12834 = vmatmul.mubr.msk.bf16.gmra.mrb[96].mxu0 %vm175_vm0, %v15021_v25  ;;  %v12920_v51 = vcombine.low %v5809_v56, %v5813_v22 }
 0x53c   :  { %12838 = vmatmul.mubr.msk.bf16.gmra.mrb[96].mxu1 %vm175_vm0, %v15021_v25  ;;  %7274 = vmatpush1.bf16.msra.mxu0 %v12872_v18  ;;  %v12914_v18 = vcombine.low %v5802_v33, %v5806_v23  ;;  %v5822_v25 = vld [vmem:[#allocation9 + $0xae8] sm:$0xff] }
 0x53d   :  { %7420 = vmatpush1.bf16.msra.mxu1 %v12874_v34  ;;  %7275 = vmatprep.subr.bf16.mxu0 %v12881_v36  ;;  %v12921_v34 = vcombine.high %v5809_v56, %v5813_v22  ;;  %v12923_v36 = vcombine.high %v5810_v41, %v5814_v44  ;;  %v5854_v56 = vld [vmem:[#allocation9 + $0xbe8] sm:$0xff] }
 0x53e   :  { %7421 = vmatprep.subr.bf16.mxu1 %v12883_v48  ;;  %5372 = vmatprep.mubr.bf16.mxu0 %v15173_v28  ;;  %v5817_v48 = vld [vmem:[#allocation9 + $0xac0] sm:$0xff] }
 0x53f   :  { %5445 = vmatprep.mubr.bf16.mxu1 %v15173_v28  ;;  %v12899_v28 = vcombine.high %v5786_v61, %v5790_v62  ;;  %v12930_v61 = vcombine.low %v5818_v21, %v5822_v25 }
 0x540   :  { %7276 = vmatpush1.bf16.msra.mxu0 %v12880_v40  ;;  %v12929_v40 = vcombine.high %v5817_v48, %v5821_v37 }
 0x541   :  { %7422 = vmatpush1.bf16.msra.mxu1 %v12882_v26  ;;  %7277 = vmatprep.subr.bf16.mxu0 %v12889_v54  ;;  %v12931_v26 = vcombine.high %v5818_v21, %v5822_v25  ;;  %v5825_v54 = vld [vmem:[#allocation9 + $0xb00] sm:$0xff] }
 0x542   :  { %7423 = vmatprep.subr.bf16.mxu1 %v12891_v52  ;;  %v5829_v52 = vld [vmem:[#allocation9 + $0xb20] sm:$0xff] }
 0x543   :  { %12835 = vmatmul.mubr.msk.bf16.gmra.mrb[100].mxu0 %vm175_vm0, %v15022_v1  ;;  %v12937_v62 = vcombine.high %v5825_v54, %v5829_v52 }
 0x544   :  { %12839 = vmatmul.mubr.msk.bf16.gmra.mrb[100].mxu1 %vm175_vm0, %v15022_v1  ;;  %7278 = vmatpush1.bf16.msra.mxu0 %v12888_v60  ;;  %v12928_v60 = vcombine.low %v5817_v48, %v5821_v37  ;;  %v5838_v1 = vld [vmem:[#allocation9 + $0xb68] sm:$0xff] }
 0x545   :  { %7424 = vmatpush1.bf16.msra.mxu1 %v12890_v46  ;;  %7297 = vmatprep.mubr.bf16.mxu0 %v15735_v0  ;;  %v12939_v46 = vcombine.high %v5826_v58, %v5830_v59  ;;  %v12946_v33 = vcombine.low %v5834_v6, %v5838_v1  ;;  %v5862_v48 = vld [vmem:[#allocation9 + $0xc28] sm:$0xff] }
 0x546   :  { %7443 = vmatprep.mubr.bf16.mxu1 %v15735_v0  ;;  %7279 = vmatprep.subr.bf16.mxu0 %v12897_v19  ;;  %v5833_v19 = vld [vmem:[#allocation9 + $0xb40] sm:$0xff] }
 0x547   :  { %7425 = vmatprep.subr.bf16.mxu1 %v12899_v28  ;;  %v12936_v28 = vcombine.low %v5825_v54, %v5829_v52  ;;  %v12945_v20 = vcombine.high %v5833_v19, %v5837_v63  ;;  %v12944_v5 = vcombine.low %v5833_v19, %v5837_v63  ;;  %v5870_v54 = vld [vmem:[#allocation9 + $0xc68] sm:$0xff] }
 0x548   :  { %7280 = vmatpush1.bf16.msra.mxu0 %v12896_v42  ;;  %v12947_v42 = vcombine.high %v5834_v6, %v5838_v1  ;;  %v5878_v19 = vld [vmem:[#allocation9 + $0xca8] sm:$0xff] }
 0x549   :  { %7426 = vmatpush1.bf16.msra.mxu1 %v12898_v3  ;;  %7281 = vmatprep.subr.bf16.mxu0 %v12905_v35  ;;  %v5841_v3 = vld [vmem:[#allocation9 + $0xb80] sm:$0xff] }
 0x54a   :  { %7427 = vmatprep.subr.bf16.mxu1 %v12907_v17  ;;  %v5845_v35 = vld [vmem:[#allocation9 + $0xba0] sm:$0xff]  ;;  %v5842_v17 = vld [vmem:[#allocation9 + $0xb88] sm:$0xff] }
 0x54b   :  { %v12953_v23 = vcombine.high %v5841_v3, %v5845_v35  ;;  %v12952_v22 = vcombine.low %v5841_v3, %v5845_v35  ;;  %v12954_v41 = vcombine.low %v5842_v17, %v5846_v27  ;;  %v5886_v3 = vld [vmem:[#allocation9 + $0xce8] sm:$0xff] }
 0x54c   :  { %7282 = vmatpush1.bf16.msra.mxu0 %v12904_v29  ;;  %v12955_v29 = vcombine.high %v5842_v17, %v5846_v27 }
 0x54d   :  { %7428 = vmatpush1.bf16.msra.mxu1 %v12906_v30  ;;  %7283 = vmatprep.subr.bf16.mxu0 %v12913_v32  ;;  %v5849_v30 = vld [vmem:[#allocation9 + $0xbc0] sm:$0xff] }
 0x54e   :  { %7429 = vmatprep.subr.bf16.mxu1 %v12915_v24  ;;  %v5853_v32 = vld [vmem:[#allocation9 + $0xbe0] sm:$0xff]  ;;  %v5850_v24 = vld [vmem:[#allocation9 + $0xbc8] sm:$0xff] }
 0x54f   :  { %v12961_v44 = vcombine.high %v5849_v30, %v5853_v32  ;;  %v12960_v37 = vcombine.low %v5849_v30, %v5853_v32  ;;  %v12962_v21 = vcombine.low %v5850_v24, %v5854_v56  ;;  %v5894_v30 = vld [vmem:[#allocation9 + $0xd28] sm:$0xff] }
 0x550   :  { %7284 = vmatpush1.bf16.msra.mxu0 %v12912_v43  ;;  %v12963_v43 = vcombine.high %v5850_v24, %v5854_v56 }
 0x551   :  { %7430 = vmatpush1.bf16.msra.mxu1 %v12914_v18  ;;  %7285 = vmatprep.subr.bf16.mxu0 %v12921_v34  ;;  %v5857_v18 = vld [vmem:[#allocation9 + $0xc00] sm:$0xff] }
 0x552   :  { %7431 = vmatprep.subr.bf16.mxu1 %v12923_v36  ;;  %v5861_v34 = vld [vmem:[#allocation9 + $0xc20] sm:$0xff]  ;;  %v5858_v36 = vld [vmem:[#allocation9 + $0xc08] sm:$0xff] }
 0x553   :  { %v12969_v25 = vcombine.high %v5857_v18, %v5861_v34  ;;  %v12968_v52 = vcombine.low %v5857_v18, %v5861_v34  ;;  %v12970_v58 = vcombine.low %v5858_v36, %v5862_v48  ;;  %v5902_v18 = vld [vmem:[#allocation9 + $0xd68] sm:$0xff] }
 0x554   :  { %7286 = vmatpush1.bf16.msra.mxu0 %v12920_v51  ;;  %v12971_v51 = vcombine.high %v5858_v36, %v5862_v48 }
 0x555   :  { %7432 = vmatpush1.bf16.msra.mxu1 %v12922_v38  ;;  %7287 = vmatprep.subr.bf16.mxu0 %v12929_v40  ;;  %v5865_v38 = vld [vmem:[#allocation9 + $0xc40] sm:$0xff] }
 0x556   :  { %7433 = vmatprep.subr.bf16.mxu1 %v12931_v26  ;;  %v5869_v40 = vld [vmem:[#allocation9 + $0xc60] sm:$0xff]  ;;  %v5866_v26 = vld [vmem:[#allocation9 + $0xc48] sm:$0xff] }
 0x557   :  { %v12977_v59 = vcombine.high %v5865_v38, %v5869_v40  ;;  %v12976_v63 = vcombine.low %v5865_v38, %v5869_v40  ;;  %v12978_v6 = vcombine.low %v5866_v26, %v5870_v54  ;;  %v5910_v38 = vld [vmem:[#allocation9 + $0xda8] sm:$0xff] }
 0x558   :  { %7288 = vmatpush1.bf16.msra.mxu0 %v12928_v60  ;;  %v12979_v60 = vcombine.high %v5866_v26, %v5870_v54 }
 0x559   :  { %7434 = vmatpush1.bf16.msra.mxu1 %v12930_v61  ;;  %7289 = vmatprep.subr.bf16.mxu0 %v12937_v62  ;;  %v5873_v61 = vld [vmem:[#allocation9 + $0xc80] sm:$0xff] }
 0x55a   :  { %7435 = vmatprep.subr.bf16.mxu1 %v12939_v46  ;;  %v5877_v62 = vld [vmem:[#allocation9 + $0xca0] sm:$0xff]  ;;  %v5874_v46 = vld [vmem:[#allocation9 + $0xc88] sm:$0xff] }
 0x55b   :  { %v12985_v1 = vcombine.high %v5873_v61, %v5877_v62  ;;  %v12984_v35 = vcombine.low %v5873_v61, %v5877_v62  ;;  %v12986_v17 = vcombine.low %v5874_v46, %v5878_v19  ;;  %v5918_v61 = vld [vmem:[#allocation9 + $0xde8] sm:$0xff] }
 0x55c   :  { %7290 = vmatpush1.bf16.msra.mxu0 %v12936_v28  ;;  %v12987_v28 = vcombine.high %v5874_v46, %v5878_v19 }
 0x55d   :  { %7436 = vmatpush1.bf16.msra.mxu1 %v12938_v7  ;;  %7291 = vmatprep.subr.bf16.mxu0 %v12945_v20  ;;  %v5881_v7 = vld [vmem:[#allocation9 + $0xcc0] sm:$0xff] }
 0x55e   :  { %7437 = vmatprep.subr.bf16.mxu1 %v12947_v42  ;;  %v5885_v20 = vld [vmem:[#allocation9 + $0xce0] sm:$0xff]  ;;  %v5882_v42 = vld [vmem:[#allocation9 + $0xcc8] sm:$0xff] }
 0x55f   :  { %v12993_v27 = vcombine.high %v5881_v7, %v5885_v20  ;;  %v12992_v32 = vcombine.low %v5881_v7, %v5885_v20  ;;  %v12994_v24 = vcombine.low %v5882_v42, %v5886_v3  ;;  %v5926_v7 = vld [vmem:[#allocation9 + $0xe28] sm:$0xff] }
 0x560   :  { %7292 = vmatpush1.bf16.msra.mxu0 %v12944_v5  ;;  %v12995_v5 = vcombine.high %v5882_v42, %v5886_v3 }
 0x561   :  { %7438 = vmatpush1.bf16.msra.mxu1 %v12946_v33  ;;  %7293 = vmatprep.subr.bf16.mxu0 %v12953_v23  ;;  %v5889_v33 = vld [vmem:[#allocation9 + $0xd00] sm:$0xff] }
 0x562   :  { %7439 = vmatprep.subr.bf16.mxu1 %v12955_v29  ;;  %v5893_v23 = vld [vmem:[#allocation9 + $0xd20] sm:$0xff]  ;;  %v5890_v29 = vld [vmem:[#allocation9 + $0xd08] sm:$0xff] }
 0x563   :  { %v13001_v56 = vcombine.high %v5889_v33, %v5893_v23  ;;  %v13000_v34 = vcombine.low %v5889_v33, %v5893_v23  ;;  %v13002_v36 = vcombine.low %v5890_v29, %v5894_v30  ;;  %v5934_v33 = vld [vmem:[#allocation9 + $0xe68] sm:$0xff] }
 0x564   :  { %7294 = vmatpush1.bf16.msra.mxu0 %v12952_v22  ;;  %v13003_v22 = vcombine.high %v5890_v29, %v5894_v30 }
 0x565   :  { %7440 = vmatpush1.bf16.msra.mxu1 %v12954_v41  ;;  %7295 = vmatprep.subr.bf16.mxu0 %v12961_v44  ;;  %v5897_v41 = vld [vmem:[#allocation9 + $0xd40] sm:$0xff] }
 0x566   :  { %7441 = vmatprep.subr.bf16.mxu1 %v12963_v43  ;;  %v5901_v44 = vld [vmem:[#allocation9 + $0xd60] sm:$0xff]  ;;  %v5898_v43 = vld [vmem:[#allocation9 + $0xd48] sm:$0xff] }
 0x567   :  { %v13009_v48 = vcombine.high %v5897_v41, %v5901_v44  ;;  %v13008_v40 = vcombine.low %v5897_v41, %v5901_v44  ;;  %v13010_v26 = vcombine.low %v5898_v43, %v5902_v18  ;;  %v5942_v41 = vld [vmem:[#allocation9 + $0xea8] sm:$0xff] }
 0x568   :  { %7296 = vmatpush1.bf16.msra.mxu0 %v12960_v37  ;;  %v13011_v37 = vcombine.high %v5898_v43, %v5902_v18 }
 0x569   :  { %7442 = vmatpush1.bf16.msra.mxu1 %v12962_v21  ;;  %7338 = vmatprep.subr.bf16.mxu0 %v12969_v25  ;;  %v5905_v21 = vld [vmem:[#allocation9 + $0xd80] sm:$0xff] }
 0x56a   :  { %7484 = vmatprep.subr.bf16.mxu1 %v12971_v51  ;;  %v5909_v25 = vld [vmem:[#allocation9 + $0xda0] sm:$0xff]  ;;  %v5906_v51 = vld [vmem:[#allocation9 + $0xd88] sm:$0xff] }
 0x56b   :  { %7298 = vmatmul.mubr.bf16.vlgmr.msra.gmra.mrb[104].mxu0 %v15731_v39  ;;  %v13017_v54 = vcombine.high %v5905_v21, %v5909_v25  ;;  %v13016_v62 = vcombine.low %v5905_v21, %v5909_v25  ;;  %v13018_v46 = vcombine.low %v5906_v51, %v5910_v38  ;;  %v5950_v21 = vld [vmem:[#allocation9 + $0xee8] sm:$0xff] }
 0x56c   :  { %7444 = vmatmul.mubr.bf16.vlgmr.msra.gmra.mrb[104].mxu1 %v15731_v39  ;;  %7307 = vmatprep.mubr.bf16.mxu0 %v15755_v14 }
 0x56d   :  { %7339 = vmatpush1.bf16.msra.mxu0 %v12968_v52  ;;  %7453 = vmatprep.mubr.bf16.mxu1 %v15755_v14  ;;  %v13019_v52 = vcombine.high %v5906_v51, %v5910_v38 }
 0x56e   :  { %7485 = vmatpush1.bf16.msra.mxu1 %v12970_v58  ;;  %7340 = vmatprep.subr.bf16.mxu0 %v12977_v59  ;;  %v5913_v58 = vld [vmem:[#allocation9 + $0xdc0] sm:$0xff] }
 0x56f   :  { %7486 = vmatprep.subr.bf16.mxu1 %v12979_v60  ;;  %v5917_v59 = vld [vmem:[#allocation9 + $0xde0] sm:$0xff]  ;;  %v5914_v60 = vld [vmem:[#allocation9 + $0xdc8] sm:$0xff] }
 0x570   :  { %v13025_v19 = vcombine.high %v5913_v58, %v5917_v59  ;;  %v13024_v20 = vcombine.low %v5913_v58, %v5917_v59  ;;  %v13026_v42 = vcombine.low %v5914_v60, %v5918_v61  ;;  %v5958_v58 = vld [vmem:[#allocation9 + $0xf28] sm:$0xff] }
 0x571   :  { %7341 = vmatpush1.bf16.msra.mxu0 %v12976_v63  ;;  %v13027_v63 = vcombine.high %v5914_v60, %v5918_v61 }
 0x572   :  { %7487 = vmatpush1.bf16.msra.mxu1 %v12978_v6  ;;  %7342 = vmatprep.subr.bf16.mxu0 %v12985_v1  ;;  %v5921_v6 = vld [vmem:[#allocation9 + $0xe00] sm:$0xff] }
 0x573   :  { %7308 = vmatmul.mubr.bf16.gmra.mrb[108].mxu0 %v15751_v16  ;;  %7488 = vmatprep.subr.bf16.mxu1 %v12987_v28  ;;  %v5925_v1 = vld [vmem:[#allocation9 + $0xe20] sm:$0xff]  ;;  %v5922_v28 = vld [vmem:[#allocation9 + $0xe08] sm:$0xff] }
 0x574   :  { %7454 = vmatmul.mubr.bf16.gmra.mrb[108].mxu1 %v15751_v16  ;;  %7317 = vmatprep.mubr.bf16.mxu0 %v15775_v31  ;;  %v13033_v3 = vcombine.high %v5921_v6, %v5925_v1  ;;  %v13032_v23 = vcombine.low %v5921_v6, %v5925_v1  ;;  %v13034_v29 = vcombine.low %v5922_v28, %v5926_v7  ;;  %v5966_v6 = vld [vmem:[#allocation9 + $0xf68] sm:$0xff] }
 0x575   :  { %7343 = vmatpush1.bf16.msra.mxu0 %v12984_v35  ;;  %7463 = vmatprep.mubr.bf16.mxu1 %v15775_v31  ;;  %v13035_v35 = vcombine.high %v5922_v28, %v5926_v7 }
 0x576   :  { %7489 = vmatpush1.bf16.msra.mxu1 %v12986_v17  ;;  %7344 = vmatprep.subr.bf16.mxu0 %v12993_v27  ;;  %v5929_v17 = vld [vmem:[#allocation9 + $0xe40] sm:$0xff] }
 0x577   :  { %7490 = vmatprep.subr.bf16.mxu1 %v12995_v5  ;;  %v5933_v27 = vld [vmem:[#allocation9 + $0xe60] sm:$0xff]  ;;  %v5930_v5 = vld [vmem:[#allocation9 + $0xe48] sm:$0xff] }
 0x578   :  { %v13041_v30 = vcombine.high %v5929_v17, %v5933_v27  ;;  %v13040_v44 = vcombine.low %v5929_v17, %v5933_v27  ;;  %v13042_v43 = vcombine.low %v5930_v5, %v5934_v33  ;;  %v5974_v17 = vld [vmem:[#allocation9 + $0xfa8] sm:$0xff] }
 0x579   :  { %7345 = vmatpush1.bf16.msra.mxu0 %v12992_v32  ;;  %v13043_v32 = vcombine.high %v5930_v5, %v5934_v33 }
 0x57a   :  { %7491 = vmatpush1.bf16.msra.mxu1 %v12994_v24  ;;  %7346 = vmatprep.subr.bf16.mxu0 %v13001_v56  ;;  %v5937_v24 = vld [vmem:[#allocation9 + $0xe80] sm:$0xff] }
 0x57b   :  { %7318 = vmatmul.mubr.bf16.gmra.mrb[112].mxu0 %v15771_v45  ;;  %7492 = vmatprep.subr.bf16.mxu1 %v13003_v22  ;;  %v5941_v56 = vld [vmem:[#allocation9 + $0xea0] sm:$0xff]  ;;  %v5938_v22 = vld [vmem:[#allocation9 + $0xe88] sm:$0xff] }
 0x57c   :  { %7464 = vmatmul.mubr.bf16.gmra.mrb[112].mxu1 %v15771_v45  ;;  %7327 = vmatprep.mubr.bf16.mxu0 %v15795_v4  ;;  %v13049_v18 = vcombine.high %v5937_v24, %v5941_v56  ;;  %v13048_v25 = vcombine.low %v5937_v24, %v5941_v56  ;;  %v13050_v51 = vcombine.low %v5938_v22, %v5942_v41  ;;  %v5982_v24 = vld [vmem:[#allocation9 + $0xfe8] sm:$0xff] }
 0x57d   :  { %7347 = vmatpush1.bf16.msra.mxu0 %v13000_v34  ;;  %7473 = vmatprep.mubr.bf16.mxu1 %v15795_v4  ;;  %v13051_v34 = vcombine.high %v5938_v22, %v5942_v41 }
 0x57e   :  { %7493 = vmatpush1.bf16.msra.mxu1 %v13002_v36  ;;  %7348 = vmatprep.subr.bf16.mxu0 %v13009_v48  ;;  %v5945_v36 = vld [vmem:[#allocation9 + $0xec0] sm:$0xff] }
 0x57f   :  { %7494 = vmatprep.subr.bf16.mxu1 %v13011_v37  ;;  %v5949_v48 = vld [vmem:[#allocation9 + $0xee0] sm:$0xff]  ;;  %v5946_v37 = vld [vmem:[#allocation9 + $0xec8] sm:$0xff] }
 0x580   :  { %v13057_v38 = vcombine.high %v5945_v36, %v5949_v48  ;;  %v13056_v59 = vcombine.low %v5945_v36, %v5949_v48  ;;  %v13058_v60 = vcombine.low %v5946_v37, %v5950_v21  ;;  %v5736_v36 = vld [vmem:[#allocation9 + $0x838] sm:$0xff] }
 0x581   :  { %7349 = vmatpush1.bf16.msra.mxu0 %v13008_v40  ;;  %v13059_v40 = vcombine.high %v5946_v37, %v5950_v21 }
 0x582   :  { %7495 = vmatpush1.bf16.msra.mxu1 %v13010_v26  ;;  %7350 = vmatprep.subr.bf16.mxu0 %v13017_v54  ;;  %v5953_v26 = vld [vmem:[#allocation9 + $0xf00] sm:$0xff] }
 0x583   :  { %7328 = vmatmul.mubr.bf16.gmra.mrb[116].mxu0 %v15791_v8  ;;  %7496 = vmatprep.subr.bf16.mxu1 %v13019_v52  ;;  %v5957_v54 = vld [vmem:[#allocation9 + $0xf20] sm:$0xff]  ;;  %v5954_v52 = vld [vmem:[#allocation9 + $0xf08] sm:$0xff] }
 0x584   :  { %7474 = vmatmul.mubr.bf16.gmra.mrb[116].mxu1 %v15791_v8  ;;  %7370 = vmatprep.mubr.bf16.mxu0 %v15737_v57  ;;  %v13065_v61 = vcombine.high %v5953_v26, %v5957_v54  ;;  %v13064_v1 = vcombine.low %v5953_v26, %v5957_v54  ;;  %v13066_v28 = vcombine.low %v5954_v52, %v5958_v58  ;;  %v5744_v26 = vld [vmem:[#allocation9 + $0x878] sm:$0xff] }
 0x585   :  { %7351 = vmatpush1.bf16.msra.mxu0 %v13016_v62  ;;  %7516 = vmatprep.mubr.bf16.mxu1 %v15737_v57  ;;  %v13067_v62 = vcombine.high %v5954_v52, %v5958_v58 }
 0x586   :  { %7497 = vmatpush1.bf16.msra.mxu1 %v13018_v46  ;;  %7352 = vmatprep.subr.bf16.mxu0 %v13025_v19  ;;  %v5961_v46 = vld [vmem:[#allocation9 + $0xf40] sm:$0xff] }
 0x587   :  { %7498 = vmatprep.subr.bf16.mxu1 %v13027_v63  ;;  %v5965_v19 = vld [vmem:[#allocation9 + $0xf60] sm:$0xff]  ;;  %v5962_v63 = vld [vmem:[#allocation9 + $0xf48] sm:$0xff] }
 0x588   :  { %v13073_v7 = vcombine.high %v5961_v46, %v5965_v19  ;;  %v13072_v27 = vcombine.low %v5961_v46, %v5965_v19  ;;  %v13074_v5 = vcombine.low %v5962_v63, %v5966_v6  ;;  %v5752_v46 = vld [vmem:[#allocation9 + $0x8b8] sm:$0xff] }
 0x589   :  { %7353 = vmatpush1.bf16.msra.mxu0 %v13024_v20  ;;  %v13075_v20 = vcombine.high %v5962_v63, %v5966_v6 }
 0x58a   :  { %7499 = vmatpush1.bf16.msra.mxu1 %v13026_v42  ;;  %7354 = vmatprep.subr.bf16.mxu0 %v13033_v3  ;;  %v5969_v42 = vld [vmem:[#allocation9 + $0xf80] sm:$0xff] }
 0x58b   :  { %7500 = vmatprep.subr.bf16.mxu1 %v13035_v35  ;;  %v5973_v3 = vld [vmem:[#allocation9 + $0xfa0] sm:$0xff]  ;;  %v5970_v35 = vld [vmem:[#allocation9 + $0xf88] sm:$0xff] }
 0x58c   :  { %v13081_v33 = vcombine.high %v5969_v42, %v5973_v3  ;;  %v13080_v56 = vcombine.low %v5969_v42, %v5973_v3  ;;  %v13082_v22 = vcombine.low %v5970_v35, %v5974_v17  ;;  %v5760_v42 = vld [vmem:[#allocation9 + $0x8f8] sm:$0xff] }
 0x58d   :  { %7355 = vmatpush1.bf16.msra.mxu0 %v13032_v23  ;;  %v13083_v23 = vcombine.high %v5970_v35, %v5974_v17 }
 0x58e   :  { %7501 = vmatpush1.bf16.msra.mxu1 %v13034_v29  ;;  %7356 = vmatprep.subr.bf16.mxu0 %v13041_v30  ;;  %v5977_v29 = vld [vmem:[#allocation9 + $0xfc0] sm:$0xff] }
 0x58f   :  { %7502 = vmatprep.subr.bf16.mxu1 %v13043_v32  ;;  %v5981_v30 = vld [vmem:[#allocation9 + $0xfe0] sm:$0xff]  ;;  %v5978_v32 = vld [vmem:[#allocation9 + $0xfc8] sm:$0xff] }
 0x590   :  { %v13089_v41 = vcombine.high %v5977_v29, %v5981_v30  ;;  %v13088_v48 = vcombine.low %v5977_v29, %v5981_v30  ;;  %v13090_v37 = vcombine.low %v5978_v32, %v5982_v24  ;;  %v5768_v29 = vld [vmem:[#allocation9 + $0x938] sm:$0xff] }
 0x591   :  { %7357 = vmatpush1.bf16.msra.mxu0 %v13040_v44  ;;  %v13091_v44 = vcombine.high %v5978_v32, %v5982_v24 }
 0x592   :  { %7503 = vmatpush1.bf16.msra.mxu1 %v13042_v43  ;;  %7358 = vmatprep.subr.bf16.mxu0 %v13049_v18  ;;  %v5731_v43 = vld [vmem:[#allocation9 + $0x810] sm:$0xff] }
 0x593   :  { %7504 = vmatprep.subr.bf16.mxu1 %v13051_v34  ;;  %v5735_v18 = vld [vmem:[#allocation9 + $0x830] sm:$0xff]  ;;  %v5732_v34 = vld [vmem:[#allocation9 + $0x818] sm:$0xff] }
 0x594   :  { %v12845_v21 = vcombine.high %v5731_v43, %v5735_v18  ;;  %v12844_v54 = vcombine.low %v5731_v43, %v5735_v18  ;;  %v12846_v52 = vcombine.low %v5732_v34, %v5736_v36  ;;  %v5776_v43 = vld [vmem:[#allocation9 + $0x978] sm:$0xff] }
 0x595   :  { %7359 = vmatpush1.bf16.msra.mxu0 %v13048_v25  ;;  %v12847_v25 = vcombine.high %v5732_v34, %v5736_v36 }
 0x596   :  { %7505 = vmatpush1.bf16.msra.mxu1 %v13050_v51  ;;  %7360 = vmatprep.subr.bf16.mxu0 %v13057_v38  ;;  %v5739_v51 = vld [vmem:[#allocation9 + $0x850] sm:$0xff] }
 0x597   :  { %7506 = vmatprep.subr.bf16.mxu1 %v13059_v40  ;;  %v5743_v38 = vld [vmem:[#allocation9 + $0x870] sm:$0xff]  ;;  %v5740_v40 = vld [vmem:[#allocation9 + $0x858] sm:$0xff] }
 0x598   :  { %v12853_v58 = vcombine.high %v5739_v51, %v5743_v38  ;;  %v12852_v19 = vcombine.low %v5739_v51, %v5743_v38  ;;  %v12854_v63 = vcombine.low %v5740_v40, %v5744_v26  ;;  %v5784_v51 = vld [vmem:[#allocation9 + $0x9b8] sm:$0xff] }
 0x599   :  { %7361 = vmatpush1.bf16.msra.mxu0 %v13056_v59  ;;  %v12855_v59 = vcombine.high %v5740_v40, %v5744_v26 }
 0x59a   :  { %7507 = vmatpush1.bf16.msra.mxu1 %v13058_v60  ;;  %7362 = vmatprep.subr.bf16.mxu0 %v13065_v61  ;;  %v5747_v60 = vld [vmem:[#allocation9 + $0x890] sm:$0xff] }
 0x59b   :  { %7508 = vmatprep.subr.bf16.mxu1 %v13067_v62  ;;  %v5751_v61 = vld [vmem:[#allocation9 + $0x8b0] sm:$0xff]  ;;  %v5748_v62 = vld [vmem:[#allocation9 + $0x898] sm:$0xff] }
 0x59c   :  { %v12861_v6 = vcombine.high %v5747_v60, %v5751_v61  ;;  %v12860_v3 = vcombine.low %v5747_v60, %v5751_v61  ;;  %v12862_v35 = vcombine.low %v5748_v62, %v5752_v46  ;;  %v5792_v60 = vld [vmem:[#allocation9 + $0x9f8] sm:$0xff] }
 0x59d   :  { %7363 = vmatpush1.bf16.msra.mxu0 %v13064_v1  ;;  %v12863_v1 = vcombine.high %v5748_v62, %v5752_v46 }
 0x59e   :  { %7509 = vmatpush1.bf16.msra.mxu1 %v13066_v28  ;;  %7364 = vmatprep.subr.bf16.mxu0 %v13073_v7  ;;  %v5755_v28 = vld [vmem:[#allocation9 + $0x8d0] sm:$0xff] }
 0x59f   :  { %7510 = vmatprep.subr.bf16.mxu1 %v13075_v20  ;;  %v5759_v7 = vld [vmem:[#allocation9 + $0x8f0] sm:$0xff]  ;;  %v5756_v20 = vld [vmem:[#allocation9 + $0x8d8] sm:$0xff] }
 0x5a0   :  { %v12869_v17 = vcombine.high %v5755_v28, %v5759_v7  ;;  %v12868_v30 = vcombine.low %v5755_v28, %v5759_v7  ;;  %v12870_v32 = vcombine.low %v5756_v20, %v5760_v42  ;;  %v5800_v28 = vld [vmem:[#allocation9 + $0xa38] sm:$0xff] }
 0x5a1   :  { %7365 = vmatpush1.bf16.msra.mxu0 %v13072_v27  ;;  %v12871_v27 = vcombine.high %v5756_v20, %v5760_v42 }
 0x5a2   :  { %7511 = vmatpush1.bf16.msra.mxu1 %v13074_v5  ;;  %7366 = vmatprep.subr.bf16.mxu0 %v13081_v33  ;;  %v5763_v5 = vld [vmem:[#allocation9 + $0x910] sm:$0xff] }
 0x5a3   :  { %7512 = vmatprep.subr.bf16.mxu1 %v13083_v23  ;;  %v5767_v33 = vld [vmem:[#allocation9 + $0x930] sm:$0xff]  ;;  %v5764_v23 = vld [vmem:[#allocation9 + $0x918] sm:$0xff] }
 0x5a4   :  { %v12877_v24 = vcombine.high %v5763_v5, %v5767_v33  ;;  %v12876_v18 = vcombine.low %v5763_v5, %v5767_v33  ;;  %v12878_v34 = vcombine.low %v5764_v23, %v5768_v29  ;;  %v5808_v5 = vld [vmem:[#allocation9 + $0xa78] sm:$0xff] }
 0x5a5   :  { %7367 = vmatpush1.bf16.msra.mxu0 %v13080_v56  ;;  %v12879_v56 = vcombine.high %v5764_v23, %v5768_v29 }
 0x5a6   :  { %7513 = vmatpush1.bf16.msra.mxu1 %v13082_v22  ;;  %7368 = vmatprep.subr.bf16.mxu0 %v13089_v41  ;;  %v5771_v22 = vld [vmem:[#allocation9 + $0x950] sm:$0xff] }
 0x5a7   :  { %7514 = vmatprep.subr.bf16.mxu1 %v13091_v44  ;;  %v5775_v41 = vld [vmem:[#allocation9 + $0x970] sm:$0xff]  ;;  %v5772_v44 = vld [vmem:[#allocation9 + $0x958] sm:$0xff] }
 0x5a8   :  { %v12885_v36 = vcombine.high %v5771_v22, %v5775_v41  ;;  %v12884_v38 = vcombine.low %v5771_v22, %v5775_v41  ;;  %v12886_v40 = vcombine.low %v5772_v44, %v5776_v43 }
 0x5a9   :  { %7369 = vmatpush1.bf16.msra.mxu0 %v13088_v48  ;;  %v12887_v48 = vcombine.high %v5772_v44, %v5776_v43 }
 0x5aa   :  { %7515 = vmatpush1.bf16.msra.mxu1 %v13090_v37  ;;  %7557 = vmatprep.subr.bf16.mxu0 %v12845_v21  ;;  %v5779_v37 = vld [vmem:[#allocation9 + $0x990] sm:$0xff] }
 0x5ab   :  { %7703 = vmatprep.subr.bf16.mxu1 %v12847_v25  ;;  %v5783_v21 = vld [vmem:[#allocation9 + $0x9b0] sm:$0xff]  ;;  %v5780_v25 = vld [vmem:[#allocation9 + $0x998] sm:$0xff] }
 0x5ac   :  { %7371 = vmatmul.mubr.bf16.vlgmr.msra.gmra.mrb[104].mxu0 %v15733_v49  ;;  %v12893_v26 = vcombine.high %v5779_v37, %v5783_v21  ;;  %v12892_v61 = vcombine.low %v5779_v37, %v5783_v21  ;;  %v12894_v62 = vcombine.low %v5780_v25, %v5784_v51 }
 0x5ad   :  { %7517 = vmatmul.mubr.bf16.vlgmr.msra.gmra.mrb[104].mxu1 %v15733_v49  ;;  %7380 = vmatprep.mubr.bf16.mxu0 %v15757_v47 }
 0x5ae   :  { %7526 = vmatprep.mubr.bf16.mxu1 %v15757_v47  ;;  %7558 = vmatpush1.bf16.msra.mxu0 %v12844_v54  ;;  %v12895_v54 = vcombine.high %v5780_v25, %v5784_v51 }
 0x5af   :  { %7704 = vmatpush1.bf16.msra.mxu1 %v12846_v52  ;;  %7559 = vmatprep.subr.bf16.mxu0 %v12853_v58  ;;  %v5787_v52 = vld [vmem:[#allocation9 + $0x9d0] sm:$0xff] }
 0x5b0   :  { %7705 = vmatprep.subr.bf16.mxu1 %v12855_v59  ;;  %v5791_v58 = vld [vmem:[#allocation9 + $0x9f0] sm:$0xff]  ;;  %v5788_v59 = vld [vmem:[#allocation9 + $0x9d8] sm:$0xff] }
 0x5b1   :  { %v12901_v46 = vcombine.high %v5787_v52, %v5791_v58  ;;  %v12900_v7 = vcombine.low %v5787_v52, %v5791_v58  ;;  %v12902_v20 = vcombine.low %v5788_v59, %v5792_v60 }
 0x5b2   :  { %7560 = vmatpush1.bf16.msra.mxu0 %v12852_v19  ;;  %v12903_v19 = vcombine.high %v5788_v59, %v5792_v60 }
 0x5b3   :  { %7706 = vmatpush1.bf16.msra.mxu1 %v12854_v63  ;;  %7561 = vmatprep.subr.bf16.mxu0 %v12861_v6  ;;  %v5795_v63 = vld [vmem:[#allocation9 + $0xa10] sm:$0xff] }
 0x5b4   :  { %7381 = vmatmul.mubr.bf16.gmra.mrb[108].mxu0 %v15753_v53  ;;  %7707 = vmatprep.subr.bf16.mxu1 %v12863_v1  ;;  %v5799_v6 = vld [vmem:[#allocation9 + $0xa30] sm:$0xff]  ;;  %v5796_v1 = vld [vmem:[#allocation9 + $0xa18] sm:$0xff] }
 0x5b5   :  { %7527 = vmatmul.mubr.bf16.gmra.mrb[108].mxu1 %v15753_v53  ;;  %7390 = vmatprep.mubr.bf16.mxu0 %v15777_v15  ;;  %v12909_v42 = vcombine.high %v5795_v63, %v5799_v6  ;;  %v12908_v33 = vcombine.low %v5795_v63, %v5799_v6  ;;  %v12910_v23 = vcombine.low %v5796_v1, %v5800_v28 }
 0x5b6   :  { %7536 = vmatprep.mubr.bf16.mxu1 %v15777_v15  ;;  %7562 = vmatpush1.bf16.msra.mxu0 %v12860_v3  ;;  %v12911_v3 = vcombine.high %v5796_v1, %v5800_v28 }
 0x5b7   :  { %7708 = vmatpush1.bf16.msra.mxu1 %v12862_v35  ;;  %7563 = vmatprep.subr.bf16.mxu0 %v12869_v17  ;;  %v5803_v35 = vld [vmem:[#allocation9 + $0xa50] sm:$0xff] }
 0x5b8   :  { %7709 = vmatprep.subr.bf16.mxu1 %v12871_v27  ;;  %v5807_v17 = vld [vmem:[#allocation9 + $0xa70] sm:$0xff]  ;;  %v5804_v27 = vld [vmem:[#allocation9 + $0xa58] sm:$0xff] }
 0x5b9   :  { %v12917_v29 = vcombine.high %v5803_v35, %v5807_v17  ;;  %v12916_v22 = vcombine.low %v5803_v35, %v5807_v17  ;;  %v12918_v41 = vcombine.low %v5804_v27, %v5808_v5 }
 0x5ba   :  { %7564 = vmatpush1.bf16.msra.mxu0 %v12868_v30  ;;  %v12919_v30 = vcombine.high %v5804_v27, %v5808_v5 }
 0x5bb   :  { %7710 = vmatpush1.bf16.msra.mxu1 %v12870_v32  ;;  %7565 = vmatprep.subr.bf16.mxu0 %v12877_v24  ;;  %v5815_v32 = vld [vmem:[#allocation9 + $0xab0] sm:$0xff]  ;;  %v5812_v24 = vld [vmem:[#allocation9 + $0xa98] sm:$0xff] }
 0x5bc   :  { %7391 = vmatmul.mubr.bf16.gmra.mrb[112].mxu0 %v15773_v55  ;;  %7711 = vmatprep.subr.bf16.mxu1 %v12879_v56  ;;  %v5816_v56 = vld [vmem:[#allocation9 + $0xab8] sm:$0xff] }
 0x5bd   :  { %7537 = vmatmul.mubr.bf16.gmra.mrb[112].mxu1 %v15773_v55  ;;  %7400 = vmatprep.mubr.bf16.mxu0 %v15797_v11  ;;  %v12927_v43 = vcombine.high %v5812_v24, %v5816_v56  ;;  %v12926_v21 = vcombine.low %v5812_v24, %v5816_v56  ;;  %v5855_v24 = vld [vmem:[#allocation9 + $0xbf0] sm:$0xff] }
 0x5be   :  { %7546 = vmatprep.mubr.bf16.mxu1 %v15797_v11  ;;  %7566 = vmatpush1.bf16.msra.mxu0 %v12876_v18  ;;  %v5819_v18 = vld [vmem:[#allocation9 + $0xad0] sm:$0xff] }
 0x5bf   :  { %7712 = vmatpush1.bf16.msra.mxu1 %v12878_v34  ;;  %7567 = vmatprep.subr.bf16.mxu0 %v12885_v36  ;;  %v5823_v34 = vld [vmem:[#allocation9 + $0xaf0] sm:$0xff]  ;;  %v5820_v36 = vld [vmem:[#allocation9 + $0xad8] sm:$0xff] }
 0x5c0   :  { %7713 = vmatprep.subr.bf16.mxu1 %v12887_v48  ;;  %v5824_v48 = vld [vmem:[#allocation9 + $0xaf8] sm:$0xff]  ;;  %v12933_v25 = vcombine.high %v5819_v18, %v5823_v34  ;;  %v12932_v52 = vcombine.low %v5819_v18, %v5823_v34 }
 0x5c1   :  { %v12935_v51 = vcombine.high %v5820_v36, %v5824_v48  ;;  %v12934_v58 = vcombine.low %v5820_v36, %v5824_v48 }
 0x5c2   :  { %7568 = vmatpush1.bf16.msra.mxu0 %v12884_v38  ;;  %v5827_v38 = vld [vmem:[#allocation9 + $0xb10] sm:$0xff] }
 0x5c3   :  { %7714 = vmatpush1.bf16.msra.mxu1 %v12886_v40  ;;  %7569 = vmatprep.subr.bf16.mxu0 %v12893_v26  ;;  %v5831_v40 = vld [vmem:[#allocation9 + $0xb30] sm:$0xff]  ;;  %v5828_v26 = vld [vmem:[#allocation9 + $0xb18] sm:$0xff] }
 0x5c4   :  { %7401 = vmatmul.mubr.bf16.gmra.mrb[116].mxu0 %v15793_v50  ;;  %7715 = vmatprep.subr.bf16.mxu1 %v12895_v54  ;;  %v5832_v54 = vld [vmem:[#allocation9 + $0xb38] sm:$0xff]  ;;  %v12941_v59 = vcombine.high %v5827_v38, %v5831_v40  ;;  %v12940_v63 = vcombine.low %v5827_v38, %v5831_v40  ;;  %v5859_v38 = vld [vmem:[#allocation9 + $0xc10] sm:$0xff] }
 0x5c5   :  { %7547 = vmatmul.mubr.bf16.gmra.mrb[116].mxu1 %v15793_v50  ;;  %7589 = vmatprep.mubr.bf16.mxu0 %v15735_v0  ;;  %v12943_v60 = vcombine.high %v5828_v26, %v5832_v54  ;;  %v12942_v6 = vcombine.low %v5828_v26, %v5832_v54  ;;  %v5863_v40 = vld [vmem:[#allocation9 + $0xc30] sm:$0xff]  ;;  %v5860_v26 = vld [vmem:[#allocation9 + $0xc18] sm:$0xff] }
 0x5c6   :  { %7570 = vmatpush1.bf16.msra.mxu0 %v12892_v61  ;;  %7735 = vmatprep.mubr.bf16.mxu1 %v15735_v0  ;;  %v5811_v0 = vld [vmem:[#allocation9 + $0xa90] sm:$0xff]  ;;  %v5864_v54 = vld [vmem:[#allocation9 + $0xc38] sm:$0xff] }
 0x5c7   :  { %7716 = vmatpush1.bf16.msra.mxu1 %v12894_v62  ;;  %7571 = vmatprep.subr.bf16.mxu0 %v12901_v46  ;;  %v12925_v44 = vcombine.high %v5811_v0, %v5815_v32  ;;  %v12924_v37 = vcombine.low %v5811_v0, %v5815_v32  ;;  %v5835_v61 = vld [vmem:[#allocation9 + $0xb50] sm:$0xff]  ;;  %v5836_v46 = vld [vmem:[#allocation9 + $0xb58] sm:$0xff] }
 0x5c8   :  { %7717 = vmatprep.subr.bf16.mxu1 %v12903_v19  ;;  %v5839_v62 = vld [vmem:[#allocation9 + $0xb70] sm:$0xff]  ;;  %v5840_v19 = vld [vmem:[#allocation9 + $0xb78] sm:$0xff] }
 0x5c9   :  { %v12949_v1 = vcombine.high %v5835_v61, %v5839_v62  ;;  %v12951_v28 = vcombine.high %v5836_v46, %v5840_v19  ;;  %v12948_v35 = vcombine.low %v5835_v61, %v5839_v62  ;;  %v12950_v27 = vcombine.low %v5836_v46, %v5840_v19  ;;  %v5851_v32 = vld [vmem:[#allocation9 + $0xbd0] sm:$0xff] }
 0x5ca   :  { %7572 = vmatpush1.bf16.msra.mxu0 %v12900_v7  ;;  %v5843_v7 = vld [vmem:[#allocation9 + $0xb90] sm:$0xff]  ;;  %v12973_v62 = vcombine.high %v5859_v38, %v5863_v40 }
 0x5cb   :  { %7718 = vmatpush1.bf16.msra.mxu1 %v12902_v20  ;;  %7573 = vmatprep.subr.bf16.mxu0 %v12909_v42  ;;  %v5847_v20 = vld [vmem:[#allocation9 + $0xbb0] sm:$0xff]  ;;  %v5844_v42 = vld [vmem:[#allocation9 + $0xb98] sm:$0xff] }
 0x5cc   :  { %7719 = vmatprep.subr.bf16.mxu1 %v12911_v3  ;;  %v5848_v3 = vld [vmem:[#allocation9 + $0xbb8] sm:$0xff]  ;;  %v12956_v34 = vcombine.low %v5843_v7, %v5847_v20 }
 0x5cd   :  { %v12959_v0 = vcombine.high %v5844_v42, %v5848_v3 }
 0x5ce   :  { %7574 = vmatpush1.bf16.msra.mxu0 %v12908_v33 }
 0x5cf   :  { %7720 = vmatpush1.bf16.msra.mxu1 %v12910_v23  ;;  %7575 = vmatprep.subr.bf16.mxu0 %v12917_v29  ;;  %v12957_v23 = vcombine.high %v5843_v7, %v5847_v20  ;;  %v5867_v7 = vld [vmem:[#allocation9 + $0xc50] sm:$0xff] }
 0x5d0   :  { %7721 = vmatprep.subr.bf16.mxu1 %v12919_v30  ;;  %v5871_v20 = vld [vmem:[#allocation9 + $0xc70] sm:$0xff] }
 0x5d2   :  { %7576 = vmatpush1.bf16.msra.mxu0 %v12916_v22 }
 0x5d3   :  { %7722 = vmatpush1.bf16.msra.mxu1 %v12918_v41  ;;  %7577 = vmatprep.subr.bf16.mxu0 %v12925_v44  ;;  %v5852_v44 = vld [vmem:[#allocation9 + $0xbd8] sm:$0xff] }
 0x5d4   :  { %7723 = vmatprep.subr.bf16.mxu1 %v12927_v43  ;;  %v5856_v43 = vld [vmem:[#allocation9 + $0xbf8] sm:$0xff] }
 0x5d6   :  { %7578 = vmatpush1.bf16.msra.mxu0 %v12924_v37  ;;  %v12958_v37 = vcombine.low %v5844_v42, %v5848_v3 }
 0x5d7   :  { %7724 = vmatpush1.bf16.msra.mxu1 %v12926_v21  ;;  %7579 = vmatprep.subr.bf16.mxu0 %v12933_v25  ;;  %v12965_v25 = vcombine.high %v5851_v32, %v5855_v24 }
 0x5d8   :  { %7725 = vmatprep.subr.bf16.mxu1 %v12935_v51  ;;  %v12967_v51 = vcombine.high %v5852_v44, %v5856_v43 }
 0x5da   :  { %7580 = vmatpush1.bf16.msra.mxu0 %v12932_v52  ;;  %v12964_v52 = vcombine.low %v5851_v32, %v5855_v24  ;;  %v5879_v32 = vld [vmem:[#allocation9 + $0xcb0] sm:$0xff] }
 0x5db   :  { %7726 = vmatpush1.bf16.msra.mxu1 %v12934_v58  ;;  %7581 = vmatprep.subr.bf16.mxu0 %v12941_v59  ;;  %v12966_v59 = vcombine.low %v5852_v44, %v5856_v43  ;;  %v12980_v44 = vcombine.low %v5867_v7, %v5871_v20 }
 0x5dc   :  { %7727 = vmatprep.subr.bf16.mxu1 %v12943_v60 }
 0x5de   :  { %7582 = vmatpush1.bf16.msra.mxu0 %v12940_v63  ;;  %v5182_v17 = vpop.f32.mrb[72].mxu0  ;;  %v12975_v63 = vcombine.high %v5860_v26, %v5864_v54 }
 0x5df   :  { %7728 = vmatpush1.bf16.msra.mxu1 %v12942_v6  ;;  %7583 = vmatprep.subr.bf16.mxu0 %v12949_v1  ;;  %v5255_v5 = vpop.f32.mrb[72].mxu1  ;;  %v5184_v33 = vpop.f32.mrb[73].mxu0 }
 0x5e0   :  { %7729 = vmatprep.subr.bf16.mxu1 %v12951_v28  ;;  %v5257_v29 = vpop.f32.mrb[73].mxu1  ;;  %v5186_v30 = vpop.f32.mrb[74].mxu0 }
 0x5e1   :  { %v15907_v56 = vpack.c.bf16 %v5186_v30, %v5182_v17  ;;  %v5259_v22 = vpop.f32.mrb[74].mxu1  ;;  %v5188_v41 = vpop.f32.mrb[75].mxu0  ;;  %v5868_v17 = vld [vmem:[#allocation9 + $0xc58] sm:$0xff] }
 0x5e2   :  { %7584 = vmatpush1.bf16.msra.mxu0 %v12948_v35  ;;  %v15909_v18 = vpack.c.bf16 %v5259_v22, %v5255_v5  ;;  %v15911_v36 = vpack.c.bf16 %v5188_v41, %v5184_v33  ;;  %v5261_v48 = vpop.f32.mrb[75].mxu1  ;;  %v12972_v5 = vcombine.low %v5859_v38, %v5863_v40  ;;  %v5876_v22 = vld [vmem:[#allocation9 + $0xc98] sm:$0xff] }
 0x5e3   :  { %7730 = vmatpush1.bf16.msra.mxu1 %v12950_v27  ;;  %7585 = vmatprep.subr.bf16.mxu0 %v12957_v23  ;;  %v15913_v21 = vpack.c.bf16 %v5261_v48, %v5257_v29  ;;  %v5872_v27 = vld [vmem:[#allocation9 + $0xc78] sm:$0xff]  ;;  %v12974_v23 = vcombine.low %v5860_v26, %v5864_v54  ;;  %v12981_v29 = vcombine.high %v5867_v7, %v5871_v20  ;;  %v5883_v54 = vld [vmem:[#allocation9 + $0xcd0] sm:$0xff] }
 0x5e4   :  { %7731 = vmatprep.subr.bf16.mxu1 %v12959_v0  ;;  %v12983_v30 = vcombine.high %v5868_v17, %v5872_v27  ;;  %v5875_v0 = vld [vmem:[#allocation9 + $0xc90] sm:$0xff]  ;;  %v5880_v41 = vld [vmem:[#allocation9 + $0xcb8] sm:$0xff]  ;;  %v12982_v48 = vcombine.low %v5868_v17, %v5872_v27 }
 0x5e5   :  { %v12991_v40 = vcombine.high %v5876_v22, %v5880_v41  ;;  %v5895_v7 = vld [vmem:[#allocation9 + $0xd30] sm:$0xff]  ;;  %v5896_v17 = vld [vmem:[#allocation9 + $0xd38] sm:$0xff] }
 0x5e6   :  { %7586 = vmatpush1.bf16.msra.mxu0 %v12956_v34  ;;  %v5192_v58 = vpop.f32.mrb[76].mxu0 }
 0x5e7   :  { %7732 = vmatpush1.bf16.msra.mxu1 %v12958_v37  ;;  %7587 = vmatprep.subr.bf16.mxu0 %v12965_v25  ;;  %v5265_v60 = vpop.f32.mrb[76].mxu1  ;;  %v5194_v61 = vpop.f32.mrb[77].mxu0 }
 0x5e8   :  { %7733 = vmatprep.subr.bf16.mxu1 %v12967_v51  ;;  %v5267_v46 = vpop.f32.mrb[77].mxu1  ;;  %v5196_v19 = vpop.f32.mrb[78].mxu0  ;;  %v12989_v51 = vcombine.high %v5875_v0, %v5879_v32 }
 0x5e9   :  { %v15915_v6 = vpack.c.bf16 %v5196_v19, %v5192_v58  ;;  %v5269_v1 = vpop.f32.mrb[78].mxu1  ;;  %v5198_v28 = vpop.f32.mrb[79].mxu0  ;;  %v12990_v19 = vcombine.low %v5876_v22, %v5880_v41 }
 0x5ea   :  { %7588 = vmatpush1.bf16.msra.mxu0 %v12964_v52  ;;  %v15917_v42 = vpack.c.bf16 %v5269_v1, %v5265_v60  ;;  %v15919_v3 = vpack.c.bf16 %v5198_v28, %v5194_v61  ;;  %v5271_v35 = vpop.f32.mrb[79].mxu1  ;;  %v5887_v52 = vld [vmem:[#allocation9 + $0xcf0] sm:$0xff]  ;;  %v5884_v60 = vld [vmem:[#allocation9 + $0xcd8] sm:$0xff] }
 0x5eb   :  { %7734 = vmatpush1.bf16.msra.mxu1 %v12966_v59  ;;  %7630 = vmatprep.subr.bf16.mxu0 %v12973_v62  ;;  %v15921_v33 = vpack.c.bf16 %v5271_v35, %v5267_v46  ;;  %v5888_v61 = vld [vmem:[#allocation9 + $0xcf8] sm:$0xff]  ;;  %v12988_v62 = vcombine.low %v5875_v0, %v5879_v32  ;;  %v5891_v28 = vld [vmem:[#allocation9 + $0xd10] sm:$0xff]  ;;  %v12996_v27 = vcombine.low %v5883_v54, %v5887_v52 }
 0x5ec   :  { %7776 = vmatprep.subr.bf16.mxu1 %v12975_v63  ;;  %v12997_v63 = vcombine.high %v5883_v54, %v5887_v52  ;;  %v12999_v1 = vcombine.high %v5884_v60, %v5888_v61  ;;  %v5892_v35 = vld [vmem:[#allocation9 + $0xd18] sm:$0xff]  ;;  %v13005_v32 = vcombine.high %v5891_v28, %v5895_v7  ;;  %v5907_v52 = vld [vmem:[#allocation9 + $0xd90] sm:$0xff] }
 0x5ed   :  { %7590 = vmatmul.mubr.bf16.vlgmr.msra.gmra.mrb[120].mxu0 %v15731_v39  ;;  %v13007_v22 = vcombine.high %v5892_v35, %v5896_v17 }
 0x5ee   :  { %7736 = vmatmul.mubr.bf16.vlgmr.msra.gmra.mrb[120].mxu1 %v15731_v39  ;;  %7599 = vmatprep.mubr.bf16.mxu0 %v15755_v14  ;;  %v5202_v24 = vpop.f32.mrb[80].mxu0 }
 0x5ef   :  { %7631 = vmatpush1.bf16.msra.mxu0 %v12972_v5  ;;  %7745 = vmatprep.mubr.bf16.mxu1 %v15755_v14  ;;  %v5275_v43 = vpop.f32.mrb[80].mxu1  ;;  %v5204_v34 = vpop.f32.mrb[81].mxu0 }
 0x5f0   :  { %7777 = vmatpush1.bf16.msra.mxu1 %v12974_v23  ;;  %7632 = vmatprep.subr.bf16.mxu0 %v12981_v29  ;;  %v5277_v37 = vpop.f32.mrb[81].mxu1  ;;  %v5206_v25 = vpop.f32.mrb[82].mxu0  ;;  %v12998_v29 = vcombine.low %v5884_v60, %v5888_v61  ;;  %v5908_v61 = vld [vmem:[#allocation9 + $0xd98] sm:$0xff] }
 0x5f1   :  { %7778 = vmatprep.subr.bf16.mxu1 %v12983_v30  ;;  %v15927_v38 = vpack.c.bf16 %v5206_v25, %v5202_v24  ;;  %v5279_v39 = vpop.f32.mrb[82].mxu1  ;;  %v5208_v26 = vpop.f32.mrb[83].mxu0  ;;  %v5904_v25 = vld [vmem:[#allocation9 + $0xd78] sm:$0xff] }
 0x5f2   :  { %v15929_v58 = vpack.c.bf16 %v5279_v39, %v5275_v43  ;;  %v15931_v14 = vpack.c.bf16 %v5208_v26, %v5204_v34  ;;  %v5281_v59 = vpop.f32.mrb[83].mxu1  ;;  %v5903_v43 = vld [vmem:[#allocation9 + $0xd70] sm:$0xff] }
 0x5f3   :  { %7633 = vmatpush1.bf16.msra.mxu0 %v12980_v44  ;;  %v15933_v46 = vpack.c.bf16 %v5281_v59, %v5277_v37  ;;  %v5899_v44 = vld [vmem:[#allocation9 + $0xd50] sm:$0xff]  ;;  %v5900_v37 = vld [vmem:[#allocation9 + $0xd58] sm:$0xff] }
 0x5f4   :  { %7779 = vmatpush1.bf16.msra.mxu1 %v12982_v48  ;;  %7634 = vmatprep.subr.bf16.mxu0 %v12989_v51  ;;  %v13004_v51 = vcombine.low %v5891_v28, %v5895_v7  ;;  %v13013_v26 = vcombine.high %v5899_v44, %v5903_v43  ;;  %v13015_v54 = vcombine.high %v5900_v37, %v5904_v25  ;;  %v5911_v59 = vld [vmem:[#allocation9 + $0xdb0] sm:$0xff] }
 0x5f5   :  { %7600 = vmatmul.mubr.bf16.gmra.mrb[124].mxu0 %v15751_v16  ;;  %7780 = vmatprep.subr.bf16.mxu1 %v12991_v40  ;;  %v13006_v40 = vcombine.low %v5892_v35, %v5896_v17  ;;  %v13014_v28 = vcombine.low %v5900_v37, %v5904_v25  ;;  %v13021_v35 = vcombine.high %v5907_v52, %v5911_v59  ;;  %v5923_v37 = vld [vmem:[#allocation9 + $0xe10] sm:$0xff] }
 0x5f6   :  { %7746 = vmatmul.mubr.bf16.gmra.mrb[124].mxu1 %v15751_v16  ;;  %7609 = vmatprep.mubr.bf16.mxu0 %v15775_v31  ;;  %v5212_v20 = vpop.f32.mrb[84].mxu0  ;;  %v5927_v25 = vld [vmem:[#allocation9 + $0xe30] sm:$0xff] }
 0x5f7   :  { %7635 = vmatpush1.bf16.msra.mxu0 %v12988_v62  ;;  %7755 = vmatprep.mubr.bf16.mxu1 %v15775_v31  ;;  %v5285_v5 = vpop.f32.mrb[84].mxu1  ;;  %v5214_v23 = vpop.f32.mrb[85].mxu0  ;;  %v5912_v62 = vld [vmem:[#allocation9 + $0xdb8] sm:$0xff] }
 0x5f8   :  { %7781 = vmatpush1.bf16.msra.mxu1 %v12990_v19  ;;  %7636 = vmatprep.subr.bf16.mxu0 %v12997_v63  ;;  %v5287_v30 = vpop.f32.mrb[85].mxu1  ;;  %v5216_v0 = vpop.f32.mrb[86].mxu0  ;;  %v13012_v19 = vcombine.low %v5899_v44, %v5903_v43  ;;  %v13022_v44 = vcombine.low %v5908_v61, %v5912_v62 }
 0x5f9   :  { %7782 = vmatprep.subr.bf16.mxu1 %v12999_v1  ;;  %v15939_v24 = vpack.c.bf16 %v5216_v0, %v5212_v20  ;;  %v5289_v16 = vpop.f32.mrb[86].mxu1  ;;  %v5218_v41 = vpop.f32.mrb[87].mxu0 }
 0x5fa   :  { %v15941_v34 = vpack.c.bf16 %v5289_v16, %v5285_v5  ;;  %v15943_v31 = vpack.c.bf16 %v5218_v41, %v5214_v23  ;;  %v5291_v48 = vpop.f32.mrb[87].mxu1  ;;  %v5915_v23 = vld [vmem:[#allocation9 + $0xdd0] sm:$0xff]  ;;  %v5920_v16 = vld [vmem:[#allocation9 + $0xdf8] sm:$0xff] }
 0x5fb   :  { %7637 = vmatpush1.bf16.msra.mxu0 %v12996_v27  ;;  %v15945_v39 = vpack.c.bf16 %v5291_v48, %v5287_v30  ;;  %v13023_v27 = vcombine.high %v5908_v61, %v5912_v62  ;;  %v13037_v61 = vcombine.high %v5923_v37, %v5927_v25 }
 0x5fc   :  { %7783 = vmatpush1.bf16.msra.mxu1 %v12998_v29  ;;  %7638 = vmatprep.subr.bf16.mxu0 %v13005_v32  ;;  %v5919_v29 = vld [vmem:[#allocation9 + $0xdf0] sm:$0xff]  ;;  %v5916_v32 = vld [vmem:[#allocation9 + $0xdd8] sm:$0xff] }
 0x5fd   :  { %7610 = vmatmul.mubr.bf16.gmra.mrb[128].mxu0 %v15771_v45  ;;  %7784 = vmatprep.subr.bf16.mxu1 %v13007_v22  ;;  %v13020_v22 = vcombine.low %v5907_v52, %v5911_v59  ;;  %v13029_v43 = vcombine.high %v5915_v23, %v5919_v29  ;;  %v13031_v48 = vcombine.high %v5916_v32, %v5920_v16 }
 0x5fe   :  { %7756 = vmatmul.mubr.bf16.gmra.mrb[128].mxu1 %v15771_v45  ;;  %7619 = vmatprep.mubr.bf16.mxu0 %v15795_v4  ;;  %v5344_v60 = vpop.f32.mrb[88].mxu0 }
 0x5ff   :  { %7639 = vmatpush1.bf16.msra.mxu0 %v13004_v51  ;;  %7765 = vmatprep.mubr.bf16.mxu1 %v15795_v4  ;;  %v5417_v63 = vpop.f32.mrb[88].mxu1  ;;  %v5346_v1 = vpop.f32.mrb[89].mxu0  ;;  %v5924_v51 = vld [vmem:[#allocation9 + $0xe18] sm:$0xff] }
 0x600   :  { %7785 = vmatpush1.bf16.msra.mxu1 %v13006_v40  ;;  %7640 = vmatprep.subr.bf16.mxu0 %v13013_v26  ;;  %v5419_v7 = vpop.f32.mrb[89].mxu1  ;;  %v5348_v20 = vpop.f32.mrb[90].mxu0  ;;  %v5928_v40 = vld [vmem:[#allocation9 + $0xe38] sm:$0xff] }
 0x601   :  { %7786 = vmatprep.subr.bf16.mxu1 %v13015_v54  ;;  %v15951_v17 = vpack.c.bf16 %v5348_v20, %v5344_v60  ;;  %v5421_v45 = vpop.f32.mrb[90].mxu1  ;;  %v5350_v5 = vpop.f32.mrb[91].mxu0  ;;  %v13028_v54 = vcombine.low %v5915_v23, %v5919_v29  ;;  %v13030_v60 = vcombine.low %v5916_v32, %v5920_v16  ;;  %v13036_v23 = vcombine.low %v5923_v37, %v5927_v25 }
 0x602   :  { %v15953_v30 = vpack.c.bf16 %v5421_v45, %v5417_v63  ;;  %v15955_v4 = vpack.c.bf16 %v5350_v5, %v5346_v1  ;;  %v5423_v0 = vpop.f32.mrb[91].mxu1  ;;  %v13039_v63 = vcombine.high %v5924_v51, %v5928_v40  ;;  %v5935_v1 = vld [vmem:[#allocation9 + $0xe70] sm:$0xff]  ;;  %v5936_v45 = vld [vmem:[#allocation9 + $0xe78] sm:$0xff] }
 0x603   :  { %7641 = vmatpush1.bf16.msra.mxu0 %v13012_v19  ;;  %v15957_v41 = vpack.c.bf16 %v5423_v0, %v5419_v7  ;;  %v13038_v0 = vcombine.low %v5924_v51, %v5928_v40  ;;  %v5947_v40 = vld [vmem:[#allocation9 + $0xed0] sm:$0xff] }
 0x604   :  { %7787 = vmatpush1.bf16.msra.mxu1 %v13014_v28  ;;  %7642 = vmatprep.subr.bf16.mxu0 %v13021_v35  ;;  %v5932_v35 = vld [vmem:[#allocation9 + $0xe58] sm:$0xff] }
 0x605   :  { %7620 = vmatmul.mubr.bf16.gmra.mrb[132].mxu0 %v15791_v8  ;;  %7788 = vmatprep.subr.bf16.mxu1 %v13023_v27  ;;  %v13047_v16 = vcombine.high %v5932_v35, %v5936_v45  ;;  %v13046_v37 = vcombine.low %v5932_v35, %v5936_v45 }
 0x606   :  { %7766 = vmatmul.mubr.bf16.gmra.mrb[132].mxu1 %v15791_v8  ;;  %7662 = vmatprep.mubr.bf16.mxu0 %v15737_v57  ;;  %v5354_v26 = vpop.f32.mrb[92].mxu0  ;;  %v5931_v8 = vld [vmem:[#allocation9 + $0xe50] sm:$0xff] }
 0x607   :  { %7643 = vmatpush1.bf16.msra.mxu0 %v13020_v22  ;;  %7808 = vmatprep.mubr.bf16.mxu1 %v15737_v57  ;;  %v5427_v52 = vpop.f32.mrb[92].mxu1  ;;  %v5356_v59 = vpop.f32.mrb[93].mxu0  ;;  %v13045_v32 = vcombine.high %v5931_v8, %v5935_v1  ;;  %v5939_v22 = vld [vmem:[#allocation9 + $0xe90] sm:$0xff] }
 0x608   :  { %7789 = vmatpush1.bf16.msra.mxu1 %v13022_v44  ;;  %7644 = vmatprep.subr.bf16.mxu0 %v13029_v43  ;;  %v5429_v62 = vpop.f32.mrb[93].mxu1  ;;  %v5358_v19 = vpop.f32.mrb[94].mxu0  ;;  %v5943_v44 = vld [vmem:[#allocation9 + $0xeb0] sm:$0xff]  ;;  %v5940_v43 = vld [vmem:[#allocation9 + $0xe98] sm:$0xff] }
 0x609   :  { %7790 = vmatprep.subr.bf16.mxu1 %v13031_v48  ;;  %v15963_v28 = vpack.c.bf16 %v5358_v19, %v5354_v26  ;;  %v5431_v7 = vpop.f32.mrb[94].mxu1  ;;  %v5360_v20 = vpop.f32.mrb[95].mxu0  ;;  %v5944_v48 = vld [vmem:[#allocation9 + $0xeb8] sm:$0xff]  ;;  %v13053_v25 = vcombine.high %v5939_v22, %v5943_v44  ;;  %v13052_v35 = vcombine.low %v5939_v22, %v5943_v44 }
 0x60a   :  { %v15965_v57 = vpack.c.bf16 %v5431_v7, %v5427_v52  ;;  %v15967_v27 = vpack.c.bf16 %v5360_v20, %v5356_v59  ;;  %v5433_v5 = vpop.f32.mrb[95].mxu1  ;;  %v13044_v52 = vcombine.low %v5931_v8, %v5935_v1  ;;  %v13055_v51 = vcombine.high %v5940_v43, %v5944_v48  ;;  %v5948_v20 = vld [vmem:[#allocation9 + $0xed8] sm:$0xff] }
 0x60b   :  { %7645 = vmatpush1.bf16.msra.mxu0 %v13028_v54  ;;  %v15969_v29 = vpack.c.bf16 %v5433_v5, %v5429_v62  ;;  %v5952_v5 = vld [vmem:[#allocation9 + $0xef8] sm:$0xff] }
 0x60c   :  { %7791 = vmatpush1.bf16.msra.mxu1 %v13030_v60  ;;  %7646 = vmatprep.subr.bf16.mxu0 %v13037_v61  ;;  %v5951_v61 = vld [vmem:[#allocation9 + $0xef0] sm:$0xff]  ;;  %v13062_v22 = vcombine.low %v5948_v20, %v5952_v5 }
 0x60d   :  { %7792 = vmatprep.subr.bf16.mxu1 %v13039_v63 }
 0x60e   :  { %v5364_v26 = vpop.f32.mrb[96].mxu0 }
 0x60f   :  { %7647 = vmatpush1.bf16.msra.mxu0 %v13036_v23  ;;  %v5437_v59 = vpop.f32.mrb[96].mxu1  ;;  %v5366_v19 = vpop.f32.mrb[97].mxu0 }
 0x610   :  { %7793 = vmatpush1.bf16.msra.mxu1 %v13038_v0  ;;  %7648 = vmatprep.subr.bf16.mxu0 %v13045_v32  ;;  %v5439_v54 = vpop.f32.mrb[97].mxu1  ;;  %v5368_v60 = vpop.f32.mrb[98].mxu0  ;;  %v13054_v0 = vcombine.low %v5940_v43, %v5944_v48  ;;  %v13061_v32 = vcombine.high %v5947_v40, %v5951_v61  ;;  %v13071_v43 = vcombine.high %v5956_v9, %v5960_v13  ;;  %v5963_v48 = vld [vmem:[#allocation9 + $0xf50] sm:$0xff] }
 0x611   :  { %7794 = vmatprep.subr.bf16.mxu1 %v13047_v16  ;;  %v15971_v62 = vpack.c.bf16 %v5368_v60, %v5364_v26  ;;  %v5441_v63 = vpop.f32.mrb[98].mxu1  ;;  %v5370_v7 = vpop.f32.mrb[99].mxu0  ;;  %v13063_v16 = vcombine.high %v5948_v20, %v5952_v5  ;;  %v5955_v26 = vld [vmem:[#allocation9 + $0xf10] sm:$0xff] }
 0x612   :  { %v15973_v23 = vpack.c.bf16 %v5441_v63, %v5437_v59  ;;  %v15975_v8 = vpack.c.bf16 %v5370_v7, %v5366_v19  ;;  %v5443_v1 = vpop.f32.mrb[99].mxu1  ;;  %v5959_v60 = vld [vmem:[#allocation9 + $0xf30] sm:$0xff]  ;;  %v13060_v59 = vcombine.low %v5947_v40, %v5951_v61 }
 0x613   :  { %7649 = vmatpush1.bf16.msra.mxu0 %v13044_v52  ;;  %v15977_v45 = vpack.c.bf16 %v5443_v1, %v5439_v54  ;;  %v13069_v44 = vcombine.high %v5955_v26, %v5959_v60  ;;  %v5964_v1 = vld [vmem:[#allocation9 + $0xf58] sm:$0xff]  ;;  %v13068_v20 = vcombine.low %v5955_v26, %v5959_v60  ;;  %v5979_v60 = vld [vmem:[#allocation9 + $0xfd0] sm:$0xff] }
 0x614   :  { %16344 = vst [vmem:[#allocation21_spill] sm:$0xff] %v15973_v23  ;;  %7795 = vmatpush1.bf16.msra.mxu1 %v13046_v37  ;;  %7650 = vmatprep.subr.bf16.mxu0 %v13053_v25  ;;  %v5967_v25 = vld [vmem:[#allocation9 + $0xf70] sm:$0xff]  ;;  %v5976_v23 = vld [vmem:[#allocation9 + $0xfb8] sm:$0xff] }
 0x615   :  { %7796 = vmatprep.subr.bf16.mxu1 %v13055_v51  ;;  %v13087_v26 = vcombine.high %v5972_v10, %v5976_v23 }
 0x616   :  { %v5374_v12 = vpop.f32.mrb[100].mxu0 }
 0x617   :  { %7651 = vmatpush1.bf16.msra.mxu0 %v13052_v35  ;;  %v5447_v19 = vpop.f32.mrb[100].mxu1  ;;  %v5376_v63 = vpop.f32.mrb[101].mxu0 }
 0x618   :  { %7797 = vmatpush1.bf16.msra.mxu1 %v13054_v0  ;;  %7652 = vmatprep.subr.bf16.mxu0 %v13061_v32  ;;  %v5449_v52 = vpop.f32.mrb[101].mxu1  ;;  %v5378_v37 = vpop.f32.mrb[102].mxu0  ;;  %v13070_v0 = vcombine.low %v5956_v9, %v5960_v13  ;;  %v13077_v32 = vcombine.high %v5963_v48, %v5967_v25  ;;  %v13086_v13 = vcombine.low %v5972_v10, %v5976_v23  ;;  %v5485_v10 = vld [vmem:[#allocation9 + $0x68] sm:$0xff] }
 0x619   :  { %7798 = vmatprep.subr.bf16.mxu1 %v13063_v16  ;;  %v15979_v54 = vpack.c.bf16 %v5378_v37, %v5374_v12  ;;  %v5451_v51 = vpop.f32.mrb[102].mxu1  ;;  %v5380_v7 = vpop.f32.mrb[103].mxu0  ;;  %v13079_v12 = vcombine.high %v5964_v1, %v5968_v2  ;;  %v5971_v16 = vld [vmem:[#allocation9 + $0xf90] sm:$0xff] }
 0x61a   :  { %v15981_v35 = vpack.c.bf16 %v5451_v51, %v5447_v19  ;;  %v15983_v40 = vpack.c.bf16 %v5380_v7, %v5376_v63  ;;  %v5453_v61 = vpop.f32.mrb[103].mxu1  ;;  %v5975_v37 = vld [vmem:[#allocation9 + $0xfb0] sm:$0xff]  ;;  %v13076_v19 = vcombine.low %v5963_v48, %v5967_v25  ;;  %v13078_v63 = vcombine.low %v5964_v1, %v5968_v2  ;;  %v5472_v7 = vld [vmem:[#allocation9] sm:$0xff]  ;;  %v5473_v25 = vld [vmem:[#allocation9 + $0x8] sm:$0xff] }
 0x61b   :  { %7653 = vmatpush1.bf16.msra.mxu0 %v13060_v59  ;;  %v15985_v5 = vpack.c.bf16 %v5453_v61, %v5449_v52  ;;  %v13085_v51 = vcombine.high %v5971_v16, %v5975_v37  ;;  %v5983_v59 = vld [vmem:[#allocation9 + $0xff0] sm:$0xff]  ;;  %v13084_v9 = vcombine.low %v5971_v16, %v5975_v37  ;;  %v5476_v48 = vld [vmem:[#allocation9 + $0x20] sm:$0xff]  ;;  %v5477_v61 = vld [vmem:[#allocation9 + $0x28] sm:$0xff] }
 0x61c   :  { %7799 = vmatpush1.bf16.msra.mxu1 %v13062_v22  ;;  %7654 = vmatprep.subr.bf16.mxu0 %v13069_v44  ;;  %v5980_v22 = vld [vmem:[#allocation9 + $0xfd8] sm:$0xff]  ;;  %v13093_v52 = vcombine.high %v5979_v60, %v5983_v59  ;;  %v13092_v2 = vcombine.low %v5979_v60, %v5983_v59  ;;  %v5481_v16 = vld [vmem:[#allocation9 + $0x48] sm:$0xff]  ;;  %v13096_v23 = vcombine.low %v5472_v7, %v5476_v48 }
 0x61d   :  { %7800 = vmatprep.subr.bf16.mxu1 %v13071_v43  ;;  %v5984_v44 = vld [vmem:[#allocation9 + $0xff8] sm:$0xff]  ;;  %v13098_v37 = vcombine.low %v5473_v25, %v5477_v61  ;;  %v5489_v60 = vld [vmem:[#allocation9 + $0x88] sm:$0xff] }
 0x61e   :  { %v13095_v43 = vcombine.high %v5980_v22, %v5984_v44  ;;  %v13094_v1 = vcombine.low %v5980_v22, %v5984_v44  ;;  %v5493_v59 = vld [vmem:[#allocation9 + $0xa8] sm:$0xff]  ;;  %v13106_v44 = vcombine.low %v5481_v16, %v5485_v10 }
 0x61f   :  { %7655 = vmatpush1.bf16.msra.mxu0 %v13068_v20  ;;  %v13097_v20 = vcombine.high %v5472_v7, %v5476_v48  ;;  %v5497_v7 = vld [vmem:[#allocation9 + $0xc8] sm:$0xff] }
 0x620   :  { %7801 = vmatpush1.bf16.msra.mxu1 %v13070_v0  ;;  %7656 = vmatprep.subr.bf16.mxu0 %v13077_v32  ;;  %v13099_v0 = vcombine.high %v5473_v25, %v5477_v61  ;;  %v5480_v32 = vld [vmem:[#allocation9 + $0x40] sm:$0xff]  ;;  %v5501_v48 = vld [vmem:[#allocation9 + $0xe8] sm:$0xff]  ;;  %v13114_v25 = vcombine.low %v5489_v60, %v5493_v59 }
 0x621   :  { %7802 = vmatprep.subr.bf16.mxu1 %v13079_v12  ;;  %v5484_v12 = vld [vmem:[#allocation9 + $0x60] sm:$0xff] }
 0x622   :  { %v13104_v22 = vcombine.low %v5480_v32, %v5484_v12 }
 0x623   :  { %7657 = vmatpush1.bf16.msra.mxu0 %v13076_v19  ;;  %v13105_v19 = vcombine.high %v5480_v32, %v5484_v12  ;;  %v13122_v12 = vcombine.low %v5497_v7, %v5501_v48 }
 0x624   :  { %7803 = vmatpush1.bf16.msra.mxu1 %v13078_v63  ;;  %7658 = vmatprep.subr.bf16.mxu0 %v13085_v51  ;;  %v13107_v63 = vcombine.high %v5481_v16, %v5485_v10  ;;  %v5488_v51 = vld [vmem:[#allocation9 + $0x80] sm:$0xff] }
 0x625   :  { %7804 = vmatprep.subr.bf16.mxu1 %v13087_v26  ;;  %v5492_v26 = vld [vmem:[#allocation9 + $0xa0] sm:$0xff] }
 0x627   :  { %7659 = vmatpush1.bf16.msra.mxu0 %v13084_v9  ;;  %v13113_v9 = vcombine.high %v5488_v51, %v5492_v26 }
 0x628   :  { %7805 = vmatpush1.bf16.msra.mxu1 %v13086_v13  ;;  %7660 = vmatprep.subr.bf16.mxu0 %v13093_v52  ;;  %v13115_v13 = vcombine.high %v5489_v60, %v5493_v59  ;;  %v5496_v52 = vld [vmem:[#allocation9 + $0xc0] sm:$0xff] }
 0x629   :  { %7806 = vmatprep.subr.bf16.mxu1 %v13095_v43  ;;  %v5500_v43 = vld [vmem:[#allocation9 + $0xe0] sm:$0xff] }
 0x62a   :  { %v13121_v61 = vcombine.high %v5496_v52, %v5500_v43  ;;  %v13120_v32 = vcombine.low %v5496_v52, %v5500_v43  ;;  %v5520_v60 = vld [vmem:[#allocation9 + $0x180] sm:$0xff] }
 0x62b   :  { %7661 = vmatpush1.bf16.msra.mxu0 %v13092_v2  ;;  %v5504_v2 = vld [vmem:[#allocation9 + $0x100] sm:$0xff] }
 0x62c   :  { %7807 = vmatpush1.bf16.msra.mxu1 %v13094_v1  ;;  %9129 = vmatprep.subr.bf16.mxu0 %v13097_v20  ;;  %v5508_v1 = vld [vmem:[#allocation9 + $0x120] sm:$0xff]  ;;  %v5505_v20 = vld [vmem:[#allocation9 + $0x108] sm:$0xff] }
 0x62d   :  { %9275 = vmatprep.subr.bf16.mxu1 %v13099_v0  ;;  %v5509_v0 = vld [vmem:[#allocation9 + $0x128] sm:$0xff]  ;;  %v13129_v16 = vcombine.high %v5504_v2, %v5508_v1  ;;  %v5524_v59 = vld [vmem:[#allocation9 + $0x1a0] sm:$0xff] }
 0x62e   :  { %7663 = vmatmul.mubr.bf16.vlgmr.msra.gmra.mrb[120].mxu0 %v15733_v49  ;;  %v13131_v10 = vcombine.high %v5505_v20, %v5509_v0  ;;  %v13145_v52 = vcombine.high %v5520_v60, %v5524_v59 }
 0x62f   :  { %7809 = vmatmul.mubr.bf16.vlgmr.msra.gmra.mrb[120].mxu1 %v15733_v49  ;;  %7672 = vmatprep.mubr.bf16.mxu0 %v15757_v47  ;;  %v13112_v49 = vcombine.low %v5488_v51, %v5492_v26  ;;  %v13130_v51 = vcombine.low %v5505_v20, %v5509_v0  ;;  %v5537_v20 = vld [vmem:[#allocation9 + $0x208] sm:$0xff] }
 0x630   :  { %7818 = vmatprep.mubr.bf16.mxu1 %v15757_v47  ;;  %9130 = vmatpush1.bf16.msra.mxu0 %v13096_v23  ;;  %v13123_v47 = vcombine.high %v5497_v7, %v5501_v48  ;;  %v5512_v23 = vld [vmem:[#allocation9 + $0x140] sm:$0xff]  ;;  %v5541_v0 = vld [vmem:[#allocation9 + $0x228] sm:$0xff] }
 0x631   :  { %9276 = vmatpush1.bf16.msra.mxu1 %v13098_v37  ;;  %9131 = vmatprep.subr.bf16.mxu0 %v13105_v19  ;;  %v5516_v37 = vld [vmem:[#allocation9 + $0x160] sm:$0xff]  ;;  %v5513_v19 = vld [vmem:[#allocation9 + $0x148] sm:$0xff] }
 0x632   :  { %9277 = vmatprep.subr.bf16.mxu1 %v13107_v63  ;;  %v5517_v63 = vld [vmem:[#allocation9 + $0x168] sm:$0xff]  ;;  %v13137_v26 = vcombine.high %v5512_v23, %v5516_v37  ;;  %v5528_v7 = vld [vmem:[#allocation9 + $0x1c0] sm:$0xff] }
 0x633   :  { %v5532_v48 = vld [vmem:[#allocation9 + $0x1e0] sm:$0xff] }
 0x634   :  { %9132 = vmatpush1.bf16.msra.mxu0 %v13104_v22  ;;  %v5521_v22 = vld [vmem:[#allocation9 + $0x188] sm:$0xff] }
 0x635   :  { %9278 = vmatpush1.bf16.msra.mxu1 %v13106_v44  ;;  %9133 = vmatprep.subr.bf16.mxu0 %v13113_v9  ;;  %v5525_v44 = vld [vmem:[#allocation9 + $0x1a8] sm:$0xff]  ;;  %v13136_v9 = vcombine.low %v5512_v23, %v5516_v37  ;;  %v5544_v23 = vld [vmem:[#allocation9 + $0x240] sm:$0xff] }
 0x636   :  { %7673 = vmatmul.mubr.bf16.gmra.mrb[124].mxu0 %v15753_v53  ;;  %9279 = vmatprep.subr.bf16.mxu1 %v13115_v13  ;;  %v13138_v13 = vcombine.low %v5513_v19, %v5517_v63  ;;  %v13147_v43 = vcombine.high %v5521_v22, %v5525_v44  ;;  %v5548_v37 = vld [vmem:[#allocation9 + $0x260] sm:$0xff] }
 0x637   :  { %7819 = vmatmul.mubr.bf16.gmra.mrb[124].mxu1 %v15753_v53  ;;  %7682 = vmatprep.mubr.bf16.mxu0 %v15777_v15  ;;  %v13128_v53 = vcombine.low %v5504_v2, %v5508_v1  ;;  %v5536_v2 = vld [vmem:[#allocation9 + $0x200] sm:$0xff] }
 0x638   :  { %7828 = vmatprep.mubr.bf16.mxu1 %v15777_v15  ;;  %9134 = vmatpush1.bf16.msra.mxu0 %v13112_v49  ;;  %v13139_v15 = vcombine.high %v5513_v19, %v5517_v63  ;;  %v5529_v49 = vld [vmem:[#allocation9 + $0x1c8] sm:$0xff]  ;;  %v5540_v1 = vld [vmem:[#allocation9 + $0x220] sm:$0xff] }
 0x639   :  { %9280 = vmatpush1.bf16.msra.mxu1 %v13114_v25  ;;  %9135 = vmatprep.subr.bf16.mxu0 %v13121_v61  ;;  %v5533_v25 = vld [vmem:[#allocation9 + $0x1e8] sm:$0xff]  ;;  %v13146_v61 = vcombine.low %v5521_v22, %v5525_v44  ;;  %v13168_v44 = vcombine.low %v5544_v23, %v5548_v37 }
 0x63a   :  { %9281 = vmatprep.subr.bf16.mxu1 %v13123_v47  ;;  %v13153_v47 = vcombine.high %v5528_v7, %v5532_v48  ;;  %v5545_v19 = vld [vmem:[#allocation9 + $0x248] sm:$0xff] }
 0x63b   :  { %v5549_v63 = vld [vmem:[#allocation9 + $0x268] sm:$0xff] }
 0x63c   :  { %9136 = vmatpush1.bf16.msra.mxu0 %v13120_v32  ;;  %v13152_v32 = vcombine.low %v5528_v7, %v5532_v48  ;;  %v5557_v22 = vld [vmem:[#allocation9 + $0x2a8] sm:$0xff]  ;;  %v5564_v7 = vld [vmem:[#allocation9 + $0x2e0] sm:$0xff] }
 0x63d   :  { %9282 = vmatpush1.bf16.msra.mxu1 %v13122_v12  ;;  %9137 = vmatprep.subr.bf16.mxu0 %v13129_v16  ;;  %v13154_v12 = vcombine.low %v5529_v49, %v5533_v25  ;;  %v13161_v16 = vcombine.high %v5536_v2, %v5540_v1  ;;  %v5561_v48 = vld [vmem:[#allocation9 + $0x2c8] sm:$0xff] }
 0x63e   :  { %7683 = vmatmul.mubr.bf16.gmra.mrb[128].mxu0 %v15773_v55  ;;  %9283 = vmatprep.subr.bf16.mxu1 %v13131_v10  ;;  %v13163_v10 = vcombine.high %v5537_v20, %v5541_v0 }
 0x63f   :  { %7829 = vmatmul.mubr.bf16.gmra.mrb[128].mxu1 %v15773_v55  ;;  %7692 = vmatprep.mubr.bf16.mxu0 %v15797_v11  ;;  %v13144_v55 = vcombine.low %v5520_v60, %v5524_v59  ;;  %v5556_v60 = vld [vmem:[#allocation9 + $0x2a0] sm:$0xff]  ;;  %v5553_v59 = vld [vmem:[#allocation9 + $0x288] sm:$0xff] }
 0x640   :  { %7838 = vmatprep.mubr.bf16.mxu1 %v15797_v11  ;;  %9138 = vmatpush1.bf16.msra.mxu0 %v13128_v53  ;;  %v13155_v11 = vcombine.high %v5529_v49, %v5533_v25  ;;  %v13162_v53 = vcombine.low %v5537_v20, %v5541_v0  ;;  %v5565_v49 = vld [vmem:[#allocation9 + $0x2e8] sm:$0xff] }
 0x641   :  { %9284 = vmatpush1.bf16.msra.mxu1 %v13130_v51  ;;  %9139 = vmatprep.subr.bf16.mxu0 %v13137_v26  ;;  %v13169_v51 = vcombine.high %v5544_v23, %v5548_v37  ;;  %v13171_v26 = vcombine.high %v5545_v19, %v5549_v63  ;;  %v5573_v20 = vld [vmem:[#allocation9 + $0x328] sm:$0xff]  ;;  %v5580_v23 = vld [vmem:[#allocation9 + $0x360] sm:$0xff] }
 0x642   :  { %9285 = vmatprep.subr.bf16.mxu1 %v13139_v15  ;;  %v5552_v15 = vld [vmem:[#allocation9 + $0x280] sm:$0xff]  ;;  %v5577_v37 = vld [vmem:[#allocation9 + $0x348] sm:$0xff] }
 0x643   :  { %v13176_v25 = vcombine.low %v5552_v15, %v5556_v60 }
 0x644   :  { %9140 = vmatpush1.bf16.msra.mxu0 %v13136_v9  ;;  %v13170_v9 = vcombine.low %v5545_v19, %v5549_v63  ;;  %v5581_v19 = vld [vmem:[#allocation9 + $0x368] sm:$0xff] }
 0x645   :  { %9286 = vmatpush1.bf16.msra.mxu1 %v13138_v13  ;;  %9141 = vmatprep.subr.bf16.mxu0 %v13145_v52  ;;  %v13177_v13 = vcombine.high %v5552_v15, %v5556_v60  ;;  %v13179_v52 = vcombine.high %v5553_v59, %v5557_v22  ;;  %v5588_v15 = vld [vmem:[#allocation9 + $0x3a0] sm:$0xff]  ;;  %v5585_v60 = vld [vmem:[#allocation9 + $0x388] sm:$0xff] }
 0x646   :  { %7693 = vmatmul.mubr.bf16.gmra.mrb[132].mxu0 %v15793_v50  ;;  %9287 = vmatprep.subr.bf16.mxu1 %v13147_v43  ;;  %v5560_v43 = vld [vmem:[#allocation9 + $0x2c0] sm:$0xff] }
 0x647   :  { %7839 = vmatmul.mubr.bf16.gmra.mrb[132].mxu1 %v15793_v50  ;;  %9161 = vmatprep.mubr.bf16.mxu0 %v15911_v36  ;;  %v13160_v50 = vcombine.low %v5536_v2, %v5540_v1  ;;  %v5572_v2 = vld [vmem:[#allocation9 + $0x320] sm:$0xff]  ;;  %v5569_v1 = vld [vmem:[#allocation9 + $0x308] sm:$0xff]  ;;  %v13184_v0 = vcombine.low %v5560_v43, %v5564_v7 }
 0x648   :  { %9142 = vmatpush1.bf16.msra.mxu0 %v13144_v55  ;;  %9307 = vmatprep.mubr.bf16.mxu1 %v15911_v36  ;;  %v13178_v55 = vcombine.low %v5553_v59, %v5557_v22  ;;  %v5589_v59 = vld [vmem:[#allocation9 + $0x3a8] sm:$0xff] }
 0x649   :  { %9288 = vmatpush1.bf16.msra.mxu1 %v13146_v61  ;;  %9143 = vmatprep.subr.bf16.mxu0 %v13153_v47  ;;  %v13185_v61 = vcombine.high %v5560_v43, %v5564_v7  ;;  %v13187_v47 = vcombine.high %v5561_v48, %v5565_v49  ;;  %v5596_v43 = vld [vmem:[#allocation9 + $0x3e0] sm:$0xff]  ;;  %v5593_v7 = vld [vmem:[#allocation9 + $0x3c8] sm:$0xff] }
 0x64a   :  { %9289 = vmatprep.subr.bf16.mxu1 %v13155_v11  ;;  %v5568_v11 = vld [vmem:[#allocation9 + $0x300] sm:$0xff] }
 0x64b   :  { %v13192_v63 = vcombine.low %v5568_v11, %v5572_v2 }
 0x64c   :  { %9144 = vmatpush1.bf16.msra.mxu0 %v13152_v32  ;;  %v13186_v32 = vcombine.low %v5561_v48, %v5565_v49  ;;  %v5597_v48 = vld [vmem:[#allocation9 + $0x3e8] sm:$0xff] }
 0x64d   :  { %9290 = vmatpush1.bf16.msra.mxu1 %v13154_v12  ;;  %9145 = vmatprep.subr.bf16.mxu0 %v13161_v16  ;;  %v13193_v12 = vcombine.high %v5568_v11, %v5572_v2  ;;  %v13195_v16 = vcombine.high %v5569_v1, %v5573_v20  ;;  %v5604_v11 = vld [vmem:[#allocation9 + $0x420] sm:$0xff]  ;;  %v5601_v2 = vld [vmem:[#allocation9 + $0x408] sm:$0xff] }
 0x64e   :  { %9291 = vmatprep.subr.bf16.mxu1 %v13163_v10  ;;  %v5576_v10 = vld [vmem:[#allocation9 + $0x340] sm:$0xff] }
 0x64f   :  { %v13200_v22 = vcombine.low %v5576_v10, %v5580_v23 }
 0x650   :  { %9146 = vmatpush1.bf16.msra.mxu0 %v13160_v50  ;;  %v13194_v50 = vcombine.low %v5569_v1, %v5573_v20  ;;  %v5605_v1 = vld [vmem:[#allocation9 + $0x428] sm:$0xff] }
 0x651   :  { %9292 = vmatpush1.bf16.msra.mxu1 %v13162_v53  ;;  %9147 = vmatprep.subr.bf16.mxu0 %v13169_v51  ;;  %v13201_v53 = vcombine.high %v5576_v10, %v5580_v23  ;;  %v13203_v51 = vcombine.high %v5577_v37, %v5581_v19  ;;  %v5612_v10 = vld [vmem:[#allocation9 + $0x460] sm:$0xff]  ;;  %v5609_v23 = vld [vmem:[#allocation9 + $0x448] sm:$0xff] }
 0x652   :  { %9293 = vmatprep.subr.bf16.mxu1 %v13171_v26  ;;  %v5584_v26 = vld [vmem:[#allocation9 + $0x380] sm:$0xff] }
 0x653   :  { %v13208_v49 = vcombine.low %v5584_v26, %v5588_v15 }
 0x654   :  { %9148 = vmatpush1.bf16.msra.mxu0 %v13168_v44  ;;  %v13202_v44 = vcombine.low %v5577_v37, %v5581_v19  ;;  %v5613_v37 = vld [vmem:[#allocation9 + $0x468] sm:$0xff] }
 0x655   :  { %9294 = vmatpush1.bf16.msra.mxu1 %v13170_v9  ;;  %9149 = vmatprep.subr.bf16.mxu0 %v13177_v13  ;;  %v13209_v9 = vcombine.high %v5584_v26, %v5588_v15  ;;  %v13211_v13 = vcombine.high %v5585_v60, %v5589_v59  ;;  %v5620_v26 = vld [vmem:[#allocation9 + $0x4a0] sm:$0xff]  ;;  %v5617_v15 = vld [vmem:[#allocation9 + $0x488] sm:$0xff] }
 0x656   :  { %9295 = vmatprep.subr.bf16.mxu1 %v13179_v52  ;;  %v5592_v52 = vld [vmem:[#allocation9 + $0x3c0] sm:$0xff] }
 0x657   :  { %v13216_v20 = vcombine.low %v5592_v52, %v5596_v43 }
 0x658   :  { %9150 = vmatpush1.bf16.msra.mxu0 %v13176_v25  ;;  %v13210_v25 = vcombine.low %v5585_v60, %v5589_v59  ;;  %v5621_v60 = vld [vmem:[#allocation9 + $0x4a8] sm:$0xff] }
 0x659   :  { %9296 = vmatpush1.bf16.msra.mxu1 %v13178_v55  ;;  %9151 = vmatprep.subr.bf16.mxu0 %v13185_v61  ;;  %v13217_v55 = vcombine.high %v5592_v52, %v5596_v43  ;;  %v13219_v61 = vcombine.high %v5593_v7, %v5597_v48  ;;  %v5628_v52 = vld [vmem:[#allocation9 + $0x4e0] sm:$0xff]  ;;  %v5625_v43 = vld [vmem:[#allocation9 + $0x4c8] sm:$0xff] }
 0x65a   :  { %9297 = vmatprep.subr.bf16.mxu1 %v13187_v47  ;;  %v5600_v47 = vld [vmem:[#allocation9 + $0x400] sm:$0xff] }
 0x65b   :  { %v13224_v19 = vcombine.low %v5600_v47, %v5604_v11 }
 0x65c   :  { %9152 = vmatpush1.bf16.msra.mxu0 %v13184_v0  ;;  %v13218_v0 = vcombine.low %v5593_v7, %v5597_v48  ;;  %v5629_v7 = vld [vmem:[#allocation9 + $0x4e8] sm:$0xff] }
 0x65d   :  { %9298 = vmatpush1.bf16.msra.mxu1 %v13186_v32  ;;  %9153 = vmatprep.subr.bf16.mxu0 %v13193_v12  ;;  %v13225_v32 = vcombine.high %v5600_v47, %v5604_v11  ;;  %v13227_v12 = vcombine.high %v5601_v2, %v5605_v1  ;;  %v5636_v47 = vld [vmem:[#allocation9 + $0x520] sm:$0xff]  ;;  %v5633_v11 = vld [vmem:[#allocation9 + $0x508] sm:$0xff] }
 0x65e   :  { %9299 = vmatprep.subr.bf16.mxu1 %v13195_v16  ;;  %v5608_v16 = vld [vmem:[#allocation9 + $0x440] sm:$0xff] }
 0x65f   :  { %v13232_v59 = vcombine.low %v5608_v16, %v5612_v10 }
 0x660   :  { %9154 = vmatpush1.bf16.msra.mxu0 %v13192_v63  ;;  %v13226_v63 = vcombine.low %v5601_v2, %v5605_v1  ;;  %v5637_v2 = vld [vmem:[#allocation9 + $0x528] sm:$0xff] }
 0x661   :  { %9300 = vmatpush1.bf16.msra.mxu1 %v13194_v50  ;;  %9155 = vmatprep.subr.bf16.mxu0 %v13201_v53  ;;  %v13233_v50 = vcombine.high %v5608_v16, %v5612_v10  ;;  %v13235_v53 = vcombine.high %v5609_v23, %v5613_v37  ;;  %v5644_v16 = vld [vmem:[#allocation9 + $0x560] sm:$0xff]  ;;  %v5641_v10 = vld [vmem:[#allocation9 + $0x548] sm:$0xff] }
 0x662   :  { %9301 = vmatprep.subr.bf16.mxu1 %v13203_v51  ;;  %v5616_v51 = vld [vmem:[#allocation9 + $0x480] sm:$0xff] }
 0x663   :  { %v13240_v48 = vcombine.low %v5616_v51, %v5620_v26 }
 0x664   :  { %9156 = vmatpush1.bf16.msra.mxu0 %v13200_v22  ;;  %v13234_v22 = vcombine.low %v5609_v23, %v5613_v37  ;;  %v5645_v23 = vld [vmem:[#allocation9 + $0x568] sm:$0xff] }
 0x665   :  { %9302 = vmatpush1.bf16.msra.mxu1 %v13202_v44  ;;  %9157 = vmatprep.subr.bf16.mxu0 %v13209_v9  ;;  %v13241_v44 = vcombine.high %v5616_v51, %v5620_v26  ;;  %v13243_v9 = vcombine.high %v5617_v15, %v5621_v60  ;;  %v5652_v51 = vld [vmem:[#allocation9 + $0x5a0] sm:$0xff]  ;;  %v5649_v26 = vld [vmem:[#allocation9 + $0x588] sm:$0xff] }
 0x666   :  { %9303 = vmatprep.subr.bf16.mxu1 %v13211_v13  ;;  %v5624_v13 = vld [vmem:[#allocation9 + $0x4c0] sm:$0xff] }
 0x667   :  { %v13248_v1 = vcombine.low %v5624_v13, %v5628_v52 }
 0x668   :  { %9158 = vmatpush1.bf16.msra.mxu0 %v13208_v49  ;;  %v13242_v49 = vcombine.low %v5617_v15, %v5621_v60  ;;  %v5653_v15 = vld [vmem:[#allocation9 + $0x5a8] sm:$0xff] }
 0x669   :  { %9304 = vmatpush1.bf16.msra.mxu1 %v13210_v25  ;;  %9159 = vmatprep.subr.bf16.mxu0 %v13217_v55  ;;  %v13249_v25 = vcombine.high %v5624_v13, %v5628_v52  ;;  %v13251_v55 = vcombine.high %v5625_v43, %v5629_v7  ;;  %v5660_v13 = vld [vmem:[#allocation9 + $0x5e0] sm:$0xff]  ;;  %v5657_v52 = vld [vmem:[#allocation9 + $0x5c8] sm:$0xff] }
 0x66a   :  { %9305 = vmatprep.subr.bf16.mxu1 %v13219_v61  ;;  %v5632_v61 = vld [vmem:[#allocation9 + $0x500] sm:$0xff] }
 0x66b   :  { %v13256_v37 = vcombine.low %v5632_v61, %v5636_v47 }
 0x66c   :  { %9160 = vmatpush1.bf16.msra.mxu0 %v13216_v20  ;;  %v13250_v20 = vcombine.low %v5625_v43, %v5629_v7  ;;  %v5661_v43 = vld [vmem:[#allocation9 + $0x5e8] sm:$0xff] }
 0x66d   :  { %9306 = vmatpush1.bf16.msra.mxu1 %v13218_v0  ;;  %9202 = vmatprep.subr.bf16.mxu0 %v13225_v32  ;;  %v13257_v0 = vcombine.high %v5632_v61, %v5636_v47  ;;  %v13259_v32 = vcombine.high %v5633_v11, %v5637_v2  ;;  %v5668_v61 = vld [vmem:[#allocation9 + $0x620] sm:$0xff]  ;;  %v5665_v47 = vld [vmem:[#allocation9 + $0x608] sm:$0xff] }
 0x66e   :  { %9348 = vmatprep.subr.bf16.mxu1 %v13227_v12  ;;  %v5640_v12 = vld [vmem:[#allocation9 + $0x540] sm:$0xff] }
 0x66f   :  { %9162 = vmatmul.mubr.bf16.vlgmr.msra.gmra.mrb[104].mxu0 %v15907_v56  ;;  %v13264_v60 = vcombine.low %v5640_v12, %v5644_v16 }
 0x670   :  { %9308 = vmatmul.mubr.bf16.vlgmr.msra.gmra.mrb[104].mxu1 %v15907_v56  ;;  %9171 = vmatprep.mubr.bf16.mxu0 %v15919_v3 }
 0x671   :  { %9203 = vmatpush1.bf16.msra.mxu0 %v13224_v19  ;;  %9317 = vmatprep.mubr.bf16.mxu1 %v15919_v3  ;;  %v13258_v19 = vcombine.low %v5633_v11, %v5637_v2  ;;  %v5669_v11 = vld [vmem:[#allocation9 + $0x628] sm:$0xff] }
 0x672   :  { %9349 = vmatpush1.bf16.msra.mxu1 %v13226_v63  ;;  %9204 = vmatprep.subr.bf16.mxu0 %v13233_v50  ;;  %v13265_v63 = vcombine.high %v5640_v12, %v5644_v16  ;;  %v13267_v50 = vcombine.high %v5641_v10, %v5645_v23  ;;  %v5676_v12 = vld [vmem:[#allocation9 + $0x660] sm:$0xff]  ;;  %v5673_v16 = vld [vmem:[#allocation9 + $0x648] sm:$0xff] }
 0x673   :  { %9350 = vmatprep.subr.bf16.mxu1 %v13235_v53  ;;  %v5648_v53 = vld [vmem:[#allocation9 + $0x580] sm:$0xff] }
 0x674   :  { %v13272_v7 = vcombine.low %v5648_v53, %v5652_v51 }
 0x675   :  { %9205 = vmatpush1.bf16.msra.mxu0 %v13232_v59  ;;  %v13266_v59 = vcombine.low %v5641_v10, %v5645_v23  ;;  %v5677_v10 = vld [vmem:[#allocation9 + $0x668] sm:$0xff] }
 0x676   :  { %9351 = vmatpush1.bf16.msra.mxu1 %v13234_v22  ;;  %9206 = vmatprep.subr.bf16.mxu0 %v13241_v44  ;;  %v13273_v22 = vcombine.high %v5648_v53, %v5652_v51  ;;  %v13275_v44 = vcombine.high %v5649_v26, %v5653_v15  ;;  %v5684_v53 = vld [vmem:[#allocation9 + $0x6a0] sm:$0xff]  ;;  %v5681_v51 = vld [vmem:[#allocation9 + $0x688] sm:$0xff] }
 0x677   :  { %9172 = vmatmul.mubr.bf16.gmra.mrb[108].mxu0 %v15915_v6  ;;  %9352 = vmatprep.subr.bf16.mxu1 %v13243_v9  ;;  %v5656_v9 = vld [vmem:[#allocation9 + $0x5c0] sm:$0xff] }
 0x678   :  { %9318 = vmatmul.mubr.bf16.gmra.mrb[108].mxu1 %v15915_v6  ;;  %9181 = vmatprep.mubr.bf16.mxu0 %v15931_v14  ;;  %v13280_v2 = vcombine.low %v5656_v9, %v5660_v13 }
 0x679   :  { %9207 = vmatpush1.bf16.msra.mxu0 %v13240_v48  ;;  %9327 = vmatprep.mubr.bf16.mxu1 %v15931_v14  ;;  %v13274_v48 = vcombine.low %v5649_v26, %v5653_v15  ;;  %v5685_v26 = vld [vmem:[#allocation9 + $0x6a8] sm:$0xff] }
 0x67a   :  { %9353 = vmatpush1.bf16.msra.mxu1 %v13242_v49  ;;  %9208 = vmatprep.subr.bf16.mxu0 %v13249_v25  ;;  %v13281_v49 = vcombine.high %v5656_v9, %v5660_v13  ;;  %v13283_v25 = vcombine.high %v5657_v52, %v5661_v43  ;;  %v5692_v9 = vld [vmem:[#allocation9 + $0x6e0] sm:$0xff]  ;;  %v5689_v13 = vld [vmem:[#allocation9 + $0x6c8] sm:$0xff] }
 0x67b   :  { %9354 = vmatprep.subr.bf16.mxu1 %v13251_v55  ;;  %v5664_v55 = vld [vmem:[#allocation9 + $0x600] sm:$0xff] }
 0x67c   :  { %v13288_v23 = vcombine.low %v5664_v55, %v5668_v61 }
 0x67d   :  { %9209 = vmatpush1.bf16.msra.mxu0 %v13248_v1  ;;  %v13282_v1 = vcombine.low %v5657_v52, %v5661_v43  ;;  %v5693_v52 = vld [vmem:[#allocation9 + $0x6e8] sm:$0xff] }
 0x67e   :  { %9355 = vmatpush1.bf16.msra.mxu1 %v13250_v20  ;;  %9210 = vmatprep.subr.bf16.mxu0 %v13257_v0  ;;  %v13289_v20 = vcombine.high %v5664_v55, %v5668_v61  ;;  %v13291_v0 = vcombine.high %v5665_v47, %v5669_v11  ;;  %v5700_v55 = vld [vmem:[#allocation9 + $0x720] sm:$0xff]  ;;  %v5697_v61 = vld [vmem:[#allocation9 + $0x708] sm:$0xff] }
 0x67f   :  { %9182 = vmatmul.mubr.bf16.gmra.mrb[112].mxu0 %v15927_v38  ;;  %9356 = vmatprep.subr.bf16.mxu1 %v13259_v32  ;;  %v5672_v32 = vld [vmem:[#allocation9 + $0x640] sm:$0xff] }
 0x680   :  { %9328 = vmatmul.mubr.bf16.gmra.mrb[112].mxu1 %v15927_v38  ;;  %9191 = vmatprep.mubr.bf16.mxu0 %v15943_v31  ;;  %v13296_v15 = vcombine.low %v5672_v32, %v5676_v12 }
 0x681   :  { %9211 = vmatpush1.bf16.msra.mxu0 %v13256_v37  ;;  %9337 = vmatprep.mubr.bf16.mxu1 %v15943_v31  ;;  %v13290_v37 = vcombine.low %v5665_v47, %v5669_v11  ;;  %v5701_v47 = vld [vmem:[#allocation9 + $0x728] sm:$0xff] }
 0x682   :  { %9357 = vmatpush1.bf16.msra.mxu1 %v13258_v19  ;;  %9212 = vmatprep.subr.bf16.mxu0 %v13265_v63  ;;  %v13297_v19 = vcombine.high %v5672_v32, %v5676_v12  ;;  %v13299_v63 = vcombine.high %v5673_v16, %v5677_v10  ;;  %v5708_v32 = vld [vmem:[#allocation9 + $0x760] sm:$0xff]  ;;  %v5705_v12 = vld [vmem:[#allocation9 + $0x748] sm:$0xff] }
 0x683   :  { %9358 = vmatprep.subr.bf16.mxu1 %v13267_v50  ;;  %v5680_v50 = vld [vmem:[#allocation9 + $0x680] sm:$0xff] }
 0x684   :  { %v13304_v43 = vcombine.low %v5680_v50, %v5684_v53 }
 0x685   :  { %9213 = vmatpush1.bf16.msra.mxu0 %v13264_v60  ;;  %v13298_v60 = vcombine.low %v5673_v16, %v5677_v10  ;;  %v5709_v16 = vld [vmem:[#allocation9 + $0x768] sm:$0xff] }
 0x686   :  { %9359 = vmatpush1.bf16.msra.mxu1 %v13266_v59  ;;  %9214 = vmatprep.subr.bf16.mxu0 %v13273_v22  ;;  %v13305_v59 = vcombine.high %v5680_v50, %v5684_v53  ;;  %v13307_v22 = vcombine.high %v5681_v51, %v5685_v26  ;;  %v5716_v50 = vld [vmem:[#allocation9 + $0x7a0] sm:$0xff]  ;;  %v5713_v53 = vld [vmem:[#allocation9 + $0x788] sm:$0xff] }
 0x687   :  { %9192 = vmatmul.mubr.bf16.gmra.mrb[116].mxu0 %v15939_v24  ;;  %9360 = vmatprep.subr.bf16.mxu1 %v13275_v44  ;;  %v5688_v44 = vld [vmem:[#allocation9 + $0x6c0] sm:$0xff] }
 0x688   :  { %9338 = vmatmul.mubr.bf16.gmra.mrb[116].mxu1 %v15939_v24  ;;  %9234 = vmatprep.mubr.bf16.mxu0 %v15913_v21  ;;  %v13312_v11 = vcombine.low %v5688_v44, %v5692_v9 }
 0x689   :  { %9215 = vmatpush1.bf16.msra.mxu0 %v13272_v7  ;;  %9380 = vmatprep.mubr.bf16.mxu1 %v15913_v21  ;;  %v13306_v7 = vcombine.low %v5681_v51, %v5685_v26  ;;  %v5717_v51 = vld [vmem:[#allocation9 + $0x7a8] sm:$0xff] }
 0x68a   :  { %9361 = vmatpush1.bf16.msra.mxu1 %v13274_v48  ;;  %9216 = vmatprep.subr.bf16.mxu0 %v13281_v49  ;;  %v13313_v48 = vcombine.high %v5688_v44, %v5692_v9  ;;  %v13315_v49 = vcombine.high %v5689_v13, %v5693_v52  ;;  %v5724_v44 = vld [vmem:[#allocation9 + $0x7e0] sm:$0xff]  ;;  %v5721_v9 = vld [vmem:[#allocation9 + $0x7c8] sm:$0xff] }
 0x68b   :  { %9362 = vmatprep.subr.bf16.mxu1 %v13283_v25  ;;  %v5696_v25 = vld [vmem:[#allocation9 + $0x700] sm:$0xff] }
 0x68c   :  { %v13320_v10 = vcombine.low %v5696_v25, %v5700_v55 }
 0x68d   :  { %9217 = vmatpush1.bf16.msra.mxu0 %v13280_v2  ;;  %v13314_v2 = vcombine.low %v5689_v13, %v5693_v52  ;;  %v5725_v13 = vld [vmem:[#allocation9 + $0x7e8] sm:$0xff] }
 0x68e   :  { %9363 = vmatpush1.bf16.msra.mxu1 %v13282_v1  ;;  %9218 = vmatprep.subr.bf16.mxu0 %v13289_v20  ;;  %v13321_v1 = vcombine.high %v5696_v25, %v5700_v55  ;;  %v13323_v20 = vcombine.high %v5697_v61, %v5701_v47  ;;  %v5478_v25 = vld [vmem:[#allocation9 + $0x30] sm:$0xff]  ;;  %v5475_v55 = vld [vmem:[#allocation9 + $0x18] sm:$0xff] }
 0x68f   :  { %9364 = vmatprep.subr.bf16.mxu1 %v13291_v0  ;;  %v5704_v0 = vld [vmem:[#allocation9 + $0x740] sm:$0xff] }
 0x690   :  { %v13328_v26 = vcombine.low %v5704_v0, %v5708_v32 }
 0x691   :  { %9219 = vmatpush1.bf16.msra.mxu0 %v13288_v23  ;;  %v13322_v23 = vcombine.low %v5697_v61, %v5701_v47  ;;  %v5479_v61 = vld [vmem:[#allocation9 + $0x38] sm:$0xff] }
 0x692   :  { %9365 = vmatpush1.bf16.msra.mxu1 %v13290_v37  ;;  %9220 = vmatprep.subr.bf16.mxu0 %v13297_v19  ;;  %v13329_v37 = vcombine.high %v5704_v0, %v5708_v32  ;;  %v13331_v19 = vcombine.high %v5705_v12, %v5709_v16  ;;  %v5486_v0 = vld [vmem:[#allocation9 + $0x70] sm:$0xff]  ;;  %v5483_v32 = vld [vmem:[#allocation9 + $0x58] sm:$0xff] }
 0x693   :  { %9366 = vmatprep.subr.bf16.mxu1 %v13299_v63  ;;  %v5712_v63 = vld [vmem:[#allocation9 + $0x780] sm:$0xff] }
 0x694   :  { %v13336_v52 = vcombine.low %v5712_v63, %v5716_v50 }
 0x695   :  { %9221 = vmatpush1.bf16.msra.mxu0 %v13296_v15  ;;  %v13330_v15 = vcombine.low %v5705_v12, %v5709_v16  ;;  %v5487_v12 = vld [vmem:[#allocation9 + $0x78] sm:$0xff] }
 0x696   :  { %9367 = vmatpush1.bf16.msra.mxu1 %v13298_v60  ;;  %9222 = vmatprep.subr.bf16.mxu0 %v13305_v59  ;;  %v13337_v60 = vcombine.high %v5712_v63, %v5716_v50  ;;  %v13339_v59 = vcombine.high %v5713_v53, %v5717_v51  ;;  %v5494_v63 = vld [vmem:[#allocation9 + $0xb0] sm:$0xff]  ;;  %v5491_v50 = vld [vmem:[#allocation9 + $0x98] sm:$0xff] }
 0x697   :  { %9368 = vmatprep.subr.bf16.mxu1 %v13307_v22  ;;  %v5720_v22 = vld [vmem:[#allocation9 + $0x7c0] sm:$0xff] }
 0x698   :  { %v13344_v47 = vcombine.low %v5720_v22, %v5724_v44 }
 0x699   :  { %9223 = vmatpush1.bf16.msra.mxu0 %v13304_v43  ;;  %v13338_v43 = vcombine.low %v5713_v53, %v5717_v51  ;;  %v5495_v53 = vld [vmem:[#allocation9 + $0xb8] sm:$0xff] }
 0x69a   :  { %9369 = vmatpush1.bf16.msra.mxu1 %v13306_v7  ;;  %9224 = vmatprep.subr.bf16.mxu0 %v13313_v48  ;;  %v13345_v7 = vcombine.high %v5720_v22, %v5724_v44  ;;  %v13347_v48 = vcombine.high %v5721_v9, %v5725_v13  ;;  %v5502_v22 = vld [vmem:[#allocation9 + $0xf0] sm:$0xff]  ;;  %v5499_v44 = vld [vmem:[#allocation9 + $0xd8] sm:$0xff] }
 0x69b   :  { %9370 = vmatprep.subr.bf16.mxu1 %v13315_v49  ;;  %v5474_v49 = vld [vmem:[#allocation9 + $0x10] sm:$0xff] }
 0x69c   :  { %v13100_v16 = vcombine.low %v5474_v49, %v5478_v25 }
 0x69d   :  { %9225 = vmatpush1.bf16.msra.mxu0 %v13312_v11  ;;  %v13346_v11 = vcombine.low %v5721_v9, %v5725_v13  ;;  %v5503_v9 = vld [vmem:[#allocation9 + $0xf8] sm:$0xff] }
 0x69e   :  { %9371 = vmatpush1.bf16.msra.mxu1 %v13314_v2  ;;  %9226 = vmatprep.subr.bf16.mxu0 %v13321_v1  ;;  %v13101_v2 = vcombine.high %v5474_v49, %v5478_v25  ;;  %v13103_v1 = vcombine.high %v5475_v55, %v5479_v61  ;;  %v5510_v49 = vld [vmem:[#allocation9 + $0x130] sm:$0xff]  ;;  %v5507_v25 = vld [vmem:[#allocation9 + $0x118] sm:$0xff] }
 0x69f   :  { %9372 = vmatprep.subr.bf16.mxu1 %v13323_v20  ;;  %v5482_v20 = vld [vmem:[#allocation9 + $0x50] sm:$0xff] }
 0x6a0   :  { %v13108_v51 = vcombine.low %v5482_v20, %v5486_v0 }
 0x6a1   :  { %9227 = vmatpush1.bf16.msra.mxu0 %v13320_v10  ;;  %v13102_v10 = vcombine.low %v5475_v55, %v5479_v61  ;;  %v5511_v55 = vld [vmem:[#allocation9 + $0x138] sm:$0xff] }
 0x6a2   :  { %9373 = vmatpush1.bf16.msra.mxu1 %v13322_v23  ;;  %9228 = vmatprep.subr.bf16.mxu0 %v13329_v37  ;;  %v13109_v23 = vcombine.high %v5482_v20, %v5486_v0  ;;  %v13111_v37 = vcombine.high %v5483_v32, %v5487_v12  ;;  %v5518_v20 = vld [vmem:[#allocation9 + $0x170] sm:$0xff]  ;;  %v5515_v0 = vld [vmem:[#allocation9 + $0x158] sm:$0xff] }
 0x6a3   :  { %9374 = vmatprep.subr.bf16.mxu1 %v13331_v19  ;;  %v5490_v19 = vld [vmem:[#allocation9 + $0x90] sm:$0xff] }
 0x6a4   :  { %v13116_v13 = vcombine.low %v5490_v19, %v5494_v63 }
 0x6a5   :  { %9229 = vmatpush1.bf16.msra.mxu0 %v13328_v26  ;;  %v13110_v26 = vcombine.low %v5483_v32, %v5487_v12  ;;  %v5519_v32 = vld [vmem:[#allocation9 + $0x178] sm:$0xff] }
 0x6a6   :  { %9375 = vmatpush1.bf16.msra.mxu1 %v13330_v15  ;;  %9230 = vmatprep.subr.bf16.mxu0 %v13337_v60  ;;  %v13117_v15 = vcombine.high %v5490_v19, %v5494_v63  ;;  %v13119_v60 = vcombine.high %v5491_v50, %v5495_v53  ;;  %v5526_v19 = vld [vmem:[#allocation9 + $0x1b0] sm:$0xff]  ;;  %v5523_v63 = vld [vmem:[#allocation9 + $0x198] sm:$0xff] }
 0x6a7   :  { %9376 = vmatprep.subr.bf16.mxu1 %v13339_v59  ;;  %v5498_v59 = vld [vmem:[#allocation9 + $0xd0] sm:$0xff] }
 0x6a8   :  { %v13124_v61 = vcombine.low %v5498_v59, %v5502_v22 }
 0x6a9   :  { %9231 = vmatpush1.bf16.msra.mxu0 %v13336_v52  ;;  %v13118_v52 = vcombine.low %v5491_v50, %v5495_v53  ;;  %v5527_v50 = vld [vmem:[#allocation9 + $0x1b8] sm:$0xff] }
 0x6aa   :  { %9377 = vmatpush1.bf16.msra.mxu1 %v13338_v43  ;;  %9232 = vmatprep.subr.bf16.mxu0 %v13345_v7  ;;  %v13125_v43 = vcombine.high %v5498_v59, %v5502_v22  ;;  %v13127_v7 = vcombine.high %v5499_v44, %v5503_v9  ;;  %v5534_v59 = vld [vmem:[#allocation9 + $0x1f0] sm:$0xff]  ;;  %v5531_v22 = vld [vmem:[#allocation9 + $0x1d8] sm:$0xff] }
 0x6ab   :  { %9378 = vmatprep.subr.bf16.mxu1 %v13347_v48  ;;  %v5506_v48 = vld [vmem:[#allocation9 + $0x110] sm:$0xff] }
 0x6ac   :  { %v13132_v12 = vcombine.low %v5506_v48, %v5510_v49 }
 0x6ad   :  { %9233 = vmatpush1.bf16.msra.mxu0 %v13344_v47  ;;  %v13126_v47 = vcombine.low %v5499_v44, %v5503_v9  ;;  %v5535_v44 = vld [vmem:[#allocation9 + $0x1f8] sm:$0xff] }
 0x6ae   :  { %9379 = vmatpush1.bf16.msra.mxu1 %v13346_v11  ;;  %9421 = vmatprep.subr.bf16.mxu0 %v13101_v2  ;;  %v13133_v11 = vcombine.high %v5506_v48, %v5510_v49  ;;  %v13135_v2 = vcombine.high %v5507_v25, %v5511_v55  ;;  %v5542_v48 = vld [vmem:[#allocation9 + $0x230] sm:$0xff]  ;;  %v5539_v49 = vld [vmem:[#allocation9 + $0x218] sm:$0xff] }
 0x6af   :  { %9567 = vmatprep.subr.bf16.mxu1 %v13103_v1  ;;  %v5514_v1 = vld [vmem:[#allocation9 + $0x150] sm:$0xff] }
 0x6b0   :  { %9235 = vmatmul.mubr.bf16.vlgmr.msra.gmra.mrb[104].mxu0 %v15909_v18  ;;  %v13140_v53 = vcombine.low %v5514_v1, %v5518_v20 }
 0x6b1   :  { %9381 = vmatmul.mubr.bf16.vlgmr.msra.gmra.mrb[104].mxu1 %v15909_v18  ;;  %9244 = vmatprep.mubr.bf16.mxu0 %v15921_v33 }
 0x6b2   :  { %9390 = vmatprep.mubr.bf16.mxu1 %v15921_v33  ;;  %9422 = vmatpush1.bf16.msra.mxu0 %v13100_v16  ;;  %v13134_v16 = vcombine.low %v5507_v25, %v5511_v55  ;;  %v5543_v25 = vld [vmem:[#allocation9 + $0x238] sm:$0xff] }
 0x6b3   :  { %9568 = vmatpush1.bf16.msra.mxu1 %v13102_v10  ;;  %9423 = vmatprep.subr.bf16.mxu0 %v13109_v23  ;;  %v13141_v10 = vcombine.high %v5514_v1, %v5518_v20  ;;  %v13143_v23 = vcombine.high %v5515_v0, %v5519_v32  ;;  %v5550_v1 = vld [vmem:[#allocation9 + $0x270] sm:$0xff]  ;;  %v5547_v20 = vld [vmem:[#allocation9 + $0x258] sm:$0xff] }
 0x6b4   :  { %9569 = vmatprep.subr.bf16.mxu1 %v13111_v37  ;;  %v5522_v37 = vld [vmem:[#allocation9 + $0x190] sm:$0xff] }
 0x6b5   :  { %v13148_v9 = vcombine.low %v5522_v37, %v5526_v19 }
 0x6b6   :  { %9424 = vmatpush1.bf16.msra.mxu0 %v13108_v51  ;;  %v13142_v51 = vcombine.low %v5515_v0, %v5519_v32  ;;  %v5551_v0 = vld [vmem:[#allocation9 + $0x278] sm:$0xff] }
 0x6b7   :  { %9570 = vmatpush1.bf16.msra.mxu1 %v13110_v26  ;;  %9425 = vmatprep.subr.bf16.mxu0 %v13117_v15  ;;  %v13149_v26 = vcombine.high %v5522_v37, %v5526_v19  ;;  %v13151_v15 = vcombine.high %v5523_v63, %v5527_v50  ;;  %v5555_v37 = vld [vmem:[#allocation9 + $0x298] sm:$0xff] }
 0x6b8   :  { %9245 = vmatmul.mubr.bf16.gmra.mrb[108].mxu0 %v15917_v42  ;;  %9571 = vmatprep.subr.bf16.mxu1 %v13119_v60  ;;  %v5530_v60 = vld [vmem:[#allocation9 + $0x1d0] sm:$0xff]  ;;  %v5559_v19 = vld [vmem:[#allocation9 + $0x2b8] sm:$0xff] }
 0x6b9   :  { %9391 = vmatmul.mubr.bf16.gmra.mrb[108].mxu1 %v15917_v42  ;;  %9254 = vmatprep.mubr.bf16.mxu0 %v15933_v46  ;;  %v13156_v55 = vcombine.low %v5530_v60, %v5534_v59 }
 0x6ba   :  { %9400 = vmatprep.mubr.bf16.mxu1 %v15933_v46  ;;  %9426 = vmatpush1.bf16.msra.mxu0 %v13116_v13  ;;  %v13150_v13 = vcombine.low %v5523_v63, %v5527_v50  ;;  %v13174_v50 = vcombine.low %v5547_v20, %v5551_v0 }
 0x6bb   :  { %9572 = vmatpush1.bf16.msra.mxu1 %v13118_v52  ;;  %9427 = vmatprep.subr.bf16.mxu0 %v13125_v43  ;;  %v13157_v52 = vcombine.high %v5530_v60, %v5534_v59  ;;  %v13159_v43 = vcombine.high %v5531_v22, %v5535_v44  ;;  %v5563_v60 = vld [vmem:[#allocation9 + $0x2d8] sm:$0xff] }
 0x6bc   :  { %9573 = vmatprep.subr.bf16.mxu1 %v13127_v7  ;;  %v5538_v7 = vld [vmem:[#allocation9 + $0x210] sm:$0xff]  ;;  %v5567_v59 = vld [vmem:[#allocation9 + $0x2f8] sm:$0xff] }
 0x6bd   :  { %v13164_v32 = vcombine.low %v5538_v7, %v5542_v48 }
 0x6be   :  { %9428 = vmatpush1.bf16.msra.mxu0 %v13124_v61  ;;  %v13158_v61 = vcombine.low %v5531_v22, %v5535_v44  ;;  %v13182_v44 = vcombine.low %v5555_v37, %v5559_v19 }
 0x6bf   :  { %9574 = vmatpush1.bf16.msra.mxu1 %v13126_v47  ;;  %9429 = vmatprep.subr.bf16.mxu0 %v13133_v11  ;;  %v13165_v47 = vcombine.high %v5538_v7, %v5542_v48  ;;  %v13167_v11 = vcombine.high %v5539_v49, %v5543_v25  ;;  %v5571_v7 = vld [vmem:[#allocation9 + $0x318] sm:$0xff] }
 0x6c0   :  { %9255 = vmatmul.mubr.bf16.gmra.mrb[112].mxu0 %v15929_v58  ;;  %9575 = vmatprep.subr.bf16.mxu1 %v13135_v2  ;;  %v5546_v2 = vld [vmem:[#allocation9 + $0x250] sm:$0xff]  ;;  %v5575_v48 = vld [vmem:[#allocation9 + $0x338] sm:$0xff] }
 0x6c1   :  { %9401 = vmatmul.mubr.bf16.gmra.mrb[112].mxu1 %v15929_v58  ;;  %9264 = vmatprep.mubr.bf16.mxu0 %v15945_v39  ;;  %v13172_v63 = vcombine.low %v5546_v2, %v5550_v1 }
 0x6c2   :  { %9410 = vmatprep.mubr.bf16.mxu1 %v15945_v39  ;;  %9430 = vmatpush1.bf16.msra.mxu0 %v13132_v12  ;;  %v13166_v12 = vcombine.low %v5539_v49, %v5543_v25  ;;  %v13190_v25 = vcombine.low %v5563_v60, %v5567_v59 }
 0x6c3   :  { %9576 = vmatpush1.bf16.msra.mxu1 %v13134_v16  ;;  %9431 = vmatprep.subr.bf16.mxu0 %v13141_v10  ;;  %v13173_v16 = vcombine.high %v5546_v2, %v5550_v1  ;;  %v13175_v10 = vcombine.high %v5547_v20, %v5551_v0  ;;  %v5579_v2 = vld [vmem:[#allocation9 + $0x358] sm:$0xff]  ;;  %v13198_v0 = vcombine.low %v5571_v7, %v5575_v48 }
 0x6c4   :  { %9577 = vmatprep.subr.bf16.mxu1 %v13143_v23  ;;  %v5558_v23 = vld [vmem:[#allocation9 + $0x2b0] sm:$0xff]  ;;  %v5583_v1 = vld [vmem:[#allocation9 + $0x378] sm:$0xff] }
 0x6c6   :  { %9432 = vmatpush1.bf16.msra.mxu0 %v13140_v53 }
 0x6c7   :  { %9578 = vmatpush1.bf16.msra.mxu1 %v13142_v51  ;;  %9433 = vmatprep.subr.bf16.mxu0 %v13149_v26  ;;  %v13183_v51 = vcombine.high %v5555_v37, %v5559_v19  ;;  %v5562_v26 = vld [vmem:[#allocation9 + $0x2d0] sm:$0xff]  ;;  %v13206_v19 = vcombine.low %v5579_v2, %v5583_v1 }
 0x6c8   :  { %9265 = vmatmul.mubr.bf16.gmra.mrb[116].mxu0 %v15941_v34  ;;  %9579 = vmatprep.subr.bf16.mxu1 %v13151_v15  ;;  %v5566_v15 = vld [vmem:[#allocation9 + $0x2f0] sm:$0xff] }
 0x6c9   :  { %9411 = vmatmul.mubr.bf16.gmra.mrb[116].mxu1 %v15941_v34  ;;  %9453 = vmatprep.mubr.bf16.mxu0 %v15911_v36  ;;  %v13188_v49 = vcombine.low %v5562_v26, %v5566_v15 }
 0x6ca   :  { %9434 = vmatpush1.bf16.msra.mxu0 %v13148_v9  ;;  %9599 = vmatprep.mubr.bf16.mxu1 %v15911_v36  ;;  %v5554_v36 = vld [vmem:[#allocation9 + $0x290] sm:$0xff]  ;;  %v13189_v9 = vcombine.high %v5562_v26, %v5566_v15  ;;  %v5595_v26 = vld [vmem:[#allocation9 + $0x3d8] sm:$0xff] }
 0x6cb   :  { %9580 = vmatpush1.bf16.msra.mxu1 %v13150_v13  ;;  %9435 = vmatprep.subr.bf16.mxu0 %v13157_v52  ;;  %v13181_v53 = vcombine.high %v5554_v36, %v5558_v23  ;;  %v13180_v22 = vcombine.low %v5554_v36, %v5558_v23  ;;  %v13191_v13 = vcombine.high %v5563_v60, %v5567_v59  ;;  %v5570_v52 = vld [vmem:[#allocation9 + $0x310] sm:$0xff]  ;;  %v5587_v36 = vld [vmem:[#allocation9 + $0x398] sm:$0xff] }
 0x6cc   :  { %9581 = vmatprep.subr.bf16.mxu1 %v13159_v43  ;;  %v5574_v43 = vld [vmem:[#allocation9 + $0x330] sm:$0xff]  ;;  %v5591_v23 = vld [vmem:[#allocation9 + $0x3b8] sm:$0xff] }
 0x6cd   :  { %v13196_v20 = vcombine.low %v5570_v52, %v5574_v43  ;;  %v5599_v15 = vld [vmem:[#allocation9 + $0x3f8] sm:$0xff]  ;;  %v13214_v59 = vcombine.low %v5587_v36, %v5591_v23 }
 0x6ce   :  { %9436 = vmatpush1.bf16.msra.mxu0 %v13156_v55  ;;  %v13197_v55 = vcombine.high %v5570_v52, %v5574_v43  ;;  %v5603_v52 = vld [vmem:[#allocation9 + $0x418] sm:$0xff] }
 0x6cf   :  { %9582 = vmatpush1.bf16.msra.mxu1 %v13158_v61  ;;  %9437 = vmatprep.subr.bf16.mxu0 %v13165_v47  ;;  %v13199_v61 = vcombine.high %v5571_v7, %v5575_v48  ;;  %v5578_v47 = vld [vmem:[#allocation9 + $0x350] sm:$0xff]  ;;  %v5607_v43 = vld [vmem:[#allocation9 + $0x438] sm:$0xff]  ;;  %v13222_v48 = vcombine.low %v5595_v26, %v5599_v15 }
 0x6d0   :  { %9583 = vmatprep.subr.bf16.mxu1 %v13167_v11  ;;  %v5582_v11 = vld [vmem:[#allocation9 + $0x370] sm:$0xff] }
 0x6d1   :  { %v13204_v37 = vcombine.low %v5578_v47, %v5582_v11 }
 0x6d2   :  { %9438 = vmatpush1.bf16.msra.mxu0 %v13164_v32  ;;  %v13205_v32 = vcombine.high %v5578_v47, %v5582_v11  ;;  %v5611_v47 = vld [vmem:[#allocation9 + $0x458] sm:$0xff] }
 0x6d3   :  { %9584 = vmatpush1.bf16.msra.mxu1 %v13166_v12  ;;  %9439 = vmatprep.subr.bf16.mxu0 %v13173_v16  ;;  %v13207_v12 = vcombine.high %v5579_v2, %v5583_v1  ;;  %v5586_v16 = vld [vmem:[#allocation9 + $0x390] sm:$0xff]  ;;  %v5615_v11 = vld [vmem:[#allocation9 + $0x478] sm:$0xff]  ;;  %v13230_v1 = vcombine.low %v5603_v52, %v5607_v43 }
 0x6d4   :  { %9585 = vmatprep.subr.bf16.mxu1 %v13175_v10  ;;  %v5590_v10 = vld [vmem:[#allocation9 + $0x3b0] sm:$0xff] }
 0x6d5   :  { %v13212_v60 = vcombine.low %v5586_v16, %v5590_v10 }
 0x6d6   :  { %9440 = vmatpush1.bf16.msra.mxu0 %v13172_v63  ;;  %v13213_v63 = vcombine.high %v5586_v16, %v5590_v10  ;;  %v5619_v16 = vld [vmem:[#allocation9 + $0x498] sm:$0xff] }
 0x6d7   :  { %9586 = vmatpush1.bf16.msra.mxu1 %v13174_v50  ;;  %9441 = vmatprep.subr.bf16.mxu0 %v13181_v53  ;;  %v13215_v50 = vcombine.high %v5587_v36, %v5591_v23  ;;  %v5594_v53 = vld [vmem:[#allocation9 + $0x3d0] sm:$0xff]  ;;  %v5623_v10 = vld [vmem:[#allocation9 + $0x4b8] sm:$0xff]  ;;  %v13238_v23 = vcombine.low %v5611_v47, %v5615_v11 }
 0x6d8   :  { %9587 = vmatprep.subr.bf16.mxu1 %v13183_v51  ;;  %v5598_v51 = vld [vmem:[#allocation9 + $0x3f0] sm:$0xff] }
 0x6d9   :  { %v13220_v7 = vcombine.low %v5594_v53, %v5598_v51 }
 0x6da   :  { %9442 = vmatpush1.bf16.msra.mxu0 %v13180_v22  ;;  %v13221_v22 = vcombine.high %v5594_v53, %v5598_v51  ;;  %v5627_v53 = vld [vmem:[#allocation9 + $0x4d8] sm:$0xff] }
 0x6db   :  { %9588 = vmatpush1.bf16.msra.mxu1 %v13182_v44  ;;  %9443 = vmatprep.subr.bf16.mxu0 %v13189_v9  ;;  %v13223_v44 = vcombine.high %v5595_v26, %v5599_v15  ;;  %v5602_v9 = vld [vmem:[#allocation9 + $0x410] sm:$0xff]  ;;  %v5631_v51 = vld [vmem:[#allocation9 + $0x4f8] sm:$0xff]  ;;  %v13246_v26 = vcombine.low %v5619_v16, %v5623_v10 }
 0x6dc   :  { %9589 = vmatprep.subr.bf16.mxu1 %v13191_v13  ;;  %v5606_v13 = vld [vmem:[#allocation9 + $0x430] sm:$0xff] }
 0x6dd   :  { %v13228_v2 = vcombine.low %v5602_v9, %v5606_v13 }
 0x6de   :  { %9444 = vmatpush1.bf16.msra.mxu0 %v13188_v49  ;;  %v13229_v49 = vcombine.high %v5602_v9, %v5606_v13  ;;  %v13254_v13 = vcombine.low %v5627_v53, %v5631_v51 }
 0x6df   :  { %9590 = vmatpush1.bf16.msra.mxu1 %v13190_v25  ;;  %9445 = vmatprep.subr.bf16.mxu0 %v13197_v55  ;;  %v13231_v25 = vcombine.high %v5603_v52, %v5607_v43  ;;  %v5610_v55 = vld [vmem:[#allocation9 + $0x450] sm:$0xff] }
 0x6e0   :  { %9591 = vmatprep.subr.bf16.mxu1 %v13199_v61  ;;  %v5614_v61 = vld [vmem:[#allocation9 + $0x470] sm:$0xff] }
 0x6e1   :  { %v13236_v36 = vcombine.low %v5610_v55, %v5614_v61 }
 0x6e2   :  { %9446 = vmatpush1.bf16.msra.mxu0 %v13196_v20  ;;  %v13237_v20 = vcombine.high %v5610_v55, %v5614_v61 }
 0x6e3   :  { %9592 = vmatpush1.bf16.msra.mxu1 %v13198_v0  ;;  %9447 = vmatprep.subr.bf16.mxu0 %v13205_v32  ;;  %v13239_v0 = vcombine.high %v5611_v47, %v5615_v11  ;;  %v5618_v32 = vld [vmem:[#allocation9 + $0x490] sm:$0xff] }
 0x6e4   :  { %9593 = vmatprep.subr.bf16.mxu1 %v13207_v12  ;;  %v5622_v12 = vld [vmem:[#allocation9 + $0x4b0] sm:$0xff] }
 0x6e5   :  { %v5650_v47 = vld [vmem:[#allocation9 + $0x590] sm:$0xff] }
 0x6e6   :  { %9448 = vmatpush1.bf16.msra.mxu0 %v13204_v37  ;;  %v13245_v37 = vcombine.high %v5618_v32, %v5622_v12  ;;  %v5654_v11 = vld [vmem:[#allocation9 + $0x5b0] sm:$0xff] }
 0x6e7   :  { %9594 = vmatpush1.bf16.msra.mxu1 %v13206_v19  ;;  %9449 = vmatprep.subr.bf16.mxu0 %v13213_v63  ;;  %v13247_v19 = vcombine.high %v5619_v16, %v5623_v10  ;;  %v5626_v63 = vld [vmem:[#allocation9 + $0x4d0] sm:$0xff] }
 0x6e8   :  { %9595 = vmatprep.subr.bf16.mxu1 %v13215_v50  ;;  %v5630_v50 = vld [vmem:[#allocation9 + $0x4f0] sm:$0xff] }
 0x6e9   :  { %v13253_v15 = vcombine.high %v5626_v63, %v5630_v50  ;;  %v13252_v9 = vcombine.low %v5626_v63, %v5630_v50  ;;  %v5658_v16 = vld [vmem:[#allocation9 + $0x5d0] sm:$0xff] }
 0x6ea   :  { %9450 = vmatpush1.bf16.msra.mxu0 %v13212_v60  ;;  %v5634_v60 = vld [vmem:[#allocation9 + $0x510] sm:$0xff] }
 0x6eb   :  { %9596 = vmatpush1.bf16.msra.mxu1 %v13214_v59  ;;  %9451 = vmatprep.subr.bf16.mxu0 %v13221_v22  ;;  %v5638_v59 = vld [vmem:[#allocation9 + $0x530] sm:$0xff]  ;;  %v5635_v22 = vld [vmem:[#allocation9 + $0x518] sm:$0xff] }
 0x6ec   :  { %9597 = vmatprep.subr.bf16.mxu1 %v13223_v44  ;;  %v5639_v44 = vld [vmem:[#allocation9 + $0x538] sm:$0xff]  ;;  %v13261_v52 = vcombine.high %v5634_v60, %v5638_v59  ;;  %v5662_v10 = vld [vmem:[#allocation9 + $0x5f0] sm:$0xff] }
 0x6ed   :  { %v13263_v43 = vcombine.high %v5635_v22, %v5639_v44  ;;  %v13262_v55 = vcombine.low %v5635_v22, %v5639_v44  ;;  %v5666_v63 = vld [vmem:[#allocation9 + $0x610] sm:$0xff]  ;;  %v5675_v22 = vld [vmem:[#allocation9 + $0x658] sm:$0xff] }
 0x6ee   :  { %9452 = vmatpush1.bf16.msra.mxu0 %v13220_v7  ;;  %v5642_v7 = vld [vmem:[#allocation9 + $0x550] sm:$0xff]  ;;  %v5679_v44 = vld [vmem:[#allocation9 + $0x678] sm:$0xff] }
 0x6ef   :  { %9598 = vmatpush1.bf16.msra.mxu1 %v13222_v48  ;;  %9494 = vmatprep.subr.bf16.mxu0 %v13229_v49  ;;  %v5646_v48 = vld [vmem:[#allocation9 + $0x570] sm:$0xff]  ;;  %v5643_v49 = vld [vmem:[#allocation9 + $0x558] sm:$0xff] }
 0x6f0   :  { %9640 = vmatprep.subr.bf16.mxu1 %v13231_v25  ;;  %v5647_v25 = vld [vmem:[#allocation9 + $0x578] sm:$0xff]  ;;  %v13269_v61 = vcombine.high %v5642_v7, %v5646_v48  ;;  %v5670_v50 = vld [vmem:[#allocation9 + $0x630] sm:$0xff] }
 0x6f1   :  { %9454 = vmatmul.mubr.bf16.vlgmr.msra.gmra.mrb[120].mxu0 %v15907_v56 }
 0x6f2   :  { %9600 = vmatmul.mubr.bf16.vlgmr.msra.gmra.mrb[120].mxu1 %v15907_v56  ;;  %9463 = vmatprep.mubr.bf16.mxu0 %v15919_v3  ;;  %v13244_v56 = vcombine.low %v5618_v32, %v5622_v12  ;;  %v13277_v32 = vcombine.high %v5650_v47, %v5654_v11 }
 0x6f3   :  { %9495 = vmatpush1.bf16.msra.mxu0 %v13228_v2  ;;  %9609 = vmatprep.mubr.bf16.mxu1 %v15919_v3  ;;  %v13255_v3 = vcombine.high %v5627_v53, %v5631_v51  ;;  %v5651_v2 = vld [vmem:[#allocation9 + $0x598] sm:$0xff] }
 0x6f4   :  { %9641 = vmatpush1.bf16.msra.mxu1 %v13230_v1  ;;  %9496 = vmatprep.subr.bf16.mxu0 %v13237_v20  ;;  %v5655_v1 = vld [vmem:[#allocation9 + $0x5b8] sm:$0xff]  ;;  %v13268_v20 = vcombine.low %v5642_v7, %v5646_v48 }
 0x6f5   :  { %9642 = vmatprep.subr.bf16.mxu1 %v13239_v0  ;;  %v13270_v0 = vcombine.low %v5643_v49, %v5647_v25  ;;  %v13279_v12 = vcombine.high %v5651_v2, %v5655_v1  ;;  %v5667_v53 = vld [vmem:[#allocation9 + $0x618] sm:$0xff] }
 0x6f6   :  { %v5671_v51 = vld [vmem:[#allocation9 + $0x638] sm:$0xff] }
 0x6f7   :  { %9497 = vmatpush1.bf16.msra.mxu0 %v13236_v36  ;;  %v5659_v36 = vld [vmem:[#allocation9 + $0x5d8] sm:$0xff] }
 0x6f8   :  { %9643 = vmatpush1.bf16.msra.mxu1 %v13238_v23  ;;  %9498 = vmatprep.subr.bf16.mxu0 %v13245_v37  ;;  %v5663_v23 = vld [vmem:[#allocation9 + $0x5f8] sm:$0xff]  ;;  %v13278_v37 = vcombine.low %v5651_v2, %v5655_v1 }
 0x6f9   :  { %9464 = vmatmul.mubr.bf16.gmra.mrb[124].mxu0 %v15915_v6  ;;  %9644 = vmatprep.subr.bf16.mxu1 %v13247_v19  ;;  %v13285_v19 = vcombine.high %v5658_v16, %v5662_v10  ;;  %v5683_v7 = vld [vmem:[#allocation9 + $0x698] sm:$0xff] }
 0x6fa   :  { %9610 = vmatmul.mubr.bf16.gmra.mrb[124].mxu1 %v15915_v6  ;;  %9473 = vmatprep.mubr.bf16.mxu0 %v15931_v14  ;;  %v13260_v6 = vcombine.low %v5634_v60, %v5638_v59  ;;  %v5674_v60 = vld [vmem:[#allocation9 + $0x650] sm:$0xff]  ;;  %v5687_v48 = vld [vmem:[#allocation9 + $0x6b8] sm:$0xff] }
 0x6fb   :  { %9499 = vmatpush1.bf16.msra.mxu0 %v13244_v56  ;;  %9619 = vmatprep.mubr.bf16.mxu1 %v15931_v14  ;;  %v13271_v14 = vcombine.high %v5643_v49, %v5647_v25  ;;  %v13284_v56 = vcombine.low %v5658_v16, %v5662_v10  ;;  %v5678_v59 = vld [vmem:[#allocation9 + $0x670] sm:$0xff]  ;;  %v13302_v25 = vcombine.low %v5675_v22, %v5679_v44  ;;  %v5699_v16 = vld [vmem:[#allocation9 + $0x718] sm:$0xff] }
 0x6fc   :  { %9645 = vmatpush1.bf16.msra.mxu1 %v13246_v26  ;;  %9500 = vmatprep.subr.bf16.mxu0 %v13253_v15  ;;  %v13286_v26 = vcombine.low %v5659_v36, %v5663_v23  ;;  %v13293_v15 = vcombine.high %v5666_v63, %v5670_v50  ;;  %v13300_v49 = vcombine.low %v5674_v60, %v5678_v59  ;;  %v5703_v10 = vld [vmem:[#allocation9 + $0x738] sm:$0xff] }
 0x6fd   :  { %9646 = vmatprep.subr.bf16.mxu1 %v13255_v3  ;;  %v13295_v3 = vcombine.high %v5667_v53, %v5671_v51  ;;  %v13310_v1 = vcombine.low %v5683_v7, %v5687_v48 }
 0x6ff   :  { %9501 = vmatpush1.bf16.msra.mxu0 %v13252_v9  ;;  %v13294_v9 = vcombine.low %v5667_v53, %v5671_v51  ;;  %v13326_v51 = vcombine.low %v5699_v16, %v5703_v10 }
 0x700   :  { %9647 = vmatpush1.bf16.msra.mxu1 %v13254_v13  ;;  %9502 = vmatprep.subr.bf16.mxu0 %v13261_v52  ;;  %v13301_v13 = vcombine.high %v5674_v60, %v5678_v59  ;;  %v13303_v52 = vcombine.high %v5675_v22, %v5679_v44  ;;  %v5715_v60 = vld [vmem:[#allocation9 + $0x798] sm:$0xff] }
 0x701   :  { %9474 = vmatmul.mubr.bf16.gmra.mrb[128].mxu0 %v15927_v38  ;;  %9648 = vmatprep.subr.bf16.mxu1 %v13263_v43  ;;  %v5686_v43 = vld [vmem:[#allocation9 + $0x6b0] sm:$0xff]  ;;  %v5719_v59 = vld [vmem:[#allocation9 + $0x7b8] sm:$0xff] }
 0x702   :  { %9620 = vmatmul.mubr.bf16.gmra.mrb[128].mxu1 %v15927_v38  ;;  %9483 = vmatprep.mubr.bf16.mxu0 %v15943_v31  ;;  %v13276_v38 = vcombine.low %v5650_v47, %v5654_v11  ;;  %v5691_v47 = vld [vmem:[#allocation9 + $0x6d8] sm:$0xff] }
 0x703   :  { %9503 = vmatpush1.bf16.msra.mxu0 %v13260_v6  ;;  %9629 = vmatprep.mubr.bf16.mxu1 %v15943_v31  ;;  %v13287_v31 = vcombine.high %v5659_v36, %v5663_v23  ;;  %v5695_v11 = vld [vmem:[#allocation9 + $0x6f8] sm:$0xff] }
 0x704   :  { %9649 = vmatpush1.bf16.msra.mxu1 %v13262_v55  ;;  %9504 = vmatprep.subr.bf16.mxu0 %v13269_v61  ;;  %v13311_v55 = vcombine.high %v5683_v7, %v5687_v48  ;;  %v5690_v61 = vld [vmem:[#allocation9 + $0x6d0] sm:$0xff]  ;;  %v13318_v23 = vcombine.low %v5691_v47, %v5695_v11  ;;  %v13342_v48 = vcombine.low %v5715_v60, %v5719_v59 }
 0x705   :  { %9650 = vmatprep.subr.bf16.mxu1 %v13271_v14  ;;  %v5694_v14 = vld [vmem:[#allocation9 + $0x6f0] sm:$0xff] }
 0x706   :  { %v13316_v36 = vcombine.low %v5690_v61, %v5694_v14 }
 0x707   :  { %9505 = vmatpush1.bf16.msra.mxu0 %v13268_v20  ;;  %v13317_v20 = vcombine.high %v5690_v61, %v5694_v14  ;;  %v9715_v61 = vld [vmem:[#allocation9 + $0x1008] sm:$0xff] }
 0x708   :  { %9651 = vmatpush1.bf16.msra.mxu1 %v13270_v0  ;;  %9506 = vmatprep.subr.bf16.mxu0 %v13277_v32  ;;  %v13319_v0 = vcombine.high %v5691_v47, %v5695_v11  ;;  %v5698_v32 = vld [vmem:[#allocation9 + $0x710] sm:$0xff]  ;;  %v9719_v14 = vld [vmem:[#allocation9 + $0x1028] sm:$0xff] }
 0x709   :  { %9484 = vmatmul.mubr.bf16.gmra.mrb[132].mxu0 %v15939_v24  ;;  %9652 = vmatprep.subr.bf16.mxu1 %v13279_v12  ;;  %v5702_v12 = vld [vmem:[#allocation9 + $0x730] sm:$0xff] }
 0x70a   :  { %9630 = vmatmul.mubr.bf16.gmra.mrb[132].mxu1 %v15939_v24  ;;  %9526 = vmatprep.mubr.bf16.mxu0 %v15913_v21  ;;  %v13292_v24 = vcombine.low %v5666_v63, %v5670_v50  ;;  %v5707_v63 = vld [vmem:[#allocation9 + $0x758] sm:$0xff]  ;;  %v13324_v53 = vcombine.low %v5698_v32, %v5702_v12 }
 0x70b   :  { %9507 = vmatpush1.bf16.msra.mxu0 %v13276_v38  ;;  %9672 = vmatprep.mubr.bf16.mxu1 %v15913_v21  ;;  %v5682_v21 = vld [vmem:[#allocation9 + $0x690] sm:$0xff]  ;;  %v13325_v38 = vcombine.high %v5698_v32, %v5702_v12  ;;  %v5711_v50 = vld [vmem:[#allocation9 + $0x778] sm:$0xff]  ;;  %v9723_v32 = vld [vmem:[#allocation9 + $0x1048] sm:$0xff] }
 0x70c   :  { %9653 = vmatpush1.bf16.msra.mxu1 %v13278_v37  ;;  %9508 = vmatprep.subr.bf16.mxu0 %v13285_v19  ;;  %v13309_v6 = vcombine.high %v5682_v21, %v5686_v43  ;;  %v13308_v2 = vcombine.low %v5682_v21, %v5686_v43  ;;  %v13327_v37 = vcombine.high %v5699_v16, %v5703_v10  ;;  %v5706_v19 = vld [vmem:[#allocation9 + $0x750] sm:$0xff]  ;;  %v5723_v21 = vld [vmem:[#allocation9 + $0x7d8] sm:$0xff]  ;;  %v9727_v12 = vld [vmem:[#allocation9 + $0x1068] sm:$0xff] }
 0x70d   :  { %9654 = vmatprep.subr.bf16.mxu1 %v13287_v31  ;;  %v5710_v31 = vld [vmem:[#allocation9 + $0x770] sm:$0xff]  ;;  %v13334_v44 = vcombine.low %v5707_v63, %v5711_v50  ;;  %v5727_v43 = vld [vmem:[#allocation9 + $0x7f8] sm:$0xff]  ;;  %v13354_v10 = vcombine.low %v9715_v61, %v9719_v14 }
 0x70e   :  { %v13332_v22 = vcombine.low %v5706_v19, %v5710_v31  ;;  %v13350_v11 = vcombine.low %v5723_v21, %v5727_v43 }
 0x70f   :  { %9509 = vmatpush1.bf16.msra.mxu0 %v13284_v56  ;;  %v13333_v56 = vcombine.high %v5706_v19, %v5710_v31  ;;  %v9731_v19 = vld [vmem:[#allocation9 + $0x1088] sm:$0xff] }
 0x710   :  { %9655 = vmatpush1.bf16.msra.mxu1 %v13286_v26  ;;  %9510 = vmatprep.subr.bf16.mxu0 %v13293_v15  ;;  %v13335_v26 = vcombine.high %v5707_v63, %v5711_v50  ;;  %v5714_v15 = vld [vmem:[#allocation9 + $0x790] sm:$0xff]  ;;  %v9735_v31 = vld [vmem:[#allocation9 + $0x10a8] sm:$0xff]  ;;  %v13362_v50 = vcombine.low %v9723_v32, %v9727_v12 }
 0x711   :  { %9656 = vmatprep.subr.bf16.mxu1 %v13295_v3  ;;  %v5718_v3 = vld [vmem:[#allocation9 + $0x7b0] sm:$0xff] }
 0x712   :  { %v13340_v7 = vcombine.low %v5714_v15, %v5718_v3 }
 0x713   :  { %9511 = vmatpush1.bf16.msra.mxu0 %v13292_v24  ;;  %v13341_v24 = vcombine.high %v5714_v15, %v5718_v3  ;;  %v9739_v15 = vld [vmem:[#allocation9 + $0x10c8] sm:$0xff] }
 0x714   :  { %9657 = vmatpush1.bf16.msra.mxu1 %v13294_v9  ;;  %9512 = vmatprep.subr.bf16.mxu0 %v13301_v13  ;;  %v13343_v9 = vcombine.high %v5715_v60, %v5719_v59  ;;  %v5722_v13 = vld [vmem:[#allocation9 + $0x7d0] sm:$0xff]  ;;  %v9743_v3 = vld [vmem:[#allocation9 + $0x10e8] sm:$0xff]  ;;  %v13370_v60 = vcombine.low %v9731_v19, %v9735_v31 }
 0x715   :  { %9658 = vmatprep.subr.bf16.mxu1 %v13303_v52  ;;  %v5726_v52 = vld [vmem:[#allocation9 + $0x7f0] sm:$0xff] }
 0x716   :  { %v13348_v47 = vcombine.low %v5722_v13, %v5726_v52 }
 0x717   :  { %9513 = vmatpush1.bf16.msra.mxu0 %v13300_v49  ;;  %v13349_v49 = vcombine.high %v5722_v13, %v5726_v52  ;;  %v13378_v52 = vcombine.low %v9739_v15, %v9743_v3 }
 0x718   :  { %9659 = vmatpush1.bf16.msra.mxu1 %v13302_v25  ;;  %9514 = vmatprep.subr.bf16.mxu0 %v13309_v6  ;;  %v13351_v25 = vcombine.high %v5723_v21, %v5727_v43  ;;  %v9714_v6 = vld [vmem:[#allocation9 + $0x1000] sm:$0xff] }
 0x719   :  { %9660 = vmatprep.subr.bf16.mxu1 %v13311_v55  ;;  %v9718_v55 = vld [vmem:[#allocation9 + $0x1020] sm:$0xff] }
 0x71a   :  { %v13352_v16 = vcombine.low %v9714_v6, %v9718_v55 }
 0x71b   :  { %9515 = vmatpush1.bf16.msra.mxu0 %v13308_v2  ;;  %v13353_v2 = vcombine.high %v9714_v6, %v9718_v55 }
 0x71c   :  { %9661 = vmatpush1.bf16.msra.mxu1 %v13310_v1  ;;  %9516 = vmatprep.subr.bf16.mxu0 %v13317_v20  ;;  %v13355_v1 = vcombine.high %v9715_v61, %v9719_v14  ;;  %v9722_v20 = vld [vmem:[#allocation9 + $0x1040] sm:$0xff] }
 0x71d   :  { %9662 = vmatprep.subr.bf16.mxu1 %v13319_v0  ;;  %v9726_v0 = vld [vmem:[#allocation9 + $0x1060] sm:$0xff] }
 0x71e   :  { %v13360_v63 = vcombine.low %v9722_v20, %v9726_v0  ;;  %v9762_v61 = vld [vmem:[#allocation9 + $0x1180] sm:$0xff] }
 0x71f   :  { %9517 = vmatpush1.bf16.msra.mxu0 %v13316_v36  ;;  %v13361_v36 = vcombine.high %v9722_v20, %v9726_v0  ;;  %v9766_v14 = vld [vmem:[#allocation9 + $0x11a0] sm:$0xff] }
 0x720   :  { %9663 = vmatpush1.bf16.msra.mxu1 %v13318_v23  ;;  %9518 = vmatprep.subr.bf16.mxu0 %v13325_v38  ;;  %v13363_v23 = vcombine.high %v9723_v32, %v9727_v12  ;;  %v9730_v38 = vld [vmem:[#allocation9 + $0x1080] sm:$0xff]  ;;  %v13401_v20 = vcombine.high %v9762_v61, %v9766_v14 }
 0x721   :  { %9664 = vmatprep.subr.bf16.mxu1 %v13327_v37  ;;  %v9734_v37 = vld [vmem:[#allocation9 + $0x10a0] sm:$0xff] }
 0x722   :  { %v9770_v32 = vld [vmem:[#allocation9 + $0x11c0] sm:$0xff] }
 0x723   :  { %9519 = vmatpush1.bf16.msra.mxu0 %v13324_v53  ;;  %v13369_v53 = vcombine.high %v9730_v38, %v9734_v37  ;;  %v9774_v12 = vld [vmem:[#allocation9 + $0x11e0] sm:$0xff] }
 0x724   :  { %9665 = vmatpush1.bf16.msra.mxu1 %v13326_v51  ;;  %9520 = vmatprep.subr.bf16.mxu0 %v13333_v56  ;;  %v13371_v51 = vcombine.high %v9731_v19, %v9735_v31  ;;  %v9738_v56 = vld [vmem:[#allocation9 + $0x10c0] sm:$0xff]  ;;  %v9779_v19 = vld [vmem:[#allocation9 + $0x1208] sm:$0xff] }
 0x725   :  { %9666 = vmatprep.subr.bf16.mxu1 %v13335_v26  ;;  %v9742_v26 = vld [vmem:[#allocation9 + $0x10e0] sm:$0xff]  ;;  %v9783_v31 = vld [vmem:[#allocation9 + $0x1228] sm:$0xff] }
 0x726   :  { %v13377_v59 = vcombine.high %v9738_v56, %v9742_v26  ;;  %v13376_v13 = vcombine.low %v9738_v56, %v9742_v26  ;;  %v9786_v56 = vld [vmem:[#allocation9 + $0x1240] sm:$0xff] }
 0x727   :  { %9521 = vmatpush1.bf16.msra.mxu0 %v13332_v22  ;;  %v9746_v22 = vld [vmem:[#allocation9 + $0x1100] sm:$0xff] }
 0x728   :  { %9667 = vmatpush1.bf16.msra.mxu1 %v13334_v44  ;;  %9522 = vmatprep.subr.bf16.mxu0 %v13341_v24  ;;  %v9750_v44 = vld [vmem:[#allocation9 + $0x1120] sm:$0xff]  ;;  %v9747_v24 = vld [vmem:[#allocation9 + $0x1108] sm:$0xff] }
 0x729   :  { %9668 = vmatprep.subr.bf16.mxu1 %v13343_v9  ;;  %v9751_v9 = vld [vmem:[#allocation9 + $0x1128] sm:$0xff]  ;;  %v13385_v21 = vcombine.high %v9746_v22, %v9750_v44  ;;  %v9790_v26 = vld [vmem:[#allocation9 + $0x1260] sm:$0xff] }
 0x72a   :  { %v13387_v43 = vcombine.high %v9747_v24, %v9751_v9  ;;  %v13386_v6 = vcombine.low %v9747_v24, %v9751_v9  ;;  %v9799_v24 = vld [vmem:[#allocation9 + $0x12a8] sm:$0xff]  ;;  %v13424_v9 = vcombine.low %v9786_v56, %v9790_v26 }
 0x72b   :  { %9523 = vmatpush1.bf16.msra.mxu0 %v13340_v7  ;;  %v9754_v7 = vld [vmem:[#allocation9 + $0x1140] sm:$0xff] }
 0x72c   :  { %9669 = vmatpush1.bf16.msra.mxu1 %v13342_v48  ;;  %9524 = vmatprep.subr.bf16.mxu0 %v13349_v49  ;;  %v9758_v48 = vld [vmem:[#allocation9 + $0x1160] sm:$0xff]  ;;  %v9755_v49 = vld [vmem:[#allocation9 + $0x1148] sm:$0xff] }
 0x72d   :  { %9670 = vmatprep.subr.bf16.mxu1 %v13351_v25  ;;  %v9759_v25 = vld [vmem:[#allocation9 + $0x1168] sm:$0xff]  ;;  %v13393_v55 = vcombine.high %v9754_v7, %v9758_v48 }
 0x72f   :  { %9525 = vmatpush1.bf16.msra.mxu0 %v13348_v47  ;;  %v9763_v47 = vld [vmem:[#allocation9 + $0x1188] sm:$0xff] }
 0x730   :  { %9671 = vmatpush1.bf16.msra.mxu1 %v13350_v11  ;;  %11250 = vmatprep.subr.bf16.mxu0 %v13353_v2  ;;  %v9767_v11 = vld [vmem:[#allocation9 + $0x11a8] sm:$0xff]  ;;  %v13392_v2 = vcombine.low %v9754_v7, %v9758_v48  ;;  %v9806_v7 = vld [vmem:[#allocation9 + $0x12e0] sm:$0xff] }
 0x731   :  { %11396 = vmatprep.subr.bf16.mxu1 %v13355_v1  ;;  %v13394_v1 = vcombine.low %v9755_v49, %v9759_v25  ;;  %v13403_v0 = vcombine.high %v9763_v47, %v9767_v11  ;;  %v9803_v48 = vld [vmem:[#allocation9 + $0x12c8] sm:$0xff] }
 0x732   :  { %9527 = vmatmul.mubr.bf16.vlgmr.msra.gmra.mrb[120].mxu0 %v15909_v18 }
 0x733   :  { %9673 = vmatmul.mubr.bf16.vlgmr.msra.gmra.mrb[120].mxu1 %v15909_v18  ;;  %9536 = vmatprep.mubr.bf16.mxu0 %v15921_v33  ;;  %v13368_v18 = vcombine.low %v9730_v38, %v9734_v37  ;;  %v9778_v38 = vld [vmem:[#allocation9 + $0x1200] sm:$0xff] }
 0x734   :  { %9682 = vmatprep.mubr.bf16.mxu1 %v15921_v33  ;;  %11251 = vmatpush1.bf16.msra.mxu0 %v13352_v16  ;;  %v13379_v33 = vcombine.high %v9739_v15, %v9743_v3  ;;  %v9771_v16 = vld [vmem:[#allocation9 + $0x11c8] sm:$0xff]  ;;  %v9782_v37 = vld [vmem:[#allocation9 + $0x1220] sm:$0xff] }
 0x735   :  { %11397 = vmatpush1.bf16.msra.mxu1 %v13354_v10  ;;  %11252 = vmatprep.subr.bf16.mxu0 %v13361_v36  ;;  %v9775_v10 = vld [vmem:[#allocation9 + $0x11e8] sm:$0xff]  ;;  %v13402_v36 = vcombine.low %v9763_v47, %v9767_v11 }
 0x736   :  { %11398 = vmatprep.subr.bf16.mxu1 %v13363_v23  ;;  %v13409_v23 = vcombine.high %v9770_v32, %v9774_v12  ;;  %v9787_v15 = vld [vmem:[#allocation9 + $0x1248] sm:$0xff] }
 0x737   :  { %v9791_v3 = vld [vmem:[#allocation9 + $0x1268] sm:$0xff] }
 0x738   :  { %11253 = vmatpush1.bf16.msra.mxu0 %v13360_v63  ;;  %v13408_v63 = vcombine.low %v9770_v32, %v9774_v12  ;;  %v9815_v47 = vld [vmem:[#allocation9 + $0x1328] sm:$0xff]  ;;  %v9822_v32 = vld [vmem:[#allocation9 + $0x1360] sm:$0xff] }
 0x739   :  { %11399 = vmatpush1.bf16.msra.mxu1 %v13362_v50  ;;  %11254 = vmatprep.subr.bf16.mxu0 %v13369_v53  ;;  %v13410_v50 = vcombine.low %v9771_v16, %v9775_v10  ;;  %v13417_v53 = vcombine.high %v9778_v38, %v9782_v37  ;;  %v9819_v12 = vld [vmem:[#allocation9 + $0x1348] sm:$0xff] }
 0x73a   :  { %9537 = vmatmul.mubr.bf16.gmra.mrb[124].mxu0 %v15917_v42  ;;  %11400 = vmatprep.subr.bf16.mxu1 %v13371_v51  ;;  %v13419_v51 = vcombine.high %v9779_v19, %v9783_v31 }
 0x73b   :  { %9683 = vmatmul.mubr.bf16.gmra.mrb[124].mxu1 %v15917_v42  ;;  %9546 = vmatprep.mubr.bf16.mxu0 %v15933_v46  ;;  %v13384_v42 = vcombine.low %v9746_v22, %v9750_v44  ;;  %v9798_v22 = vld [vmem:[#allocation9 + $0x12a0] sm:$0xff]  ;;  %v9795_v44 = vld [vmem:[#allocation9 + $0x1288] sm:$0xff] }
 0x73c   :  { %9692 = vmatprep.mubr.bf16.mxu1 %v15933_v46  ;;  %11255 = vmatpush1.bf16.msra.mxu0 %v13368_v18  ;;  %v13395_v46 = vcombine.high %v9755_v49, %v9759_v25  ;;  %v13418_v18 = vcombine.low %v9779_v19, %v9783_v31  ;;  %v9807_v49 = vld [vmem:[#allocation9 + $0x12e8] sm:$0xff] }
 0x73d   :  { %11401 = vmatpush1.bf16.msra.mxu1 %v13370_v60  ;;  %11256 = vmatprep.subr.bf16.mxu0 %v13377_v59  ;;  %v13425_v60 = vcombine.high %v9786_v56, %v9790_v26  ;;  %v13427_v59 = vcombine.high %v9787_v15, %v9791_v3  ;;  %v9831_v19 = vld [vmem:[#allocation9 + $0x13a8] sm:$0xff]  ;;  %v9838_v56 = vld [vmem:[#allocation9 + $0x13e0] sm:$0xff] }
 0x73e   :  { %11402 = vmatprep.subr.bf16.mxu1 %v13379_v33  ;;  %v9794_v33 = vld [vmem:[#allocation9 + $0x1280] sm:$0xff]  ;;  %v9835_v26 = vld [vmem:[#allocation9 + $0x13c8] sm:$0xff] }
 0x73f   :  { %v13432_v25 = vcombine.low %v9794_v33, %v9798_v22 }
 0x740   :  { %11257 = vmatpush1.bf16.msra.mxu0 %v13376_v13  ;;  %v13426_v13 = vcombine.low %v9787_v15, %v9791_v3  ;;  %v9839_v15 = vld [vmem:[#allocation9 + $0x13e8] sm:$0xff] }
 0x741   :  { %11403 = vmatpush1.bf16.msra.mxu1 %v13378_v52  ;;  %11258 = vmatprep.subr.bf16.mxu0 %v13385_v21  ;;  %v13433_v52 = vcombine.high %v9794_v33, %v9798_v22  ;;  %v13435_v21 = vcombine.high %v9795_v44, %v9799_v24  ;;  %v9846_v33 = vld [vmem:[#allocation9 + $0x1420] sm:$0xff]  ;;  %v9843_v22 = vld [vmem:[#allocation9 + $0x1408] sm:$0xff] }
 0x742   :  { %9547 = vmatmul.mubr.bf16.gmra.mrb[128].mxu0 %v15929_v58  ;;  %11404 = vmatprep.subr.bf16.mxu1 %v13387_v43  ;;  %v9802_v43 = vld [vmem:[#allocation9 + $0x12c0] sm:$0xff] }
 0x743   :  { %9693 = vmatmul.mubr.bf16.gmra.mrb[128].mxu1 %v15929_v58  ;;  %9556 = vmatprep.mubr.bf16.mxu0 %v15945_v39  ;;  %v13400_v58 = vcombine.low %v9762_v61, %v9766_v14  ;;  %v9814_v61 = vld [vmem:[#allocation9 + $0x1320] sm:$0xff]  ;;  %v9811_v14 = vld [vmem:[#allocation9 + $0x1308] sm:$0xff]  ;;  %v13440_v11 = vcombine.low %v9802_v43, %v9806_v7 }
 0x744   :  { %9702 = vmatprep.mubr.bf16.mxu1 %v15945_v39  ;;  %11259 = vmatpush1.bf16.msra.mxu0 %v13384_v42  ;;  %v13411_v39 = vcombine.high %v9771_v16, %v9775_v10  ;;  %v13434_v42 = vcombine.low %v9795_v44, %v9799_v24  ;;  %v9823_v16 = vld [vmem:[#allocation9 + $0x1368] sm:$0xff] }
 0x745   :  { %11405 = vmatpush1.bf16.msra.mxu1 %v13386_v6  ;;  %11260 = vmatprep.subr.bf16.mxu0 %v13393_v55  ;;  %v13441_v6 = vcombine.high %v9802_v43, %v9806_v7  ;;  %v13443_v55 = vcombine.high %v9803_v48, %v9807_v49  ;;  %v9847_v44 = vld [vmem:[#allocation9 + $0x1428] sm:$0xff]  ;;  %v9854_v43 = vld [vmem:[#allocation9 + $0x1460] sm:$0xff] }
 0x746   :  { %11406 = vmatprep.subr.bf16.mxu1 %v13395_v46  ;;  %v9810_v46 = vld [vmem:[#allocation9 + $0x1300] sm:$0xff]  ;;  %v9851_v7 = vld [vmem:[#allocation9 + $0x1448] sm:$0xff] }
 0x747   :  { %v13448_v10 = vcombine.low %v9810_v46, %v9814_v61 }
 0x748   :  { %11261 = vmatpush1.bf16.msra.mxu0 %v13392_v2  ;;  %v13442_v2 = vcombine.low %v9803_v48, %v9807_v49  ;;  %v9855_v48 = vld [vmem:[#allocation9 + $0x1468] sm:$0xff] }
 0x749   :  { %11407 = vmatpush1.bf16.msra.mxu1 %v13394_v1  ;;  %11262 = vmatprep.subr.bf16.mxu0 %v13401_v20  ;;  %v13449_v1 = vcombine.high %v9810_v46, %v9814_v61  ;;  %v13451_v20 = vcombine.high %v9811_v14, %v9815_v47  ;;  %v9862_v46 = vld [vmem:[#allocation9 + $0x14a0] sm:$0xff]  ;;  %v9859_v61 = vld [vmem:[#allocation9 + $0x1488] sm:$0xff] }
 0x74a   :  { %9557 = vmatmul.mubr.bf16.gmra.mrb[132].mxu0 %v15941_v34  ;;  %11408 = vmatprep.subr.bf16.mxu1 %v13403_v0  ;;  %v9818_v0 = vld [vmem:[#allocation9 + $0x1340] sm:$0xff] }
 0x74b   :  { %9703 = vmatmul.mubr.bf16.gmra.mrb[132].mxu1 %v15941_v34  ;;  %11282 = vmatprep.mubr.bf16.mxu0 %v15955_v4  ;;  %v13416_v34 = vcombine.low %v9778_v38, %v9782_v37  ;;  %v9830_v38 = vld [vmem:[#allocation9 + $0x13a0] sm:$0xff]  ;;  %v9827_v37 = vld [vmem:[#allocation9 + $0x1388] sm:$0xff]  ;;  %v13456_v31 = vcombine.low %v9818_v0, %v9822_v32 }
 0x74c   :  { %11263 = vmatpush1.bf16.msra.mxu0 %v13400_v58  ;;  %11428 = vmatprep.mubr.bf16.mxu1 %v15955_v4  ;;  %v13450_v58 = vcombine.low %v9811_v14, %v9815_v47  ;;  %v9863_v14 = vld [vmem:[#allocation9 + $0x14a8] sm:$0xff] }
 0x74d   :  { %11409 = vmatpush1.bf16.msra.mxu1 %v13402_v36  ;;  %11264 = vmatprep.subr.bf16.mxu0 %v13409_v23  ;;  %v13457_v36 = vcombine.high %v9818_v0, %v9822_v32  ;;  %v13459_v23 = vcombine.high %v9819_v12, %v9823_v16  ;;  %v9870_v0 = vld [vmem:[#allocation9 + $0x14e0] sm:$0xff]  ;;  %v9867_v32 = vld [vmem:[#allocation9 + $0x14c8] sm:$0xff] }
 0x74e   :  { %11410 = vmatprep.subr.bf16.mxu1 %v13411_v39  ;;  %v9826_v39 = vld [vmem:[#allocation9 + $0x1380] sm:$0xff] }
 0x74f   :  { %v13464_v3 = vcombine.low %v9826_v39, %v9830_v38 }
 0x750   :  { %11265 = vmatpush1.bf16.msra.mxu0 %v13408_v63  ;;  %v13458_v63 = vcombine.low %v9819_v12, %v9823_v16  ;;  %v9871_v12 = vld [vmem:[#allocation9 + $0x14e8] sm:$0xff] }
 0x751   :  { %11411 = vmatpush1.bf16.msra.mxu1 %v13410_v50  ;;  %11266 = vmatprep.subr.bf16.mxu0 %v13417_v53  ;;  %v13465_v50 = vcombine.high %v9826_v39, %v9830_v38  ;;  %v13467_v53 = vcombine.high %v9827_v37, %v9831_v19  ;;  %v9878_v39 = vld [vmem:[#allocation9 + $0x1520] sm:$0xff]  ;;  %v9875_v38 = vld [vmem:[#allocation9 + $0x1508] sm:$0xff] }
 0x752   :  { %11412 = vmatprep.subr.bf16.mxu1 %v13419_v51  ;;  %v9834_v51 = vld [vmem:[#allocation9 + $0x13c0] sm:$0xff] }
 0x753   :  { %v13472_v24 = vcombine.low %v9834_v51, %v9838_v56 }
 0x754   :  { %11267 = vmatpush1.bf16.msra.mxu0 %v13416_v34  ;;  %v13466_v34 = vcombine.low %v9827_v37, %v9831_v19  ;;  %v9879_v37 = vld [vmem:[#allocation9 + $0x1528] sm:$0xff] }
 0x755   :  { %11413 = vmatpush1.bf16.msra.mxu1 %v13418_v18  ;;  %11268 = vmatprep.subr.bf16.mxu0 %v13425_v60  ;;  %v13473_v18 = vcombine.high %v9834_v51, %v9838_v56  ;;  %v13475_v60 = vcombine.high %v9835_v26, %v9839_v15  ;;  %v9886_v51 = vld [vmem:[#allocation9 + $0x1560] sm:$0xff]  ;;  %v9883_v56 = vld [vmem:[#allocation9 + $0x1548] sm:$0xff] }
 0x756   :  { %11414 = vmatprep.subr.bf16.mxu1 %v13427_v59  ;;  %v9842_v59 = vld [vmem:[#allocation9 + $0x1400] sm:$0xff] }
 0x757   :  { %v13480_v49 = vcombine.low %v9842_v59, %v9846_v33 }
 0x758   :  { %11269 = vmatpush1.bf16.msra.mxu0 %v13424_v9  ;;  %v13474_v9 = vcombine.low %v9835_v26, %v9839_v15  ;;  %v9887_v26 = vld [vmem:[#allocation9 + $0x1568] sm:$0xff] }
 0x759   :  { %11415 = vmatpush1.bf16.msra.mxu1 %v13426_v13  ;;  %11270 = vmatprep.subr.bf16.mxu0 %v13433_v52  ;;  %v13481_v13 = vcombine.high %v9842_v59, %v9846_v33  ;;  %v13483_v52 = vcombine.high %v9843_v22, %v9847_v44  ;;  %v9894_v59 = vld [vmem:[#allocation9 + $0x15a0] sm:$0xff]  ;;  %v9891_v33 = vld [vmem:[#allocation9 + $0x1588] sm:$0xff] }
 0x75a   :  { %11416 = vmatprep.subr.bf16.mxu1 %v13435_v21  ;;  %v9850_v21 = vld [vmem:[#allocation9 + $0x1440] sm:$0xff] }
 0x75b   :  { %v13488_v47 = vcombine.low %v9850_v21, %v9854_v43 }
 0x75c   :  { %11271 = vmatpush1.bf16.msra.mxu0 %v13432_v25  ;;  %v13482_v25 = vcombine.low %v9843_v22, %v9847_v44  ;;  %v9895_v22 = vld [vmem:[#allocation9 + $0x15a8] sm:$0xff] }
 0x75d   :  { %11417 = vmatpush1.bf16.msra.mxu1 %v13434_v42  ;;  %11272 = vmatprep.subr.bf16.mxu0 %v13441_v6  ;;  %v13489_v42 = vcombine.high %v9850_v21, %v9854_v43  ;;  %v13491_v6 = vcombine.high %v9851_v7, %v9855_v48  ;;  %v9902_v21 = vld [vmem:[#allocation9 + $0x15e0] sm:$0xff]  ;;  %v9899_v43 = vld [vmem:[#allocation9 + $0x15c8] sm:$0xff] }
 0x75e   :  { %11418 = vmatprep.subr.bf16.mxu1 %v13443_v55  ;;  %v9858_v55 = vld [vmem:[#allocation9 + $0x1480] sm:$0xff] }
 0x75f   :  { %v13496_v16 = vcombine.low %v9858_v55, %v9862_v46 }
 0x760   :  { %11273 = vmatpush1.bf16.msra.mxu0 %v13440_v11  ;;  %v13490_v11 = vcombine.low %v9851_v7, %v9855_v48  ;;  %v9903_v7 = vld [vmem:[#allocation9 + $0x15e8] sm:$0xff] }
 0x761   :  { %11419 = vmatpush1.bf16.msra.mxu1 %v13442_v2  ;;  %11274 = vmatprep.subr.bf16.mxu0 %v13449_v1  ;;  %v13497_v2 = vcombine.high %v9858_v55, %v9862_v46  ;;  %v13499_v1 = vcombine.high %v9859_v61, %v9863_v14  ;;  %v9910_v55 = vld [vmem:[#allocation9 + $0x1620] sm:$0xff]  ;;  %v9907_v46 = vld [vmem:[#allocation9 + $0x1608] sm:$0xff] }
 0x762   :  { %11420 = vmatprep.subr.bf16.mxu1 %v13451_v20  ;;  %v9866_v20 = vld [vmem:[#allocation9 + $0x14c0] sm:$0xff] }
 0x763   :  { %v13504_v19 = vcombine.low %v9866_v20, %v9870_v0 }
 0x764   :  { %11275 = vmatpush1.bf16.msra.mxu0 %v13448_v10  ;;  %v13498_v10 = vcombine.low %v9859_v61, %v9863_v14  ;;  %v9911_v61 = vld [vmem:[#allocation9 + $0x1628] sm:$0xff] }
 0x765   :  { %11421 = vmatpush1.bf16.msra.mxu1 %v13450_v58  ;;  %11276 = vmatprep.subr.bf16.mxu0 %v13457_v36  ;;  %v13505_v58 = vcombine.high %v9866_v20, %v9870_v0  ;;  %v13507_v36 = vcombine.high %v9867_v32, %v9871_v12  ;;  %v9918_v20 = vld [vmem:[#allocation9 + $0x1660] sm:$0xff]  ;;  %v9915_v0 = vld [vmem:[#allocation9 + $0x1648] sm:$0xff] }
 0x766   :  { %11422 = vmatprep.subr.bf16.mxu1 %v13459_v23  ;;  %v9874_v23 = vld [vmem:[#allocation9 + $0x1500] sm:$0xff] }
 0x767   :  { %v13512_v15 = vcombine.low %v9874_v23, %v9878_v39 }
 0x768   :  { %11277 = vmatpush1.bf16.msra.mxu0 %v13456_v31  ;;  %v13506_v31 = vcombine.low %v9867_v32, %v9871_v12  ;;  %v9919_v32 = vld [vmem:[#allocation9 + $0x1668] sm:$0xff] }
 0x769   :  { %11423 = vmatpush1.bf16.msra.mxu1 %v13458_v63  ;;  %11278 = vmatprep.subr.bf16.mxu0 %v13465_v50  ;;  %v13513_v63 = vcombine.high %v9874_v23, %v9878_v39  ;;  %v13515_v50 = vcombine.high %v9875_v38, %v9879_v37  ;;  %v9926_v23 = vld [vmem:[#allocation9 + $0x16a0] sm:$0xff]  ;;  %v9923_v39 = vld [vmem:[#allocation9 + $0x1688] sm:$0xff] }
 0x76a   :  { %11424 = vmatprep.subr.bf16.mxu1 %v13467_v53  ;;  %v9882_v53 = vld [vmem:[#allocation9 + $0x1540] sm:$0xff] }
 0x76b   :  { %v13520_v44 = vcombine.low %v9882_v53, %v9886_v51 }
 0x76c   :  { %11279 = vmatpush1.bf16.msra.mxu0 %v13464_v3  ;;  %v13514_v3 = vcombine.low %v9875_v38, %v9879_v37  ;;  %v9927_v38 = vld [vmem:[#allocation9 + $0x16a8] sm:$0xff] }
 0x76d   :  { %11425 = vmatpush1.bf16.msra.mxu1 %v13466_v34  ;;  %11280 = vmatprep.subr.bf16.mxu0 %v13473_v18  ;;  %v13521_v34 = vcombine.high %v9882_v53, %v9886_v51  ;;  %v13523_v18 = vcombine.high %v9883_v56, %v9887_v26  ;;  %v9934_v53 = vld [vmem:[#allocation9 + $0x16e0] sm:$0xff]  ;;  %v9931_v51 = vld [vmem:[#allocation9 + $0x16c8] sm:$0xff] }
 0x76e   :  { %11426 = vmatprep.subr.bf16.mxu1 %v13475_v60  ;;  %v9890_v60 = vld [vmem:[#allocation9 + $0x1580] sm:$0xff] }
 0x76f   :  { %v13528_v48 = vcombine.low %v9890_v60, %v9894_v59 }
 0x770   :  { %11281 = vmatpush1.bf16.msra.mxu0 %v13472_v24  ;;  %v13522_v24 = vcombine.low %v9883_v56, %v9887_v26  ;;  %v9935_v56 = vld [vmem:[#allocation9 + $0x16e8] sm:$0xff] }
 0x771   :  { %11427 = vmatpush1.bf16.msra.mxu1 %v13474_v9  ;;  %11323 = vmatprep.subr.bf16.mxu0 %v13481_v13  ;;  %v13529_v9 = vcombine.high %v9890_v60, %v9894_v59  ;;  %v13531_v13 = vcombine.high %v9891_v33, %v9895_v22  ;;  %v9942_v60 = vld [vmem:[#allocation9 + $0x1720] sm:$0xff]  ;;  %v9939_v59 = vld [vmem:[#allocation9 + $0x1708] sm:$0xff] }
 0x772   :  { %11469 = vmatprep.subr.bf16.mxu1 %v13483_v52  ;;  %v9898_v52 = vld [vmem:[#allocation9 + $0x15c0] sm:$0xff] }
 0x773   :  { %11283 = vmatmul.mubr.bf16.vlgmr.msra.gmra.mrb[104].mxu0 %v15951_v17  ;;  %v13536_v14 = vcombine.low %v9898_v52, %v9902_v21 }
 0x774   :  { %11429 = vmatmul.mubr.bf16.vlgmr.msra.gmra.mrb[104].mxu1 %v15951_v17  ;;  %11292 = vmatprep.mubr.bf16.mxu0 %v15967_v27 }
 0x775   :  { %11324 = vmatpush1.bf16.msra.mxu0 %v13480_v49  ;;  %11438 = vmatprep.mubr.bf16.mxu1 %v15967_v27  ;;  %v13530_v49 = vcombine.low %v9891_v33, %v9895_v22  ;;  %v9943_v33 = vld [vmem:[#allocation9 + $0x1728] sm:$0xff] }
 0x776   :  { %11470 = vmatpush1.bf16.msra.mxu1 %v13482_v25  ;;  %11325 = vmatprep.subr.bf16.mxu0 %v13489_v42  ;;  %v13537_v25 = vcombine.high %v9898_v52, %v9902_v21  ;;  %v13539_v42 = vcombine.high %v9899_v43, %v9903_v7  ;;  %v9950_v52 = vld [vmem:[#allocation9 + $0x1760] sm:$0xff]  ;;  %v9947_v21 = vld [vmem:[#allocation9 + $0x1748] sm:$0xff] }
 0x777   :  { %11471 = vmatprep.subr.bf16.mxu1 %v13491_v6  ;;  %v9906_v6 = vld [vmem:[#allocation9 + $0x1600] sm:$0xff] }
 0x778   :  { %v13544_v12 = vcombine.low %v9906_v6, %v9910_v55 }
 0x779   :  { %11326 = vmatpush1.bf16.msra.mxu0 %v13488_v47  ;;  %v13538_v47 = vcombine.low %v9899_v43, %v9903_v7  ;;  %v9951_v43 = vld [vmem:[#allocation9 + $0x1768] sm:$0xff] }
 0x77a   :  { %11472 = vmatpush1.bf16.msra.mxu1 %v13490_v11  ;;  %11327 = vmatprep.subr.bf16.mxu0 %v13497_v2  ;;  %v13545_v11 = vcombine.high %v9906_v6, %v9910_v55  ;;  %v13547_v2 = vcombine.high %v9907_v46, %v9911_v61  ;;  %v9958_v6 = vld [vmem:[#allocation9 + $0x17a0] sm:$0xff]  ;;  %v9955_v55 = vld [vmem:[#allocation9 + $0x1788] sm:$0xff] }
 0x77b   :  { %11293 = vmatmul.mubr.bf16.gmra.mrb[108].mxu0 %v15963_v28  ;;  %11473 = vmatprep.subr.bf16.mxu1 %v13499_v1  ;;  %v9914_v1 = vld [vmem:[#allocation9 + $0x1640] sm:$0xff] }
 0x77c   :  { %11439 = vmatmul.mubr.bf16.gmra.mrb[108].mxu1 %v15963_v28  ;;  %11302 = vmatprep.mubr.bf16.mxu0 %v15975_v8  ;;  %v13552_v37 = vcombine.low %v9914_v1, %v9918_v20 }
 0x77d   :  { %11328 = vmatpush1.bf16.msra.mxu0 %v13496_v16  ;;  %11448 = vmatprep.mubr.bf16.mxu1 %v15975_v8  ;;  %v13546_v16 = vcombine.low %v9907_v46, %v9911_v61  ;;  %v9959_v46 = vld [vmem:[#allocation9 + $0x17a8] sm:$0xff] }
 0x77e   :  { %11474 = vmatpush1.bf16.msra.mxu1 %v13498_v10  ;;  %11329 = vmatprep.subr.bf16.mxu0 %v13505_v58  ;;  %v13553_v10 = vcombine.high %v9914_v1, %v9918_v20  ;;  %v13555_v58 = vcombine.high %v9915_v0, %v9919_v32  ;;  %v9966_v1 = vld [vmem:[#allocation9 + $0x17e0] sm:$0xff]  ;;  %v9963_v20 = vld [vmem:[#allocation9 + $0x17c8] sm:$0xff] }
 0x77f   :  { %11475 = vmatprep.subr.bf16.mxu1 %v13507_v36  ;;  %v9922_v36 = vld [vmem:[#allocation9 + $0x1680] sm:$0xff] }
 0x780   :  { %v13560_v26 = vcombine.low %v9922_v36, %v9926_v23 }
 0x781   :  { %11330 = vmatpush1.bf16.msra.mxu0 %v13504_v19  ;;  %v13554_v19 = vcombine.low %v9915_v0, %v9919_v32  ;;  %v9967_v0 = vld [vmem:[#allocation9 + $0x17e8] sm:$0xff] }
 0x782   :  { %11476 = vmatpush1.bf16.msra.mxu1 %v13506_v31  ;;  %11331 = vmatprep.subr.bf16.mxu0 %v13513_v63  ;;  %v13561_v31 = vcombine.high %v9922_v36, %v9926_v23  ;;  %v13563_v63 = vcombine.high %v9923_v39, %v9927_v38  ;;  %v9720_v36 = vld [vmem:[#allocation9 + $0x1030] sm:$0xff]  ;;  %v9717_v23 = vld [vmem:[#allocation9 + $0x1018] sm:$0xff] }
 0x783   :  { %11303 = vmatmul.mubr.bf16.gmra.mrb[112].mxu0 %v15971_v62  ;;  %11477 = vmatprep.subr.bf16.mxu1 %v13515_v50  ;;  %v9930_v50 = vld [vmem:[#allocation9 + $0x16c0] sm:$0xff] }
 0x784   :  { %11449 = vmatmul.mubr.bf16.gmra.mrb[112].mxu1 %v15971_v62  ;;  %11312 = vmatprep.mubr.bf16.mxu0 %v15983_v40  ;;  %v13568_v22 = vcombine.low %v9930_v50, %v9934_v53 }
 0x785   :  { %11332 = vmatpush1.bf16.msra.mxu0 %v13512_v15  ;;  %11458 = vmatprep.mubr.bf16.mxu1 %v15983_v40  ;;  %v13562_v15 = vcombine.low %v9923_v39, %v9927_v38  ;;  %v9721_v39 = vld [vmem:[#allocation9 + $0x1038] sm:$0xff] }
 0x786   :  { %11478 = vmatpush1.bf16.msra.mxu1 %v13514_v3  ;;  %11333 = vmatprep.subr.bf16.mxu0 %v13521_v34  ;;  %v13569_v3 = vcombine.high %v9930_v50, %v9934_v53  ;;  %v13571_v34 = vcombine.high %v9931_v51, %v9935_v56  ;;  %v9728_v50 = vld [vmem:[#allocation9 + $0x1070] sm:$0xff]  ;;  %v9725_v53 = vld [vmem:[#allocation9 + $0x1058] sm:$0xff] }
 0x787   :  { %11479 = vmatprep.subr.bf16.mxu1 %v13523_v18  ;;  %v9938_v18 = vld [vmem:[#allocation9 + $0x1700] sm:$0xff] }
 0x788   :  { %v13576_v7 = vcombine.low %v9938_v18, %v9942_v60 }
 0x789   :  { %11334 = vmatpush1.bf16.msra.mxu0 %v13520_v44  ;;  %v13570_v44 = vcombine.low %v9931_v51, %v9935_v56  ;;  %v9729_v51 = vld [vmem:[#allocation9 + $0x1078] sm:$0xff] }
 0x78a   :  { %11480 = vmatpush1.bf16.msra.mxu1 %v13522_v24  ;;  %11335 = vmatprep.subr.bf16.mxu0 %v13529_v9  ;;  %v13577_v24 = vcombine.high %v9938_v18, %v9942_v60  ;;  %v13579_v9 = vcombine.high %v9939_v59, %v9943_v33  ;;  %v9736_v18 = vld [vmem:[#allocation9 + $0x10b0] sm:$0xff]  ;;  %v9733_v60 = vld [vmem:[#allocation9 + $0x1098] sm:$0xff] }
 0x78b   :  { %11313 = vmatmul.mubr.bf16.gmra.mrb[116].mxu0 %v15979_v54  ;;  %11481 = vmatprep.subr.bf16.mxu1 %v13531_v13  ;;  %v9946_v13 = vld [vmem:[#allocation9 + $0x1740] sm:$0xff] }
 0x78c   :  { %11459 = vmatmul.mubr.bf16.gmra.mrb[116].mxu1 %v15979_v54  ;;  %11355 = vmatprep.mubr.bf16.mxu0 %v15957_v41  ;;  %v13584_v61 = vcombine.low %v9946_v13, %v9950_v52 }
 0x78d   :  { %11336 = vmatpush1.bf16.msra.mxu0 %v13528_v48  ;;  %11501 = vmatprep.mubr.bf16.mxu1 %v15957_v41  ;;  %v13578_v48 = vcombine.low %v9939_v59, %v9943_v33  ;;  %v9737_v59 = vld [vmem:[#allocation9 + $0x10b8] sm:$0xff] }
 0x78e   :  { %11482 = vmatpush1.bf16.msra.mxu1 %v13530_v49  ;;  %11337 = vmatprep.subr.bf16.mxu0 %v13537_v25  ;;  %v13585_v49 = vcombine.high %v9946_v13, %v9950_v52  ;;  %v13587_v25 = vcombine.high %v9947_v21, %v9951_v43  ;;  %v9744_v13 = vld [vmem:[#allocation9 + $0x10f0] sm:$0xff]  ;;  %v9741_v52 = vld [vmem:[#allocation9 + $0x10d8] sm:$0xff] }
 0x78f   :  { %11483 = vmatprep.subr.bf16.mxu1 %v13539_v42  ;;  %v9954_v42 = vld [vmem:[#allocation9 + $0x1780] sm:$0xff] }
 0x790   :  { %v13592_v32 = vcombine.low %v9954_v42, %v9958_v6 }
 0x791   :  { %11338 = vmatpush1.bf16.msra.mxu0 %v13536_v14  ;;  %v13586_v14 = vcombine.low %v9947_v21, %v9951_v43  ;;  %v9745_v21 = vld [vmem:[#allocation9 + $0x10f8] sm:$0xff] }
 0x792   :  { %11484 = vmatpush1.bf16.msra.mxu1 %v13538_v47  ;;  %11339 = vmatprep.subr.bf16.mxu0 %v13545_v11  ;;  %v13593_v47 = vcombine.high %v9954_v42, %v9958_v6  ;;  %v13595_v11 = vcombine.high %v9955_v55, %v9959_v46  ;;  %v9752_v42 = vld [vmem:[#allocation9 + $0x1130] sm:$0xff]  ;;  %v9749_v6 = vld [vmem:[#allocation9 + $0x1118] sm:$0xff] }
 0x793   :  { %11485 = vmatprep.subr.bf16.mxu1 %v13547_v2  ;;  %v9962_v2 = vld [vmem:[#allocation9 + $0x17c0] sm:$0xff] }
 0x794   :  { %v13600_v38 = vcombine.low %v9962_v2, %v9966_v1 }
 0x795   :  { %11340 = vmatpush1.bf16.msra.mxu0 %v13544_v12  ;;  %v13594_v12 = vcombine.low %v9955_v55, %v9959_v46  ;;  %v9753_v55 = vld [vmem:[#allocation9 + $0x1138] sm:$0xff] }
 0x796   :  { %11486 = vmatpush1.bf16.msra.mxu1 %v13546_v16  ;;  %11341 = vmatprep.subr.bf16.mxu0 %v13553_v10  ;;  %v13601_v16 = vcombine.high %v9962_v2, %v9966_v1  ;;  %v13603_v10 = vcombine.high %v9963_v20, %v9967_v0  ;;  %v9760_v2 = vld [vmem:[#allocation9 + $0x1170] sm:$0xff]  ;;  %v9757_v1 = vld [vmem:[#allocation9 + $0x1158] sm:$0xff] }
 0x797   :  { %11487 = vmatprep.subr.bf16.mxu1 %v13555_v58  ;;  %v9716_v58 = vld [vmem:[#allocation9 + $0x1010] sm:$0xff] }
 0x798   :  { %v13356_v56 = vcombine.low %v9716_v58, %v9720_v36 }
 0x799   :  { %11342 = vmatpush1.bf16.msra.mxu0 %v13552_v37  ;;  %v13602_v37 = vcombine.low %v9963_v20, %v9967_v0  ;;  %v9761_v20 = vld [vmem:[#allocation9 + $0x1178] sm:$0xff] }
 0x79a   :  { %11488 = vmatpush1.bf16.msra.mxu1 %v13554_v19  ;;  %11343 = vmatprep.subr.bf16.mxu0 %v13561_v31  ;;  %v13357_v19 = vcombine.high %v9716_v58, %v9720_v36  ;;  %v13359_v31 = vcombine.high %v9717_v23, %v9721_v39  ;;  %v9764_v58 = vld [vmem:[#allocation9 + $0x1190] sm:$0xff] }
 0x79b   :  { %11489 = vmatprep.subr.bf16.mxu1 %v13563_v63  ;;  %v9724_v63 = vld [vmem:[#allocation9 + $0x1050] sm:$0xff] }
 0x79c   :  { %v13364_v33 = vcombine.low %v9724_v63, %v9728_v50  ;;  %v9768_v36 = vld [vmem:[#allocation9 + $0x11b0] sm:$0xff] }
 0x79d   :  { %11344 = vmatpush1.bf16.msra.mxu0 %v13560_v26  ;;  %v13358_v26 = vcombine.low %v9717_v23, %v9721_v39  ;;  %v9765_v23 = vld [vmem:[#allocation9 + $0x1198] sm:$0xff] }
 0x79e   :  { %11490 = vmatpush1.bf16.msra.mxu1 %v13562_v15  ;;  %11345 = vmatprep.subr.bf16.mxu0 %v13569_v3  ;;  %v13365_v15 = vcombine.high %v9724_v63, %v9728_v50  ;;  %v13367_v3 = vcombine.high %v9725_v53, %v9729_v51  ;;  %v9769_v39 = vld [vmem:[#allocation9 + $0x11b8] sm:$0xff]  ;;  %v9772_v63 = vld [vmem:[#allocation9 + $0x11d0] sm:$0xff] }
 0x79f   :  { %11491 = vmatprep.subr.bf16.mxu1 %v13571_v34  ;;  %v9732_v34 = vld [vmem:[#allocation9 + $0x1090] sm:$0xff] }
 0x7a0   :  { %v13372_v43 = vcombine.low %v9732_v34, %v9736_v18  ;;  %v9776_v50 = vld [vmem:[#allocation9 + $0x11f0] sm:$0xff] }
 0x7a1   :  { %11346 = vmatpush1.bf16.msra.mxu0 %v13568_v22  ;;  %v13366_v22 = vcombine.low %v9725_v53, %v9729_v51  ;;  %v9773_v53 = vld [vmem:[#allocation9 + $0x11d8] sm:$0xff] }
 0x7a2   :  { %11492 = vmatpush1.bf16.msra.mxu1 %v13570_v44  ;;  %11347 = vmatprep.subr.bf16.mxu0 %v13577_v24  ;;  %v13373_v44 = vcombine.high %v9732_v34, %v9736_v18  ;;  %v13375_v24 = vcombine.high %v9733_v60, %v9737_v59  ;;  %v9777_v51 = vld [vmem:[#allocation9 + $0x11f8] sm:$0xff]  ;;  %v9780_v34 = vld [vmem:[#allocation9 + $0x1210] sm:$0xff] }
 0x7a3   :  { %11493 = vmatprep.subr.bf16.mxu1 %v13579_v9  ;;  %v9740_v9 = vld [vmem:[#allocation9 + $0x10d0] sm:$0xff] }
 0x7a4   :  { %v13380_v46 = vcombine.low %v9740_v9, %v9744_v13  ;;  %v9784_v18 = vld [vmem:[#allocation9 + $0x1230] sm:$0xff] }
 0x7a5   :  { %11348 = vmatpush1.bf16.msra.mxu0 %v13576_v7  ;;  %v13374_v7 = vcombine.low %v9733_v60, %v9737_v59  ;;  %v9781_v60 = vld [vmem:[#allocation9 + $0x1218] sm:$0xff] }
 0x7a6   :  { %11494 = vmatpush1.bf16.msra.mxu1 %v13578_v48  ;;  %11349 = vmatprep.subr.bf16.mxu0 %v13585_v49  ;;  %v13381_v48 = vcombine.high %v9740_v9, %v9744_v13  ;;  %v13383_v49 = vcombine.high %v9741_v52, %v9745_v21  ;;  %v9785_v59 = vld [vmem:[#allocation9 + $0x1238] sm:$0xff]  ;;  %v9788_v9 = vld [vmem:[#allocation9 + $0x1250] sm:$0xff] }
 0x7a7   :  { %11495 = vmatprep.subr.bf16.mxu1 %v13587_v25  ;;  %v9748_v25 = vld [vmem:[#allocation9 + $0x1110] sm:$0xff] }
 0x7a8   :  { %v13388_v0 = vcombine.low %v9748_v25, %v9752_v42  ;;  %v9792_v13 = vld [vmem:[#allocation9 + $0x1270] sm:$0xff] }
 0x7a9   :  { %11350 = vmatpush1.bf16.msra.mxu0 %v13584_v61  ;;  %v13382_v61 = vcombine.low %v9741_v52, %v9745_v21  ;;  %v9789_v52 = vld [vmem:[#allocation9 + $0x1258] sm:$0xff] }
 0x7aa   :  { %11496 = vmatpush1.bf16.msra.mxu1 %v13586_v14  ;;  %11351 = vmatprep.subr.bf16.mxu0 %v13593_v47  ;;  %v13389_v14 = vcombine.high %v9748_v25, %v9752_v42  ;;  %v13391_v47 = vcombine.high %v9749_v6, %v9753_v55  ;;  %v9793_v21 = vld [vmem:[#allocation9 + $0x1278] sm:$0xff]  ;;  %v9800_v25 = vld [vmem:[#allocation9 + $0x12b0] sm:$0xff] }
 0x7ab   :  { %11497 = vmatprep.subr.bf16.mxu1 %v13595_v11  ;;  %v9756_v11 = vld [vmem:[#allocation9 + $0x1150] sm:$0xff]  ;;  %v9797_v42 = vld [vmem:[#allocation9 + $0x1298] sm:$0xff] }
 0x7ad   :  { %11352 = vmatpush1.bf16.msra.mxu0 %v13592_v32  ;;  %v13390_v32 = vcombine.low %v9749_v6, %v9753_v55  ;;  %v9801_v6 = vld [vmem:[#allocation9 + $0x12b8] sm:$0xff]  ;;  %v13428_v55 = vcombine.low %v9788_v9, %v9792_v13 }
 0x7ae   :  { %11498 = vmatpush1.bf16.msra.mxu1 %v13594_v12  ;;  %11353 = vmatprep.subr.bf16.mxu0 %v13601_v16  ;;  %v13397_v12 = vcombine.high %v9756_v11, %v9760_v2  ;;  %v16345_v16 = vld [vmem:[#allocation21_spill] sm:$0xff] }
 0x7af   :  { %11499 = vmatprep.subr.bf16.mxu1 %v13603_v10  ;;  %v13399_v10 = vcombine.high %v9757_v1, %v9761_v20 }
 0x7b1   :  { %11354 = vmatpush1.bf16.msra.mxu0 %v13600_v38  ;;  %v13396_v38 = vcombine.low %v9756_v11, %v9760_v2  ;;  %v9808_v11 = vld [vmem:[#allocation9 + $0x12f0] sm:$0xff]  ;;  %v9805_v2 = vld [vmem:[#allocation9 + $0x12d8] sm:$0xff] }
 0x7b2   :  { %11500 = vmatpush1.bf16.msra.mxu1 %v13602_v37  ;;  %11542 = vmatprep.subr.bf16.mxu0 %v13357_v19  ;;  %v13398_v37 = vcombine.low %v9757_v1, %v9761_v20  ;;  %v13405_v19 = vcombine.high %v9764_v58, %v9768_v36  ;;  %v9809_v1 = vld [vmem:[#allocation9 + $0x12f8] sm:$0xff] }
 0x7b3   :  { %11688 = vmatprep.subr.bf16.mxu1 %v13359_v31  ;;  %v13407_v31 = vcombine.high %v9765_v23, %v9769_v39 }
 0x7b4   :  { %11356 = vmatmul.mubr.bf16.vlgmr.msra.gmra.mrb[104].mxu0 %v15953_v30 }
 0x7b5   :  { %11502 = vmatmul.mubr.bf16.vlgmr.msra.gmra.mrb[104].mxu1 %v15953_v30  ;;  %11365 = vmatprep.mubr.bf16.mxu0 %v15969_v29 }
 0x7b6   :  { %11511 = vmatprep.mubr.bf16.mxu1 %v15969_v29  ;;  %11543 = vmatpush1.bf16.msra.mxu0 %v13356_v56  ;;  %v13404_v56 = vcombine.low %v9764_v58, %v9768_v36  ;;  %v9816_v58 = vld [vmem:[#allocation9 + $0x1330] sm:$0xff]  ;;  %v9813_v36 = vld [vmem:[#allocation9 + $0x1318] sm:$0xff] }
 0x7b7   :  { %11689 = vmatpush1.bf16.msra.mxu1 %v13358_v26  ;;  %11544 = vmatprep.subr.bf16.mxu0 %v13365_v15  ;;  %v13406_v26 = vcombine.low %v9765_v23, %v9769_v39  ;;  %v13413_v15 = vcombine.high %v9772_v63, %v9776_v50  ;;  %v9817_v23 = vld [vmem:[#allocation9 + $0x1338] sm:$0xff] }
 0x7b8   :  { %11690 = vmatprep.subr.bf16.mxu1 %v13367_v3  ;;  %v13415_v3 = vcombine.high %v9773_v53, %v9777_v51 }
 0x7ba   :  { %11545 = vmatpush1.bf16.msra.mxu0 %v13364_v33  ;;  %v13412_v33 = vcombine.low %v9772_v63, %v9776_v50  ;;  %v9824_v63 = vld [vmem:[#allocation9 + $0x1370] sm:$0xff]  ;;  %v9821_v50 = vld [vmem:[#allocation9 + $0x1358] sm:$0xff] }
 0x7bb   :  { %11691 = vmatpush1.bf16.msra.mxu1 %v13366_v22  ;;  %11546 = vmatprep.subr.bf16.mxu0 %v13373_v44  ;;  %v13414_v22 = vcombine.low %v9773_v53, %v9777_v51  ;;  %v13421_v44 = vcombine.high %v9780_v34, %v9784_v18  ;;  %v9825_v53 = vld [vmem:[#allocation9 + $0x1378] sm:$0xff] }
 0x7bc   :  { %11366 = vmatmul.mubr.bf16.gmra.mrb[108].mxu0 %v15965_v57  ;;  %11692 = vmatprep.subr.bf16.mxu1 %v13375_v24  ;;  %v13423_v24 = vcombine.high %v9781_v60, %v9785_v59 }
 0x7bd   :  { %11512 = vmatmul.mubr.bf16.gmra.mrb[108].mxu1 %v15965_v57  ;;  %11375 = vmatprep.mubr.bf16.mxu0 %v15977_v45 }
 0x7be   :  { %11521 = vmatprep.mubr.bf16.mxu1 %v15977_v45  ;;  %11547 = vmatpush1.bf16.msra.mxu0 %v13372_v43  ;;  %v13420_v43 = vcombine.low %v9780_v34, %v9784_v18  ;;  %v9832_v34 = vld [vmem:[#allocation9 + $0x13b0] sm:$0xff]  ;;  %v9829_v18 = vld [vmem:[#allocation9 + $0x1398] sm:$0xff] }
 0x7bf   :  { %11693 = vmatpush1.bf16.msra.mxu1 %v13374_v7  ;;  %11548 = vmatprep.subr.bf16.mxu0 %v13381_v48  ;;  %v13422_v7 = vcombine.low %v9781_v60, %v9785_v59  ;;  %v13429_v48 = vcombine.high %v9788_v9, %v9792_v13  ;;  %v9833_v60 = vld [vmem:[#allocation9 + $0x13b8] sm:$0xff]  ;;  %v9840_v9 = vld [vmem:[#allocation9 + $0x13f0] sm:$0xff] }
 0x7c0   :  { %11694 = vmatprep.subr.bf16.mxu1 %v13383_v49  ;;  %v13431_v49 = vcombine.high %v9789_v52, %v9793_v21  ;;  %v9837_v13 = vld [vmem:[#allocation9 + $0x13d8] sm:$0xff] }
 0x7c2   :  { %11549 = vmatpush1.bf16.msra.mxu0 %v13380_v46  ;;  %v13430_v46 = vcombine.low %v9789_v52, %v9793_v21  ;;  %v9841_v52 = vld [vmem:[#allocation9 + $0x13f8] sm:$0xff] }
 0x7c3   :  { %11695 = vmatpush1.bf16.msra.mxu1 %v13382_v61  ;;  %11550 = vmatprep.subr.bf16.mxu0 %v13389_v14  ;;  %v13439_v14 = vcombine.high %v9797_v42, %v9801_v6 }
 0x7c4   :  { %11376 = vmatmul.mubr.bf16.gmra.mrb[112].mxu0 %v16345_v16  ;;  %11696 = vmatprep.subr.bf16.mxu1 %v13391_v47  ;;  %v9804_v47 = vld [vmem:[#allocation9 + $0x12d0] sm:$0xff] }
 0x7c5   :  { %11522 = vmatmul.mubr.bf16.gmra.mrb[112].mxu1 %v16345_v16  ;;  %11385 = vmatprep.mubr.bf16.mxu0 %v15985_v5  ;;  %v13444_v39 = vcombine.low %v9804_v47, %v9808_v11 }
 0x7c6   :  { %11531 = vmatprep.mubr.bf16.mxu1 %v15985_v5  ;;  %11551 = vmatpush1.bf16.msra.mxu0 %v13388_v0  ;;  %v13438_v0 = vcombine.low %v9797_v42, %v9801_v6  ;;  %v9849_v42 = vld [vmem:[#allocation9 + $0x1438] sm:$0xff] }
 0x7c7   :  { %11697 = vmatpush1.bf16.msra.mxu1 %v13390_v32  ;;  %11552 = vmatprep.subr.bf16.mxu0 %v13397_v12  ;;  %v13445_v32 = vcombine.high %v9804_v47, %v9808_v11  ;;  %v13447_v12 = vcombine.high %v9805_v2, %v9809_v1  ;;  %v9856_v47 = vld [vmem:[#allocation9 + $0x1470] sm:$0xff]  ;;  %v9853_v11 = vld [vmem:[#allocation9 + $0x1458] sm:$0xff] }
 0x7c8   :  { %11698 = vmatprep.subr.bf16.mxu1 %v13399_v10  ;;  %v9812_v10 = vld [vmem:[#allocation9 + $0x1310] sm:$0xff] }
 0x7c9   :  { %v13452_v51 = vcombine.low %v9812_v10, %v9816_v58 }
 0x7ca   :  { %11553 = vmatpush1.bf16.msra.mxu0 %v13396_v38  ;;  %v13446_v38 = vcombine.low %v9805_v2, %v9809_v1  ;;  %v9857_v2 = vld [vmem:[#allocation9 + $0x1478] sm:$0xff] }
 0x7cb   :  { %11699 = vmatpush1.bf16.msra.mxu1 %v13398_v37  ;;  %11554 = vmatprep.subr.bf16.mxu0 %v13405_v19  ;;  %v13453_v37 = vcombine.high %v9812_v10, %v9816_v58  ;;  %v13455_v19 = vcombine.high %v9813_v36, %v9817_v23  ;;  %v9864_v10 = vld [vmem:[#allocation9 + $0x14b0] sm:$0xff]  ;;  %v9861_v58 = vld [vmem:[#allocation9 + $0x1498] sm:$0xff] }
 0x7cc   :  { %11386 = vmatmul.mubr.bf16.gmra.mrb[116].mxu0 %v15981_v35  ;;  %11700 = vmatprep.subr.bf16.mxu1 %v13407_v31  ;;  %v9820_v31 = vld [vmem:[#allocation9 + $0x1350] sm:$0xff] }
 0x7cd   :  { %11532 = vmatmul.mubr.bf16.gmra.mrb[116].mxu1 %v15981_v35  ;;  %11574 = vmatprep.mubr.bf16.mxu0 %v15955_v4  ;;  %v13460_v59 = vcombine.low %v9820_v31, %v9824_v63 }
 0x7ce   :  { %11555 = vmatpush1.bf16.msra.mxu0 %v13404_v56  ;;  %11720 = vmatprep.mubr.bf16.mxu1 %v15955_v4  ;;  %v9796_v4 = vld [vmem:[#allocation9 + $0x1290] sm:$0xff]  ;;  %v13454_v56 = vcombine.low %v9813_v36, %v9817_v23  ;;  %v9865_v36 = vld [vmem:[#allocation9 + $0x14b8] sm:$0xff] }
 0x7cf   :  { %11701 = vmatpush1.bf16.msra.mxu1 %v13406_v26  ;;  %11556 = vmatprep.subr.bf16.mxu0 %v13413_v15  ;;  %v13437_v61 = vcombine.high %v9796_v4, %v9800_v25  ;;  %v13436_v20 = vcombine.low %v9796_v4, %v9800_v25  ;;  %v13461_v26 = vcombine.high %v9820_v31, %v9824_v63  ;;  %v9848_v4 = vld [vmem:[#allocation9 + $0x1430] sm:$0xff]  ;;  %v9845_v25 = vld [vmem:[#allocation9 + $0x1418] sm:$0xff] }
 0x7d0   :  { %11702 = vmatprep.subr.bf16.mxu1 %v13415_v3  ;;  %v13463_v15 = vcombine.high %v9821_v50, %v9825_v53  ;;  %v9828_v3 = vld [vmem:[#allocation9 + $0x1390] sm:$0xff]  ;;  %v9869_v63 = vld [vmem:[#allocation9 + $0x14d8] sm:$0xff] }
 0x7d1   :  { %v13468_v21 = vcombine.low %v9828_v3, %v9832_v34  ;;  %v9872_v31 = vld [vmem:[#allocation9 + $0x14f0] sm:$0xff] }
 0x7d2   :  { %11557 = vmatpush1.bf16.msra.mxu0 %v13412_v33  ;;  %v13462_v33 = vcombine.low %v9821_v50, %v9825_v53  ;;  %v9873_v50 = vld [vmem:[#allocation9 + $0x14f8] sm:$0xff]  ;;  %v13502_v53 = vcombine.low %v9861_v58, %v9865_v36 }
 0x7d3   :  { %11703 = vmatpush1.bf16.msra.mxu1 %v13414_v22  ;;  %11558 = vmatprep.subr.bf16.mxu0 %v13421_v44  ;;  %v13469_v22 = vcombine.high %v9828_v3, %v9832_v34  ;;  %v13471_v44 = vcombine.high %v9829_v18, %v9833_v60  ;;  %v9881_v3 = vld [vmem:[#allocation9 + $0x1538] sm:$0xff] }
 0x7d4   :  { %11704 = vmatprep.subr.bf16.mxu1 %v13423_v24  ;;  %v9836_v24 = vld [vmem:[#allocation9 + $0x13d0] sm:$0xff] }
 0x7d5   :  { %v13476_v6 = vcombine.low %v9836_v24, %v9840_v9 }
 0x7d6   :  { %11559 = vmatpush1.bf16.msra.mxu0 %v13420_v43  ;;  %v13470_v43 = vcombine.low %v9829_v18, %v9833_v60  ;;  %v13510_v18 = vcombine.low %v9869_v63, %v9873_v50 }
 0x7d7   :  { %11705 = vmatpush1.bf16.msra.mxu1 %v13422_v7  ;;  %11560 = vmatprep.subr.bf16.mxu0 %v13429_v48  ;;  %v13477_v7 = vcombine.high %v9836_v24, %v9840_v9  ;;  %v13479_v48 = vcombine.high %v9837_v13, %v9841_v52  ;;  %v9889_v24 = vld [vmem:[#allocation9 + $0x1578] sm:$0xff] }
 0x7d8   :  { %11706 = vmatprep.subr.bf16.mxu1 %v13431_v49  ;;  %v9844_v49 = vld [vmem:[#allocation9 + $0x1410] sm:$0xff] }
 0x7d9   :  { %v13484_v1 = vcombine.low %v9844_v49, %v9848_v4 }
 0x7da   :  { %11561 = vmatpush1.bf16.msra.mxu0 %v13428_v55  ;;  %v13478_v55 = vcombine.low %v9837_v13, %v9841_v52  ;;  %v9892_v52 = vld [vmem:[#allocation9 + $0x1590] sm:$0xff] }
 0x7db   :  { %11707 = vmatpush1.bf16.msra.mxu1 %v13430_v46  ;;  %11562 = vmatprep.subr.bf16.mxu0 %v13437_v61  ;;  %v13485_v46 = vcombine.high %v9844_v49, %v9848_v4  ;;  %v13487_v61 = vcombine.high %v9845_v25, %v9849_v42 }
 0x7dc   :  { %11708 = vmatprep.subr.bf16.mxu1 %v13439_v14  ;;  %v9852_v14 = vld [vmem:[#allocation9 + $0x1450] sm:$0xff] }
 0x7dd   :  { %v13492_v23 = vcombine.low %v9852_v14, %v9856_v47 }
 0x7de   :  { %11563 = vmatpush1.bf16.msra.mxu0 %v13436_v20  ;;  %v13486_v20 = vcombine.low %v9845_v25, %v9849_v42  ;;  %v9900_v42 = vld [vmem:[#allocation9 + $0x15d0] sm:$0xff] }
 0x7df   :  { %11709 = vmatpush1.bf16.msra.mxu1 %v13438_v0  ;;  %11564 = vmatprep.subr.bf16.mxu0 %v13445_v32  ;;  %v13493_v0 = vcombine.high %v9852_v14, %v9856_v47  ;;  %v13495_v32 = vcombine.high %v9853_v11, %v9857_v2  ;;  %v9908_v47 = vld [vmem:[#allocation9 + $0x1610] sm:$0xff] }
 0x7e0   :  { %11710 = vmatprep.subr.bf16.mxu1 %v13447_v12  ;;  %v9860_v12 = vld [vmem:[#allocation9 + $0x1490] sm:$0xff] }
 0x7e2   :  { %11565 = vmatpush1.bf16.msra.mxu0 %v13444_v39  ;;  %v13494_v39 = vcombine.low %v9853_v11, %v9857_v2  ;;  %v9912_v11 = vld [vmem:[#allocation9 + $0x1630] sm:$0xff]  ;;  %v9909_v2 = vld [vmem:[#allocation9 + $0x1618] sm:$0xff] }
 0x7e3   :  { %11711 = vmatpush1.bf16.msra.mxu1 %v13446_v38  ;;  %11566 = vmatprep.subr.bf16.mxu0 %v13453_v37  ;;  %v13501_v38 = vcombine.high %v9860_v12, %v9864_v10  ;;  %v13503_v37 = vcombine.high %v9861_v58, %v9865_v36  ;;  %v9920_v58 = vld [vmem:[#allocation9 + $0x1670] sm:$0xff]  ;;  %v9917_v36 = vld [vmem:[#allocation9 + $0x1658] sm:$0xff] }
 0x7e4   :  { %11712 = vmatprep.subr.bf16.mxu1 %v13455_v19  ;;  %v9868_v19 = vld [vmem:[#allocation9 + $0x14d0] sm:$0xff] }
 0x7e5   :  { %v13508_v34 = vcombine.low %v9868_v19, %v9872_v31 }
 0x7e6   :  { %11567 = vmatpush1.bf16.msra.mxu0 %v13452_v51  ;;  %v13509_v51 = vcombine.high %v9868_v19, %v9872_v31  ;;  %v9928_v19 = vld [vmem:[#allocation9 + $0x16b0] sm:$0xff]  ;;  %v9925_v31 = vld [vmem:[#allocation9 + $0x1698] sm:$0xff] }
 0x7e7   :  { %11713 = vmatpush1.bf16.msra.mxu1 %v13454_v56  ;;  %11568 = vmatprep.subr.bf16.mxu0 %v13461_v26  ;;  %v9876_v56 = vld [vmem:[#allocation9 + $0x1510] sm:$0xff] }
 0x7e8   :  { %11714 = vmatprep.subr.bf16.mxu1 %v13463_v15  ;;  %v9880_v26 = vld [vmem:[#allocation9 + $0x1530] sm:$0xff]  ;;  %v9877_v15 = vld [vmem:[#allocation9 + $0x1518] sm:$0xff] }
 0x7e9   :  { %v13517_v60 = vcombine.high %v9876_v56, %v9880_v26  ;;  %v13518_v9 = vcombine.low %v9877_v15, %v9881_v3 }
 0x7ea   :  { %11569 = vmatpush1.bf16.msra.mxu0 %v13460_v59  ;;  %v13519_v59 = vcombine.high %v9877_v15, %v9881_v3  ;;  %v9937_v15 = vld [vmem:[#allocation9 + $0x16f8] sm:$0xff] }
 0x7eb   :  { %11715 = vmatpush1.bf16.msra.mxu1 %v13462_v33  ;;  %11570 = vmatprep.subr.bf16.mxu0 %v13469_v22  ;;  %v9884_v33 = vld [vmem:[#allocation9 + $0x1550] sm:$0xff] }
 0x7ec   :  { %11716 = vmatprep.subr.bf16.mxu1 %v13471_v44  ;;  %v9888_v22 = vld [vmem:[#allocation9 + $0x1570] sm:$0xff]  ;;  %v9885_v44 = vld [vmem:[#allocation9 + $0x1558] sm:$0xff] }
 0x7ed   :  { %v13525_v13 = vcombine.high %v9884_v33, %v9888_v22  ;;  %v13526_v49 = vcombine.low %v9885_v44, %v9889_v24 }
 0x7ee   :  { %11571 = vmatpush1.bf16.msra.mxu0 %v13468_v21  ;;  %v9896_v21 = vld [vmem:[#allocation9 + $0x15b0] sm:$0xff] }
 0x7ef   :  { %11717 = vmatpush1.bf16.msra.mxu1 %v13470_v43  ;;  %11572 = vmatprep.subr.bf16.mxu0 %v13477_v7  ;;  %v9893_v43 = vld [vmem:[#allocation9 + $0x1598] sm:$0xff]  ;;  %v13533_v4 = vcombine.high %v9892_v52, %v9896_v21 }
 0x7f0   :  { %11718 = vmatprep.subr.bf16.mxu1 %v13479_v48  ;;  %v9897_v7 = vld [vmem:[#allocation9 + $0x15b8] sm:$0xff]  ;;  %v13524_v48 = vcombine.low %v9884_v33, %v9888_v22  ;;  %v9944_v33 = vld [vmem:[#allocation9 + $0x1730] sm:$0xff] }
 0x7f1   :  { %v13535_v25 = vcombine.high %v9893_v43, %v9897_v7  ;;  %v9941_v22 = vld [vmem:[#allocation9 + $0x1718] sm:$0xff] }
 0x7f2   :  { %11573 = vmatpush1.bf16.msra.mxu0 %v13476_v6  ;;  %v9904_v6 = vld [vmem:[#allocation9 + $0x15f0] sm:$0xff] }
 0x7f3   :  { %11719 = vmatpush1.bf16.msra.mxu1 %v13478_v55  ;;  %11615 = vmatprep.subr.bf16.mxu0 %v13485_v46  ;;  %v9901_v55 = vld [vmem:[#allocation9 + $0x15d8] sm:$0xff]  ;;  %v13541_v14 = vcombine.high %v9900_v42, %v9904_v6 }
 0x7f4   :  { %11761 = vmatprep.subr.bf16.mxu1 %v13487_v61  ;;  %v9905_v46 = vld [vmem:[#allocation9 + $0x15f8] sm:$0xff]  ;;  %v13534_v61 = vcombine.low %v9893_v43, %v9897_v7 }
 0x7f5   :  { %11575 = vmatmul.mubr.bf16.vlgmr.msra.gmra.mrb[120].mxu0 %v15951_v17  ;;  %v9953_v43 = vld [vmem:[#allocation9 + $0x1778] sm:$0xff] }
 0x7f6   :  { %11721 = vmatmul.mubr.bf16.vlgmr.msra.gmra.mrb[120].mxu1 %v15951_v17  ;;  %11584 = vmatprep.mubr.bf16.mxu0 %v15967_v27  ;;  %v13500_v17 = vcombine.low %v9860_v12, %v9864_v10  ;;  %v9916_v10 = vld [vmem:[#allocation9 + $0x1650] sm:$0xff] }
 0x7f7   :  { %11616 = vmatpush1.bf16.msra.mxu0 %v13484_v1  ;;  %11730 = vmatprep.mubr.bf16.mxu1 %v15967_v27  ;;  %v13511_v27 = vcombine.high %v9869_v63, %v9873_v50  ;;  %v9913_v1 = vld [vmem:[#allocation9 + $0x1638] sm:$0xff]  ;;  %v13556_v50 = vcombine.low %v9916_v10, %v9920_v58 }
 0x7f8   :  { %11762 = vmatpush1.bf16.msra.mxu1 %v13486_v20  ;;  %11617 = vmatprep.subr.bf16.mxu0 %v13493_v0  ;;  %v13540_v20 = vcombine.low %v9900_v42, %v9904_v6  ;;  %v13542_v0 = vcombine.low %v9901_v55, %v9905_v46  ;;  %v13551_v12 = vcombine.high %v9909_v2, %v9913_v1  ;;  %v9929_v63 = vld [vmem:[#allocation9 + $0x16b8] sm:$0xff]  ;;  %v9960_v42 = vld [vmem:[#allocation9 + $0x17b0] sm:$0xff] }
 0x7f9   :  { %11763 = vmatprep.subr.bf16.mxu1 %v13495_v32  ;;  %v13549_v32 = vcombine.high %v9908_v47, %v9912_v11  ;;  %v9957_v6 = vld [vmem:[#allocation9 + $0x1798] sm:$0xff] }
 0x7fb   :  { %11618 = vmatpush1.bf16.msra.mxu0 %v13492_v23  ;;  %v9921_v23 = vld [vmem:[#allocation9 + $0x1678] sm:$0xff] }
 0x7fc   :  { %11764 = vmatpush1.bf16.msra.mxu1 %v13494_v39  ;;  %11619 = vmatprep.subr.bf16.mxu0 %v13501_v38  ;;  %v13550_v39 = vcombine.low %v9909_v2, %v9913_v1  ;;  %v13557_v38 = vcombine.high %v9916_v10, %v9920_v58  ;;  %v9969_v2 = vld [vmem:[#allocation9 + $0x17f8] sm:$0xff] }
 0x7fd   :  { %11585 = vmatmul.mubr.bf16.gmra.mrb[124].mxu0 %v15963_v28  ;;  %11765 = vmatprep.subr.bf16.mxu1 %v13503_v37  ;;  %v13559_v37 = vcombine.high %v9917_v36, %v9921_v23  ;;  %v16347_v58 = vld [vmem:[#allocation18_spill] sm:$0xff] }
 0x7fe   :  { %11731 = vmatmul.mubr.bf16.gmra.mrb[124].mxu1 %v15963_v28  ;;  %11594 = vmatprep.mubr.bf16.mxu0 %v15975_v8  ;;  %v13516_v28 = vcombine.low %v9876_v56, %v9880_v26  ;;  %v9936_v56 = vld [vmem:[#allocation9 + $0x16f0] sm:$0xff]  ;;  %v9933_v26 = vld [vmem:[#allocation9 + $0x16d8] sm:$0xff] }
 0x7ff   :  { %11620 = vmatpush1.bf16.msra.mxu0 %v13500_v17  ;;  %11740 = vmatprep.mubr.bf16.mxu1 %v15975_v8  ;;  %v13527_v8 = vcombine.high %v9885_v44, %v9889_v24  ;;  %v13558_v17 = vcombine.low %v9917_v36, %v9921_v23  ;;  %v9945_v44 = vld [vmem:[#allocation9 + $0x1738] sm:$0xff]  ;;  %v16348_v36 = vld [vmem:[#allocation19_spill] sm:$0xff]  ;;  %v16349_v23 = vld [vmem:[#allocation20_spill] sm:$0xff] }
 0x800   :  { %11766 = vmatpush1.bf16.msra.mxu1 %v13502_v53  ;;  %11621 = vmatprep.subr.bf16.mxu0 %v13509_v51  ;;  %v13567_v51 = vcombine.high %v9925_v31, %v9929_v63 }
 0x801   :  { %11767 = vmatprep.subr.bf16.mxu1 %v13511_v27  ;;  %v9932_v27 = vld [vmem:[#allocation9 + $0x16d0] sm:$0xff] }
 0x802   :  { %v13572_v24 = vcombine.low %v9932_v27, %v9936_v56 }
 0x803   :  { %11622 = vmatpush1.bf16.msra.mxu0 %v13508_v34  ;;  %v13566_v34 = vcombine.low %v9925_v31, %v9929_v63 }
 0x804   :  { %11768 = vmatpush1.bf16.msra.mxu1 %v13510_v18  ;;  %11623 = vmatprep.subr.bf16.mxu0 %v13517_v60  ;;  %v13573_v18 = vcombine.high %v9932_v27, %v9936_v56  ;;  %v13575_v60 = vcombine.high %v9933_v26, %v9937_v15 }
 0x805   :  { %11595 = vmatmul.mubr.bf16.gmra.mrb[128].mxu0 %v15971_v62  ;;  %11769 = vmatprep.subr.bf16.mxu1 %v13519_v59  ;;  %v9940_v59 = vld [vmem:[#allocation9 + $0x1710] sm:$0xff] }
 0x806   :  { %11741 = vmatmul.mubr.bf16.gmra.mrb[128].mxu1 %v15971_v62  ;;  %11604 = vmatprep.mubr.bf16.mxu0 %v15983_v40  ;;  %v13532_v62 = vcombine.low %v9892_v52, %v9896_v21  ;;  %v9952_v52 = vld [vmem:[#allocation9 + $0x1770] sm:$0xff]  ;;  %v9949_v21 = vld [vmem:[#allocation9 + $0x1758] sm:$0xff]  ;;  %v13580_v7 = vcombine.low %v9940_v59, %v9944_v33 }
 0x807   :  { %11624 = vmatpush1.bf16.msra.mxu0 %v13516_v28  ;;  %11750 = vmatprep.mubr.bf16.mxu1 %v15983_v40  ;;  %v13543_v40 = vcombine.high %v9901_v55, %v9905_v46  ;;  %v13574_v28 = vcombine.low %v9933_v26, %v9937_v15  ;;  %v9961_v55 = vld [vmem:[#allocation9 + $0x17b8] sm:$0xff] }
 0x808   :  { %11770 = vmatpush1.bf16.msra.mxu1 %v13518_v9  ;;  %11625 = vmatprep.subr.bf16.mxu0 %v13525_v13  ;;  %v13581_v9 = vcombine.high %v9940_v59, %v9944_v33  ;;  %v13583_v13 = vcombine.high %v9941_v22, %v9945_v44 }
 0x809   :  { %11771 = vmatprep.subr.bf16.mxu1 %v13527_v8  ;;  %v9948_v8 = vld [vmem:[#allocation9 + $0x1750] sm:$0xff] }
 0x80a   :  { %v13588_v46 = vcombine.low %v9948_v8, %v9952_v52 }
 0x80b   :  { %11626 = vmatpush1.bf16.msra.mxu0 %v13524_v48  ;;  %v13582_v48 = vcombine.low %v9941_v22, %v9945_v44 }
 0x80c   :  { %11772 = vmatpush1.bf16.msra.mxu1 %v13526_v49  ;;  %11627 = vmatprep.subr.bf16.mxu0 %v13533_v4  ;;  %v13589_v49 = vcombine.high %v9948_v8, %v9952_v52  ;;  %v13591_v4 = vcombine.high %v9949_v21, %v9953_v43 }
 0x80d   :  { %11605 = vmatmul.mubr.bf16.gmra.mrb[132].mxu0 %v15979_v54  ;;  %11773 = vmatprep.subr.bf16.mxu1 %v13535_v25  ;;  %v9956_v25 = vld [vmem:[#allocation9 + $0x1790] sm:$0xff] }
 0x80e   :  { %11751 = vmatmul.mubr.bf16.gmra.mrb[132].mxu1 %v15979_v54  ;;  %11647 = vmatprep.mubr.bf16.mxu0 %v15957_v41  ;;  %v13548_v54 = vcombine.low %v9908_v47, %v9912_v11  ;;  %v9968_v47 = vld [vmem:[#allocation9 + $0x17f0] sm:$0xff]  ;;  %v9965_v11 = vld [vmem:[#allocation9 + $0x17d8] sm:$0xff]  ;;  %v13596_v1 = vcombine.low %v9956_v25, %v9960_v42 }
 0x80f   :  { %11628 = vmatpush1.bf16.msra.mxu0 %v13532_v62  ;;  %11793 = vmatprep.mubr.bf16.mxu1 %v15957_v41  ;;  %v9924_v41 = vld [vmem:[#allocation9 + $0x1690] sm:$0xff]  ;;  %v13590_v62 = vcombine.low %v9949_v21, %v9953_v43  ;;  %v13606_v10 = vcombine.low %v9965_v11, %v9969_v2 }
 0x810   :  { %11774 = vmatpush1.bf16.msra.mxu1 %v13534_v61  ;;  %11629 = vmatprep.subr.bf16.mxu0 %v13541_v14  ;;  %v13565_v53 = vcombine.high %v9924_v41, %v9928_v19  ;;  %v13564_v3 = vcombine.low %v9924_v41, %v9928_v19  ;;  %v13597_v61 = vcombine.high %v9956_v25, %v9960_v42 }
 0x811   :  { %11775 = vmatprep.subr.bf16.mxu1 %v13543_v40  ;;  %v13599_v14 = vcombine.high %v9957_v6, %v9961_v55  ;;  %v9964_v40 = vld [vmem:[#allocation9 + $0x17d0] sm:$0xff] }
 0x813   :  { %11630 = vmatpush1.bf16.msra.mxu0 %v13540_v20  ;;  %v13598_v20 = vcombine.low %v9957_v6, %v9961_v55 }
 0x814   :  { %11776 = vmatpush1.bf16.msra.mxu1 %v13542_v0  ;;  %11631 = vmatprep.subr.bf16.mxu0 %v13549_v32  ;;  %v13605_v0 = vcombine.high %v9964_v40, %v9968_v47  ;;  %v13607_v32 = vcombine.high %v9965_v11, %v9969_v2 }
 0x815   :  { %11777 = vmatprep.subr.bf16.mxu1 %v13551_v12  ;;  %v13604_v12 = vcombine.low %v9964_v40, %v9968_v47 }
 0x817   :  { %11632 = vmatpush1.bf16.msra.mxu0 %v13548_v54 }
 0x818   :  { %11778 = vmatpush1.bf16.msra.mxu1 %v13550_v39  ;;  %11633 = vmatprep.subr.bf16.mxu0 %v13557_v38 }
 0x819   :  { %11779 = vmatprep.subr.bf16.mxu1 %v13559_v37 }
 0x81b   :  { %11634 = vmatpush1.bf16.msra.mxu0 %v13556_v50 }
 0x81c   :  { %11780 = vmatpush1.bf16.msra.mxu1 %v13558_v17  ;;  %11635 = vmatprep.subr.bf16.mxu0 %v13565_v53 }
 0x81d   :  { %11781 = vmatprep.subr.bf16.mxu1 %v13567_v51 }
 0x81f   :  { %11636 = vmatpush1.bf16.msra.mxu0 %v13564_v3 }
 0x820   :  { %11782 = vmatpush1.bf16.msra.mxu1 %v13566_v34  ;;  %11637 = vmatprep.subr.bf16.mxu0 %v13573_v18 }
 0x821   :  { %11783 = vmatprep.subr.bf16.mxu1 %v13575_v60 }
 0x823   :  { %11638 = vmatpush1.bf16.msra.mxu0 %v13572_v24 }
 0x824   :  { %11784 = vmatpush1.bf16.msra.mxu1 %v13574_v28  ;;  %11639 = vmatprep.subr.bf16.mxu0 %v13581_v9 }
 0x825   :  { %11785 = vmatprep.subr.bf16.mxu1 %v13583_v13 }
 0x827   :  { %11640 = vmatpush1.bf16.msra.mxu0 %v13580_v7 }
 0x828   :  { %11786 = vmatpush1.bf16.msra.mxu1 %v13582_v48  ;;  %11641 = vmatprep.subr.bf16.mxu0 %v13589_v49 }
 0x829   :  { %11787 = vmatprep.subr.bf16.mxu1 %v13591_v4 }
 0x82b   :  { %11642 = vmatpush1.bf16.msra.mxu0 %v13588_v46 }
 0x82c   :  { %11788 = vmatpush1.bf16.msra.mxu1 %v13590_v62  ;;  %11643 = vmatprep.subr.bf16.mxu0 %v13597_v61 }
 0x82d   :  { %11789 = vmatprep.subr.bf16.mxu1 %v13599_v14 }
 0x82f   :  { %11644 = vmatpush1.bf16.msra.mxu0 %v13596_v1 }
 0x830   :  { %11790 = vmatpush1.bf16.msra.mxu1 %v13598_v20  ;;  %11645 = vmatprep.subr.bf16.mxu0 %v13605_v0 }
 0x831   :  { %11791 = vmatprep.subr.bf16.mxu1 %v13607_v32 }
 0x833   :  { %11646 = vmatpush1.bf16.msra.mxu0 %v13604_v12 }
 0x834   :  { %11792 = vmatpush1.bf16.msra.mxu1 %v13606_v10 }
 0x836   :  { %11648 = vmatmul.mubr.bf16.vlgmr.msra.gmra.mrb[120].mxu0 %v15953_v30 }
 0x837   :  { %11794 = vmatmul.mubr.bf16.vlgmr.msra.gmra.mrb[120].mxu1 %v15953_v30  ;;  %11657 = vmatprep.mubr.bf16.mxu0 %v15969_v29  ;;  %v16129_v30 = vld [vmem:[#allocation10] sm:$0xff] }
 0x838   :  { %11803 = vmatprep.mubr.bf16.mxu1 %v15969_v29  ;;  %v16346_v29 = vld [vmem:[#allocation17_spill] sm:$0xff] }
 0x83e   :  { %11658 = vmatmul.mubr.bf16.gmra.mrb[124].mxu0 %v15965_v57 }
 0x83f   :  { %11804 = vmatmul.mubr.bf16.gmra.mrb[124].mxu1 %v15965_v57  ;;  %11667 = vmatprep.mubr.bf16.mxu0 %v15977_v45  ;;  %v16133_v57 = vrot.slane %v16129_v30, %v16346_v29 }
 0x840   :  { %11813 = vmatprep.mubr.bf16.mxu1 %v15977_v45  ;;  %v16137_v45 = vrot.slane %v16129_v30, %v16347_v58 }
 0x846   :  { %11668 = vmatmul.mubr.bf16.gmra.mrb[128].mxu0 %v16345_v16 }
 0x847   :  { %11814 = vmatmul.mubr.bf16.gmra.mrb[128].mxu1 %v16345_v16  ;;  %11677 = vmatprep.mubr.bf16.mxu0 %v15985_v5  ;;  %v16141_v16 = vrot.slane %v16129_v30, %v16348_v36 }
 0x848   :  { %11823 = vmatprep.mubr.bf16.mxu1 %v15985_v5  ;;  %v16145_v5 = vrot.slane %v16129_v30, %v16349_v23 }
 0x84e   :  { %11678 = vmatmul.mubr.bf16.gmra.mrb[132].mxu0 %v15981_v35 }
 0x84f   :  { %11824 = vmatmul.mubr.bf16.gmra.mrb[132].mxu1 %v15981_v35 }
 0x887   :  { %v11357_v54 = vpop.f32.mrb[104].mxu0 }
 0x888   :  { %v11940_v35 = vadd.f32 %v16133_v57, %v11357_v54  ;;  %v11503_v39 = vpop.f32.mrb[104].mxu1  ;;  %v11359_v38 = vpop.f32.mrb[105].mxu0 }
 0x889   :  { %v11942_v37 = vadd.f32 %v16137_v45, %v11503_v39  ;;  %v11941_v41 = vadd.f32 %v16141_v16, %v11359_v38  ;;  %v11505_v19 = vpop.f32.mrb[105].mxu1  ;;  %v11361_v31 = vpop.f32.mrb[106].mxu0 }
 0x88a   :  { %v12004_v63 = vmax.f32 %v11940_v35, 0.0  ;;  %v11943_v50 = vadd.f32 %v16145_v5, %v11505_v19  ;;  %v11948_v17 = vadd.f32 %v16133_v57, %v11361_v31  ;;  %v11507_v53 = vpop.f32.mrb[106].mxu1  ;;  %v11363_v51 = vpop.f32.mrb[107].mxu0 }
 0x88b   :  { %v12006_v27 = vmax.f32 %v11942_v37, 0.0  ;;  %v12005_v56 = vmax.f32 %v11941_v41, 0.0  ;;  %v11950_v26 = vadd.f32 %v16137_v45, %v11507_v53  ;;  %v11949_v15 = vadd.f32 %v16141_v16, %v11363_v51  ;;  %v11509_v3 = vpop.f32.mrb[107].mxu1 }
 0x88c   :  { %v12007_v34 = vmax.f32 %v11943_v50, 0.0  ;;  %v12012_v18 = vmax.f32 %v11948_v17, 0.0  ;;  %v11951_v60 = vadd.f32 %v16145_v5, %v11509_v3 }
 0x88d   :  { %v13640_v59 = vpack.c.bf16 %v12005_v56, %v12004_v63  ;;  %v12014_v33 = vmax.f32 %v11950_v26, 0.0  ;;  %v12013_v22 = vmax.f32 %v11949_v15, 0.0 }
 0x88e   :  { %v13641_v44 = vpack.c.bf16 %v12007_v34, %v12006_v27  ;;  %v12015_v24 = vmax.f32 %v11951_v60, 0.0 }
 0x88f   :  { %12260 = vst [vmem:[%s16331_s8] sm:$0xff] %v13640_v59  ;;  %v13644_v28 = vpack.c.bf16 %v12013_v22, %v12012_v18  ;;  %v11367_v9 = vpop.f32.mrb[108].mxu0 }
 0x890   :  { %12261 = vst [vmem:[%s16331_s8 + $0x8] sm:$0xff] %v13641_v44  ;;  %v13645_v13 = vpack.c.bf16 %v12015_v24, %v12014_v33  ;;  %v11956_v8 = vadd.f32 %v16133_v57, %v11367_v9  ;;  %v11513_v52 = vpop.f32.mrb[108].mxu1  ;;  %v11369_v21 = vpop.f32.mrb[109].mxu0 }
 0x891   :  { %12264 = vst [vmem:[%s16331_s8 + $0x20] sm:$0xff] %v13644_v28  ;;  %v11958_v43 = vadd.f32 %v16137_v45, %v11513_v52  ;;  %v11957_v7 = vadd.f32 %v16141_v16, %v11369_v21  ;;  %v11515_v48 = vpop.f32.mrb[109].mxu1  ;;  %v11371_v49 = vpop.f32.mrb[110].mxu0 }
 0x892   :  { %12265 = vst [vmem:[%s16331_s8 + $0x28] sm:$0xff] %v13645_v13  ;;  %v12020_v4 = vmax.f32 %v11956_v8, 0.0  ;;  %v11959_v25 = vadd.f32 %v16145_v5, %v11515_v48  ;;  %v11964_v42 = vadd.f32 %v16133_v57, %v11371_v49  ;;  %v11517_v6 = vpop.f32.mrb[110].mxu1  ;;  %v11373_v55 = vpop.f32.mrb[111].mxu0 }
 0x893   :  { %v12022_v46 = vmax.f32 %v11958_v43, 0.0  ;;  %v12021_v62 = vmax.f32 %v11957_v7, 0.0  ;;  %v11966_v61 = vadd.f32 %v16137_v45, %v11517_v6  ;;  %v11965_v14 = vadd.f32 %v16141_v16, %v11373_v55  ;;  %v11519_v40 = vpop.f32.mrb[111].mxu1 }
 0x894   :  { %v12023_v47 = vmax.f32 %v11959_v25, 0.0  ;;  %v12028_v11 = vmax.f32 %v11964_v42, 0.0  ;;  %v11967_v2 = vadd.f32 %v16145_v5, %v11519_v40 }
 0x895   :  { %v13648_v1 = vpack.c.bf16 %v12021_v62, %v12020_v4  ;;  %v12030_v20 = vmax.f32 %v11966_v61, 0.0  ;;  %v12029_v0 = vmax.f32 %v11965_v14, 0.0 }
 0x896   :  { %v13649_v32 = vpack.c.bf16 %v12023_v47, %v12022_v46  ;;  %v12031_v12 = vmax.f32 %v11967_v2, 0.0 }
 0x897   :  { %12268 = vst [vmem:[%s16331_s8 + $0x40] sm:$0xff] %v13648_v1  ;;  %v13652_v10 = vpack.c.bf16 %v12029_v0, %v12028_v11  ;;  %v11377_v29 = vpop.f32.mrb[112].mxu0 }
 0x898   :  { %12269 = vst [vmem:[%s16331_s8 + $0x48] sm:$0xff] %v13649_v32  ;;  %v13653_v58 = vpack.c.bf16 %v12031_v12, %v12030_v20  ;;  %v11972_v36 = vadd.f32 %v16133_v57, %v11377_v29  ;;  %v11523_v23 = vpop.f32.mrb[112].mxu1  ;;  %v11379_v54 = vpop.f32.mrb[113].mxu0 }
 0x899   :  { %12272 = vst [vmem:[%s16331_s8 + $0x60] sm:$0xff] %v13652_v10  ;;  %v11974_v35 = vadd.f32 %v16137_v45, %v11523_v23  ;;  %v11973_v39 = vadd.f32 %v16141_v16, %v11379_v54  ;;  %v11525_v38 = vpop.f32.mrb[113].mxu1  ;;  %v11381_v37 = vpop.f32.mrb[114].mxu0 }
 0x89a   :  { %12273 = vst [vmem:[%s16331_s8 + $0x68] sm:$0xff] %v13653_v58  ;;  %v12036_v41 = vmax.f32 %v11972_v36, 0.0  ;;  %v11975_v19 = vadd.f32 %v16145_v5, %v11525_v38  ;;  %v11980_v31 = vadd.f32 %v16133_v57, %v11381_v37  ;;  %v11527_v63 = vpop.f32.mrb[114].mxu1  ;;  %v11383_v50 = vpop.f32.mrb[115].mxu0 }
 0x89b   :  { %v12038_v17 = vmax.f32 %v11974_v35, 0.0  ;;  %v12037_v53 = vmax.f32 %v11973_v39, 0.0  ;;  %v11982_v51 = vadd.f32 %v16137_v45, %v11527_v63  ;;  %v11981_v27 = vadd.f32 %v16141_v16, %v11383_v50  ;;  %v11529_v56 = vpop.f32.mrb[115].mxu1 }
 0x89c   :  { %v12039_v26 = vmax.f32 %v11975_v19, 0.0  ;;  %v12044_v15 = vmax.f32 %v11980_v31, 0.0  ;;  %v11983_v3 = vadd.f32 %v16145_v5, %v11529_v56 }
 0x89d   :  { %v13656_v34 = vpack.c.bf16 %v12037_v53, %v12036_v41  ;;  %v12046_v18 = vmax.f32 %v11982_v51, 0.0  ;;  %v12045_v60 = vmax.f32 %v11981_v27, 0.0 }
 0x89e   :  { %v13657_v59 = vpack.c.bf16 %v12039_v26, %v12038_v17  ;;  %v12047_v33 = vmax.f32 %v11983_v3, 0.0 }
 0x89f   :  { %12276 = vst [vmem:[%s16331_s8 + $0x80] sm:$0xff] %v13656_v34  ;;  %v13660_v22 = vpack.c.bf16 %v12045_v60, %v12044_v15  ;;  %v11387_v44 = vpop.f32.mrb[116].mxu0 }
 0x8a0   :  { %12277 = vst [vmem:[%s16331_s8 + $0x88] sm:$0xff] %v13657_v59  ;;  %v13661_v24 = vpack.c.bf16 %v12047_v33, %v12046_v18  ;;  %v11988_v28 = vadd.f32 %v16133_v57, %v11387_v44  ;;  %v11533_v9 = vpop.f32.mrb[116].mxu1  ;;  %v11389_v13 = vpop.f32.mrb[117].mxu0 }
 0x8a1   :  { %12280 = vst [vmem:[%s16331_s8 + $0xa0] sm:$0xff] %v13660_v22  ;;  %v11990_v8 = vadd.f32 %v16137_v45, %v11533_v9  ;;  %v11989_v52 = vadd.f32 %v16141_v16, %v11389_v13  ;;  %v11535_v21 = vpop.f32.mrb[117].mxu1  ;;  %v11391_v43 = vpop.f32.mrb[118].mxu0 }
 0x8a2   :  { %12281 = vst [vmem:[%s16331_s8 + $0xa8] sm:$0xff] %v13661_v24  ;;  %v12052_v7 = vmax.f32 %v11988_v28, 0.0  ;;  %v11991_v48 = vadd.f32 %v16145_v5, %v11535_v21  ;;  %v11996_v49 = vadd.f32 %v16133_v57, %v11391_v43  ;;  %v11537_v4 = vpop.f32.mrb[118].mxu1  ;;  %v11393_v25 = vpop.f32.mrb[119].mxu0 }
 0x8a3   :  { %v12054_v42 = vmax.f32 %v11990_v8, 0.0  ;;  %v12053_v6 = vmax.f32 %v11989_v52, 0.0  ;;  %v11998_v55 = vadd.f32 %v16137_v45, %v11537_v4  ;;  %v11997_v46 = vadd.f32 %v16141_v16, %v11393_v25  ;;  %v11539_v62 = vpop.f32.mrb[119].mxu1  ;;  %v16350_v16 = vld [vmem:[#allocation16_spill] sm:$0xff] }
 0x8a4   :  { %v12055_v61 = vmax.f32 %v11991_v48, 0.0  ;;  %v12060_v14 = vmax.f32 %v11996_v49, 0.0  ;;  %v11999_v40 = vadd.f32 %v16145_v5, %v11539_v62  ;;  %v11918_v5 = vsub.s32 4, %v16350_v16 }
 0x8a5   :  { %v13664_v47 = vpack.c.bf16 %v12053_v6, %v12052_v7  ;;  %v12062_v11 = vmax.f32 %v11998_v55, 0.0  ;;  %v12061_v2 = vmax.f32 %v11997_v46, 0.0  ;;  %v11926_v0 = vsub.s32 6, %v16350_v16 }
 0x8a6   :  { %v13665_v1 = vpack.c.bf16 %v12055_v61, %v12054_v42  ;;  %v12063_v20 = vmax.f32 %v11999_v40, 0.0  ;;  %v11922_v32 = vsub.s32 5, %v16350_v16  ;;  %v11930_v12 = vsub.s32 7, %v16350_v16 }
 0x8a7   :  { %12284 = vst [vmem:[%s16331_s8 + $0xc0] sm:$0xff] %v13664_v47  ;;  %v13668_v57 = vpack.c.bf16 %v12061_v2, %v12060_v14  ;;  %v16232_v10 = vrot.slane %v16129_v30, %v11918_v5  ;;  %v16235_v29 = vrot.slane %v16129_v30, %v11926_v0 }
 0x8a8   :  { %12285 = vst [vmem:[%s16331_s8 + $0xc8] sm:$0xff] %v13665_v1  ;;  %v13669_v45 = vpack.c.bf16 %v12063_v20, %v12062_v11  ;;  %v16238_v58 = vrot.slane %v16129_v30, %v11922_v32  ;;  %v16241_v36 = vrot.slane %v16129_v30, %v11930_v12 }
 0x8a9   :  { %12288 = vst [vmem:[%s16331_s8 + $0xe0] sm:$0xff] %v13668_v57 }
 0x8aa   :  { %12289 = vst [vmem:[%s16331_s8 + $0xe8] sm:$0xff] %v13669_v45 }
 0x909   :  { %v11649_v23 = vpop.f32.mrb[120].mxu0 }
 0x90a   :  { %v11944_v54 = vadd.f32 %v16232_v10, %v11649_v23  ;;  %v11795_v35 = vpop.f32.mrb[120].mxu1  ;;  %v11651_v39 = vpop.f32.mrb[121].mxu0 }
 0x90b   :  { %v11946_v38 = vadd.f32 %v16235_v29, %v11795_v35  ;;  %v11945_v37 = vadd.f32 %v16238_v58, %v11651_v39  ;;  %v11797_v41 = vpop.f32.mrb[121].mxu1  ;;  %v11653_v19 = vpop.f32.mrb[122].mxu0 }
 0x90c   :  { %v12008_v31 = vmax.f32 %v11944_v54, 0.0  ;;  %v11947_v63 = vadd.f32 %v16241_v36, %v11797_v41  ;;  %v11952_v50 = vadd.f32 %v16232_v10, %v11653_v19  ;;  %v11799_v17 = vpop.f32.mrb[122].mxu1  ;;  %v11655_v53 = vpop.f32.mrb[123].mxu0 }
 0x90d   :  { %v12010_v30 = vmax.f32 %v11946_v38, 0.0  ;;  %v12009_v51 = vmax.f32 %v11945_v37, 0.0  ;;  %v11954_v27 = vadd.f32 %v16235_v29, %v11799_v17  ;;  %v11953_v56 = vadd.f32 %v16238_v58, %v11655_v53  ;;  %v11801_v26 = vpop.f32.mrb[123].mxu1 }
 0x90e   :  { %v12011_v15 = vmax.f32 %v11947_v63, 0.0  ;;  %v12016_v3 = vmax.f32 %v11952_v50, 0.0  ;;  %v11955_v34 = vadd.f32 %v16241_v36, %v11801_v26 }
 0x90f   :  { %v13642_v18 = vpack.c.bf16 %v12009_v51, %v12008_v31  ;;  %v12018_v60 = vmax.f32 %v11954_v27, 0.0  ;;  %v12017_v59 = vmax.f32 %v11953_v56, 0.0 }
 0x910   :  { %v13643_v33 = vpack.c.bf16 %v12011_v15, %v12010_v30  ;;  %v12019_v22 = vmax.f32 %v11955_v34, 0.0 }
 0x911   :  { %12262 = vst [vmem:[%s16331_s8 + $0x10] sm:$0xff] %v13642_v18  ;;  %v13646_v44 = vpack.c.bf16 %v12017_v59, %v12016_v3  ;;  %v11659_v24 = vpop.f32.mrb[124].mxu0 }
 0x912   :  { %12263 = vst [vmem:[%s16331_s8 + $0x18] sm:$0xff] %v13643_v33  ;;  %v13647_v28 = vpack.c.bf16 %v12019_v22, %v12018_v60  ;;  %v11960_v9 = vadd.f32 %v16232_v10, %v11659_v24  ;;  %v11805_v13 = vpop.f32.mrb[124].mxu1  ;;  %v11661_v8 = vpop.f32.mrb[125].mxu0 }
 0x913   :  { %12266 = vst [vmem:[%s16331_s8 + $0x30] sm:$0xff] %v13646_v44  ;;  %v11962_v52 = vadd.f32 %v16235_v29, %v11805_v13  ;;  %v11961_v21 = vadd.f32 %v16238_v58, %v11661_v8  ;;  %v11807_v43 = vpop.f32.mrb[125].mxu1  ;;  %v11663_v7 = vpop.f32.mrb[126].mxu0 }
 0x914   :  { %12267 = vst [vmem:[%s16331_s8 + $0x38] sm:$0xff] %v13647_v28  ;;  %v12024_v48 = vmax.f32 %v11960_v9, 0.0  ;;  %v11963_v49 = vadd.f32 %v16241_v36, %v11807_v43  ;;  %v11968_v4 = vadd.f32 %v16232_v10, %v11663_v7  ;;  %v11809_v25 = vpop.f32.mrb[126].mxu1  ;;  %v11665_v42 = vpop.f32.mrb[127].mxu0 }
 0x915   :  { %v12026_v6 = vmax.f32 %v11962_v52, 0.0  ;;  %v12025_v55 = vmax.f32 %v11961_v21, 0.0  ;;  %v11970_v46 = vadd.f32 %v16235_v29, %v11809_v25  ;;  %v11969_v62 = vadd.f32 %v16238_v58, %v11665_v42  ;;  %v11811_v61 = vpop.f32.mrb[127].mxu1 }
 0x916   :  { %v12027_v14 = vmax.f32 %v11963_v49, 0.0  ;;  %v12032_v40 = vmax.f32 %v11968_v4, 0.0  ;;  %v11971_v47 = vadd.f32 %v16241_v36, %v11811_v61 }
 0x917   :  { %v13650_v11 = vpack.c.bf16 %v12025_v55, %v12024_v48  ;;  %v12034_v2 = vmax.f32 %v11970_v46, 0.0  ;;  %v12033_v1 = vmax.f32 %v11969_v62, 0.0 }
 0x918   :  { %v13651_v20 = vpack.c.bf16 %v12027_v14, %v12026_v6  ;;  %v12035_v57 = vmax.f32 %v11971_v47, 0.0 }
 0x919   :  { %12270 = vst [vmem:[%s16331_s8 + $0x50] sm:$0xff] %v13650_v11  ;;  %v13654_v45 = vpack.c.bf16 %v12033_v1, %v12032_v40  ;;  %v11669_v16 = vpop.f32.mrb[128].mxu0 }
 0x91a   :  { %12271 = vst [vmem:[%s16331_s8 + $0x58] sm:$0xff] %v13651_v20  ;;  %v13655_v5 = vpack.c.bf16 %v12035_v57, %v12034_v2  ;;  %v11976_v0 = vadd.f32 %v16232_v10, %v11669_v16  ;;  %v11815_v32 = vpop.f32.mrb[128].mxu1  ;;  %v11671_v12 = vpop.f32.mrb[129].mxu0 }
 0x91b   :  { %12274 = vst [vmem:[%s16331_s8 + $0x70] sm:$0xff] %v13654_v45  ;;  %v11978_v23 = vadd.f32 %v16235_v29, %v11815_v32  ;;  %v11977_v54 = vadd.f32 %v16238_v58, %v11671_v12  ;;  %v11817_v35 = vpop.f32.mrb[129].mxu1  ;;  %v11673_v39 = vpop.f32.mrb[130].mxu0 }
 0x91c   :  { %12275 = vst [vmem:[%s16331_s8 + $0x78] sm:$0xff] %v13655_v5  ;;  %v12040_v38 = vmax.f32 %v11976_v0, 0.0  ;;  %v11979_v37 = vadd.f32 %v16241_v36, %v11817_v35  ;;  %v11984_v41 = vadd.f32 %v16232_v10, %v11673_v39  ;;  %v11819_v19 = vpop.f32.mrb[130].mxu1  ;;  %v11675_v31 = vpop.f32.mrb[131].mxu0 }
 0x91d   :  { %v12042_v63 = vmax.f32 %v11978_v23, 0.0  ;;  %v12041_v50 = vmax.f32 %v11977_v54, 0.0  ;;  %v11986_v17 = vadd.f32 %v16235_v29, %v11819_v19  ;;  %v11985_v53 = vadd.f32 %v16238_v58, %v11675_v31  ;;  %v11821_v30 = vpop.f32.mrb[131].mxu1 }
 0x91e   :  { %v12043_v51 = vmax.f32 %v11979_v37, 0.0  ;;  %v12048_v27 = vmax.f32 %v11984_v41, 0.0  ;;  %v11987_v56 = vadd.f32 %v16241_v36, %v11821_v30 }
 0x91f   :  { %v13658_v26 = vpack.c.bf16 %v12041_v50, %v12040_v38  ;;  %v12050_v15 = vmax.f32 %v11986_v17, 0.0  ;;  %v12049_v3 = vmax.f32 %v11985_v53, 0.0 }
 0x920   :  { %v13659_v34 = vpack.c.bf16 %v12043_v51, %v12042_v63  ;;  %v12051_v18 = vmax.f32 %v11987_v56, 0.0 }
 0x921   :  { %12278 = vst [vmem:[%s16331_s8 + $0x90] sm:$0xff] %v13658_v26  ;;  %v13662_v60 = vpack.c.bf16 %v12049_v3, %v12048_v27  ;;  %v11679_v59 = vpop.f32.mrb[132].mxu0 }
 0x922   :  { %12279 = vst [vmem:[%s16331_s8 + $0x98] sm:$0xff] %v13659_v34  ;;  %v13663_v33 = vpack.c.bf16 %v12051_v18, %v12050_v15  ;;  %v11992_v22 = vadd.f32 %v16232_v10, %v11679_v59  ;;  %v11825_v44 = vpop.f32.mrb[132].mxu1  ;;  %v11681_v24 = vpop.f32.mrb[133].mxu0 }
 0x923   :  { %12282 = vst [vmem:[%s16331_s8 + $0xb0] sm:$0xff] %v13662_v60  ;;  %v11994_v28 = vadd.f32 %v16235_v29, %v11825_v44  ;;  %v11993_v9 = vadd.f32 %v16238_v58, %v11681_v24  ;;  %v11827_v13 = vpop.f32.mrb[133].mxu1  ;;  %v11683_v8 = vpop.f32.mrb[134].mxu0 }
 0x924   :  { %12283 = vst [vmem:[%s16331_s8 + $0xb8] sm:$0xff] %v13663_v33  ;;  %v12056_v52 = vmax.f32 %v11992_v22, 0.0  ;;  %v11995_v21 = vadd.f32 %v16241_v36, %v11827_v13  ;;  %v12000_v43 = vadd.f32 %v16232_v10, %v11683_v8  ;;  %v11829_v7 = vpop.f32.mrb[134].mxu1  ;;  %v11685_v48 = vpop.f32.mrb[135].mxu0 }
 0x925   :  { %v12058_v49 = vmax.f32 %v11994_v28, 0.0  ;;  %v12057_v4 = vmax.f32 %v11993_v9, 0.0  ;;  %v12002_v25 = vadd.f32 %v16235_v29, %v11829_v7  ;;  %v12001_v42 = vadd.f32 %v16238_v58, %v11685_v48  ;;  %v11831_v6 = vpop.f32.mrb[135].mxu1 }
 0x926   :  { %v12059_v55 = vmax.f32 %v11995_v21, 0.0  ;;  %v12064_v46 = vmax.f32 %v12000_v43, 0.0  ;;  %v12003_v62 = vadd.f32 %v16241_v36, %v11831_v6 }
 0x927   :  { %v13666_v61 = vpack.c.bf16 %v12057_v4, %v12056_v52  ;;  %v12066_v14 = vmax.f32 %v12002_v25, 0.0  ;;  %v12065_v40 = vmax.f32 %v12001_v42, 0.0 }
 0x928   :  { %v13667_v47 = vpack.c.bf16 %v12059_v55, %v12058_v49  ;;  %v12067_v11 = vmax.f32 %v12003_v62, 0.0 }
 0x929   :  { %12286 = vst [vmem:[%s16331_s8 + $0xd0] sm:$0xff] %v13666_v61  ;;  %v13670_v10 = vpack.c.bf16 %v12065_v40, %v12064_v46 }
 0x92a   :  { %12287 = vst [vmem:[%s16331_s8 + $0xd8] sm:$0xff] %v13667_v47  ;;  %v13671_v29 = vpack.c.bf16 %v12067_v11, %v12066_v14 }
 0x92b   :  { %12290 = vst [vmem:[%s16331_s8 + $0xf0] sm:$0xff] %v13670_v10 }
 0x92c   :  { %12291 = vst [vmem:[%s16331_s8 + $0xf8] sm:$0xff] %v13671_v29 }
 0x92d   :  { %12296 = vsyncpa [#allocation3], 1 }
 0x92e   :  { %12297 = vsyncpa [#allocation5], 1 }
 0x92f   :  { %12298 = vsyncpa [#allocation8], 1 }
 0x930   :  { %12299 = vsyncpa [#allocation11], 1 }

</bundles_post_ra>
